<compile_context>
chip_gen: v6e
topology: v6e:2x2x1
jax: 0.10.0
libtpu: 0.0.40
codegen_flags: <defaults>
</compile_context>

<pallas_src>
import jax
import jax.numpy as jnp
from jax.experimental import pallas as pl
from jax.experimental.pallas import tpu as pltpu

# ---------------- config (mirrors the PyTorch module) ----------------
D = 100                  # BiDAF hidden size
HP = 128                 # lane-aligned padded hidden size used inside LSTM kernels
GLOVE_DIM = 100          # glove.dim
MAX_WORD_LENGTH = 40
CNN_K = 5
CHAR_EMB = 8
CHAR_VOCAB = 1311
WORD_VOCAB = 50          # synthetic GloVe vocab (+1 appended zero row)
CNN_GROUP = 8            # words per char-CNN grid step


# =====================================================================
# Pallas kernels
# =====================================================================
def char_cnn_pallas(feat2d, w_flat, b, n_words, P):
    """feat2d: (n_words*P, K*C) im2col rows; w_flat: (K*C, O); b: (1, O).
    relu(conv1d) + max-pool over all P positions per word -> (n_words, O)."""
    KC = feat2d.shape[1]
    O = w_flat.shape[1]
    WB = CNN_GROUP
    Nw = ((n_words + WB - 1) // WB) * WB
    if Nw != n_words:
        feat2d = jnp.pad(feat2d, ((0, (Nw - n_words) * P), (0, 0)))

    def kernel(x_ref, w_ref, b_ref, o_ref):
        # one GEMM covering WB words worth of conv windows
        y = jnp.dot(x_ref[...], w_ref[...],
                    preferred_element_type=jnp.float32) + b_ref[...]
        y = jnp.maximum(y, 0.0)                                        # relu
        pooled = [jnp.max(y[w * P:(w + 1) * P, :], axis=0, keepdims=True)
                  for w in range(WB)]                                  # maxpool
        o_ref[...] = jnp.concatenate(pooled, axis=0)                   # (WB, O)

    out = pl.pallas_call(
        kernel,
        out_shape=jax.ShapeDtypeStruct((Nw, O), jnp.float32),
        grid=(Nw // WB,),
        in_specs=[
            pl.BlockSpec((WB * P, KC), lambda i: (i, 0)),
            pl.BlockSpec((KC, O), lambda i: (0, 0)),
            pl.BlockSpec((1, O), lambda i: (0, 0)),
        ],
        out_specs=pl.BlockSpec((WB, O), lambda i: (i, 0)),
        compiler_params=pltpu.CompilerParams(dimension_semantics=("parallel",)),
    )(feat2d, w_flat, b)
    return out[:n_words]


def highway_pallas(x, w1, b1, w2, b2, wg, bg):
    """x: (N, F). p * transform(x) + (1 - p) * x, row-tiled grid."""
    N, F = x.shape
    TM = 256 if N >= 256 else max(8, ((N + 7) // 8) * 8)
    Np = ((N + TM - 1) // TM) * TM
    xp = x if Np == N else jnp.pad(x, ((0, Np - N), (0, 0)))

    def kernel(x_ref, w1_ref, b1_ref, w2_ref, b2_ref, wg_ref, bg_ref, o_ref):
        xv = x_ref[...]
        t = jnp.maximum(
            jnp.dot(xv, w1_ref[...], preferred_element_type=jnp.float32) + b1_ref[...], 0.0)
        t = jnp.maximum(
            jnp.dot(t, w2_ref[...], preferred_element_type=jnp.float32) + b2_ref[...], 0.0)
        p = jax.nn.sigmoid(
            jnp.dot(xv, wg_ref[...], preferred_element_type=jnp.float32) + bg_ref[...])
        o_ref[...] = p * t + (1.0 - p) * xv

    out = pl.pallas_call(
        kernel,
        out_shape=jax.ShapeDtypeStruct((Np, F), jnp.float32),
        grid=(Np // TM,),
        in_specs=[
            pl.BlockSpec((TM, F), lambda i: (i, 0)),
            pl.BlockSpec((F, F), lambda i: (0, 0)), pl.BlockSpec((1, F), lambda i: (0, 0)),
            pl.BlockSpec((F, F), lambda i: (0, 0)), pl.BlockSpec((1, F), lambda i: (0, 0)),
            pl.BlockSpec((F, F), lambda i: (0, 0)), pl.BlockSpec((1, F), lambda i: (0, 0)),
        ],
        out_specs=pl.BlockSpec((TM, F), lambda i: (i, 0)),
        compiler_params=pltpu.CompilerParams(dimension_semantics=("parallel",)),
    )(xp, w1, b1, w2, b2, wg, bg)
    return out if Np == N else out[:N]


def lstm_input_proj_pallas(x2d, wih, b):
    """Hoisted LSTM input projection for BOTH directions.
    x2d: (N, In), wih: (2, In, 4*HP), b: (2, 1, 4*HP) -> (2, N, 4*HP)."""
    N, In = x2d.shape
    G = wih.shape[2]
    TM = 256 if N >= 256 else max(8, ((N + 7) // 8) * 8)
    Np = ((N + TM - 1) // TM) * TM
    xp = x2d if Np == N else jnp.pad(x2d, ((0, Np - N), (0, 0)))

    def kernel(x_ref, w_ref, b_ref, o_ref):
        o_ref[...] = jnp.dot(x_ref[...], w_ref[...],
                             preferred_element_type=jnp.float32) + b_ref[...]

    out = pl.pallas_call(
        kernel,
        out_shape=jax.ShapeDtypeStruct((2, Np, G), jnp.float32),
        grid=(2, Np // TM),
        in_specs=[
            pl.BlockSpec((TM, In), lambda d, i: (i, 0)),
            pl.BlockSpec((None, In, G), lambda d, i: (d, 0, 0)),
            pl.BlockSpec((None, 1, G), lambda d, i: (d, 0, 0)),
        ],
        out_specs=pl.BlockSpec((None, TM, G), lambda d, i: (d, i, 0)),
        compiler_params=pltpu.CompilerParams(
            dimension_semantics=("parallel", "parallel")),
    )(xp, wih, b)
    return out if Np == N else out[:, :N]


def lstm_recurrent_pallas(xg, whh, T_, B_, Hp):
    """Bidirectional recurrence on pre-projected gates.
    xg: (2, T, B, 4*Hp) = x@W_ih + b; whh: (2, Hp, 4*Hp) -> (2, T, B, Hp).
    Direction 1 walks time in reverse inside the kernel (no data reversal).
    Gate order matches PyTorch: i, f, g, o."""
    G = 4 * Hp

    def kernel(xg_ref, whh_ref, o_ref, h_scr, c_scr):
        d = pl.program_id(0)
        h_scr[...] = jnp.zeros_like(h_scr)
        c_scr[...] = jnp.zeros_like(c_scr)

        def step(t, carry):
            t_idx = jnp.where(d == 0, t, T_ - 1 - t)
            g = xg_ref[t_idx] + jnp.dot(h_scr[...], whh_ref[...],
                                        preferred_element_type=jnp.float32)
            i_g = jax.nn.sigmoid(g[:, 0:Hp])
            f_g = jax.nn.sigmoid(g[:, Hp:2 * Hp])
            g_g = jnp.tanh(g[:, 2 * Hp:3 * Hp])
            o_g = jax.nn.sigmoid(g[:, 3 * Hp:4 * Hp])
            c_new = f_g * c_scr[...] + i_g * g_g
            h_new = o_g * jnp.tanh(c_new)
            c_scr[...] = c_new
            h_scr[...] = h_new
            o_ref[t_idx] = h_new
            return carry

        jax.lax.fori_loop(0, T_, step, 0, unroll=True)

    return pl.pallas_call(
        kernel,
        out_shape=jax.ShapeDtypeStruct((2, T_, B_, Hp), jnp.float32),
        grid=(2,),
        in_specs=[
            pl.BlockSpec((None, T_, B_, G), lambda d: (d, 0, 0, 0)),
            pl.BlockSpec((None, Hp, G), lambda d: (d, 0, 0)),
        ],
        out_specs=pl.BlockSpec((None, T_, B_, Hp), lambda d: (d, 0, 0, 0)),
        scratch_shapes=[pltpu.VMEM((B_, Hp), jnp.float32),
                        pltpu.VMEM((B_, Hp), jnp.float32)],
        compiler_params=pltpu.CompilerParams(dimension_semantics=("parallel",)),
    )(xg, whh)


def bilstm(x_btf, lstm_params):
    """x_btf: (B, T, In) -> (B, T, 2D), PyTorch-style bidirectional concat."""
    wih, whh, b = lstm_params                      # (2,In,4HP), (2,HP,4HP), (2,1,4HP)
    B, T, In = x_btf.shape
    G = wih.shape[2]
    x2d = jnp.transpose(x_btf, (1, 0, 2)).reshape(T * B, In)
    xg = lstm_input_proj_pallas(x2d, wih, b).reshape(2, T, B, G)
    h = lstm_recurrent_pallas(xg, whh, T, B, HP)   # (2, T, B, HP)
    out = jnp.concatenate([h[0, :, :, :D], h[1, :, :, :D]], axis=-1)   # (T, B, 2D)
    return jnp.transpose(out, (1, 0, 2))


def attention_pallas(Hc, Uq, w1, w2, w3, bias):
    """Attention-flow layer, whole batch in one kernel invocation.
    Hc: (B, T, 2D), Uq: (B, J, 2D); alpha([h;u;h*u]) decomposed as
    S = (H.w1) + (U.w2) + (H*w3)@U^T + b.
    Returns G: (B, T, 8D) and q2c: (B, 1, T) (softmax over T, lane-dense)."""
    B, T, F2 = Hc.shape
    J = Uq.shape[1]

    def kernel(h_ref, u_ref, w1_ref, w2_ref, w3_ref, b_ref, g_ref, q2c_ref):
        H = h_ref[...]                                                 # (B, T, 2D)
        U = u_ref[...]                                                 # (B, J, 2D)
        w1_v, w2_v, w3_v = w1_ref[...], w2_ref[...], w3_ref[...]       # (1, 2D) each

        s1 = jnp.sum(H * w1_v, axis=-1, keepdims=True)                 # (B, T, 1)  VPU
        s2 = jnp.sum(U * w2_v, axis=-1)                                # (B, J)     VPU
        s3 = jnp.einsum('btd,bjd->btj', H * w3_v, U,
                        preferred_element_type=jnp.float32)            # (B, T, J)  MXU
        S = s3 + s1 + s2[:, None, :] + b_ref[...]                      # (B, T, J)

        # context-to-query attention: softmax over J
        m = jnp.max(S, axis=-1, keepdims=True)                         # (B, T, 1)
        e = jnp.exp(S - m)
        c2q = e / jnp.sum(e, axis=-1, keepdims=True)
        U_til = jnp.einsum('btj,bjd->btd', c2q, U,
                           preferred_element_type=jnp.float32)         # (B, T, 2D)

        # query-to-context attention: softmax over T of max_j S
        row_max = m[..., 0]                                            # (B, T)
        mm = jnp.max(row_max, axis=-1, keepdims=True)
        ee = jnp.exp(row_max - mm)
        q2c = ee / jnp.sum(ee, axis=-1, keepdims=True)                 # (B, T)
        H_til = jnp.sum(q2c[:, :, None] * H, axis=1)                   # (B, 2D)    VPU

        G = jnp.concatenate([H, U_til, H * U_til, H * H_til[:, None, :]], axis=-1)
        g_ref[...] = G
        q2c_ref[...] = q2c[:, None, :]                                 # (B, 1, T)

    return pl.pallas_call(
        kernel,
        out_shape=(jax.ShapeDtypeStruct((B, T, 4 * F2), jnp.float32),
                   jax.ShapeDtypeStruct((B, 1, T), jnp.float32)),
    )(Hc, Uq, w1, w2, w3, bias)


def dense_logsoftmax_split_pallas(G, M, wg, wm, b):
    """Output-layer dense + log-softmax WITHOUT materialising cat(G, M) in HBM.
    G: (B, T, 8D), M: (B, T, 2D); wg: (1, 8D), wm: (1, 2D); b: (1, 1).
    logits = sum(G*wg) + sum(M*wm) + b  (two VPU reductions, no N=1 matmul),
    then log-softmax over T.  Output (B, T)."""
    B, T, _ = G.shape

    def kernel(g_ref, m_ref, wg_ref, wm_ref, b_ref, o_ref):
        logits = (jnp.sum(g_ref[...] * wg_ref[...], axis=-1)
                  + jnp.sum(m_ref[...] * wm_ref[...], axis=-1)
                  + b_ref[...])                                        # (B, T)
        mx = jnp.max(logits, axis=-1, keepdims=True)
        lse = jnp.log(jnp.sum(jnp.exp(logits - mx), axis=-1, keepdims=True)) + mx
        o_ref[...] = logits - lse

    return pl.pallas_call(
        kernel, out_shape=jax.ShapeDtypeStruct((B, T), jnp.float32)
    )(G, M, wg, wm, b)


# =====================================================================
# Parameter initialization (deterministic, synthetic)
# =====================================================================
def _init(key, shape, scale=0.08):
    return jax.random.uniform(key, shape, jnp.float32, -1.0, 1.0) * scale


def _fuse_pad_lstm(key, in_dim, hid, hid_pad):
    """Fuse i/f/g/o gates into one (In, 4*hid_pad) / (hid_pad, 4*hid_pad) matrix,
    zero-padding hid -> hid_pad (padded lanes stay exactly zero at runtime)."""
    k1, k2, k3 = jax.random.split(key, 3)
    wih = _init(k1, (4, in_dim, hid))     # per-gate W_ih
    whh = _init(k2, (4, hid, hid))        # per-gate W_hh
    b = _init(k3, (4, 1, hid))            # combined bias per gate
    wih_f = jnp.zeros((in_dim, 4 * hid_pad), jnp.float32)
    whh_f = jnp.zeros((hid_pad, 4 * hid_pad), jnp.float32)
    b_f = jnp.zeros((1, 4 * hid_pad), jnp.float32)
    for g in range(4):
        wih_f = wih_f.at[:, g * hid_pad:g * hid_pad + hid].set(wih[g])
        whh_f = whh_f.at[:hid, g * hid_pad:g * hid_pad + hid].set(whh[g])
        b_f = b_f.at[:, g * hid_pad:g * hid_pad + hid].set(b[g])
    return wih_f, whh_f, b_f


def lstm_bidir_params(key, in_dim, hid=D, hid_pad=HP):
    kf, kb = jax.random.split(key)
    fwd = _fuse_pad_lstm(kf, in_dim, hid, hid_pad)
    bwd = _fuse_pad_lstm(kb, in_dim, hid, hid_pad)
    return tuple(jnp.stack([a, c]) for a, c in zip(fwd, bwd))


def init_params(key):
    ks = jax.random.split(key, 24)
    F = GLOVE_DIM + D                       # 200
    p = {}
    # char embedding (padding_idx=0 -> zero row)
    p['char_table'] = _init(ks[0], (CHAR_VOCAB, CHAR_EMB)).at[0].set(0.0)
    conv_w = _init(ks[1], (D, CHAR_EMB, CNN_K))                 # (out, in, k) like PyTorch
    p['conv_w_flat'] = jnp.transpose(conv_w, (2, 1, 0)).reshape(CNN_K * CHAR_EMB, D)
    p['conv_b'] = _init(ks[2], (1, D))
    # word embedding (GloVe vectors + appended zero row)
    p['word_table'] = jnp.concatenate(
        [_init(ks[3], (WORD_VOCAB, GLOVE_DIM)), jnp.zeros((1, GLOVE_DIM), jnp.float32)], axis=0)
    # highway network
    p['hw_w1'], p['hw_b1'] = _init(ks[4], (F, F)), _init(ks[5], (1, F))
    p['hw_w2'], p['hw_b2'] = _init(ks[6], (F, F)), _init(ks[7], (1, F))
    p['hw_wg'], p['hw_bg'] = _init(ks[8], (F, F)), _init(ks[9], (1, F))
    # contextual embedding biLSTM (in 200 -> H 100, bidirectional, shared)
    p['cont'] = lstm_bidir_params(ks[10], F)
    # attention flow alpha: Linear(6D, 1) split into three 2D chunks
    alpha_w = _init(ks[11], (6 * D,))
    p['att_w1'] = alpha_w[:2 * D].reshape(1, 2 * D)             # acts on H
    p['att_w2'] = alpha_w[2 * D:4 * D].reshape(1, 2 * D)        # acts on U
    p['att_w3'] = alpha_w[4 * D:].reshape(1, 2 * D)             # acts on H*U
    p['att_b'] = _init(ks[12], (1, 1))
    # modelling layer: 2-layer bidirectional LSTM (8D -> D, then 2D -> D)
    p['mod0'] = lstm_bidir_params(ks[13], 8 * D)
    p['mod1'] = lstm_bidir_params(ks[14], 2 * D)
    # output layer: Linear(10D, 1) weights stored split as (8D part, 2D part)
    d1_w = _init(ks[15], (1, 10 * D))
    p['d1_wg'], p['d1_wm'] = d1_w[:, :8 * D], d1_w[:, 8 * D:]
    p['d1_b'] = _init(ks[16], (1, 1))
    d2_w = _init(ks[17], (1, 10 * D))
    p['d2_wg'], p['d2_wm'] = d2_w[:, :8 * D], d2_w[:, 8 * D:]
    p['d2_b'] = _init(ks[18], (1, 1))
    p['out_lstm'] = lstm_bidir_params(ks[19], 2 * D)
    return p


# =====================================================================
# BiDAF forward
# =====================================================================
def char_embedding(params, chars):
    """chars: (B, W, MAX_WORD_LENGTH) int32 -> (B, W, D)"""
    B, Wn, L = chars.shape
    flat = chars.reshape(-1, L)                                  # (N, L)
    emb = params['char_table'][flat]                             # (N, L, C)  gather (glue)
    P = L - CNN_K + 1
    idx = jnp.arange(P)[:, None] + jnp.arange(CNN_K)[None, :]    # (P, K)
    windows = emb[:, idx, :]                                     # (N, P, K, C)
    feat2d = windows.reshape(B * Wn * P, CNN_K * CHAR_EMB)       # im2col rows
    out = char_cnn_pallas(feat2d, params['conv_w_flat'], params['conv_b'], B * Wn, P)
    return out.reshape(B, Wn, D)


def bidaf_forward(params, context_char, context_word, query_char, query_word):
    F = GLOVE_DIM + D
    B, T = context_word.shape

    # ---- embeddings (context) ----
    c_char = char_embedding(params, context_char)                # (B, T, D)
    c_word = params['word_table'][context_word]                  # (B, T, GLOVE_DIM)
    c_emb = jnp.concatenate([c_char, c_word], axis=-1)           # (B, T, 200)
    c_emb = highway_pallas(c_emb.reshape(B * T, F),
                           params['hw_w1'], params['hw_b1'],
                           params['hw_w2'], params['hw_b2'],
                           params['hw_wg'], params['hw_bg']).reshape(B, T, F)
    Hc = bilstm(c_emb, params['cont'])                           # (B, T, 2D)

    # ---- embeddings (query) — no highway, matching the reference forward ----
    q_char = char_embedding(params, query_char)                  # (B, J, D)
    q_word = params['word_table'][query_word]                    # (B, J, GLOVE_DIM)
    q_emb = jnp.concatenate([q_char, q_word], axis=-1)           # (B, J, 200)
    Uq = bilstm(q_emb, params['cont'])                           # (B, J, 2D)

    # ---- attention flow ----
    G, q2c_att = attention_pallas(Hc, Uq, params['att_w1'], params['att_w2'],
                                  params['att_w3'], params['att_b'])

    # ---- modelling layer (2-layer biLSTM) ----
    m0 = bilstm(G, params['mod0'])                               # (B, T, 2D)
    M = bilstm(m0, params['mod1'])                               # (B, T, 2D)

    # ---- output layer (GM concat folded into the dense kernel) ----
    start = dense_logsoftmax_split_pallas(G, M, params['d1_wg'],
                                          params['d1_wm'], params['d1_b'])
    M2 = bilstm(M, params['out_lstm'])                           # (B, T, 2D)
    end = dense_logsoftmax_split_pallas(G, M2, params['d2_wg'],
                                        params['d2_wm'], params['d2_b'])

    return (start, end), q2c_att


# =====================================================================
if __name__ == "__main__":
    key = jax.random.PRNGKey(0)
    pkey, k1, k2, k3, k4 = jax.random.split(key, 5)
    params = init_params(pkey)

    B, T, J = 2, 8, 4
    context_char = jax.random.randint(k1, (B, T, MAX_WORD_LENGTH), 0, CHAR_VOCAB, jnp.int32)
    context_word = jax.random.randint(k2, (B, T), 0, WORD_VOCAB + 1, jnp.int32)
    query_char = jax.random.randint(k3, (B, J, MAX_WORD_LENGTH), 0, CHAR_VOCAB, jnp.int32)
    query_word = jax.random.randint(k4, (B, J), 0, WORD_VOCAB + 1, jnp.int32)

    fwd = jax.jit(bidaf_forward)
    (start, end), q2c = fwd(params, context_char, context_word, query_char, query_word)
    jax.block_until_ready((start, end, q2c))

    assert start.shape == (B, T) and end.shape == (B, T) and q2c.shape == (B, 1, T)
    assert bool(jnp.all(jnp.isfinite(start))) and bool(jnp.all(jnp.isfinite(end)))
    print("KERNEL_OK")
</pallas_src>

<mosaic_0001>
module attributes {stable_mosaic.version = 11 : i64} {
  func.func @kernel(%arg0: i32, %arg1: memref<288x40xf32, #tpu.memory_space<vmem>>, %arg2: memref<40x100xf32, #tpu.memory_space<vmem>>, %arg3: memref<1x100xf32, #tpu.memory_space<vmem>>, %arg4: memref<8x100xf32, #tpu.memory_space<vmem>>) attributes {dimension_semantics = [#tpu.dimension_semantics<parallel>], iteration_bounds = array<i64: 1>, scalar_prefetch = 0 : i64, scratch_operands = 0 : i64, tpu.core_type = #tpu.core_type<tc>, window_params = [{transform_indices = @transform_0, window_bounds = array<i64: 288, 40>}, {pipeline_mode = #tpu.pipeline_mode<synchronous>, transform_indices = @transform_1, window_bounds = array<i64: 40, 100>}, {pipeline_mode = #tpu.pipeline_mode<synchronous>, transform_indices = @transform_2, window_bounds = array<i64: 1, 100>}, {transform_indices = @transform_3, window_bounds = array<i64: 8, 100>}]} {
    %c0 = arith.constant 0 : index
    %c0_0 = arith.constant 0 : index
    %0 = vector.load %arg1[%c0, %c0_0] : memref<288x40xf32, #tpu.memory_space<vmem>>, vector<288x40xf32>
    %c0_1 = arith.constant 0 : index
    %c0_2 = arith.constant 0 : index
    %1 = vector.load %arg2[%c0_1, %c0_2] : memref<40x100xf32, #tpu.memory_space<vmem>>, vector<40x100xf32>
    %cst = arith.constant dense<0.000000e+00> : vector<288x100xf32>
    %2 = tpu.matmul %0, %1, %cst {dimension_numbers = #tpu.dot_dimension_numbers<[1], [0], [0], [1], [0, 0, 1, 1], [], []>} : vector<288x40xf32>, vector<40x100xf32>, vector<288x100xf32> -> vector<288x100xf32>
    %c0_3 = arith.constant 0 : index
    %c0_4 = arith.constant 0 : index
    %3 = vector.load %arg3[%c0_3, %c0_4] : memref<1x100xf32, #tpu.memory_space<vmem>>, vector<1x100xf32>
    %4 = vector.broadcast %3 : vector<1x100xf32> to vector<288x100xf32>
    %5 = arith.addf %2, %4 : vector<288x100xf32>
    %cst_5 = arith.constant 0.000000e+00 : f32
    %6 = vector.broadcast %cst_5 : f32 to vector<288x100xf32>
    %7 = arith.maximumf %5, %6 : vector<288x100xf32>
    %8 = vector.extract_strided_slice %7 {offsets = [0, 0], sizes = [36, 100], strides = [1, 1]} : vector<288x100xf32> to vector<36x100xf32>
    %cst_6 = arith.constant dense<0xFF800000> : vector<100xf32>
    %9 = vector.multi_reduction <maximumf>, %8, %cst_6 [0] : vector<36x100xf32> to vector<100xf32>
    %10 = vector.shape_cast %9 : vector<100xf32> to vector<1x100xf32>
    %11 = vector.extract_strided_slice %7 {offsets = [36, 0], sizes = [36, 100], strides = [1, 1]} : vector<288x100xf32> to vector<36x100xf32>
    %cst_7 = arith.constant dense<0xFF800000> : vector<100xf32>
    %12 = vector.multi_reduction <maximumf>, %11, %cst_7 [0] : vector<36x100xf32> to vector<100xf32>
    %13 = vector.shape_cast %12 : vector<100xf32> to vector<1x100xf32>
    %14 = vector.extract_strided_slice %7 {offsets = [72, 0], sizes = [36, 100], strides = [1, 1]} : vector<288x100xf32> to vector<36x100xf32>
    %cst_8 = arith.constant dense<0xFF800000> : vector<100xf32>
    %15 = vector.multi_reduction <maximumf>, %14, %cst_8 [0] : vector<36x100xf32> to vector<100xf32>
    %16 = vector.shape_cast %15 : vector<100xf32> to vector<1x100xf32>
    %17 = vector.extract_strided_slice %7 {offsets = [108, 0], sizes = [36, 100], strides = [1, 1]} : vector<288x100xf32> to vector<36x100xf32>
    %cst_9 = arith.constant dense<0xFF800000> : vector<100xf32>
    %18 = vector.multi_reduction <maximumf>, %17, %cst_9 [0] : vector<36x100xf32> to vector<100xf32>
    %19 = vector.shape_cast %18 : vector<100xf32> to vector<1x100xf32>
    %20 = vector.extract_strided_slice %7 {offsets = [144, 0], sizes = [36, 100], strides = [1, 1]} : vector<288x100xf32> to vector<36x100xf32>
    %cst_10 = arith.constant dense<0xFF800000> : vector<100xf32>
    %21 = vector.multi_reduction <maximumf>, %20, %cst_10 [0] : vector<36x100xf32> to vector<100xf32>
    %22 = vector.shape_cast %21 : vector<100xf32> to vector<1x100xf32>
    %23 = vector.extract_strided_slice %7 {offsets = [180, 0], sizes = [36, 100], strides = [1, 1]} : vector<288x100xf32> to vector<36x100xf32>
    %cst_11 = arith.constant dense<0xFF800000> : vector<100xf32>
    %24 = vector.multi_reduction <maximumf>, %23, %cst_11 [0] : vector<36x100xf32> to vector<100xf32>
    %25 = vector.shape_cast %24 : vector<100xf32> to vector<1x100xf32>
    %26 = vector.extract_strided_slice %7 {offsets = [216, 0], sizes = [36, 100], strides = [1, 1]} : vector<288x100xf32> to vector<36x100xf32>
    %cst_12 = arith.constant dense<0xFF800000> : vector<100xf32>
    %27 = vector.multi_reduction <maximumf>, %26, %cst_12 [0] : vector<36x100xf32> to vector<100xf32>
    %28 = vector.shape_cast %27 : vector<100xf32> to vector<1x100xf32>
    %29 = vector.extract_strided_slice %7 {offsets = [252, 0], sizes = [36, 100], strides = [1, 1]} : vector<288x100xf32> to vector<36x100xf32>
    %cst_13 = arith.constant dense<0xFF800000> : vector<100xf32>
    %30 = vector.multi_reduction <maximumf>, %29, %cst_13 [0] : vector<36x100xf32> to vector<100xf32>
    %31 = vector.shape_cast %30 : vector<100xf32> to vector<1x100xf32>
    %32 = tpu.concatenate %10, %13, %16, %19, %22, %25, %28, %31 in 0 : vector<1x100xf32>, vector<1x100xf32>, vector<1x100xf32>, vector<1x100xf32>, vector<1x100xf32>, vector<1x100xf32>, vector<1x100xf32>, vector<1x100xf32> -> vector<8x100xf32>
    %c0_14 = arith.constant 0 : index
    %c0_15 = arith.constant 0 : index
    %33 = vector.load %arg4[%c0_14, %c0_15] : memref<8x100xf32, #tpu.memory_space<vmem>>, vector<8x100xf32>
    tpu.vector_store %arg4[%c0_14, %c0_15], %32 {strides = array<i32>} : memref<8x100xf32, #tpu.memory_space<vmem>>, vector<8x100xf32>,
    return
  }
  func.func @transform_0(%arg0: i32) -> (i32, i32) {
    %c0_i32 = arith.constant 0 : i32
    %c0_i32_0 = arith.constant 0 : i32
    return %arg0, %c0_i32 : i32, i32
  }
  func.func @transform_1(%arg0: i32) -> (i32, i32) {
    %c0_i32 = arith.constant 0 : i32
    %c0_i32_0 = arith.constant 0 : i32
    %c0_i32_1 = arith.constant 0 : i32
    return %c0_i32, %c0_i32_0 : i32, i32
  }
  func.func @transform_2(%arg0: i32) -> (i32, i32) {
    %c0_i32 = arith.constant 0 : i32
    %c0_i32_0 = arith.constant 0 : i32
    %c0_i32_1 = arith.constant 0 : i32
    return %c0_i32, %c0_i32_0 : i32, i32
  }
  func.func @transform_3(%arg0: i32) -> (i32, i32) {
    %c0_i32 = arith.constant 0 : i32
    %c0_i32_0 = arith.constant 0 : i32
    return %arg0, %c0_i32 : i32, i32
  }
}

module attributes {stable_mosaic.version = 11 : i64} {
  func.func @kernel(%arg0: i32, %arg1: i32, %arg2: memref<8x200xf32, #tpu.memory_space<vmem>>, %arg3: memref<1x200x512xf32, #tpu.memory_space<vmem>>, %arg4: memref<1x1x512xf32, #tpu.memory_space<vmem>>, %arg5: memref<1x8x512xf32, #tpu.memory_space<vmem>>) attributes {dimension_semantics = [#tpu.dimension_semantics<parallel>, #tpu.dimension_semantics<parallel>], iteration_bounds = array<i64: 2, 1>, scalar_prefetch = 0 : i64, scratch_operands = 0 : i64, tpu.core_type = #tpu.core_type<tc>, window_params = [{transform_indices = @transform_0, window_bounds = array<i64: 8, 200>}, {transform_indices = @transform_1, window_bounds = array<i64: 1, 200, 512>}, {transform_indices = @transform_2, window_bounds = array<i64: 1, 1, 512>}, {transform_indices = @transform_3, window_bounds = array<i64: 1, 8, 512>}]} {
    %c0 = arith.constant 0 : index
    %c0_0 = arith.constant 0 : index
    %0 = vector.load %arg2[%c0, %c0_0] : memref<8x200xf32, #tpu.memory_space<vmem>>, vector<8x200xf32>
    %c0_1 = arith.constant 0 : index
    %c0_2 = arith.constant 0 : index
    %c0_3 = arith.constant 0 : index
    %1 = vector.load %arg3[%c0_1, %c0_2, %c0_3] : memref<1x200x512xf32, #tpu.memory_space<vmem>>, vector<1x200x512xf32>
    %2 = vector.shape_cast %1 : vector<1x200x512xf32> to vector<200x512xf32>
    %cst = arith.constant dense<0.000000e+00> : vector<8x512xf32>
    %3 = tpu.matmul %0, %2, %cst {dimension_numbers = #tpu.dot_dimension_numbers<[1], [0], [0], [1], [0, 0, 1, 1], [], []>} : vector<8x200xf32>, vector<200x512xf32>, vector<8x512xf32> -> vector<8x512xf32>
    %c0_4 = arith.constant 0 : index
    %c0_5 = arith.constant 0 : index
    %c0_6 = arith.constant 0 : index
    %4 = vector.load %arg4[%c0_4, %c0_5, %c0_6] : memref<1x1x512xf32, #tpu.memory_space<vmem>>, vector<1x1x512xf32>
    %5 = vector.shape_cast %4 : vector<1x1x512xf32> to vector<1x512xf32>
    %6 = vector.broadcast %5 : vector<1x512xf32> to vector<8x512xf32>
    %7 = arith.addf %3, %6 : vector<8x512xf32>
    %c0_7 = arith.constant 0 : index
    %c0_8 = arith.constant 0 : index
    %c0_9 = arith.constant 0 : index
    %8 = vector.load %arg5[%c0_7, %c0_8, %c0_9] : memref<1x8x512xf32, #tpu.memory_space<vmem>>, vector<1x8x512xf32>
    %9 = vector.shape_cast %8 : vector<1x8x512xf32> to vector<8x512xf32>
    %10 = vector.shape_cast %7 : vector<8x512xf32> to vector<1x8x512xf32>
    tpu.vector_store %arg5[%c0_7, %c0_8, %c0_9], %10 {strides = array<i32>} : memref<1x8x512xf32, #tpu.memory_space<vmem>>, vector<1x8x512xf32>,
    return
  }
  func.func @transform_0(%arg0: i32, %arg1: i32) -> (i32, i32) {
    %c0_i32 = arith.constant 0 : i32
    %c0_i32_0 = arith.constant 0 : i32
    return %arg1, %c0_i32 : i32, i32
  }
  func.func @transform_1(%arg0: i32, %arg1: i32) -> (i32, i32, i32) {
    %c0_i32 = arith.constant 0 : i32
    %c0_i32_0 = arith.constant 0 : i32
    %c0_i32_1 = arith.constant 0 : i32
    return %arg0, %c0_i32, %c0_i32_0 : i32, i32, i32
  }
  func.func @transform_2(%arg0: i32, %arg1: i32) -> (i32, i32, i32) {
    %c0_i32 = arith.constant 0 : i32
    %c0_i32_0 = arith.constant 0 : i32
    %c0_i32_1 = arith.constant 0 : i32
    return %arg0, %c0_i32, %c0_i32_0 : i32, i32, i32
  }
  func.func @transform_3(%arg0: i32, %arg1: i32) -> (i32, i32, i32) {
    %c0_i32 = arith.constant 0 : i32
    %c0_i32_0 = arith.constant 0 : i32
    return %arg0, %arg1, %c0_i32 : i32, i32, i32
  }
}

module attributes {stable_mosaic.version = 11 : i64} {
  func.func @kernel(%arg0: i32, %arg1: memref<1x4x2x512xf32, #tpu.memory_space<vmem>>, %arg2: memref<1x128x512xf32, #tpu.memory_space<vmem>>, %arg3: memref<1x4x2x128xf32, #tpu.memory_space<vmem>>, %arg4: memref<2x128xf32, #tpu.memory_space<vmem>>, %arg5: memref<2x128xf32, #tpu.memory_space<vmem>>) attributes {dimension_semantics = [#tpu.dimension_semantics<parallel>], iteration_bounds = array<i64: 2>, scalar_prefetch = 0 : i64, scratch_operands = 2 : i64, tpu.core_type = #tpu.core_type<tc>, window_params = [{transform_indices = @transform_0, window_bounds = array<i64: 1, 4, 2, 512>}, {transform_indices = @transform_1, window_bounds = array<i64: 1, 128, 512>}, {transform_indices = @transform_2, window_bounds = array<i64: 1, 4, 2, 128>}]} {
    %cst = arith.constant 0.000000e+00 : f32
    %0 = vector.broadcast %cst : f32 to vector<2x128xf32>
    %c0 = arith.constant 0 : index
    %c0_0 = arith.constant 0 : index
    %1 = vector.load %arg4[%c0, %c0_0] : memref<2x128xf32, #tpu.memory_space<vmem>>, vector<2x128xf32>
    tpu.vector_store %arg4[%c0, %c0_0], %0 {strides = array<i32>} : memref<2x128xf32, #tpu.memory_space<vmem>>, vector<2x128xf32>,
    %cst_1 = arith.constant 0.000000e+00 : f32
    %2 = vector.broadcast %cst_1 : f32 to vector<2x128xf32>
    %c0_2 = arith.constant 0 : index
    %c0_3 = arith.constant 0 : index
    %3 = vector.load %arg5[%c0_2, %c0_3] : memref<2x128xf32, #tpu.memory_space<vmem>>, vector<2x128xf32>
    tpu.vector_store %arg5[%c0_2, %c0_3], %2 {strides = array<i32>} : memref<2x128xf32, #tpu.memory_space<vmem>>, vector<2x128xf32>,
    %c0_i32 = arith.constant 0 : i32
    %c0_i32_4 = arith.constant 0 : i32
    %4 = arith.cmpi eq, %arg0, %c0_i32_4 : i32
    %c3_i32 = arith.constant 3 : i32
    %5 = arith.subi %c3_i32, %c0_i32 : i32
    %6 = arith.select %4, %c0_i32, %5 : i32
    %c0_5 = arith.constant 0 : index
    %7 = arith.index_cast %6 : i32 to index
    %c0_6 = arith.constant 0 : index
    %c0_7 = arith.constant 0 : index
    %8 = vector.load %arg1[%c0_5, %7, %c0_6, %c0_7] : memref<1x4x2x512xf32, #tpu.memory_space<vmem>>, vector<1x1x2x512xf32>
    %9 = vector.shape_cast %8 : vector<1x1x2x512xf32> to vector<2x512xf32>
    %c0_8 = arith.constant 0 : index
    %c0_9 = arith.constant 0 : index
    %10 = vector.load %arg4[%c0_8, %c0_9] : memref<2x128xf32, #tpu.memory_space<vmem>>, vector<2x128xf32>
    %c0_10 = arith.constant 0 : index
    %c0_11 = arith.constant 0 : index
    %c0_12 = arith.constant 0 : index
    %11 = vector.load %arg2[%c0_10, %c0_11, %c0_12] : memref<1x128x512xf32, #tpu.memory_space<vmem>>, vector<1x128x512xf32>
    %12 = vector.shape_cast %11 : vector<1x128x512xf32> to vector<128x512xf32>
    %cst_13 = arith.constant dense<0.000000e+00> : vector<2x512xf32>
    %13 = tpu.matmul %10, %12, %cst_13 {dimension_numbers = #tpu.dot_dimension_numbers<[1], [0], [0], [1], [0, 0, 1, 1], [], []>} : vector<2x128xf32>, vector<128x512xf32>, vector<2x512xf32> -> vector<2x512xf32>
    %14 = arith.addf %9, %13 : vector<2x512xf32>
    %15 = vector.extract_strided_slice %14 {offsets = [0, 0], sizes = [2, 128], strides = [1, 1]} : vector<2x512xf32> to vector<2x128xf32>
    %16 = arith.negf %15 : vector<2x128xf32>
    %17 = math.exp %16 : vector<2x128xf32>
    %cst_14 = arith.constant 1.000000e+00 : f32
    %18 = vector.broadcast %cst_14 : f32 to vector<2x128xf32>
    %19 = arith.addf %18, %17 : vector<2x128xf32>
    %20 = arith.divf %18, %19 : vector<2x128xf32>
    %21 = vector.extract_strided_slice %14 {offsets = [0, 128], sizes = [2, 128], strides = [1, 1]} : vector<2x512xf32> to vector<2x128xf32>
    %22 = arith.negf %21 : vector<2x128xf32>
    %23 = math.exp %22 : vector<2x128xf32>
    %cst_15 = arith.constant 1.000000e+00 : f32
    %24 = vector.broadcast %cst_15 : f32 to vector<2x128xf32>
    %25 = arith.addf %24, %23 : vector<2x128xf32>
    %26 = arith.divf %24, %25 : vector<2x128xf32>
    %27 = vector.extract_strided_slice %14 {offsets = [0, 256], sizes = [2, 128], strides = [1, 1]} : vector<2x512xf32> to vector<2x128xf32>
    %28 = math.tanh %27 : vector<2x128xf32>
    %29 = vector.extract_strided_slice %14 {offsets = [0, 384], sizes = [2, 128], strides = [1, 1]} : vector<2x512xf32> to vector<2x128xf32>
    %30 = arith.negf %29 : vector<2x128xf32>
    %31 = math.exp %30 : vector<2x128xf32>
    %cst_16 = arith.constant 1.000000e+00 : f32
    %32 = vector.broadcast %cst_16 : f32 to vector<2x128xf32>
    %33 = arith.addf %32, %31 : vector<2x128xf32>
    %34 = arith.divf %32, %33 : vector<2x128xf32>
    %c0_17 = arith.constant 0 : index
    %c0_18 = arith.constant 0 : index
    %35 = vector.load %arg5[%c0_17, %c0_18] : memref<2x128xf32, #tpu.memory_space<vmem>>, vector<2x128xf32>
    %36 = arith.mulf %26, %35 : vector<2x128xf32>
    %37 = arith.mulf %20, %28 : vector<2x128xf32>
    %38 = arith.addf %36, %37 : vector<2x128xf32>
    %39 = math.tanh %38 : vector<2x128xf32>
    %40 = arith.mulf %34, %39 : vector<2x128xf32>
    %c0_19 = arith.constant 0 : index
    %c0_20 = arith.constant 0 : index
    %41 = vector.load %arg5[%c0_19, %c0_20] : memref<2x128xf32, #tpu.memory_space<vmem>>, vector<2x128xf32>
    tpu.vector_store %arg5[%c0_19, %c0_20], %38 {strides = array<i32>} : memref<2x128xf32, #tpu.memory_space<vmem>>, vector<2x128xf32>,
    %c0_21 = arith.constant 0 : index
    %c0_22 = arith.constant 0 : index
    %42 = vector.load %arg4[%c0_21, %c0_22] : memref<2x128xf32, #tpu.memory_space<vmem>>, vector<2x128xf32>
    tpu.vector_store %arg4[%c0_21, %c0_22], %40 {strides = array<i32>} : memref<2x128xf32, #tpu.memory_space<vmem>>, vector<2x128xf32>,
    %c0_23 = arith.constant 0 : index
    %43 = arith.index_cast %6 : i32 to index
    %c0_24 = arith.constant 0 : index
    %c0_25 = arith.constant 0 : index
    %44 = vector.load %arg3[%c0_23, %43, %c0_24, %c0_25] : memref<1x4x2x128xf32, #tpu.memory_space<vmem>>, vector<1x1x2x128xf32>
    %45 = vector.shape_cast %44 : vector<1x1x2x128xf32> to vector<2x128xf32>
    %46 = vector.shape_cast %40 : vector<2x128xf32> to vector<1x1x2x128xf32>
    tpu.vector_store %arg3[%c0_23, %43, %c0_24, %c0_25], %46 {strides = array<i32>} : memref<1x4x2x128xf32, #tpu.memory_space<vmem>>, vector<1x1x2x128xf32>,
    %c1_i32 = arith.constant 1 : i32
    %c0_i32_26 = arith.constant 0 : i32
    %47 = arith.cmpi eq, %arg0, %c0_i32_26 : i32
    %c3_i32_27 = arith.constant 3 : i32
    %48 = arith.subi %c3_i32_27, %c1_i32 : i32
    %49 = arith.select %47, %c1_i32, %48 : i32
    %c0_28 = arith.constant 0 : index
    %50 = arith.index_cast %49 : i32 to index
    %c0_29 = arith.constant 0 : index
    %c0_30 = arith.constant 0 : index
    %51 = vector.load %arg1[%c0_28, %50, %c0_29, %c0_30] : memref<1x4x2x512xf32, #tpu.memory_space<vmem>>, vector<1x1x2x512xf32>
    %52 = vector.shape_cast %51 : vector<1x1x2x512xf32> to vector<2x512xf32>
    %c0_31 = arith.constant 0 : index
    %c0_32 = arith.constant 0 : index
    %53 = vector.load %arg4[%c0_31, %c0_32] : memref<2x128xf32, #tpu.memory_space<vmem>>, vector<2x128xf32>
    %c0_33 = arith.constant 0 : index
    %c0_34 = arith.constant 0 : index
    %c0_35 = arith.constant 0 : index
    %54 = vector.load %arg2[%c0_33, %c0_34, %c0_35] : memref<1x128x512xf32, #tpu.memory_space<vmem>>, vector<1x128x512xf32>
    %55 = vector.shape_cast %54 : vector<1x128x512xf32> to vector<128x512xf32>
    %cst_36 = arith.constant dense<0.000000e+00> : vector<2x512xf32>
    %56 = tpu.matmul %53, %55, %cst_36 {dimension_numbers = #tpu.dot_dimension_numbers<[1], [0], [0], [1], [0, 0, 1, 1], [], []>} : vector<2x128xf32>, vector<128x512xf32>, vector<2x512xf32> -> vector<2x512xf32>
    %57 = arith.addf %52, %56 : vector<2x512xf32>
    %58 = vector.extract_strided_slice %57 {offsets = [0, 0], sizes = [2, 128], strides = [1, 1]} : vector<2x512xf32> to vector<2x128xf32>
    %59 = arith.negf %58 : vector<2x128xf32>
    %60 = math.exp %59 : vector<2x128xf32>
    %cst_37 = arith.constant 1.000000e+00 : f32
    %61 = vector.broadcast %cst_37 : f32 to vector<2x128xf32>
    %62 = arith.addf %61, %60 : vector<2x128xf32>
    %63 = arith.divf %61, %62 : vector<2x128xf32>
    %64 = vector.extract_strided_slice %57 {offsets = [0, 128], sizes = [2, 128], strides = [1, 1]} : vector<2x512xf32> to vector<2x128xf32>
    %65 = arith.negf %64 : vector<2x128xf32>
    %66 = math.exp %65 : vector<2x128xf32>
    %cst_38 = arith.constant 1.000000e+00 : f32
    %67 = vector.broadcast %cst_38 : f32 to vector<2x128xf32>
    %68 = arith.addf %67, %66 : vector<2x128xf32>
    %69 = arith.divf %67, %68 : vector<2x128xf32>
    %70 = vector.extract_strided_slice %57 {offsets = [0, 256], sizes = [2, 128], strides = [1, 1]} : vector<2x512xf32> to vector<2x128xf32>
    %71 = math.tanh %70 : vector<2x128xf32>
    %72 = vector.extract_strided_slice %57 {offsets = [0, 384], sizes = [2, 128], strides = [1, 1]} : vector<2x512xf32> to vector<2x128xf32>
    %73 = arith.negf %72 : vector<2x128xf32>
    %74 = math.exp %73 : vector<2x128xf32>
    %cst_39 = arith.constant 1.000000e+00 : f32
    %75 = vector.broadcast %cst_39 : f32 to vector<2x128xf32>
    %76 = arith.addf %75, %74 : vector<2x128xf32>
    %77 = arith.divf %75, %76 : vector<2x128xf32>
    %c0_40 = arith.constant 0 : index
    %c0_41 = arith.constant 0 : index
    %78 = vector.load %arg5[%c0_40, %c0_41] : memref<2x128xf32, #tpu.memory_space<vmem>>, vector<2x128xf32>
    %79 = arith.mulf %69, %78 : vector<2x128xf32>
    %80 = arith.mulf %63, %71 : vector<2x128xf32>
    %81 = arith.addf %79, %80 : vector<2x128xf32>
    %82 = math.tanh %81 : vector<2x128xf32>
    %83 = arith.mulf %77, %82 : vector<2x128xf32>
    %c0_42 = arith.constant 0 : index
    %c0_43 = arith.constant 0 : index
    %84 = vector.load %arg5[%c0_42, %c0_43] : memref<2x128xf32, #tpu.memory_space<vmem>>, vector<2x128xf32>
    tpu.vector_store %arg5[%c0_42, %c0_43], %81 {strides = array<i32>} : memref<2x128xf32, #tpu.memory_space<vmem>>, vector<2x128xf32>,
    %c0_44 = arith.constant 0 : index
    %c0_45 = arith.constant 0 : index
    %85 = vector.load %arg4[%c0_44, %c0_45] : memref<2x128xf32, #tpu.memory_space<vmem>>, vector<2x128xf32>
    tpu.vector_store %arg4[%c0_44, %c0_45], %83 {strides = array<i32>} : memref<2x128xf32, #tpu.memory_space<vmem>>, vector<2x128xf32>,
    %c0_46 = arith.constant 0 : index
    %86 = arith.index_cast %49 : i32 to index
    %c0_47 = arith.constant 0 : index
    %c0_48 = arith.constant 0 : index
    %87 = vector.load %arg3[%c0_46, %86, %c0_47, %c0_48] : memref<1x4x2x128xf32, #tpu.memory_space<vmem>>, vector<1x1x2x128xf32>
    %88 = vector.shape_cast %87 : vector<1x1x2x128xf32> to vector<2x128xf32>
    %89 = vector.shape_cast %83 : vector<2x128xf32> to vector<1x1x2x128xf32>
    tpu.vector_store %arg3[%c0_46, %86, %c0_47, %c0_48], %89 {strides = array<i32>} : memref<1x4x2x128xf32, #tpu.memory_space<vmem>>, vector<1x1x2x128xf32>,
    %c2_i32 = arith.constant 2 : i32
    %c0_i32_49 = arith.constant 0 : i32
    %90 = arith.cmpi eq, %arg0, %c0_i32_49 : i32
    %c3_i32_50 = arith.constant 3 : i32
    %91 = arith.subi %c3_i32_50, %c2_i32 : i32
    %92 = arith.select %90, %c2_i32, %91 : i32
    %c0_51 = arith.constant 0 : index
    %93 = arith.index_cast %92 : i32 to index
    %c0_52 = arith.constant 0 : index
    %c0_53 = arith.constant 0 : index
    %94 = vector.load %arg1[%c0_51, %93, %c0_52, %c0_53] : memref<1x4x2x512xf32, #tpu.memory_space<vmem>>, vector<1x1x2x512xf32>
    %95 = vector.shape_cast %94 : vector<1x1x2x512xf32> to vector<2x512xf32>
    %c0_54 = arith.constant 0 : index
    %c0_55 = arith.constant 0 : index
    %96 = vector.load %arg4[%c0_54, %c0_55] : memref<2x128xf32, #tpu.memory_space<vmem>>, vector<2x128xf32>
    %c0_56 = arith.constant 0 : index
    %c0_57 = arith.constant 0 : index
    %c0_58 = arith.constant 0 : index
    %97 = vector.load %arg2[%c0_56, %c0_57, %c0_58] : memref<1x128x512xf32, #tpu.memory_space<vmem>>, vector<1x128x512xf32>
    %98 = vector.shape_cast %97 : vector<1x128x512xf32> to vector<128x512xf32>
    %cst_59 = arith.constant dense<0.000000e+00> : vector<2x512xf32>
    %99 = tpu.matmul %96, %98, %cst_59 {dimension_numbers = #tpu.dot_dimension_numbers<[1], [0], [0], [1], [0, 0, 1, 1], [], []>} : vector<2x128xf32>, vector<128x512xf32>, vector<2x512xf32> -> vector<2x512xf32>
    %100 = arith.addf %95, %99 : vector<2x512xf32>
    %101 = vector.extract_strided_slice %100 {offsets = [0, 0], sizes = [2, 128], strides = [1, 1]} : vector<2x512xf32> to vector<2x128xf32>
    %102 = arith.negf %101 : vector<2x128xf32>
    %103 = math.exp %102 : vector<2x128xf32>
    %cst_60 = arith.constant 1.000000e+00 : f32
    %104 = vector.broadcast %cst_60 : f32 to vector<2x128xf32>
    %105 = arith.addf %104, %103 : vector<2x128xf32>
    %106 = arith.divf %104, %105 : vector<2x128xf32>
    %107 = vector.extract_strided_slice %100 {offsets = [0, 128], sizes = [2, 128], strides = [1, 1]} : vector<2x512xf32> to vector<2x128xf32>
    %108 = arith.negf %107 : vector<2x128xf32>
    %109 = math.exp %108 : vector<2x128xf32>
    %cst_61 = arith.constant 1.000000e+00 : f32
    %110 = vector.broadcast %cst_61 : f32 to vector<2x128xf32>
    %111 = arith.addf %110, %109 : vector<2x128xf32>
    %112 = arith.divf %110, %111 : vector<2x128xf32>
    %113 = vector.extract_strided_slice %100 {offsets = [0, 256], sizes = [2, 128], strides = [1, 1]} : vector<2x512xf32> to vector<2x128xf32>
    %114 = math.tanh %113 : vector<2x128xf32>
    %115 = vector.extract_strided_slice %100 {offsets = [0, 384], sizes = [2, 128], strides = [1, 1]} : vector<2x512xf32> to vector<2x128xf32>
    %116 = arith.negf %115 : vector<2x128xf32>
    %117 = math.exp %116 : vector<2x128xf32>
    %cst_62 = arith.constant 1.000000e+00 : f32
    %118 = vector.broadcast %cst_62 : f32 to vector<2x128xf32>
    %119 = arith.addf %118, %117 : vector<2x128xf32>
    %120 = arith.divf %118, %119 : vector<2x128xf32>
    %c0_63 = arith.constant 0 : index
    %c0_64 = arith.constant 0 : index
    %121 = vector.load %arg5[%c0_63, %c0_64] : memref<2x128xf32, #tpu.memory_space<vmem>>, vector<2x128xf32>
    %122 = arith.mulf %112, %121 : vector<2x128xf32>
    %123 = arith.mulf %106, %114 : vector<2x128xf32>
    %124 = arith.addf %122, %123 : vector<2x128xf32>
    %125 = math.tanh %124 : vector<2x128xf32>
    %126 = arith.mulf %120, %125 : vector<2x128xf32>
    %c0_65 = arith.constant 0 : index
    %c0_66 = arith.constant 0 : index
    %127 = vector.load %arg5[%c0_65, %c0_66] : memref<2x128xf32, #tpu.memory_space<vmem>>, vector<2x128xf32>
    tpu.vector_store %arg5[%c0_65, %c0_66], %124 {strides = array<i32>} : memref<2x128xf32, #tpu.memory_space<vmem>>, vector<2x128xf32>,
    %c0_67 = arith.constant 0 : index
    %c0_68 = arith.constant 0 : index
    %128 = vector.load %arg4[%c0_67, %c0_68] : memref<2x128xf32, #tpu.memory_space<vmem>>, vector<2x128xf32>
    tpu.vector_store %arg4[%c0_67, %c0_68], %126 {strides = array<i32>} : memref<2x128xf32, #tpu.memory_space<vmem>>, vector<2x128xf32>,
    %c0_69 = arith.constant 0 : index
    %129 = arith.index_cast %92 : i32 to index
    %c0_70 = arith.constant 0 : index
    %c0_71 = arith.constant 0 : index
    %130 = vector.load %arg3[%c0_69, %129, %c0_70, %c0_71] : memref<1x4x2x128xf32, #tpu.memory_space<vmem>>, vector<1x1x2x128xf32>
    %131 = vector.shape_cast %130 : vector<1x1x2x128xf32> to vector<2x128xf32>
    %132 = vector.shape_cast %126 : vector<2x128xf32> to vector<1x1x2x128xf32>
    tpu.vector_store %arg3[%c0_69, %129, %c0_70, %c0_71], %132 {strides = array<i32>} : memref<1x4x2x128xf32, #tpu.memory_space<vmem>>, vector<1x1x2x128xf32>,
    %c3_i32_72 = arith.constant 3 : i32
    %c0_i32_73 = arith.constant 0 : i32
    %133 = arith.cmpi eq, %arg0, %c0_i32_73 : i32
    %c3_i32_74 = arith.constant 3 : i32
    %134 = arith.subi %c3_i32_74, %c3_i32_72 : i32
    %135 = arith.select %133, %c3_i32_72, %134 : i32
    %c0_75 = arith.constant 0 : index
    %136 = arith.index_cast %135 : i32 to index
    %c0_76 = arith.constant 0 : index
    %c0_77 = arith.constant 0 : index
    %137 = vector.load %arg1[%c0_75, %136, %c0_76, %c0_77] : memref<1x4x2x512xf32, #tpu.memory_space<vmem>>, vector<1x1x2x512xf32>
    %138 = vector.shape_cast %137 : vector<1x1x2x512xf32> to vector<2x512xf32>
    %c0_78 = arith.constant 0 : index
    %c0_79 = arith.constant 0 : index
    %139 = vector.load %arg4[%c0_78, %c0_79] : memref<2x128xf32, #tpu.memory_space<vmem>>, vector<2x128xf32>
    %c0_80 = arith.constant 0 : index
    %c0_81 = arith.constant 0 : index
    %c0_82 = arith.constant 0 : index
    %140 = vector.load %arg2[%c0_80, %c0_81, %c0_82] : memref<1x128x512xf32, #tpu.memory_space<vmem>>, vector<1x128x512xf32>
    %141 = vector.shape_cast %140 : vector<1x128x512xf32> to vector<128x512xf32>
    %cst_83 = arith.constant dense<0.000000e+00> : vector<2x512xf32>
    %142 = tpu.matmul %139, %141, %cst_83 {dimension_numbers = #tpu.dot_dimension_numbers<[1], [0], [0], [1], [0, 0, 1, 1], [], []>} : vector<2x128xf32>, vector<128x512xf32>, vector<2x512xf32> -> vector<2x512xf32>
    %143 = arith.addf %138, %142 : vector<2x512xf32>
    %144 = vector.extract_strided_slice %143 {offsets = [0, 0], sizes = [2, 128], strides = [1, 1]} : vector<2x512xf32> to vector<2x128xf32>
    %145 = arith.negf %144 : vector<2x128xf32>
    %146 = math.exp %145 : vector<2x128xf32>
    %cst_84 = arith.constant 1.000000e+00 : f32
    %147 = vector.broadcast %cst_84 : f32 to vector<2x128xf32>
    %148 = arith.addf %147, %146 : vector<2x128xf32>
    %149 = arith.divf %147, %148 : vector<2x128xf32>
    %150 = vector.extract_strided_slice %143 {offsets = [0, 128], sizes = [2, 128], strides = [1, 1]} : vector<2x512xf32> to vector<2x128xf32>
    %151 = arith.negf %150 : vector<2x128xf32>
    %152 = math.exp %151 : vector<2x128xf32>
    %cst_85 = arith.constant 1.000000e+00 : f32
    %153 = vector.broadcast %cst_85 : f32 to vector<2x128xf32>
    %154 = arith.addf %153, %152 : vector<2x128xf32>
    %155 = arith.divf %153, %154 : vector<2x128xf32>
    %156 = vector.extract_strided_slice %143 {offsets = [0, 256], sizes = [2, 128], strides = [1, 1]} : vector<2x512xf32> to vector<2x128xf32>
    %157 = math.tanh %156 : vector<2x128xf32>
    %158 = vector.extract_strided_slice %143 {offsets = [0, 384], sizes = [2, 128], strides = [1, 1]} : vector<2x512xf32> to vector<2x128xf32>
    %159 = arith.negf %158 : vector<2x128xf32>
    %160 = math.exp %159 : vector<2x128xf32>
    %cst_86 = arith.constant 1.000000e+00 : f32
    %161 = vector.broadcast %cst_86 : f32 to vector<2x128xf32>
    %162 = arith.addf %161, %160 : vector<2x128xf32>
    %163 = arith.divf %161, %162 : vector<2x128xf32>
    %c0_87 = arith.constant 0 : index
    %c0_88 = arith.constant 0 : index
    %164 = vector.load %arg5[%c0_87, %c0_88] : memref<2x128xf32, #tpu.memory_space<vmem>>, vector<2x128xf32>
    %165 = arith.mulf %155, %164 : vector<2x128xf32>
    %166 = arith.mulf %149, %157 : vector<2x128xf32>
    %167 = arith.addf %165, %166 : vector<2x128xf32>
    %168 = math.tanh %167 : vector<2x128xf32>
    %169 = arith.mulf %163, %168 : vector<2x128xf32>
    %c0_89 = arith.constant 0 : index
    %c0_90 = arith.constant 0 : index
    %170 = vector.load %arg5[%c0_89, %c0_90] : memref<2x128xf32, #tpu.memory_space<vmem>>, vector<2x128xf32>
    tpu.vector_store %arg5[%c0_89, %c0_90], %167 {strides = array<i32>} : memref<2x128xf32, #tpu.memory_space<vmem>>, vector<2x128xf32>,
    %c0_91 = arith.constant 0 : index
    %c0_92 = arith.constant 0 : index
    %171 = vector.load %arg4[%c0_91, %c0_92] : memref<2x128xf32, #tpu.memory_space<vmem>>, vector<2x128xf32>
    tpu.vector_store %arg4[%c0_91, %c0_92], %169 {strides = array<i32>} : memref<2x128xf32, #tpu.memory_space<vmem>>, vector<2x128xf32>,
    %c0_93 = arith.constant 0 : index
    %172 = arith.index_cast %135 : i32 to index
    %c0_94 = arith.constant 0 : index
    %c0_95 = arith.constant 0 : index
    %173 = vector.load %arg3[%c0_93, %172, %c0_94, %c0_95] : memref<1x4x2x128xf32, #tpu.memory_space<vmem>>, vector<1x1x2x128xf32>
    %174 = vector.shape_cast %173 : vector<1x1x2x128xf32> to vector<2x128xf32>
    %175 = vector.shape_cast %169 : vector<2x128xf32> to vector<1x1x2x128xf32>
    tpu.vector_store %arg3[%c0_93, %172, %c0_94, %c0_95], %175 {strides = array<i32>} : memref<1x4x2x128xf32, #tpu.memory_space<vmem>>, vector<1x1x2x128xf32>,
    %c4_i32 = arith.constant 4 : i32
    return
  }
  func.func @transform_0(%arg0: i32) -> (i32, i32, i32, i32) {
    %c0_i32 = arith.constant 0 : i32
    %c0_i32_0 = arith.constant 0 : i32
    %c0_i32_1 = arith.constant 0 : i32
    %c0_i32_2 = arith.constant 0 : i32
    return %arg0, %c0_i32, %c0_i32_0, %c0_i32_1 : i32, i32, i32, i32
  }
  func.func @transform_1(%arg0: i32) -> (i32, i32, i32) {
    %c0_i32 = arith.constant 0 : i32
    %c0_i32_0 = arith.constant 0 : i32
    %c0_i32_1 = arith.constant 0 : i32
    return %arg0, %c0_i32, %c0_i32_0 : i32, i32, i32
  }
  func.func @transform_2(%arg0: i32) -> (i32, i32, i32, i32) {
    %c0_i32 = arith.constant 0 : i32
    %c0_i32_0 = arith.constant 0 : i32
    %c0_i32_1 = arith.constant 0 : i32
    %c0_i32_2 = arith.constant 0 : i32
    return %arg0, %c0_i32, %c0_i32_0, %c0_i32_1 : i32, i32, i32, i32
  }
}

module attributes {stable_mosaic.version = 11 : i64} {
  func.func @kernel(%arg0: i32, %arg1: memref<288x40xf32, #tpu.memory_space<vmem>>, %arg2: memref<40x100xf32, #tpu.memory_space<vmem>>, %arg3: memref<1x100xf32, #tpu.memory_space<vmem>>, %arg4: memref<8x100xf32, #tpu.memory_space<vmem>>) attributes {dimension_semantics = [#tpu.dimension_semantics<parallel>], iteration_bounds = array<i64: 2>, scalar_prefetch = 0 : i64, scratch_operands = 0 : i64, tpu.core_type = #tpu.core_type<tc>, window_params = [{transform_indices = @transform_0, window_bounds = array<i64: 288, 40>}, {pipeline_mode = #tpu.pipeline_mode<synchronous>, transform_indices = @transform_1, window_bounds = array<i64: 40, 100>}, {pipeline_mode = #tpu.pipeline_mode<synchronous>, transform_indices = @transform_2, window_bounds = array<i64: 1, 100>}, {transform_indices = @transform_3, window_bounds = array<i64: 8, 100>}]} {
    %c0 = arith.constant 0 : index
    %c0_0 = arith.constant 0 : index
    %0 = vector.load %arg1[%c0, %c0_0] : memref<288x40xf32, #tpu.memory_space<vmem>>, vector<288x40xf32>
    %c0_1 = arith.constant 0 : index
    %c0_2 = arith.constant 0 : index
    %1 = vector.load %arg2[%c0_1, %c0_2] : memref<40x100xf32, #tpu.memory_space<vmem>>, vector<40x100xf32>
    %cst = arith.constant dense<0.000000e+00> : vector<288x100xf32>
    %2 = tpu.matmul %0, %1, %cst {dimension_numbers = #tpu.dot_dimension_numbers<[1], [0], [0], [1], [0, 0, 1, 1], [], []>} : vector<288x40xf32>, vector<40x100xf32>, vector<288x100xf32> -> vector<288x100xf32>
    %c0_3 = arith.constant 0 : index
    %c0_4 = arith.constant 0 : index
    %3 = vector.load %arg3[%c0_3, %c0_4] : memref<1x100xf32, #tpu.memory_space<vmem>>, vector<1x100xf32>
    %4 = vector.broadcast %3 : vector<1x100xf32> to vector<288x100xf32>
    %5 = arith.addf %2, %4 : vector<288x100xf32>
    %cst_5 = arith.constant 0.000000e+00 : f32
    %6 = vector.broadcast %cst_5 : f32 to vector<288x100xf32>
    %7 = arith.maximumf %5, %6 : vector<288x100xf32>
    %8 = vector.extract_strided_slice %7 {offsets = [0, 0], sizes = [36, 100], strides = [1, 1]} : vector<288x100xf32> to vector<36x100xf32>
    %cst_6 = arith.constant dense<0xFF800000> : vector<100xf32>
    %9 = vector.multi_reduction <maximumf>, %8, %cst_6 [0] : vector<36x100xf32> to vector<100xf32>
    %10 = vector.shape_cast %9 : vector<100xf32> to vector<1x100xf32>
    %11 = vector.extract_strided_slice %7 {offsets = [36, 0], sizes = [36, 100], strides = [1, 1]} : vector<288x100xf32> to vector<36x100xf32>
    %cst_7 = arith.constant dense<0xFF800000> : vector<100xf32>
    %12 = vector.multi_reduction <maximumf>, %11, %cst_7 [0] : vector<36x100xf32> to vector<100xf32>
    %13 = vector.shape_cast %12 : vector<100xf32> to vector<1x100xf32>
    %14 = vector.extract_strided_slice %7 {offsets = [72, 0], sizes = [36, 100], strides = [1, 1]} : vector<288x100xf32> to vector<36x100xf32>
    %cst_8 = arith.constant dense<0xFF800000> : vector<100xf32>
    %15 = vector.multi_reduction <maximumf>, %14, %cst_8 [0] : vector<36x100xf32> to vector<100xf32>
    %16 = vector.shape_cast %15 : vector<100xf32> to vector<1x100xf32>
    %17 = vector.extract_strided_slice %7 {offsets = [108, 0], sizes = [36, 100], strides = [1, 1]} : vector<288x100xf32> to vector<36x100xf32>
    %cst_9 = arith.constant dense<0xFF800000> : vector<100xf32>
    %18 = vector.multi_reduction <maximumf>, %17, %cst_9 [0] : vector<36x100xf32> to vector<100xf32>
    %19 = vector.shape_cast %18 : vector<100xf32> to vector<1x100xf32>
    %20 = vector.extract_strided_slice %7 {offsets = [144, 0], sizes = [36, 100], strides = [1, 1]} : vector<288x100xf32> to vector<36x100xf32>
    %cst_10 = arith.constant dense<0xFF800000> : vector<100xf32>
    %21 = vector.multi_reduction <maximumf>, %20, %cst_10 [0] : vector<36x100xf32> to vector<100xf32>
    %22 = vector.shape_cast %21 : vector<100xf32> to vector<1x100xf32>
    %23 = vector.extract_strided_slice %7 {offsets = [180, 0], sizes = [36, 100], strides = [1, 1]} : vector<288x100xf32> to vector<36x100xf32>
    %cst_11 = arith.constant dense<0xFF800000> : vector<100xf32>
    %24 = vector.multi_reduction <maximumf>, %23, %cst_11 [0] : vector<36x100xf32> to vector<100xf32>
    %25 = vector.shape_cast %24 : vector<100xf32> to vector<1x100xf32>
    %26 = vector.extract_strided_slice %7 {offsets = [216, 0], sizes = [36, 100], strides = [1, 1]} : vector<288x100xf32> to vector<36x100xf32>
    %cst_12 = arith.constant dense<0xFF800000> : vector<100xf32>
    %27 = vector.multi_reduction <maximumf>, %26, %cst_12 [0] : vector<36x100xf32> to vector<100xf32>
    %28 = vector.shape_cast %27 : vector<100xf32> to vector<1x100xf32>
    %29 = vector.extract_strided_slice %7 {offsets = [252, 0], sizes = [36, 100], strides = [1, 1]} : vector<288x100xf32> to vector<36x100xf32>
    %cst_13 = arith.constant dense<0xFF800000> : vector<100xf32>
    %30 = vector.multi_reduction <maximumf>, %29, %cst_13 [0] : vector<36x100xf32> to vector<100xf32>
    %31 = vector.shape_cast %30 : vector<100xf32> to vector<1x100xf32>
    %32 = tpu.concatenate %10, %13, %16, %19, %22, %25, %28, %31 in 0 : vector<1x100xf32>, vector<1x100xf32>, vector<1x100xf32>, vector<1x100xf32>, vector<1x100xf32>, vector<1x100xf32>, vector<1x100xf32>, vector<1x100xf32> -> vector<8x100xf32>
    %c0_14 = arith.constant 0 : index
    %c0_15 = arith.constant 0 : index
    %33 = vector.load %arg4[%c0_14, %c0_15] : memref<8x100xf32, #tpu.memory_space<vmem>>, vector<8x100xf32>
    tpu.vector_store %arg4[%c0_14, %c0_15], %32 {strides = array<i32>} : memref<8x100xf32, #tpu.memory_space<vmem>>, vector<8x100xf32>,
    return
  }
  func.func @transform_0(%arg0: i32) -> (i32, i32) {
    %c0_i32 = arith.constant 0 : i32
    %c0_i32_0 = arith.constant 0 : i32
    return %arg0, %c0_i32 : i32, i32
  }
  func.func @transform_1(%arg0: i32) -> (i32, i32) {
    %c0_i32 = arith.constant 0 : i32
    %c0_i32_0 = arith.constant 0 : i32
    %c0_i32_1 = arith.constant 0 : i32
    return %c0_i32, %c0_i32_0 : i32, i32
  }
  func.func @transform_2(%arg0: i32) -> (i32, i32) {
    %c0_i32 = arith.constant 0 : i32
    %c0_i32_0 = arith.constant 0 : i32
    %c0_i32_1 = arith.constant 0 : i32
    return %c0_i32, %c0_i32_0 : i32, i32
  }
  func.func @transform_3(%arg0: i32) -> (i32, i32) {
    %c0_i32 = arith.constant 0 : i32
    %c0_i32_0 = arith.constant 0 : i32
    return %arg0, %c0_i32 : i32, i32
  }
}

module attributes {stable_mosaic.version = 11 : i64} {
  func.func @kernel(%arg0: i32, %arg1: memref<16x200xf32, #tpu.memory_space<vmem>>, %arg2: memref<200x200xf32, #tpu.memory_space<vmem>>, %arg3: memref<1x200xf32, #tpu.memory_space<vmem>>, %arg4: memref<200x200xf32, #tpu.memory_space<vmem>>, %arg5: memref<1x200xf32, #tpu.memory_space<vmem>>, %arg6: memref<200x200xf32, #tpu.memory_space<vmem>>, %arg7: memref<1x200xf32, #tpu.memory_space<vmem>>, %arg8: memref<16x200xf32, #tpu.memory_space<vmem>>) attributes {dimension_semantics = [#tpu.dimension_semantics<parallel>], iteration_bounds = array<i64: 1>, scalar_prefetch = 0 : i64, scratch_operands = 0 : i64, tpu.core_type = #tpu.core_type<tc>, window_params = [{transform_indices = @transform_0, window_bounds = array<i64: 16, 200>}, {pipeline_mode = #tpu.pipeline_mode<synchronous>, transform_indices = @transform_1, window_bounds = array<i64: 200, 200>}, {pipeline_mode = #tpu.pipeline_mode<synchronous>, transform_indices = @transform_2, window_bounds = array<i64: 1, 200>}, {pipeline_mode = #tpu.pipeline_mode<synchronous>, transform_indices = @transform_3, window_bounds = array<i64: 200, 200>}, {pipeline_mode = #tpu.pipeline_mode<synchronous>, transform_indices = @transform_4, window_bounds = array<i64: 1, 200>}, {pipeline_mode = #tpu.pipeline_mode<synchronous>, transform_indices = @transform_5, window_bounds = array<i64: 200, 200>}, {pipeline_mode = #tpu.pipeline_mode<synchronous>, transform_indices = @transform_6, window_bounds = array<i64: 1, 200>}, {transform_indices = @transform_7, window_bounds = array<i64: 16, 200>}]} {
    %c0 = arith.constant 0 : index
    %c0_0 = arith.constant 0 : index
    %0 = vector.load %arg1[%c0, %c0_0] : memref<16x200xf32, #tpu.memory_space<vmem>>, vector<16x200xf32>
    %c0_1 = arith.constant 0 : index
    %c0_2 = arith.constant 0 : index
    %1 = vector.load %arg2[%c0_1, %c0_2] : memref<200x200xf32, #tpu.memory_space<vmem>>, vector<200x200xf32>
    %cst = arith.constant dense<0.000000e+00> : vector<16x200xf32>
    %2 = tpu.matmul %0, %1, %cst {dimension_numbers = #tpu.dot_dimension_numbers<[1], [0], [0], [1], [0, 0, 1, 1], [], []>} : vector<16x200xf32>, vector<200x200xf32>, vector<16x200xf32> -> vector<16x200xf32>
    %c0_3 = arith.constant 0 : index
    %c0_4 = arith.constant 0 : index
    %3 = vector.load %arg3[%c0_3, %c0_4] : memref<1x200xf32, #tpu.memory_space<vmem>>, vector<1x200xf32>
    %4 = vector.broadcast %3 : vector<1x200xf32> to vector<16x200xf32>
    %5 = arith.addf %2, %4 : vector<16x200xf32>
    %cst_5 = arith.constant 0.000000e+00 : f32
    %6 = vector.broadcast %cst_5 : f32 to vector<16x200xf32>
    %7 = arith.maximumf %5, %6 : vector<16x200xf32>
    %c0_6 = arith.constant 0 : index
    %c0_7 = arith.constant 0 : index
    %8 = vector.load %arg4[%c0_6, %c0_7] : memref<200x200xf32, #tpu.memory_space<vmem>>, vector<200x200xf32>
    %cst_8 = arith.constant dense<0.000000e+00> : vector<16x200xf32>
    %9 = tpu.matmul %7, %8, %cst_8 {dimension_numbers = #tpu.dot_dimension_numbers<[1], [0], [0], [1], [0, 0, 1, 1], [], []>} : vector<16x200xf32>, vector<200x200xf32>, vector<16x200xf32> -> vector<16x200xf32>
    %c0_9 = arith.constant 0 : index
    %c0_10 = arith.constant 0 : index
    %10 = vector.load %arg5[%c0_9, %c0_10] : memref<1x200xf32, #tpu.memory_space<vmem>>, vector<1x200xf32>
    %11 = vector.broadcast %10 : vector<1x200xf32> to vector<16x200xf32>
    %12 = arith.addf %9, %11 : vector<16x200xf32>
    %cst_11 = arith.constant 0.000000e+00 : f32
    %13 = vector.broadcast %cst_11 : f32 to vector<16x200xf32>
    %14 = arith.maximumf %12, %13 : vector<16x200xf32>
    %c0_12 = arith.constant 0 : index
    %c0_13 = arith.constant 0 : index
    %15 = vector.load %arg6[%c0_12, %c0_13] : memref<200x200xf32, #tpu.memory_space<vmem>>, vector<200x200xf32>
    %cst_14 = arith.constant dense<0.000000e+00> : vector<16x200xf32>
    %16 = tpu.matmul %0, %15, %cst_14 {dimension_numbers = #tpu.dot_dimension_numbers<[1], [0], [0], [1], [0, 0, 1, 1], [], []>} : vector<16x200xf32>, vector<200x200xf32>, vector<16x200xf32> -> vector<16x200xf32>
    %c0_15 = arith.constant 0 : index
    %c0_16 = arith.constant 0 : index
    %17 = vector.load %arg7[%c0_15, %c0_16] : memref<1x200xf32, #tpu.memory_space<vmem>>, vector<1x200xf32>
    %18 = vector.broadcast %17 : vector<1x200xf32> to vector<16x200xf32>
    %19 = arith.addf %16, %18 : vector<16x200xf32>
    %20 = arith.negf %19 : vector<16x200xf32>
    %21 = math.exp %20 : vector<16x200xf32>
    %cst_17 = arith.constant 1.000000e+00 : f32
    %22 = vector.broadcast %cst_17 : f32 to vector<16x200xf32>
    %23 = arith.addf %22, %21 : vector<16x200xf32>
    %24 = arith.divf %22, %23 : vector<16x200xf32>
    %25 = arith.mulf %24, %14 : vector<16x200xf32>
    %cst_18 = arith.constant 1.000000e+00 : f32
    %26 = vector.broadcast %cst_18 : f32 to vector<16x200xf32>
    %27 = arith.subf %26, %24 : vector<16x200xf32>
    %28 = arith.mulf %27, %0 : vector<16x200xf32>
    %29 = arith.addf %25, %28 : vector<16x200xf32>
    %c0_19 = arith.constant 0 : index
    %c0_20 = arith.constant 0 : index
    %30 = vector.load %arg8[%c0_19, %c0_20] : memref<16x200xf32, #tpu.memory_space<vmem>>, vector<16x200xf32>
    tpu.vector_store %arg8[%c0_19, %c0_20], %29 {strides = array<i32>} : memref<16x200xf32, #tpu.memory_space<vmem>>, vector<16x200xf32>,
    return
  }
  func.func @transform_0(%arg0: i32) -> (i32, i32) {
    %c0_i32 = arith.constant 0 : i32
    %c0_i32_0 = arith.constant 0 : i32
    return %arg0, %c0_i32 : i32, i32
  }
  func.func @transform_1(%arg0: i32) -> (i32, i32) {
    %c0_i32 = arith.constant 0 : i32
    %c0_i32_0 = arith.constant 0 : i32
    %c0_i32_1 = arith.constant 0 : i32
    return %c0_i32, %c0_i32_0 : i32, i32
  }
  func.func @transform_2(%arg0: i32) -> (i32, i32) {
    %c0_i32 = arith.constant 0 : i32
    %c0_i32_0 = arith.constant 0 : i32
    %c0_i32_1 = arith.constant 0 : i32
    return %c0_i32, %c0_i32_0 : i32, i32
  }
  func.func @transform_3(%arg0: i32) -> (i32, i32) {
    %c0_i32 = arith.constant 0 : i32
    %c0_i32_0 = arith.constant 0 : i32
    %c0_i32_1 = arith.constant 0 : i32
    return %c0_i32, %c0_i32_0 : i32, i32
  }
  func.func @transform_4(%arg0: i32) -> (i32, i32) {
    %c0_i32 = arith.constant 0 : i32
    %c0_i32_0 = arith.constant 0 : i32
    %c0_i32_1 = arith.constant 0 : i32
    return %c0_i32, %c0_i32_0 : i32, i32
  }
  func.func @transform_5(%arg0: i32) -> (i32, i32) {
    %c0_i32 = arith.constant 0 : i32
    %c0_i32_0 = arith.constant 0 : i32
    %c0_i32_1 = arith.constant 0 : i32
    return %c0_i32, %c0_i32_0 : i32, i32
  }
  func.func @transform_6(%arg0: i32) -> (i32, i32) {
    %c0_i32 = arith.constant 0 : i32
    %c0_i32_0 = arith.constant 0 : i32
    %c0_i32_1 = arith.constant 0 : i32
    return %c0_i32, %c0_i32_0 : i32, i32
  }
  func.func @transform_7(%arg0: i32) -> (i32, i32) {
    %c0_i32 = arith.constant 0 : i32
    %c0_i32_0 = arith.constant 0 : i32
    return %arg0, %c0_i32 : i32, i32
  }
}

module attributes {stable_mosaic.version = 11 : i64} {
  func.func @kernel(%arg0: i32, %arg1: i32, %arg2: memref<16x200xf32, #tpu.memory_space<vmem>>, %arg3: memref<1x200x512xf32, #tpu.memory_space<vmem>>, %arg4: memref<1x1x512xf32, #tpu.memory_space<vmem>>, %arg5: memref<1x16x512xf32, #tpu.memory_space<vmem>>) attributes {dimension_semantics = [#tpu.dimension_semantics<parallel>, #tpu.dimension_semantics<parallel>], iteration_bounds = array<i64: 2, 1>, scalar_prefetch = 0 : i64, scratch_operands = 0 : i64, tpu.core_type = #tpu.core_type<tc>, window_params = [{transform_indices = @transform_0, window_bounds = array<i64: 16, 200>}, {transform_indices = @transform_1, window_bounds = array<i64: 1, 200, 512>}, {transform_indices = @transform_2, window_bounds = array<i64: 1, 1, 512>}, {transform_indices = @transform_3, window_bounds = array<i64: 1, 16, 512>}]} {
    %c0 = arith.constant 0 : index
    %c0_0 = arith.constant 0 : index
    %0 = vector.load %arg2[%c0, %c0_0] : memref<16x200xf32, #tpu.memory_space<vmem>>, vector<16x200xf32>
    %c0_1 = arith.constant 0 : index
    %c0_2 = arith.constant 0 : index
    %c0_3 = arith.constant 0 : index
    %1 = vector.load %arg3[%c0_1, %c0_2, %c0_3] : memref<1x200x512xf32, #tpu.memory_space<vmem>>, vector<1x200x512xf32>
    %2 = vector.shape_cast %1 : vector<1x200x512xf32> to vector<200x512xf32>
    %cst = arith.constant dense<0.000000e+00> : vector<16x512xf32>
    %3 = tpu.matmul %0, %2, %cst {dimension_numbers = #tpu.dot_dimension_numbers<[1], [0], [0], [1], [0, 0, 1, 1], [], []>} : vector<16x200xf32>, vector<200x512xf32>, vector<16x512xf32> -> vector<16x512xf32>
    %c0_4 = arith.constant 0 : index
    %c0_5 = arith.constant 0 : index
    %c0_6 = arith.constant 0 : index
    %4 = vector.load %arg4[%c0_4, %c0_5, %c0_6] : memref<1x1x512xf32, #tpu.memory_space<vmem>>, vector<1x1x512xf32>
    %5 = vector.shape_cast %4 : vector<1x1x512xf32> to vector<1x512xf32>
    %6 = vector.broadcast %5 : vector<1x512xf32> to vector<16x512xf32>
    %7 = arith.addf %3, %6 : vector<16x512xf32>
    %c0_7 = arith.constant 0 : index
    %c0_8 = arith.constant 0 : index
    %c0_9 = arith.constant 0 : index
    %8 = vector.load %arg5[%c0_7, %c0_8, %c0_9] : memref<1x16x512xf32, #tpu.memory_space<vmem>>, vector<1x16x512xf32>
    %9 = vector.shape_cast %8 : vector<1x16x512xf32> to vector<16x512xf32>
    %10 = vector.shape_cast %7 : vector<16x512xf32> to vector<1x16x512xf32>
    tpu.vector_store %arg5[%c0_7, %c0_8, %c0_9], %10 {strides = array<i32>} : memref<1x16x512xf32, #tpu.memory_space<vmem>>, vector<1x16x512xf32>,
    return
  }
  func.func @transform_0(%arg0: i32, %arg1: i32) -> (i32, i32) {
    %c0_i32 = arith.constant 0 : i32
    %c0_i32_0 = arith.constant 0 : i32
    return %arg1, %c0_i32 : i32, i32
  }
  func.func @transform_1(%arg0: i32, %arg1: i32) -> (i32, i32, i32) {
    %c0_i32 = arith.constant 0 : i32
    %c0_i32_0 = arith.constant 0 : i32
    %c0_i32_1 = arith.constant 0 : i32
    return %arg0, %c0_i32, %c0_i32_0 : i32, i32, i32
  }
  func.func @transform_2(%arg0: i32, %arg1: i32) -> (i32, i32, i32) {
    %c0_i32 = arith.constant 0 : i32
    %c0_i32_0 = arith.constant 0 : i32
    %c0_i32_1 = arith.constant 0 : i32
    return %arg0, %c0_i32, %c0_i32_0 : i32, i32, i32
  }
  func.func @transform_3(%arg0: i32, %arg1: i32) -> (i32, i32, i32) {
    %c0_i32 = arith.constant 0 : i32
    %c0_i32_0 = arith.constant 0 : i32
    return %arg0, %arg1, %c0_i32 : i32, i32, i32
  }
}

module attributes {stable_mosaic.version = 11 : i64} {
  func.func @kernel(%arg0: i32, %arg1: memref<1x8x2x512xf32, #tpu.memory_space<vmem>>, %arg2: memref<1x128x512xf32, #tpu.memory_space<vmem>>, %arg3: memref<1x8x2x128xf32, #tpu.memory_space<vmem>>, %arg4: memref<2x128xf32, #tpu.memory_space<vmem>>, %arg5: memref<2x128xf32, #tpu.memory_space<vmem>>) attributes {dimension_semantics = [#tpu.dimension_semantics<parallel>], iteration_bounds = array<i64: 2>, scalar_prefetch = 0 : i64, scratch_operands = 2 : i64, tpu.core_type = #tpu.core_type<tc>, window_params = [{transform_indices = @transform_0, window_bounds = array<i64: 1, 8, 2, 512>}, {transform_indices = @transform_1, window_bounds = array<i64: 1, 128, 512>}, {transform_indices = @transform_2, window_bounds = array<i64: 1, 8, 2, 128>}]} {
    %cst = arith.constant 0.000000e+00 : f32
    %0 = vector.broadcast %cst : f32 to vector<2x128xf32>
    %c0 = arith.constant 0 : index
    %c0_0 = arith.constant 0 : index
    %1 = vector.load %arg4[%c0, %c0_0] : memref<2x128xf32, #tpu.memory_space<vmem>>, vector<2x128xf32>
    tpu.vector_store %arg4[%c0, %c0_0], %0 {strides = array<i32>} : memref<2x128xf32, #tpu.memory_space<vmem>>, vector<2x128xf32>,
    %cst_1 = arith.constant 0.000000e+00 : f32
    %2 = vector.broadcast %cst_1 : f32 to vector<2x128xf32>
    %c0_2 = arith.constant 0 : index
    %c0_3 = arith.constant 0 : index
    %3 = vector.load %arg5[%c0_2, %c0_3] : memref<2x128xf32, #tpu.memory_space<vmem>>, vector<2x128xf32>
    tpu.vector_store %arg5[%c0_2, %c0_3], %2 {strides = array<i32>} : memref<2x128xf32, #tpu.memory_space<vmem>>, vector<2x128xf32>,
    %c0_i32 = arith.constant 0 : i32
    %c0_i32_4 = arith.constant 0 : i32
    %4 = arith.cmpi eq, %arg0, %c0_i32_4 : i32
    %c7_i32 = arith.constant 7 : i32
    %5 = arith.subi %c7_i32, %c0_i32 : i32
    %6 = arith.select %4, %c0_i32, %5 : i32
    %c0_5 = arith.constant 0 : index
    %7 = arith.index_cast %6 : i32 to index
    %c0_6 = arith.constant 0 : index
    %c0_7 = arith.constant 0 : index
    %8 = vector.load %arg1[%c0_5, %7, %c0_6, %c0_7] : memref<1x8x2x512xf32, #tpu.memory_space<vmem>>, vector<1x1x2x512xf32>
    %9 = vector.shape_cast %8 : vector<1x1x2x512xf32> to vector<2x512xf32>
    %c0_8 = arith.constant 0 : index
    %c0_9 = arith.constant 0 : index
    %10 = vector.load %arg4[%c0_8, %c0_9] : memref<2x128xf32, #tpu.memory_space<vmem>>, vector<2x128xf32>
    %c0_10 = arith.constant 0 : index
    %c0_11 = arith.constant 0 : index
    %c0_12 = arith.constant 0 : index
    %11 = vector.load %arg2[%c0_10, %c0_11, %c0_12] : memref<1x128x512xf32, #tpu.memory_space<vmem>>, vector<1x128x512xf32>
    %12 = vector.shape_cast %11 : vector<1x128x512xf32> to vector<128x512xf32>
    %cst_13 = arith.constant dense<0.000000e+00> : vector<2x512xf32>
    %13 = tpu.matmul %10, %12, %cst_13 {dimension_numbers = #tpu.dot_dimension_numbers<[1], [0], [0], [1], [0, 0, 1, 1], [], []>} : vector<2x128xf32>, vector<128x512xf32>, vector<2x512xf32> -> vector<2x512xf32>
    %14 = arith.addf %9, %13 : vector<2x512xf32>
    %15 = vector.extract_strided_slice %14 {offsets = [0, 0], sizes = [2, 128], strides = [1, 1]} : vector<2x512xf32> to vector<2x128xf32>
    %16 = arith.negf %15 : vector<2x128xf32>
    %17 = math.exp %16 : vector<2x128xf32>
    %cst_14 = arith.constant 1.000000e+00 : f32
    %18 = vector.broadcast %cst_14 : f32 to vector<2x128xf32>
    %19 = arith.addf %18, %17 : vector<2x128xf32>
    %20 = arith.divf %18, %19 : vector<2x128xf32>
    %21 = vector.extract_strided_slice %14 {offsets = [0, 128], sizes = [2, 128], strides = [1, 1]} : vector<2x512xf32> to vector<2x128xf32>
    %22 = arith.negf %21 : vector<2x128xf32>
    %23 = math.exp %22 : vector<2x128xf32>
    %cst_15 = arith.constant 1.000000e+00 : f32
    %24 = vector.broadcast %cst_15 : f32 to vector<2x128xf32>
    %25 = arith.addf %24, %23 : vector<2x128xf32>
    %26 = arith.divf %24, %25 : vector<2x128xf32>
    %27 = vector.extract_strided_slice %14 {offsets = [0, 256], sizes = [2, 128], strides = [1, 1]} : vector<2x512xf32> to vector<2x128xf32>
    %28 = math.tanh %27 : vector<2x128xf32>
    %29 = vector.extract_strided_slice %14 {offsets = [0, 384], sizes = [2, 128], strides = [1, 1]} : vector<2x512xf32> to vector<2x128xf32>
    %30 = arith.negf %29 : vector<2x128xf32>
    %31 = math.exp %30 : vector<2x128xf32>
    %cst_16 = arith.constant 1.000000e+00 : f32
    %32 = vector.broadcast %cst_16 : f32 to vector<2x128xf32>
    %33 = arith.addf %32, %31 : vector<2x128xf32>
    %34 = arith.divf %32, %33 : vector<2x128xf32>
    %c0_17 = arith.constant 0 : index
    %c0_18 = arith.constant 0 : index
    %35 = vector.load %arg5[%c0_17, %c0_18] : memref<2x128xf32, #tpu.memory_space<vmem>>, vector<2x128xf32>
    %36 = arith.mulf %26, %35 : vector<2x128xf32>
    %37 = arith.mulf %20, %28 : vector<2x128xf32>
    %38 = arith.addf %36, %37 : vector<2x128xf32>
    %39 = math.tanh %38 : vector<2x128xf32>
    %40 = arith.mulf %34, %39 : vector<2x128xf32>
    %c0_19 = arith.constant 0 : index
    %c0_20 = arith.constant 0 : index
    %41 = vector.load %arg5[%c0_19, %c0_20] : memref<2x128xf32, #tpu.memory_space<vmem>>, vector<2x128xf32>
    tpu.vector_store %arg5[%c0_19, %c0_20], %38 {strides = array<i32>} : memref<2x128xf32, #tpu.memory_space<vmem>>, vector<2x128xf32>,
    %c0_21 = arith.constant 0 : index
    %c0_22 = arith.constant 0 : index
    %42 = vector.load %arg4[%c0_21, %c0_22] : memref<2x128xf32, #tpu.memory_space<vmem>>, vector<2x128xf32>
    tpu.vector_store %arg4[%c0_21, %c0_22], %40 {strides = array<i32>} : memref<2x128xf32, #tpu.memory_space<vmem>>, vector<2x128xf32>,
    %c0_23 = arith.constant 0 : index
    %43 = arith.index_cast %6 : i32 to index
    %c0_24 = arith.constant 0 : index
    %c0_25 = arith.constant 0 : index
    %44 = vector.load %arg3[%c0_23, %43, %c0_24, %c0_25] : memref<1x8x2x128xf32, #tpu.memory_space<vmem>>, vector<1x1x2x128xf32>
    %45 = vector.shape_cast %44 : vector<1x1x2x128xf32> to vector<2x128xf32>
    %46 = vector.shape_cast %40 : vector<2x128xf32> to vector<1x1x2x128xf32>
    tpu.vector_store %arg3[%c0_23, %43, %c0_24, %c0_25], %46 {strides = array<i32>} : memref<1x8x2x128xf32, #tpu.memory_space<vmem>>, vector<1x1x2x128xf32>,
    %c1_i32 = arith.constant 1 : i32
    %c0_i32_26 = arith.constant 0 : i32
    %47 = arith.cmpi eq, %arg0, %c0_i32_26 : i32
    %c7_i32_27 = arith.constant 7 : i32
    %48 = arith.subi %c7_i32_27, %c1_i32 : i32
    %49 = arith.select %47, %c1_i32, %48 : i32
    %c0_28 = arith.constant 0 : index
    %50 = arith.index_cast %49 : i32 to index
    %c0_29 = arith.constant 0 : index
    %c0_30 = arith.constant 0 : index
    %51 = vector.load %arg1[%c0_28, %50, %c0_29, %c0_30] : memref<1x8x2x512xf32, #tpu.memory_space<vmem>>, vector<1x1x2x512xf32>
    %52 = vector.shape_cast %51 : vector<1x1x2x512xf32> to vector<2x512xf32>
    %c0_31 = arith.constant 0 : index
    %c0_32 = arith.constant 0 : index
    %53 = vector.load %arg4[%c0_31, %c0_32] : memref<2x128xf32, #tpu.memory_space<vmem>>, vector<2x128xf32>
    %c0_33 = arith.constant 0 : index
    %c0_34 = arith.constant 0 : index
    %c0_35 = arith.constant 0 : index
    %54 = vector.load %arg2[%c0_33, %c0_34, %c0_35] : memref<1x128x512xf32, #tpu.memory_space<vmem>>, vector<1x128x512xf32>
    %55 = vector.shape_cast %54 : vector<1x128x512xf32> to vector<128x512xf32>
    %cst_36 = arith.constant dense<0.000000e+00> : vector<2x512xf32>
    %56 = tpu.matmul %53, %55, %cst_36 {dimension_numbers = #tpu.dot_dimension_numbers<[1], [0], [0], [1], [0, 0, 1, 1], [], []>} : vector<2x128xf32>, vector<128x512xf32>, vector<2x512xf32> -> vector<2x512xf32>
    %57 = arith.addf %52, %56 : vector<2x512xf32>
    %58 = vector.extract_strided_slice %57 {offsets = [0, 0], sizes = [2, 128], strides = [1, 1]} : vector<2x512xf32> to vector<2x128xf32>
    %59 = arith.negf %58 : vector<2x128xf32>
    %60 = math.exp %59 : vector<2x128xf32>
    %cst_37 = arith.constant 1.000000e+00 : f32
    %61 = vector.broadcast %cst_37 : f32 to vector<2x128xf32>
    %62 = arith.addf %61, %60 : vector<2x128xf32>
    %63 = arith.divf %61, %62 : vector<2x128xf32>
    %64 = vector.extract_strided_slice %57 {offsets = [0, 128], sizes = [2, 128], strides = [1, 1]} : vector<2x512xf32> to vector<2x128xf32>
    %65 = arith.negf %64 : vector<2x128xf32>
    %66 = math.exp %65 : vector<2x128xf32>
    %cst_38 = arith.constant 1.000000e+00 : f32
    %67 = vector.broadcast %cst_38 : f32 to vector<2x128xf32>
    %68 = arith.addf %67, %66 : vector<2x128xf32>
    %69 = arith.divf %67, %68 : vector<2x128xf32>
    %70 = vector.extract_strided_slice %57 {offsets = [0, 256], sizes = [2, 128], strides = [1, 1]} : vector<2x512xf32> to vector<2x128xf32>
    %71 = math.tanh %70 : vector<2x128xf32>
    %72 = vector.extract_strided_slice %57 {offsets = [0, 384], sizes = [2, 128], strides = [1, 1]} : vector<2x512xf32> to vector<2x128xf32>
    %73 = arith.negf %72 : vector<2x128xf32>
    %74 = math.exp %73 : vector<2x128xf32>
    %cst_39 = arith.constant 1.000000e+00 : f32
    %75 = vector.broadcast %cst_39 : f32 to vector<2x128xf32>
    %76 = arith.addf %75, %74 : vector<2x128xf32>
    %77 = arith.divf %75, %76 : vector<2x128xf32>
    %c0_40 = arith.constant 0 : index
    %c0_41 = arith.constant 0 : index
    %78 = vector.load %arg5[%c0_40, %c0_41] : memref<2x128xf32, #tpu.memory_space<vmem>>, vector<2x128xf32>
    %79 = arith.mulf %69, %78 : vector<2x128xf32>
    %80 = arith.mulf %63, %71 : vector<2x128xf32>
    %81 = arith.addf %79, %80 : vector<2x128xf32>
    %82 = math.tanh %81 : vector<2x128xf32>
    %83 = arith.mulf %77, %82 : vector<2x128xf32>
    %c0_42 = arith.constant 0 : index
    %c0_43 = arith.constant 0 : index
    %84 = vector.load %arg5[%c0_42, %c0_43] : memref<2x128xf32, #tpu.memory_space<vmem>>, vector<2x128xf32>
    tpu.vector_store %arg5[%c0_42, %c0_43], %81 {strides = array<i32>} : memref<2x128xf32, #tpu.memory_space<vmem>>, vector<2x128xf32>,
    %c0_44 = arith.constant 0 : index
    %c0_45 = arith.constant 0 : index
    %85 = vector.load %arg4[%c0_44, %c0_45] : memref<2x128xf32, #tpu.memory_space<vmem>>, vector<2x128xf32>
    tpu.vector_store %arg4[%c0_44, %c0_45], %83 {strides = array<i32>} : memref<2x128xf32, #tpu.memory_space<vmem>>, vector<2x128xf32>,
    %c0_46 = arith.constant 0 : index
    %86 = arith.index_cast %49 : i32 to index
    %c0_47 = arith.constant 0 : index
    %c0_48 = arith.constant 0 : index
    %87 = vector.load %arg3[%c0_46, %86, %c0_47, %c0_48] : memref<1x8x2x128xf32, #tpu.memory_space<vmem>>, vector<1x1x2x128xf32>
    %88 = vector.shape_cast %87 : vector<1x1x2x128xf32> to vector<2x128xf32>
    %89 = vector.shape_cast %83 : vector<2x128xf32> to vector<1x1x2x128xf32>
    tpu.vector_store %arg3[%c0_46, %86, %c0_47, %c0_48], %89 {strides = array<i32>} : memref<1x8x2x128xf32, #tpu.memory_space<vmem>>, vector<1x1x2x128xf32>,
    %c2_i32 = arith.constant 2 : i32
    %c0_i32_49 = arith.constant 0 : i32
    %90 = arith.cmpi eq, %arg0, %c0_i32_49 : i32
    %c7_i32_50 = arith.constant 7 : i32
    %91 = arith.subi %c7_i32_50, %c2_i32 : i32
    %92 = arith.select %90, %c2_i32, %91 : i32
    %c0_51 = arith.constant 0 : index
    %93 = arith.index_cast %92 : i32 to index
    %c0_52 = arith.constant 0 : index
    %c0_53 = arith.constant 0 : index
    %94 = vector.load %arg1[%c0_51, %93, %c0_52, %c0_53] : memref<1x8x2x512xf32, #tpu.memory_space<vmem>>, vector<1x1x2x512xf32>
    %95 = vector.shape_cast %94 : vector<1x1x2x512xf32> to vector<2x512xf32>
    %c0_54 = arith.constant 0 : index
    %c0_55 = arith.constant 0 : index
    %96 = vector.load %arg4[%c0_54, %c0_55] : memref<2x128xf32, #tpu.memory_space<vmem>>, vector<2x128xf32>
    %c0_56 = arith.constant 0 : index
    %c0_57 = arith.constant 0 : index
    %c0_58 = arith.constant 0 : index
    %97 = vector.load %arg2[%c0_56, %c0_57, %c0_58] : memref<1x128x512xf32, #tpu.memory_space<vmem>>, vector<1x128x512xf32>
    %98 = vector.shape_cast %97 : vector<1x128x512xf32> to vector<128x512xf32>
    %cst_59 = arith.constant dense<0.000000e+00> : vector<2x512xf32>
    %99 = tpu.matmul %96, %98, %cst_59 {dimension_numbers = #tpu.dot_dimension_numbers<[1], [0], [0], [1], [0, 0, 1, 1], [], []>} : vector<2x128xf32>, vector<128x512xf32>, vector<2x512xf32> -> vector<2x512xf32>
    %100 = arith.addf %95, %99 : vector<2x512xf32>
    %101 = vector.extract_strided_slice %100 {offsets = [0, 0], sizes = [2, 128], strides = [1, 1]} : vector<2x512xf32> to vector<2x128xf32>
    %102 = arith.negf %101 : vector<2x128xf32>
    %103 = math.exp %102 : vector<2x128xf32>
    %cst_60 = arith.constant 1.000000e+00 : f32
    %104 = vector.broadcast %cst_60 : f32 to vector<2x128xf32>
    %105 = arith.addf %104, %103 : vector<2x128xf32>
    %106 = arith.divf %104, %105 : vector<2x128xf32>
    %107 = vector.extract_strided_slice %100 {offsets = [0, 128], sizes = [2, 128], strides = [1, 1]} : vector<2x512xf32> to vector<2x128xf32>
    %108 = arith.negf %107 : vector<2x128xf32>
    %109 = math.exp %108 : vector<2x128xf32>
    %cst_61 = arith.constant 1.000000e+00 : f32
    %110 = vector.broadcast %cst_61 : f32 to vector<2x128xf32>
    %111 = arith.addf %110, %109 : vector<2x128xf32>
    %112 = arith.divf %110, %111 : vector<2x128xf32>
    %113 = vector.extract_strided_slice %100 {offsets = [0, 256], sizes = [2, 128], strides = [1, 1]} : vector<2x512xf32> to vector<2x128xf32>
    %114 = math.tanh %113 : vector<2x128xf32>
    %115 = vector.extract_strided_slice %100 {offsets = [0, 384], sizes = [2, 128], strides = [1, 1]} : vector<2x512xf32> to vector<2x128xf32>
    %116 = arith.negf %115 : vector<2x128xf32>
    %117 = math.exp %116 : vector<2x128xf32>
    %cst_62 = arith.constant 1.000000e+00 : f32
    %118 = vector.broadcast %cst_62 : f32 to vector<2x128xf32>
    %119 = arith.addf %118, %117 : vector<2x128xf32>
    %120 = arith.divf %118, %119 : vector<2x128xf32>
    %c0_63 = arith.constant 0 : index
    %c0_64 = arith.constant 0 : index
    %121 = vector.load %arg5[%c0_63, %c0_64] : memref<2x128xf32, #tpu.memory_space<vmem>>, vector<2x128xf32>
    %122 = arith.mulf %112, %121 : vector<2x128xf32>
    %123 = arith.mulf %106, %114 : vector<2x128xf32>
    %124 = arith.addf %122, %123 : vector<2x128xf32>
    %125 = math.tanh %124 : vector<2x128xf32>
    %126 = arith.mulf %120, %125 : vector<2x128xf32>
    %c0_65 = arith.constant 0 : index
    %c0_66 = arith.constant 0 : index
    %127 = vector.load %arg5[%c0_65, %c0_66] : memref<2x128xf32, #tpu.memory_space<vmem>>, vector<2x128xf32>
    tpu.vector_store %arg5[%c0_65, %c0_66], %124 {strides = array<i32>} : memref<2x128xf32, #tpu.memory_space<vmem>>, vector<2x128xf32>,
    %c0_67 = arith.constant 0 : index
    %c0_68 = arith.constant 0 : index
    %128 = vector.load %arg4[%c0_67, %c0_68] : memref<2x128xf32, #tpu.memory_space<vmem>>, vector<2x128xf32>
    tpu.vector_store %arg4[%c0_67, %c0_68], %126 {strides = array<i32>} : memref<2x128xf32, #tpu.memory_space<vmem>>, vector<2x128xf32>,
    %c0_69 = arith.constant 0 : index
    %129 = arith.index_cast %92 : i32 to index
    %c0_70 = arith.constant 0 : index
    %c0_71 = arith.constant 0 : index
    %130 = vector.load %arg3[%c0_69, %129, %c0_70, %c0_71] : memref<1x8x2x128xf32, #tpu.memory_space<vmem>>, vector<1x1x2x128xf32>
    %131 = vector.shape_cast %130 : vector<1x1x2x128xf32> to vector<2x128xf32>
    %132 = vector.shape_cast %126 : vector<2x128xf32> to vector<1x1x2x128xf32>
    tpu.vector_store %arg3[%c0_69, %129, %c0_70, %c0_71], %132 {strides = array<i32>} : memref<1x8x2x128xf32, #tpu.memory_space<vmem>>, vector<1x1x2x128xf32>,
    %c3_i32 = arith.constant 3 : i32
    %c0_i32_72 = arith.constant 0 : i32
    %133 = arith.cmpi eq, %arg0, %c0_i32_72 : i32
    %c7_i32_73 = arith.constant 7 : i32
    %134 = arith.subi %c7_i32_73, %c3_i32 : i32
    %135 = arith.select %133, %c3_i32, %134 : i32
    %c0_74 = arith.constant 0 : index
    %136 = arith.index_cast %135 : i32 to index
    %c0_75 = arith.constant 0 : index
    %c0_76 = arith.constant 0 : index
    %137 = vector.load %arg1[%c0_74, %136, %c0_75, %c0_76] : memref<1x8x2x512xf32, #tpu.memory_space<vmem>>, vector<1x1x2x512xf32>
    %138 = vector.shape_cast %137 : vector<1x1x2x512xf32> to vector<2x512xf32>
    %c0_77 = arith.constant 0 : index
    %c0_78 = arith.constant 0 : index
    %139 = vector.load %arg4[%c0_77, %c0_78] : memref<2x128xf32, #tpu.memory_space<vmem>>, vector<2x128xf32>
    %c0_79 = arith.constant 0 : index
    %c0_80 = arith.constant 0 : index
    %c0_81 = arith.constant 0 : index
    %140 = vector.load %arg2[%c0_79, %c0_80, %c0_81] : memref<1x128x512xf32, #tpu.memory_space<vmem>>, vector<1x128x512xf32>
    %141 = vector.shape_cast %140 : vector<1x128x512xf32> to vector<128x512xf32>
    %cst_82 = arith.constant dense<0.000000e+00> : vector<2x512xf32>
    %142 = tpu.matmul %139, %141, %cst_82 {dimension_numbers = #tpu.dot_dimension_numbers<[1], [0], [0], [1], [0, 0, 1, 1], [], []>} : vector<2x128xf32>, vector<128x512xf32>, vector<2x512xf32> -> vector<2x512xf32>
    %143 = arith.addf %138, %142 : vector<2x512xf32>
    %144 = vector.extract_strided_slice %143 {offsets = [0, 0], sizes = [2, 128], strides = [1, 1]} : vector<2x512xf32> to vector<2x128xf32>
    %145 = arith.negf %144 : vector<2x128xf32>
    %146 = math.exp %145 : vector<2x128xf32>
    %cst_83 = arith.constant 1.000000e+00 : f32
    %147 = vector.broadcast %cst_83 : f32 to vector<2x128xf32>
    %148 = arith.addf %147, %146 : vector<2x128xf32>
    %149 = arith.divf %147, %148 : vector<2x128xf32>
    %150 = vector.extract_strided_slice %143 {offsets = [0, 128], sizes = [2, 128], strides = [1, 1]} : vector<2x512xf32> to vector<2x128xf32>
    %151 = arith.negf %150 : vector<2x128xf32>
    %152 = math.exp %151 : vector<2x128xf32>
    %cst_84 = arith.constant 1.000000e+00 : f32
    %153 = vector.broadcast %cst_84 : f32 to vector<2x128xf32>
    %154 = arith.addf %153, %152 : vector<2x128xf32>
    %155 = arith.divf %153, %154 : vector<2x128xf32>
    %156 = vector.extract_strided_slice %143 {offsets = [0, 256], sizes = [2, 128], strides = [1, 1]} : vector<2x512xf32> to vector<2x128xf32>
    %157 = math.tanh %156 : vector<2x128xf32>
    %158 = vector.extract_strided_slice %143 {offsets = [0, 384], sizes = [2, 128], strides = [1, 1]} : vector<2x512xf32> to vector<2x128xf32>
    %159 = arith.negf %158 : vector<2x128xf32>
    %160 = math.exp %159 : vector<2x128xf32>
    %cst_85 = arith.constant 1.000000e+00 : f32
    %161 = vector.broadcast %cst_85 : f32 to vector<2x128xf32>
    %162 = arith.addf %161, %160 : vector<2x128xf32>
    %163 = arith.divf %161, %162 : vector<2x128xf32>
    %c0_86 = arith.constant 0 : index
    %c0_87 = arith.constant 0 : index
    %164 = vector.load %arg5[%c0_86, %c0_87] : memref<2x128xf32, #tpu.memory_space<vmem>>, vector<2x128xf32>
    %165 = arith.mulf %155, %164 : vector<2x128xf32>
    %166 = arith.mulf %149, %157 : vector<2x128xf32>
    %167 = arith.addf %165, %166 : vector<2x128xf32>
    %168 = math.tanh %167 : vector<2x128xf32>
    %169 = arith.mulf %163, %168 : vector<2x128xf32>
    %c0_88 = arith.constant 0 : index
    %c0_89 = arith.constant 0 : index
    %170 = vector.load %arg5[%c0_88, %c0_89] : memref<2x128xf32, #tpu.memory_space<vmem>>, vector<2x128xf32>
    tpu.vector_store %arg5[%c0_88, %c0_89], %167 {strides = array<i32>} : memref<2x128xf32, #tpu.memory_space<vmem>>, vector<2x128xf32>,
    %c0_90 = arith.constant 0 : index
    %c0_91 = arith.constant 0 : index
    %171 = vector.load %arg4[%c0_90, %c0_91] : memref<2x128xf32, #tpu.memory_space<vmem>>, vector<2x128xf32>
    tpu.vector_store %arg4[%c0_90, %c0_91], %169 {strides = array<i32>} : memref<2x128xf32, #tpu.memory_space<vmem>>, vector<2x128xf32>,
    %c0_92 = arith.constant 0 : index
    %172 = arith.index_cast %135 : i32 to index
    %c0_93 = arith.constant 0 : index
    %c0_94 = arith.constant 0 : index
    %173 = vector.load %arg3[%c0_92, %172, %c0_93, %c0_94] : memref<1x8x2x128xf32, #tpu.memory_space<vmem>>, vector<1x1x2x128xf32>
    %174 = vector.shape_cast %173 : vector<1x1x2x128xf32> to vector<2x128xf32>
    %175 = vector.shape_cast %169 : vector<2x128xf32> to vector<1x1x2x128xf32>
    tpu.vector_store %arg3[%c0_92, %172, %c0_93, %c0_94], %175 {strides = array<i32>} : memref<1x8x2x128xf32, #tpu.memory_space<vmem>>, vector<1x1x2x128xf32>,
    %c4_i32 = arith.constant 4 : i32
    %c0_i32_95 = arith.constant 0 : i32
    %176 = arith.cmpi eq, %arg0, %c0_i32_95 : i32
    %c7_i32_96 = arith.constant 7 : i32
    %177 = arith.subi %c7_i32_96, %c4_i32 : i32
    %178 = arith.select %176, %c4_i32, %177 : i32
    %c0_97 = arith.constant 0 : index
    %179 = arith.index_cast %178 : i32 to index
    %c0_98 = arith.constant 0 : index
    %c0_99 = arith.constant 0 : index
    %180 = vector.load %arg1[%c0_97, %179, %c0_98, %c0_99] : memref<1x8x2x512xf32, #tpu.memory_space<vmem>>, vector<1x1x2x512xf32>
    %181 = vector.shape_cast %180 : vector<1x1x2x512xf32> to vector<2x512xf32>
    %c0_100 = arith.constant 0 : index
    %c0_101 = arith.constant 0 : index
    %182 = vector.load %arg4[%c0_100, %c0_101] : memref<2x128xf32, #tpu.memory_space<vmem>>, vector<2x128xf32>
    %c0_102 = arith.constant 0 : index
    %c0_103 = arith.constant 0 : index
    %c0_104 = arith.constant 0 : index
    %183 = vector.load %arg2[%c0_102, %c0_103, %c0_104] : memref<1x128x512xf32, #tpu.memory_space<vmem>>, vector<1x128x512xf32>
    %184 = vector.shape_cast %183 : vector<1x128x512xf32> to vector<128x512xf32>
    %cst_105 = arith.constant dense<0.000000e+00> : vector<2x512xf32>
    %185 = tpu.matmul %182, %184, %cst_105 {dimension_numbers = #tpu.dot_dimension_numbers<[1], [0], [0], [1], [0, 0, 1, 1], [], []>} : vector<2x128xf32>, vector<128x512xf32>, vector<2x512xf32> -> vector<2x512xf32>
    %186 = arith.addf %181, %185 : vector<2x512xf32>
    %187 = vector.extract_strided_slice %186 {offsets = [0, 0], sizes = [2, 128], strides = [1, 1]} : vector<2x512xf32> to vector<2x128xf32>
    %188 = arith.negf %187 : vector<2x128xf32>
    %189 = math.exp %188 : vector<2x128xf32>
    %cst_106 = arith.constant 1.000000e+00 : f32
    %190 = vector.broadcast %cst_106 : f32 to vector<2x128xf32>
    %191 = arith.addf %190, %189 : vector<2x128xf32>
    %192 = arith.divf %190, %191 : vector<2x128xf32>
    %193 = vector.extract_strided_slice %186 {offsets = [0, 128], sizes = [2, 128], strides = [1, 1]} : vector<2x512xf32> to vector<2x128xf32>
    %194 = arith.negf %193 : vector<2x128xf32>
    %195 = math.exp %194 : vector<2x128xf32>
    %cst_107 = arith.constant 1.000000e+00 : f32
    %196 = vector.broadcast %cst_107 : f32 to vector<2x128xf32>
    %197 = arith.addf %196, %195 : vector<2x128xf32>
    %198 = arith.divf %196, %197 : vector<2x128xf32>
    %199 = vector.extract_strided_slice %186 {offsets = [0, 256], sizes = [2, 128], strides = [1, 1]} : vector<2x512xf32> to vector<2x128xf32>
    %200 = math.tanh %199 : vector<2x128xf32>
    %201 = vector.extract_strided_slice %186 {offsets = [0, 384], sizes = [2, 128], strides = [1, 1]} : vector<2x512xf32> to vector<2x128xf32>
    %202 = arith.negf %201 : vector<2x128xf32>
    %203 = math.exp %202 : vector<2x128xf32>
    %cst_108 = arith.constant 1.000000e+00 : f32
    %204 = vector.broadcast %cst_108 : f32 to vector<2x128xf32>
    %205 = arith.addf %204, %203 : vector<2x128xf32>
    %206 = arith.divf %204, %205 : vector<2x128xf32>
    %c0_109 = arith.constant 0 : index
    %c0_110 = arith.constant 0 : index
    %207 = vector.load %arg5[%c0_109, %c0_110] : memref<2x128xf32, #tpu.memory_space<vmem>>, vector<2x128xf32>
    %208 = arith.mulf %198, %207 : vector<2x128xf32>
    %209 = arith.mulf %192, %200 : vector<2x128xf32>
    %210 = arith.addf %208, %209 : vector<2x128xf32>
    %211 = math.tanh %210 : vector<2x128xf32>
    %212 = arith.mulf %206, %211 : vector<2x128xf32>
    %c0_111 = arith.constant 0 : index
    %c0_112 = arith.constant 0 : index
    %213 = vector.load %arg5[%c0_111, %c0_112] : memref<2x128xf32, #tpu.memory_space<vmem>>, vector<2x128xf32>
    tpu.vector_store %arg5[%c0_111, %c0_112], %210 {strides = array<i32>} : memref<2x128xf32, #tpu.memory_space<vmem>>, vector<2x128xf32>,
    %c0_113 = arith.constant 0 : index
    %c0_114 = arith.constant 0 : index
    %214 = vector.load %arg4[%c0_113, %c0_114] : memref<2x128xf32, #tpu.memory_space<vmem>>, vector<2x128xf32>
    tpu.vector_store %arg4[%c0_113, %c0_114], %212 {strides = array<i32>} : memref<2x128xf32, #tpu.memory_space<vmem>>, vector<2x128xf32>,
    %c0_115 = arith.constant 0 : index
    %215 = arith.index_cast %178 : i32 to index
    %c0_116 = arith.constant 0 : index
    %c0_117 = arith.constant 0 : index
    %216 = vector.load %arg3[%c0_115, %215, %c0_116, %c0_117] : memref<1x8x2x128xf32, #tpu.memory_space<vmem>>, vector<1x1x2x128xf32>
    %217 = vector.shape_cast %216 : vector<1x1x2x128xf32> to vector<2x128xf32>
    %218 = vector.shape_cast %212 : vector<2x128xf32> to vector<1x1x2x128xf32>
    tpu.vector_store %arg3[%c0_115, %215, %c0_116, %c0_117], %218 {strides = array<i32>} : memref<1x8x2x128xf32, #tpu.memory_space<vmem>>, vector<1x1x2x128xf32>,
    %c5_i32 = arith.constant 5 : i32
    %c0_i32_118 = arith.constant 0 : i32
    %219 = arith.cmpi eq, %arg0, %c0_i32_118 : i32
    %c7_i32_119 = arith.constant 7 : i32
    %220 = arith.subi %c7_i32_119, %c5_i32 : i32
    %221 = arith.select %219, %c5_i32, %220 : i32
    %c0_120 = arith.constant 0 : index
    %222 = arith.index_cast %221 : i32 to index
    %c0_121 = arith.constant 0 : index
    %c0_122 = arith.constant 0 : index
    %223 = vector.load %arg1[%c0_120, %222, %c0_121, %c0_122] : memref<1x8x2x512xf32, #tpu.memory_space<vmem>>, vector<1x1x2x512xf32>
    %224 = vector.shape_cast %223 : vector<1x1x2x512xf32> to vector<2x512xf32>
    %c0_123 = arith.constant 0 : index
    %c0_124 = arith.constant 0 : index
    %225 = vector.load %arg4[%c0_123, %c0_124] : memref<2x128xf32, #tpu.memory_space<vmem>>, vector<2x128xf32>
    %c0_125 = arith.constant 0 : index
    %c0_126 = arith.constant 0 : index
    %c0_127 = arith.constant 0 : index
    %226 = vector.load %arg2[%c0_125, %c0_126, %c0_127] : memref<1x128x512xf32, #tpu.memory_space<vmem>>, vector<1x128x512xf32>
    %227 = vector.shape_cast %226 : vector<1x128x512xf32> to vector<128x512xf32>
    %cst_128 = arith.constant dense<0.000000e+00> : vector<2x512xf32>
    %228 = tpu.matmul %225, %227, %cst_128 {dimension_numbers = #tpu.dot_dimension_numbers<[1], [0], [0], [1], [0, 0, 1, 1], [], []>} : vector<2x128xf32>, vector<128x512xf32>, vector<2x512xf32> -> vector<2x512xf32>
    %229 = arith.addf %224, %228 : vector<2x512xf32>
    %230 = vector.extract_strided_slice %229 {offsets = [0, 0], sizes = [2, 128], strides = [1, 1]} : vector<2x512xf32> to vector<2x128xf32>
    %231 = arith.negf %230 : vector<2x128xf32>
    %232 = math.exp %231 : vector<2x128xf32>
    %cst_129 = arith.constant 1.000000e+00 : f32
    %233 = vector.broadcast %cst_129 : f32 to vector<2x128xf32>
    %234 = arith.addf %233, %232 : vector<2x128xf32>
    %235 = arith.divf %233, %234 : vector<2x128xf32>
    %236 = vector.extract_strided_slice %229 {offsets = [0, 128], sizes = [2, 128], strides = [1, 1]} : vector<2x512xf32> to vector<2x128xf32>
    %237 = arith.negf %236 : vector<2x128xf32>
    %238 = math.exp %237 : vector<2x128xf32>
    %cst_130 = arith.constant 1.000000e+00 : f32
    %239 = vector.broadcast %cst_130 : f32 to vector<2x128xf32>
    %240 = arith.addf %239, %238 : vector<2x128xf32>
    %241 = arith.divf %239, %240 : vector<2x128xf32>
    %242 = vector.extract_strided_slice %229 {offsets = [0, 256], sizes = [2, 128], strides = [1, 1]} : vector<2x512xf32> to vector<2x128xf32>
    %243 = math.tanh %242 : vector<2x128xf32>
    %244 = vector.extract_strided_slice %229 {offsets = [0, 384], sizes = [2, 128], strides = [1, 1]} : vector<2x512xf32> to vector<2x128xf32>
    %245 = arith.negf %244 : vector<2x128xf32>
    %246 = math.exp %245 : vector<2x128xf32>
    %cst_131 = arith.constant 1.000000e+00 : f32
    %247 = vector.broadcast %cst_131 : f32 to vector<2x128xf32>
    %248 = arith.addf %247, %246 : vector<2x128xf32>
    %249 = arith.divf %247, %248 : vector<2x128xf32>
    %c0_132 = arith.constant 0 : index
    %c0_133 = arith.constant 0 : index
    %250 = vector.load %arg5[%c0_132, %c0_133] : memref<2x128xf32, #tpu.memory_space<vmem>>, vector<2x128xf32>
    %251 = arith.mulf %241, %250 : vector<2x128xf32>
    %252 = arith.mulf %235, %243 : vector<2x128xf32>
    %253 = arith.addf %251, %252 : vector<2x128xf32>
    %254 = math.tanh %253 : vector<2x128xf32>
    %255 = arith.mulf %249, %254 : vector<2x128xf32>
    %c0_134 = arith.constant 0 : index
    %c0_135 = arith.constant 0 : index
    %256 = vector.load %arg5[%c0_134, %c0_135] : memref<2x128xf32, #tpu.memory_space<vmem>>, vector<2x128xf32>
    tpu.vector_store %arg5[%c0_134, %c0_135], %253 {strides = array<i32>} : memref<2x128xf32, #tpu.memory_space<vmem>>, vector<2x128xf32>,
    %c0_136 = arith.constant 0 : index
    %c0_137 = arith.constant 0 : index
    %257 = vector.load %arg4[%c0_136, %c0_137] : memref<2x128xf32, #tpu.memory_space<vmem>>, vector<2x128xf32>
    tpu.vector_store %arg4[%c0_136, %c0_137], %255 {strides = array<i32>} : memref<2x128xf32, #tpu.memory_space<vmem>>, vector<2x128xf32>,
    %c0_138 = arith.constant 0 : index
    %258 = arith.index_cast %221 : i32 to index
    %c0_139 = arith.constant 0 : index
    %c0_140 = arith.constant 0 : index
    %259 = vector.load %arg3[%c0_138, %258, %c0_139, %c0_140] : memref<1x8x2x128xf32, #tpu.memory_space<vmem>>, vector<1x1x2x128xf32>
    %260 = vector.shape_cast %259 : vector<1x1x2x128xf32> to vector<2x128xf32>
    %261 = vector.shape_cast %255 : vector<2x128xf32> to vector<1x1x2x128xf32>
    tpu.vector_store %arg3[%c0_138, %258, %c0_139, %c0_140], %261 {strides = array<i32>} : memref<1x8x2x128xf32, #tpu.memory_space<vmem>>, vector<1x1x2x128xf32>,
    %c6_i32 = arith.constant 6 : i32
    %c0_i32_141 = arith.constant 0 : i32
    %262 = arith.cmpi eq, %arg0, %c0_i32_141 : i32
    %c7_i32_142 = arith.constant 7 : i32
    %263 = arith.subi %c7_i32_142, %c6_i32 : i32
    %264 = arith.select %262, %c6_i32, %263 : i32
    %c0_143 = arith.constant 0 : index
    %265 = arith.index_cast %264 : i32 to index
    %c0_144 = arith.constant 0 : index
    %c0_145 = arith.constant 0 : index
    %266 = vector.load %arg1[%c0_143, %265, %c0_144, %c0_145] : memref<1x8x2x512xf32, #tpu.memory_space<vmem>>, vector<1x1x2x512xf32>
    %267 = vector.shape_cast %266 : vector<1x1x2x512xf32> to vector<2x512xf32>
    %c0_146 = arith.constant 0 : index
    %c0_147 = arith.constant 0 : index
    %268 = vector.load %arg4[%c0_146, %c0_147] : memref<2x128xf32, #tpu.memory_space<vmem>>, vector<2x128xf32>
    %c0_148 = arith.constant 0 : index
    %c0_149 = arith.constant 0 : index
    %c0_150 = arith.constant 0 : index
    %269 = vector.load %arg2[%c0_148, %c0_149, %c0_150] : memref<1x128x512xf32, #tpu.memory_space<vmem>>, vector<1x128x512xf32>
    %270 = vector.shape_cast %269 : vector<1x128x512xf32> to vector<128x512xf32>
    %cst_151 = arith.constant dense<0.000000e+00> : vector<2x512xf32>
    %271 = tpu.matmul %268, %270, %cst_151 {dimension_numbers = #tpu.dot_dimension_numbers<[1], [0], [0], [1], [0, 0, 1, 1], [], []>} : vector<2x128xf32>, vector<128x512xf32>, vector<2x512xf32> -> vector<2x512xf32>
    %272 = arith.addf %267, %271 : vector<2x512xf32>
    %273 = vector.extract_strided_slice %272 {offsets = [0, 0], sizes = [2, 128], strides = [1, 1]} : vector<2x512xf32> to vector<2x128xf32>
    %274 = arith.negf %273 : vector<2x128xf32>
    %275 = math.exp %274 : vector<2x128xf32>
    %cst_152 = arith.constant 1.000000e+00 : f32
    %276 = vector.broadcast %cst_152 : f32 to vector<2x128xf32>
    %277 = arith.addf %276, %275 : vector<2x128xf32>
    %278 = arith.divf %276, %277 : vector<2x128xf32>
    %279 = vector.extract_strided_slice %272 {offsets = [0, 128], sizes = [2, 128], strides = [1, 1]} : vector<2x512xf32> to vector<2x128xf32>
    %280 = arith.negf %279 : vector<2x128xf32>
    %281 = math.exp %280 : vector<2x128xf32>
    %cst_153 = arith.constant 1.000000e+00 : f32
    %282 = vector.broadcast %cst_153 : f32 to vector<2x128xf32>
    %283 = arith.addf %282, %281 : vector<2x128xf32>
    %284 = arith.divf %282, %283 : vector<2x128xf32>
    %285 = vector.extract_strided_slice %272 {offsets = [0, 256], sizes = [2, 128], strides = [1, 1]} : vector<2x512xf32> to vector<2x128xf32>
    %286 = math.tanh %285 : vector<2x128xf32>
    %287 = vector.extract_strided_slice %272 {offsets = [0, 384], sizes = [2, 128], strides = [1, 1]} : vector<2x512xf32> to vector<2x128xf32>
    %288 = arith.negf %287 : vector<2x128xf32>
    %289 = math.exp %288 : vector<2x128xf32>
    %cst_154 = arith.constant 1.000000e+00 : f32
    %290 = vector.broadcast %cst_154 : f32 to vector<2x128xf32>
    %291 = arith.addf %290, %289 : vector<2x128xf32>
    %292 = arith.divf %290, %291 : vector<2x128xf32>
    %c0_155 = arith.constant 0 : index
    %c0_156 = arith.constant 0 : index
    %293 = vector.load %arg5[%c0_155, %c0_156] : memref<2x128xf32, #tpu.memory_space<vmem>>, vector<2x128xf32>
    %294 = arith.mulf %284, %293 : vector<2x128xf32>
    %295 = arith.mulf %278, %286 : vector<2x128xf32>
    %296 = arith.addf %294, %295 : vector<2x128xf32>
    %297 = math.tanh %296 : vector<2x128xf32>
    %298 = arith.mulf %292, %297 : vector<2x128xf32>
    %c0_157 = arith.constant 0 : index
    %c0_158 = arith.constant 0 : index
    %299 = vector.load %arg5[%c0_157, %c0_158] : memref<2x128xf32, #tpu.memory_space<vmem>>, vector<2x128xf32>
    tpu.vector_store %arg5[%c0_157, %c0_158], %296 {strides = array<i32>} : memref<2x128xf32, #tpu.memory_space<vmem>>, vector<2x128xf32>,
    %c0_159 = arith.constant 0 : index
    %c0_160 = arith.constant 0 : index
    %300 = vector.load %arg4[%c0_159, %c0_160] : memref<2x128xf32, #tpu.memory_space<vmem>>, vector<2x128xf32>
    tpu.vector_store %arg4[%c0_159, %c0_160], %298 {strides = array<i32>} : memref<2x128xf32, #tpu.memory_space<vmem>>, vector<2x128xf32>,
    %c0_161 = arith.constant 0 : index
    %301 = arith.index_cast %264 : i32 to index
    %c0_162 = arith.constant 0 : index
    %c0_163 = arith.constant 0 : index
    %302 = vector.load %arg3[%c0_161, %301, %c0_162, %c0_163] : memref<1x8x2x128xf32, #tpu.memory_space<vmem>>, vector<1x1x2x128xf32>
    %303 = vector.shape_cast %302 : vector<1x1x2x128xf32> to vector<2x128xf32>
    %304 = vector.shape_cast %298 : vector<2x128xf32> to vector<1x1x2x128xf32>
    tpu.vector_store %arg3[%c0_161, %301, %c0_162, %c0_163], %304 {strides = array<i32>} : memref<1x8x2x128xf32, #tpu.memory_space<vmem>>, vector<1x1x2x128xf32>,
    %c7_i32_164 = arith.constant 7 : i32
    %c0_i32_165 = arith.constant 0 : i32
    %305 = arith.cmpi eq, %arg0, %c0_i32_165 : i32
    %c7_i32_166 = arith.constant 7 : i32
    %306 = arith.subi %c7_i32_166, %c7_i32_164 : i32
    %307 = arith.select %305, %c7_i32_164, %306 : i32
    %c0_167 = arith.constant 0 : index
    %308 = arith.index_cast %307 : i32 to index
    %c0_168 = arith.constant 0 : index
    %c0_169 = arith.constant 0 : index
    %309 = vector.load %arg1[%c0_167, %308, %c0_168, %c0_169] : memref<1x8x2x512xf32, #tpu.memory_space<vmem>>, vector<1x1x2x512xf32>
    %310 = vector.shape_cast %309 : vector<1x1x2x512xf32> to vector<2x512xf32>
    %c0_170 = arith.constant 0 : index
    %c0_171 = arith.constant 0 : index
    %311 = vector.load %arg4[%c0_170, %c0_171] : memref<2x128xf32, #tpu.memory_space<vmem>>, vector<2x128xf32>
    %c0_172 = arith.constant 0 : index
    %c0_173 = arith.constant 0 : index
    %c0_174 = arith.constant 0 : index
    %312 = vector.load %arg2[%c0_172, %c0_173, %c0_174] : memref<1x128x512xf32, #tpu.memory_space<vmem>>, vector<1x128x512xf32>
    %313 = vector.shape_cast %312 : vector<1x128x512xf32> to vector<128x512xf32>
    %cst_175 = arith.constant dense<0.000000e+00> : vector<2x512xf32>
    %314 = tpu.matmul %311, %313, %cst_175 {dimension_numbers = #tpu.dot_dimension_numbers<[1], [0], [0], [1], [0, 0, 1, 1], [], []>} : vector<2x128xf32>, vector<128x512xf32>, vector<2x512xf32> -> vector<2x512xf32>
    %315 = arith.addf %310, %314 : vector<2x512xf32>
    %316 = vector.extract_strided_slice %315 {offsets = [0, 0], sizes = [2, 128], strides = [1, 1]} : vector<2x512xf32> to vector<2x128xf32>
    %317 = arith.negf %316 : vector<2x128xf32>
    %318 = math.exp %317 : vector<2x128xf32>
    %cst_176 = arith.constant 1.000000e+00 : f32
    %319 = vector.broadcast %cst_176 : f32 to vector<2x128xf32>
    %320 = arith.addf %319, %318 : vector<2x128xf32>
    %321 = arith.divf %319, %320 : vector<2x128xf32>
    %322 = vector.extract_strided_slice %315 {offsets = [0, 128], sizes = [2, 128], strides = [1, 1]} : vector<2x512xf32> to vector<2x128xf32>
    %323 = arith.negf %322 : vector<2x128xf32>
    %324 = math.exp %323 : vector<2x128xf32>
    %cst_177 = arith.constant 1.000000e+00 : f32
    %325 = vector.broadcast %cst_177 : f32 to vector<2x128xf32>
    %326 = arith.addf %325, %324 : vector<2x128xf32>
    %327 = arith.divf %325, %326 : vector<2x128xf32>
    %328 = vector.extract_strided_slice %315 {offsets = [0, 256], sizes = [2, 128], strides = [1, 1]} : vector<2x512xf32> to vector<2x128xf32>
    %329 = math.tanh %328 : vector<2x128xf32>
    %330 = vector.extract_strided_slice %315 {offsets = [0, 384], sizes = [2, 128], strides = [1, 1]} : vector<2x512xf32> to vector<2x128xf32>
    %331 = arith.negf %330 : vector<2x128xf32>
    %332 = math.exp %331 : vector<2x128xf32>
    %cst_178 = arith.constant 1.000000e+00 : f32
    %333 = vector.broadcast %cst_178 : f32 to vector<2x128xf32>
    %334 = arith.addf %333, %332 : vector<2x128xf32>
    %335 = arith.divf %333, %334 : vector<2x128xf32>
    %c0_179 = arith.constant 0 : index
    %c0_180 = arith.constant 0 : index
    %336 = vector.load %arg5[%c0_179, %c0_180] : memref<2x128xf32, #tpu.memory_space<vmem>>, vector<2x128xf32>
    %337 = arith.mulf %327, %336 : vector<2x128xf32>
    %338 = arith.mulf %321, %329 : vector<2x128xf32>
    %339 = arith.addf %337, %338 : vector<2x128xf32>
    %340 = math.tanh %339 : vector<2x128xf32>
    %341 = arith.mulf %335, %340 : vector<2x128xf32>
    %c0_181 = arith.constant 0 : index
    %c0_182 = arith.constant 0 : index
    %342 = vector.load %arg5[%c0_181, %c0_182] : memref<2x128xf32, #tpu.memory_space<vmem>>, vector<2x128xf32>
    tpu.vector_store %arg5[%c0_181, %c0_182], %339 {strides = array<i32>} : memref<2x128xf32, #tpu.memory_space<vmem>>, vector<2x128xf32>,
    %c0_183 = arith.constant 0 : index
    %c0_184 = arith.constant 0 : index
    %343 = vector.load %arg4[%c0_183, %c0_184] : memref<2x128xf32, #tpu.memory_space<vmem>>, vector<2x128xf32>
    tpu.vector_store %arg4[%c0_183, %c0_184], %341 {strides = array<i32>} : memref<2x128xf32, #tpu.memory_space<vmem>>, vector<2x128xf32>,
    %c0_185 = arith.constant 0 : index
    %344 = arith.index_cast %307 : i32 to index
    %c0_186 = arith.constant 0 : index
    %c0_187 = arith.constant 0 : index
    %345 = vector.load %arg3[%c0_185, %344, %c0_186, %c0_187] : memref<1x8x2x128xf32, #tpu.memory_space<vmem>>, vector<1x1x2x128xf32>
    %346 = vector.shape_cast %345 : vector<1x1x2x128xf32> to vector<2x128xf32>
    %347 = vector.shape_cast %341 : vector<2x128xf32> to vector<1x1x2x128xf32>
    tpu.vector_store %arg3[%c0_185, %344, %c0_186, %c0_187], %347 {strides = array<i32>} : memref<1x8x2x128xf32, #tpu.memory_space<vmem>>, vector<1x1x2x128xf32>,
    %c8_i32 = arith.constant 8 : i32
    return
  }
  func.func @transform_0(%arg0: i32) -> (i32, i32, i32, i32) {
    %c0_i32 = arith.constant 0 : i32
    %c0_i32_0 = arith.constant 0 : i32
    %c0_i32_1 = arith.constant 0 : i32
    %c0_i32_2 = arith.constant 0 : i32
    return %arg0, %c0_i32, %c0_i32_0, %c0_i32_1 : i32, i32, i32, i32
  }
  func.func @transform_1(%arg0: i32) -> (i32, i32, i32) {
    %c0_i32 = arith.constant 0 : i32
    %c0_i32_0 = arith.constant 0 : i32
    %c0_i32_1 = arith.constant 0 : i32
    return %arg0, %c0_i32, %c0_i32_0 : i32, i32, i32
  }
  func.func @transform_2(%arg0: i32) -> (i32, i32, i32, i32) {
    %c0_i32 = arith.constant 0 : i32
    %c0_i32_0 = arith.constant 0 : i32
    %c0_i32_1 = arith.constant 0 : i32
    %c0_i32_2 = arith.constant 0 : i32
    return %arg0, %c0_i32, %c0_i32_0, %c0_i32_1 : i32, i32, i32, i32
  }
}

module attributes {stable_mosaic.version = 11 : i64} {
  func.func @kernel(%arg0: memref<2x8x200xf32, #tpu.memory_space<vmem>>, %arg1: memref<2x4x200xf32, #tpu.memory_space<vmem>>, %arg2: memref<1x200xf32, #tpu.memory_space<vmem>>, %arg3: memref<1x200xf32, #tpu.memory_space<vmem>>, %arg4: memref<1x200xf32, #tpu.memory_space<vmem>>, %arg5: memref<1x1xf32, #tpu.memory_space<vmem>>, %arg6: memref<2x8x800xf32, #tpu.memory_space<vmem>>, %arg7: memref<2x1x8xf32, #tpu.memory_space<vmem>>) attributes {dimension_semantics = [], scalar_prefetch = 0 : i64, scratch_operands = 0 : i64, tpu.core_type = #tpu.core_type<tc>} {
    %c0 = arith.constant 0 : index
    %c0_0 = arith.constant 0 : index
    %c0_1 = arith.constant 0 : index
    %0 = vector.load %arg0[%c0, %c0_0, %c0_1] : memref<2x8x200xf32, #tpu.memory_space<vmem>>, vector<2x8x200xf32>
    %c0_2 = arith.constant 0 : index
    %c0_3 = arith.constant 0 : index
    %c0_4 = arith.constant 0 : index
    %1 = vector.load %arg1[%c0_2, %c0_3, %c0_4] : memref<2x4x200xf32, #tpu.memory_space<vmem>>, vector<2x4x200xf32>
    %c0_5 = arith.constant 0 : index
    %c0_6 = arith.constant 0 : index
    %2 = vector.load %arg2[%c0_5, %c0_6] : memref<1x200xf32, #tpu.memory_space<vmem>>, vector<1x200xf32>
    %c0_7 = arith.constant 0 : index
    %c0_8 = arith.constant 0 : index
    %3 = vector.load %arg3[%c0_7, %c0_8] : memref<1x200xf32, #tpu.memory_space<vmem>>, vector<1x200xf32>
    %c0_9 = arith.constant 0 : index
    %c0_10 = arith.constant 0 : index
    %4 = vector.load %arg4[%c0_9, %c0_10] : memref<1x200xf32, #tpu.memory_space<vmem>>, vector<1x200xf32>
    %5 = vector.shape_cast %2 : vector<1x200xf32> to vector<1x1x200xf32>
    %6 = vector.broadcast %5 : vector<1x1x200xf32> to vector<2x8x200xf32>
    %7 = arith.mulf %0, %6 : vector<2x8x200xf32>
    %cst = arith.constant dense<0.000000e+00> : vector<2x8xf32>
    %8 = vector.multi_reduction <add>, %7, %cst [2] : vector<2x8x200xf32> to vector<2x8xf32>
    %9 = vector.shape_cast %8 : vector<2x8xf32> to vector<2x8x1xf32>
    %10 = vector.shape_cast %3 : vector<1x200xf32> to vector<1x1x200xf32>
    %11 = vector.broadcast %10 : vector<1x1x200xf32> to vector<2x4x200xf32>
    %12 = arith.mulf %1, %11 : vector<2x4x200xf32>
    %cst_11 = arith.constant dense<0.000000e+00> : vector<2x4xf32>
    %13 = vector.multi_reduction <add>, %12, %cst_11 [2] : vector<2x4x200xf32> to vector<2x4xf32>
    %14 = vector.shape_cast %4 : vector<1x200xf32> to vector<1x1x200xf32>
    %15 = vector.broadcast %14 : vector<1x1x200xf32> to vector<2x8x200xf32>
    %16 = arith.mulf %0, %15 : vector<2x8x200xf32>
    "tpu.trace_start"() <{level = 10 : i32, message = "btd,bjd->btj"}> : () -> ()
    %cst_12 = arith.constant dense<0.000000e+00> : vector<2x8x4xf32>
    %17 = tpu.matmul %16, %1, %cst_12 {dimension_numbers = #tpu.dot_dimension_numbers<[2], [2], [1], [1], [0, 0, 0, 1, 1, 1], [0], [0]>} : vector<2x8x200xf32>, vector<2x4x200xf32>, vector<2x8x4xf32> -> vector<2x8x4xf32>
    "tpu.trace_stop"() : () -> ()
    %18 = vector.broadcast %9 : vector<2x8x1xf32> to vector<2x8x4xf32>
    %19 = arith.addf %17, %18 : vector<2x8x4xf32>
    %20 = vector.shape_cast %13 : vector<2x4xf32> to vector<2x1x4xf32>
    %21 = vector.broadcast %20 : vector<2x1x4xf32> to vector<2x8x4xf32>
    %22 = arith.addf %19, %21 : vector<2x8x4xf32>
    %c0_13 = arith.constant 0 : index
    %c0_14 = arith.constant 0 : index
    %23 = vector.load %arg5[%c0_13, %c0_14] : memref<1x1xf32, #tpu.memory_space<vmem>>, vector<1x1xf32>
    %24 = vector.shape_cast %23 : vector<1x1xf32> to vector<1x1x1xf32>
    %25 = vector.broadcast %24 : vector<1x1x1xf32> to vector<2x8x4xf32>
    %26 = arith.addf %22, %25 : vector<2x8x4xf32>
    %cst_15 = arith.constant dense<0xFF800000> : vector<2x8xf32>
    %27 = vector.multi_reduction <maximumf>, %26, %cst_15 [2] : vector<2x8x4xf32> to vector<2x8xf32>
    %28 = vector.shape_cast %27 : vector<2x8xf32> to vector<2x8x1xf32>
    %29 = vector.broadcast %28 : vector<2x8x1xf32> to vector<2x8x4xf32>
    %30 = arith.subf %26, %29 : vector<2x8x4xf32>
    %31 = math.exp %30 : vector<2x8x4xf32>
    %cst_16 = arith.constant dense<0.000000e+00> : vector<2x8xf32>
    %32 = vector.multi_reduction <add>, %31, %cst_16 [2] : vector<2x8x4xf32> to vector<2x8xf32>
    %33 = vector.shape_cast %32 : vector<2x8xf32> to vector<2x8x1xf32>
    %34 = vector.broadcast %33 : vector<2x8x1xf32> to vector<2x8x4xf32>
    %35 = arith.divf %31, %34 : vector<2x8x4xf32>
    "tpu.trace_start"() <{level = 10 : i32, message = "btj,bjd->btd"}> : () -> ()
    %cst_17 = arith.constant dense<0.000000e+00> : vector<2x8x200xf32>
    %36 = tpu.matmul %35, %1, %cst_17 {dimension_numbers = #tpu.dot_dimension_numbers<[2], [1], [1], [2], [0, 0, 0, 1, 1, 2], [0], [0]>} : vector<2x8x4xf32>, vector<2x4x200xf32>, vector<2x8x200xf32> -> vector<2x8x200xf32>
    "tpu.trace_stop"() : () -> ()
    %37 = vector.shape_cast %28 : vector<2x8x1xf32> to vector<2x8xf32>
    %cst_18 = arith.constant dense<0xFF800000> : vector<2xf32>
    %38 = vector.multi_reduction <maximumf>, %37, %cst_18 [1] : vector<2x8xf32> to vector<2xf32>
    %39 = vector.shape_cast %38 : vector<2xf32> to vector<2x1xf32>
    %40 = vector.broadcast %39 : vector<2x1xf32> to vector<2x8xf32>
    %41 = arith.subf %37, %40 : vector<2x8xf32>
    %42 = math.exp %41 : vector<2x8xf32>
    %cst_19 = arith.constant dense<0.000000e+00> : vector<2xf32>
    %43 = vector.multi_reduction <add>, %42, %cst_19 [1] : vector<2x8xf32> to vector<2xf32>
    %44 = vector.shape_cast %43 : vector<2xf32> to vector<2x1xf32>
    %45 = vector.broadcast %44 : vector<2x1xf32> to vector<2x8xf32>
    %46 = arith.divf %42, %45 : vector<2x8xf32>
    %47 = vector.shape_cast %46 : vector<2x8xf32> to vector<2x8x1xf32>
    %48 = vector.broadcast %47 : vector<2x8x1xf32> to vector<2x8x200xf32>
    %49 = arith.mulf %48, %0 : vector<2x8x200xf32>
    %cst_20 = arith.constant dense<0.000000e+00> : vector<2x200xf32>
    %50 = vector.multi_reduction <add>, %49, %cst_20 [1] : vector<2x8x200xf32> to vector<2x200xf32>
    %51 = arith.mulf %0, %36 : vector<2x8x200xf32>
    %52 = vector.shape_cast %50 : vector<2x200xf32> to vector<2x1x200xf32>
    %53 = vector.broadcast %52 : vector<2x1x200xf32> to vector<2x8x200xf32>
    %54 = arith.mulf %0, %53 : vector<2x8x200xf32>
    %55 = tpu.concatenate %0, %36, %51, %54 in 2 : vector<2x8x200xf32>, vector<2x8x200xf32>, vector<2x8x200xf32>, vector<2x8x200xf32> -> vector<2x8x800xf32>
    %c0_21 = arith.constant 0 : index
    %c0_22 = arith.constant 0 : index
    %c0_23 = arith.constant 0 : index
    %56 = vector.load %arg6[%c0_21, %c0_22, %c0_23] : memref<2x8x800xf32, #tpu.memory_space<vmem>>, vector<2x8x800xf32>
    tpu.vector_store %arg6[%c0_21, %c0_22, %c0_23], %55 {strides = array<i32>} : memref<2x8x800xf32, #tpu.memory_space<vmem>>, vector<2x8x800xf32>,
    %57 = vector.shape_cast %46 : vector<2x8xf32> to vector<2x1x8xf32>
    %c0_24 = arith.constant 0 : index
    %c0_25 = arith.constant 0 : index
    %c0_26 = arith.constant 0 : index
    %58 = vector.load %arg7[%c0_24, %c0_25, %c0_26] : memref<2x1x8xf32, #tpu.memory_space<vmem>>, vector<2x1x8xf32>
    tpu.vector_store %arg7[%c0_24, %c0_25, %c0_26], %57 {strides = array<i32>} : memref<2x1x8xf32, #tpu.memory_space<vmem>>, vector<2x1x8xf32>,
    return
  }
}

module attributes {stable_mosaic.version = 11 : i64} {
  func.func @kernel(%arg0: i32, %arg1: i32, %arg2: memref<16x800xf32, #tpu.memory_space<vmem>>, %arg3: memref<1x800x512xf32, #tpu.memory_space<vmem>>, %arg4: memref<1x1x512xf32, #tpu.memory_space<vmem>>, %arg5: memref<1x16x512xf32, #tpu.memory_space<vmem>>) attributes {dimension_semantics = [#tpu.dimension_semantics<parallel>, #tpu.dimension_semantics<parallel>], iteration_bounds = array<i64: 2, 1>, scalar_prefetch = 0 : i64, scratch_operands = 0 : i64, tpu.core_type = #tpu.core_type<tc>, window_params = [{transform_indices = @transform_0, window_bounds = array<i64: 16, 800>}, {transform_indices = @transform_1, window_bounds = array<i64: 1, 800, 512>}, {transform_indices = @transform_2, window_bounds = array<i64: 1, 1, 512>}, {transform_indices = @transform_3, window_bounds = array<i64: 1, 16, 512>}]} {
    %c0 = arith.constant 0 : index
    %c0_0 = arith.constant 0 : index
    %0 = vector.load %arg2[%c0, %c0_0] : memref<16x800xf32, #tpu.memory_space<vmem>>, vector<16x800xf32>
    %c0_1 = arith.constant 0 : index
    %c0_2 = arith.constant 0 : index
    %c0_3 = arith.constant 0 : index
    %1 = vector.load %arg3[%c0_1, %c0_2, %c0_3] : memref<1x800x512xf32, #tpu.memory_space<vmem>>, vector<1x800x512xf32>
    %2 = vector.shape_cast %1 : vector<1x800x512xf32> to vector<800x512xf32>
    %cst = arith.constant dense<0.000000e+00> : vector<16x512xf32>
    %3 = tpu.matmul %0, %2, %cst {dimension_numbers = #tpu.dot_dimension_numbers<[1], [0], [0], [1], [0, 0, 1, 1], [], []>} : vector<16x800xf32>, vector<800x512xf32>, vector<16x512xf32> -> vector<16x512xf32>
    %c0_4 = arith.constant 0 : index
    %c0_5 = arith.constant 0 : index
    %c0_6 = arith.constant 0 : index
    %4 = vector.load %arg4[%c0_4, %c0_5, %c0_6] : memref<1x1x512xf32, #tpu.memory_space<vmem>>, vector<1x1x512xf32>
    %5 = vector.shape_cast %4 : vector<1x1x512xf32> to vector<1x512xf32>
    %6 = vector.broadcast %5 : vector<1x512xf32> to vector<16x512xf32>
    %7 = arith.addf %3, %6 : vector<16x512xf32>
    %c0_7 = arith.constant 0 : index
    %c0_8 = arith.constant 0 : index
    %c0_9 = arith.constant 0 : index
    %8 = vector.load %arg5[%c0_7, %c0_8, %c0_9] : memref<1x16x512xf32, #tpu.memory_space<vmem>>, vector<1x16x512xf32>
    %9 = vector.shape_cast %8 : vector<1x16x512xf32> to vector<16x512xf32>
    %10 = vector.shape_cast %7 : vector<16x512xf32> to vector<1x16x512xf32>
    tpu.vector_store %arg5[%c0_7, %c0_8, %c0_9], %10 {strides = array<i32>} : memref<1x16x512xf32, #tpu.memory_space<vmem>>, vector<1x16x512xf32>,
    return
  }
  func.func @transform_0(%arg0: i32, %arg1: i32) -> (i32, i32) {
    %c0_i32 = arith.constant 0 : i32
    %c0_i32_0 = arith.constant 0 : i32
    return %arg1, %c0_i32 : i32, i32
  }
  func.func @transform_1(%arg0: i32, %arg1: i32) -> (i32, i32, i32) {
    %c0_i32 = arith.constant 0 : i32
    %c0_i32_0 = arith.constant 0 : i32
    %c0_i32_1 = arith.constant 0 : i32
    return %arg0, %c0_i32, %c0_i32_0 : i32, i32, i32
  }
  func.func @transform_2(%arg0: i32, %arg1: i32) -> (i32, i32, i32) {
    %c0_i32 = arith.constant 0 : i32
    %c0_i32_0 = arith.constant 0 : i32
    %c0_i32_1 = arith.constant 0 : i32
    return %arg0, %c0_i32, %c0_i32_0 : i32, i32, i32
  }
  func.func @transform_3(%arg0: i32, %arg1: i32) -> (i32, i32, i32) {
    %c0_i32 = arith.constant 0 : i32
    %c0_i32_0 = arith.constant 0 : i32
    return %arg0, %arg1, %c0_i32 : i32, i32, i32
  }
}

module attributes {stable_mosaic.version = 11 : i64} {
  func.func @kernel(%arg0: memref<2x8x800xf32, #tpu.memory_space<vmem>>, %arg1: memref<2x8x200xf32, #tpu.memory_space<vmem>>, %arg2: memref<1x800xf32, #tpu.memory_space<vmem>>, %arg3: memref<1x200xf32, #tpu.memory_space<vmem>>, %arg4: memref<1x1xf32, #tpu.memory_space<vmem>>, %arg5: memref<2x8xf32, #tpu.memory_space<vmem>>) attributes {dimension_semantics = [], scalar_prefetch = 0 : i64, scratch_operands = 0 : i64, tpu.core_type = #tpu.core_type<tc>} {
    %c0 = arith.constant 0 : index
    %c0_0 = arith.constant 0 : index
    %c0_1 = arith.constant 0 : index
    %0 = vector.load %arg0[%c0, %c0_0, %c0_1] : memref<2x8x800xf32, #tpu.memory_space<vmem>>, vector<2x8x800xf32>
    %c0_2 = arith.constant 0 : index
    %c0_3 = arith.constant 0 : index
    %1 = vector.load %arg2[%c0_2, %c0_3] : memref<1x800xf32, #tpu.memory_space<vmem>>, vector<1x800xf32>
    %2 = vector.shape_cast %1 : vector<1x800xf32> to vector<1x1x800xf32>
    %3 = vector.broadcast %2 : vector<1x1x800xf32> to vector<2x8x800xf32>
    %4 = arith.mulf %0, %3 : vector<2x8x800xf32>
    %cst = arith.constant dense<0.000000e+00> : vector<2x8xf32>
    %5 = vector.multi_reduction <add>, %4, %cst [2] : vector<2x8x800xf32> to vector<2x8xf32>
    %c0_4 = arith.constant 0 : index
    %c0_5 = arith.constant 0 : index
    %c0_6 = arith.constant 0 : index
    %6 = vector.load %arg1[%c0_4, %c0_5, %c0_6] : memref<2x8x200xf32, #tpu.memory_space<vmem>>, vector<2x8x200xf32>
    %c0_7 = arith.constant 0 : index
    %c0_8 = arith.constant 0 : index
    %7 = vector.load %arg3[%c0_7, %c0_8] : memref<1x200xf32, #tpu.memory_space<vmem>>, vector<1x200xf32>
    %8 = vector.shape_cast %7 : vector<1x200xf32> to vector<1x1x200xf32>
    %9 = vector.broadcast %8 : vector<1x1x200xf32> to vector<2x8x200xf32>
    %10 = arith.mulf %6, %9 : vector<2x8x200xf32>
    %cst_9 = arith.constant dense<0.000000e+00> : vector<2x8xf32>
    %11 = vector.multi_reduction <add>, %10, %cst_9 [2] : vector<2x8x200xf32> to vector<2x8xf32>
    %12 = arith.addf %5, %11 : vector<2x8xf32>
    %c0_10 = arith.constant 0 : index
    %c0_11 = arith.constant 0 : index
    %13 = vector.load %arg4[%c0_10, %c0_11] : memref<1x1xf32, #tpu.memory_space<vmem>>, vector<1x1xf32>
    %14 = vector.broadcast %13 : vector<1x1xf32> to vector<2x8xf32>
    %15 = arith.addf %12, %14 : vector<2x8xf32>
    %cst_12 = arith.constant dense<0xFF800000> : vector<2xf32>
    %16 = vector.multi_reduction <maximumf>, %15, %cst_12 [1] : vector<2x8xf32> to vector<2xf32>
    %17 = vector.shape_cast %16 : vector<2xf32> to vector<2x1xf32>
    %18 = vector.broadcast %17 : vector<2x1xf32> to vector<2x8xf32>
    %19 = arith.subf %15, %18 : vector<2x8xf32>
    %20 = math.exp %19 : vector<2x8xf32>
    %cst_13 = arith.constant dense<0.000000e+00> : vector<2xf32>
    %21 = vector.multi_reduction <add>, %20, %cst_13 [1] : vector<2x8xf32> to vector<2xf32>
    %22 = vector.shape_cast %21 : vector<2xf32> to vector<2x1xf32>
    %23 = math.log %22 : vector<2x1xf32>
    %24 = arith.addf %23, %17 : vector<2x1xf32>
    %25 = vector.broadcast %24 : vector<2x1xf32> to vector<2x8xf32>
    %26 = arith.subf %15, %25 : vector<2x8xf32>
    %c0_14 = arith.constant 0 : index
    %c0_15 = arith.constant 0 : index
    %27 = vector.load %arg5[%c0_14, %c0_15] : memref<2x8xf32, #tpu.memory_space<vmem>>, vector<2x8xf32>
    tpu.vector_store %arg5[%c0_14, %c0_15], %26 {strides = array<i32>} : memref<2x8xf32, #tpu.memory_space<vmem>>, vector<2x8xf32>,
    return
  }
}

</mosaic_0001>

<bundles_post_ra>
// kernel: bidaf_forward.20
= control target key start
LH: loop header
LB: loop body
LE: loop exit
PB: predicated region body
PF: predicated region fallthrough
CT: control target
= control target key end

     0   :  { %vm62_vm0 = vcmask 326656   ;;  %vm452_vm1 = vcmask 818176   ;;  %vm457_vm2 = vcmask 814080   ;;  %vm469_vm3 = vcmask 818180   ;;  %s1014_s1 = inlined_call_operand.vmem [shape: f32[40,100], index: 1, kind: input, shape index: {}]   ;;  %s1015_s0 = inlined_call_operand.vmem [shape: f32[288,40], index: 0, kind: input, shape index: {}]   ;;  %s1016_s2 = inlined_call_operand.vmem [shape: f32[1,100], index: 2, kind: input, shape index: {}]   ;;  %s1017_s3 = inlined_call_operand.vmem [shape: f32[8,100], index: 3, kind: output, shape index: {}]  }
   0x1   :  { %v54_v0 = vld [vmem:[%s1014_s1 + $0x20] sm:$0xff]  ;;  %v53_v1 = vld [vmem:[%s1014_s1 + $0x18] sm:$0xff]  ;;  %v52_v2 = vld [vmem:[%s1014_s1 + $0x10] sm:$0xff]  ;;  %vm575_vm4 = vcmask 1040384   ;;  %vm577_vm5 = vcmask 1041408   ;;  %vm579_vm6 = vcmask 1042432  }
   0x2   :  { %672 = vmatprep.subr.mxu0 %v54_v0  ;;  %736 = vmatprep.subr.mxu1 %v54_v0  ;;  %v51_v3 = vld [vmem:[%s1014_s1 + $0x8] sm:$0xff]  ;;  %v50_v4 = vld [vmem:[%s1014_s1] sm:$0xff]  ;;  %v32_v6 = vld [vmem:[%s1015_s0 + $0x90] sm:$0xff]  ;;  %vm581_vm7 = vcmask 1043456   ;;  %vm583_vm8 = vcmask 1044480   ;;  %vm585_vm9 = vcmask 1045504  }
   0x3   :  { %673 = vmatpush3.msra.mxu0 %v54_v0  ;;  %741 = vmatpush3.msra.mxu1 %v54_v0  ;;  %v14_v5 = vld [vmem:[%s1015_s0] sm:$0xff]  ;;  %v15_v7 = vld [vmem:[%s1015_s0 + $0x8] sm:$0xff]  ;;  %v33_v8 = vld [vmem:[%s1015_s0 + $0x98] sm:$0xff]  ;;  %vm587_vm10 = vcmask 1046528  }
   0x4   :  { %674 = vmatprep.subr.mxu0 %v53_v1  ;;  %737 = vmatprep.subr.mxu1 %v53_v1  ;;  %v16_v9 = vld [vmem:[%s1015_s0 + $0x10] sm:$0xff]  ;;  %v34_v10 = vld [vmem:[%s1015_s0 + $0xa0] sm:$0xff]  ;;  %v17_v11 = vld [vmem:[%s1015_s0 + $0x18] sm:$0xff] }
   0x5   :  { %675 = vmatpush3.msra.mxu0 %v53_v1  ;;  %742 = vmatpush3.msra.mxu1 %v53_v1  ;;  %v35_v12 = vld [vmem:[%s1015_s0 + $0xa8] sm:$0xff]  ;;  %v18_v13 = vld [vmem:[%s1015_s0 + $0x20] sm:$0xff]  ;;  %v36_v14 = vld [vmem:[%s1015_s0 + $0xb0] sm:$0xff] }
   0x6   :  { %676 = vmatprep.subr.mxu0 %v52_v2  ;;  %738 = vmatprep.subr.mxu1 %v52_v2  ;;  %v19_v15 = vld [vmem:[%s1015_s0 + $0x28] sm:$0xff]  ;;  %v37_v16 = vld [vmem:[%s1015_s0 + $0xb8] sm:$0xff]  ;;  %v20_v17 = vld [vmem:[%s1015_s0 + $0x30] sm:$0xff] }
   0x7   :  { %677 = vmatpush3.msra.mxu0 %v52_v2  ;;  %743 = vmatpush3.msra.mxu1 %v52_v2  ;;  %v38_v18 = vld [vmem:[%s1015_s0 + $0xc0] sm:$0xff]  ;;  %v21_v19 = vld [vmem:[%s1015_s0 + $0x38] sm:$0xff]  ;;  %v39_v20 = vld [vmem:[%s1015_s0 + $0xc8] sm:$0xff] }
   0x8   :  { %678 = vmatprep.subr.mxu0 %v51_v3  ;;  %739 = vmatprep.subr.mxu1 %v51_v3  ;;  %v22_v21 = vld [vmem:[%s1015_s0 + $0x40] sm:$0xff]  ;;  %v40_v22 = vld [vmem:[%s1015_s0 + $0xd0] sm:$0xff]  ;;  %v23_v23 = vld [vmem:[%s1015_s0 + $0x48] sm:$0xff] }
   0x9   :  { %679 = vmatpush3.msra.mxu0 %v51_v3  ;;  %744 = vmatpush3.msra.mxu1 %v51_v3  ;;  %v41_v24 = vld [vmem:[%s1015_s0 + $0xd8] sm:$0xff]  ;;  %v24_v25 = vld [vmem:[%s1015_s0 + $0x50] sm:$0xff]  ;;  %v42_v26 = vld [vmem:[%s1015_s0 + $0xe0] sm:$0xff] }
   0xa   :  { %680 = vmatprep.subr.mxu0 %v50_v4  ;;  %740 = vmatprep.subr.mxu1 %v50_v4  ;;  %v25_v27 = vld [vmem:[%s1015_s0 + $0x58] sm:$0xff]  ;;  %v43_v28 = vld [vmem:[%s1015_s0 + $0xe8] sm:$0xff]  ;;  %v26_v29 = vld [vmem:[%s1015_s0 + $0x60] sm:$0xff] }
   0xb   :  { %681 = vmatpush3.msra.mxu0 %v50_v4  ;;  %745 = vmatpush3.msra.mxu1 %v50_v4  ;;  %v44_v30 = vld [vmem:[%s1015_s0 + $0xf0] sm:$0xff]  ;;  %v27_v31 = vld [vmem:[%s1015_s0 + $0x68] sm:$0xff]  ;;  %v45_v32 = vld [vmem:[%s1015_s0 + $0xf8] sm:$0xff] }
   0xc   :  { %682 = vmatprep.mubr.msk.f32.mxu0 %vm62_vm0, %v14_v5  ;;  %709 = vmatprep.mubr.msk.f32.mxu1 %vm62_vm0, %v32_v6  ;;  %v28_v33 = vld [vmem:[%s1015_s0 + $0x70] sm:$0xff]  ;;  %v46_v34 = vld [vmem:[%s1015_s0 + $0x100] sm:$0xff]  ;;  %v29_v35 = vld [vmem:[%s1015_s0 + $0x78] sm:$0xff] }
   0xd   :  { %683 = vmatmul.mubr.msk.f32.vlgmr.msra.gmra.mxu0 %vm62_vm0, %v15_v7  ;;  %710 = vmatmul.mubr.msk.f32.vlgmr.msra.gmra.mxu1 %vm62_vm0, %v33_v8  ;;  %v47_v36 = vld [vmem:[%s1015_s0 + $0x108] sm:$0xff]  ;;  %v30_v37 = vld [vmem:[%s1015_s0 + $0x80] sm:$0xff]  ;;  %v48_v38 = vld [vmem:[%s1015_s0 + $0x110] sm:$0xff] }
   0xe   :  { %685 = vmatprep.mubr.msk.f32.mxu0 %vm62_vm0, %v16_v9  ;;  %712 = vmatprep.mubr.msk.f32.mxu1 %vm62_vm0, %v34_v10  ;;  %v31_v39 = vld [vmem:[%s1015_s0 + $0x88] sm:$0xff]  ;;  %v49_v40 = vld [vmem:[%s1015_s0 + $0x118] sm:$0xff]  ;;  %v928_v45 = vld [vmem:[%s1016_s2] ss:$0 sm:$0xff] }
  0x11   :  { %686 = vmatmul.mubr.msk.f32.gmra.mxu0 %vm62_vm0, %v17_v11  ;;  %713 = vmatmul.mubr.msk.f32.gmra.mxu1 %vm62_vm0, %v35_v12 }
  0x12   :  { %688 = vmatprep.mubr.msk.f32.mxu0 %vm62_vm0, %v18_v13  ;;  %715 = vmatprep.mubr.msk.f32.mxu1 %vm62_vm0, %v36_v14 }
  0x15   :  { %689 = vmatmul.mubr.msk.f32.gmra.mxu0 %vm62_vm0, %v19_v15  ;;  %716 = vmatmul.mubr.msk.f32.gmra.mxu1 %vm62_vm0, %v37_v16 }
  0x16   :  { %691 = vmatprep.mubr.msk.f32.mxu0 %vm62_vm0, %v20_v17  ;;  %718 = vmatprep.mubr.msk.f32.mxu1 %vm62_vm0, %v38_v18 }
  0x19   :  { %692 = vmatmul.mubr.msk.f32.gmra.mxu0 %vm62_vm0, %v21_v19  ;;  %719 = vmatmul.mubr.msk.f32.gmra.mxu1 %vm62_vm0, %v39_v20 }
  0x1a   :  { %694 = vmatprep.mubr.msk.f32.mxu0 %vm62_vm0, %v22_v21  ;;  %721 = vmatprep.mubr.msk.f32.mxu1 %vm62_vm0, %v40_v22 }
  0x1d   :  { %695 = vmatmul.mubr.msk.f32.gmra.mxu0 %vm62_vm0, %v23_v23  ;;  %722 = vmatmul.mubr.msk.f32.gmra.mxu1 %vm62_vm0, %v41_v24 }
  0x1e   :  { %697 = vmatprep.mubr.msk.f32.mxu0 %vm62_vm0, %v24_v25  ;;  %724 = vmatprep.mubr.msk.f32.mxu1 %vm62_vm0, %v42_v26 }
  0x21   :  { %698 = vmatmul.mubr.msk.f32.gmra.mxu0 %vm62_vm0, %v25_v27  ;;  %725 = vmatmul.mubr.msk.f32.gmra.mxu1 %vm62_vm0, %v43_v28 }
  0x22   :  { %700 = vmatprep.mubr.msk.f32.mxu0 %vm62_vm0, %v26_v29  ;;  %727 = vmatprep.mubr.msk.f32.mxu1 %vm62_vm0, %v44_v30 }
  0x25   :  { %701 = vmatmul.mubr.msk.f32.gmra.mxu0 %vm62_vm0, %v27_v31  ;;  %728 = vmatmul.mubr.msk.f32.gmra.mxu1 %vm62_vm0, %v45_v32 }
  0x26   :  { %703 = vmatprep.mubr.msk.f32.mxu0 %vm62_vm0, %v28_v33  ;;  %730 = vmatprep.mubr.msk.f32.mxu1 %vm62_vm0, %v46_v34 }
  0x29   :  { %704 = vmatmul.mubr.msk.f32.gmra.mxu0 %vm62_vm0, %v29_v35  ;;  %731 = vmatmul.mubr.msk.f32.gmra.mxu1 %vm62_vm0, %v47_v36 }
  0x2a   :  { %706 = vmatprep.mubr.msk.f32.mxu0 %vm62_vm0, %v30_v37  ;;  %733 = vmatprep.mubr.msk.f32.mxu1 %vm62_vm0, %v48_v38 }
  0x2d   :  { %707 = vmatmul.mubr.msk.f32.gmra.mxu0 %vm62_vm0, %v31_v39  ;;  %734 = vmatmul.mubr.msk.f32.gmra.mxu1 %vm62_vm0, %v49_v40 }
  0xcd   :  { %v684_v41 = vpop.f32.mrf.mxu0  ;;  %v711_v42 = vpop.f32.mrf.mxu1 }
  0xce   :  { %v243_v50 = vadd.f32 %v684_v41, %v928_v45  ;;  %v333_v56 = vadd.f32 %v711_v42, %v928_v45 }
  0xcf   :  { %v237_v43 = vpop.f32.mrf.mxu0  ;;  %v327_v44 = vpop.f32.mrf.mxu1 }
  0xd0   :  { %v238_v51 = vadd.f32 %v928_v45, %v237_v43  ;;  %v328_v52 = vadd.f32 %v928_v45, %v327_v44  ;;  %v417_v61 = vmax.f32 %v243_v50, 0.0  ;;  %v435_v6 = vmax.f32 %v333_v56, 0.0 }
  0xd1   :  { %v687_v46 = vpop.f32.mrf.mxu0  ;;  %v714_v47 = vpop.f32.mrf.mxu1 }
  0xd2   :  { %v343_v57 = vadd.f32 %v714_v47, %v928_v45  ;;  %v416_v62 = vmax.f32 %v238_v51, 0.0  ;;  %v253_v63 = vadd.f32 %v687_v46, %v928_v45  ;;  %v434_v0 = vmax.f32 %v328_v52, 0.0 }
  0xd3   :  { %v247_v48 = vpop.f32.mrf.mxu0  ;;  %v337_v49 = vpop.f32.mrf.mxu1  ;;  %v454_v13 = vsel %vm452_vm1, %v417_v61, -inf  ;;  %v516_v37 = vsel %vm452_vm1, %v435_v6, -inf }
  0xd4   :  { %v248_v53 = vadd.f32 %v928_v45, %v247_v48  ;;  %v338_v58 = vadd.f32 %v928_v45, %v337_v49  ;;  %v437_v7 = vmax.f32 %v343_v57, 0.0  ;;  %v453_v14 = vsel %vm452_vm1, %v416_v62, -inf }
  0xd5   :  { %v690_v54 = vpop.f32.mrf.mxu0  ;;  %v717_v55 = vpop.f32.mrf.mxu1  ;;  %v419_v15 = vmax.f32 %v253_v63, 0.0  ;;  %v515_v17 = vsel %vm452_vm1, %v434_v0, -inf }
  0xd6   :  { %v418_v1 = vmax.f32 %v248_v53, 0.0  ;;  %v436_v8 = vmax.f32 %v338_v58, 0.0  ;;  %v263_v16 = vadd.f32 %v690_v54, %v928_v45  ;;  %v353_v19 = vadd.f32 %v717_v55, %v928_v45 }
  0xd7   :  { %v257_v59 = vpop.f32.mrf.mxu0  ;;  %v347_v60 = vpop.f32.mrf.mxu1  ;;  %v518_v27 = vsel %vm452_vm1, %v437_v7, -inf  ;;  %v456_v33 = vsel %vm452_vm1, %v419_v15, -inf }
  0xd8   :  { %v258_v2 = vadd.f32 %v928_v45, %v257_v59  ;;  %v348_v3 = vadd.f32 %v928_v45, %v347_v60  ;;  %v455_v18 = vsel %vm452_vm1, %v418_v1, -inf  ;;  %v517_v28 = vsel %vm452_vm1, %v436_v8, -inf }
  0xd9   :  { %v693_v4 = vpop.f32.mrf.mxu0  ;;  %v720_v5 = vpop.f32.mrf.mxu1  ;;  %v421_v34 = vmax.f32 %v263_v16, 0.0  ;;  %v461_v38 = vmax.f32 %v455_v18, %v456_v33  ;;  %v439_v39 = vmax.f32 %v353_v19, 0.0  ;;  %v522_v43 = vmax.f32 %v517_v28, %v518_v27 }
  0xda   :  { %v420_v9 = vmax.f32 %v258_v2, 0.0  ;;  %v438_v10 = vmax.f32 %v348_v3, 0.0  ;;  %v273_v25 = vadd.f32 %v693_v4, %v928_v45  ;;  %v363_v29 = vadd.f32 %v720_v5, %v928_v45 }
  0xdb   :  { %v267_v11 = vpop.f32.mrf.mxu0  ;;  %v357_v12 = vpop.f32.mrf.mxu1  ;;  %v471_v54 = vsel %vm452_vm1, %v421_v34, -inf  ;;  %v531_v4 = vsel %vm452_vm1, %v439_v39, -inf }
  0xdc   :  { %v458_v20 = vsel %vm457_vm2, %v420_v9, -inf  ;;  %v519_v24 = vsel %vm457_vm2, %v438_v10, -inf  ;;  %v268_v26 = vadd.f32 %v928_v45, %v267_v11  ;;  %v358_v30 = vadd.f32 %v928_v45, %v357_v12 }
  0xdd   :  { %v696_v21 = vpop.f32.mrf.mxu0  ;;  %v723_v22 = vpop.f32.mrf.mxu1  ;;  %v459_v23 = vmax.f32 %v453_v14, %v458_v20  ;;  %v520_v40 = vmax.f32 %v515_v17, %v519_v24  ;;  %v423_v46 = vmax.f32 %v273_v25, 0.0  ;;  %v441_v48 = vmax.f32 %v363_v29, 0.0 }
  0xde   :  { %v422_v47 = vmax.f32 %v268_v26, 0.0  ;;  %v440_v49 = vmax.f32 %v358_v30, 0.0  ;;  %v470_v55 = vsel %vm469_vm3, %v420_v9, -inf  ;;  %v530_v56 = vsel %vm469_vm3, %v438_v10, -inf }
  0xdf   :  { %v277_v31 = vpop.f32.mrf.mxu0  ;;  %v367_v32 = vpop.f32.mrf.mxu1  ;;  %v460_v44 = vmax.f32 %v459_v23, %v454_v13  ;;  %v283_v57 = vadd.f32 %v696_v21, %v928_v45  ;;  %v521_v58 = vmax.f32 %v520_v40, %v516_v37  ;;  %v373_v59 = vadd.f32 %v723_v22, %v928_v45 }
  0xe0   :  { %v278_v35 = vadd.f32 %v928_v45, %v277_v31  ;;  %v368_v36 = vadd.f32 %v928_v45, %v367_v32  ;;  %v472_v1 = vsel %vm452_vm1, %v422_v47, -inf  ;;  %v473_v5 = vsel %vm452_vm1, %v423_v46, -inf }
  0xe1   :  { %v699_v41 = vpop.f32.mrf.mxu0  ;;  %v726_v42 = vpop.f32.mrf.mxu1  ;;  %v462_v0 = vmax.f32 %v460_v44, %v461_v38  ;;  %v533_v6 = vsel %vm452_vm1, %v441_v48, -inf  ;;  %v532_v7 = vsel %vm452_vm1, %v440_v49, -inf  ;;  %v523_v14 = vmax.f32 %v521_v58, %v522_v43 }
  0xe2   :  { %v424_v50 = vmax.f32 %v278_v35, 0.0  ;;  %v442_v51 = vmax.f32 %v368_v36, 0.0  ;;  %v293_v10 = vadd.f32 %v699_v41, %v928_v45  ;;  %v383_v11 = vadd.f32 %v726_v42, %v928_v45 }
  0xe3   :  { %v287_v52 = vpop.f32.mrf.mxu0  ;;  %v377_v53 = vpop.f32.mrf.mxu1  ;;  %v477_v15 = vmax.f32 %v472_v1, %v473_v5  ;;  %v425_v16 = vmax.f32 %v283_v57, 0.0  ;;  %v443_v17 = vmax.f32 %v373_v59, 0.0  ;;  %v463_v19 = vrot.slane %v462_v0, 4 }
  0xe4   :  { %v474_v60 = vsel %vm452_vm1, %v424_v50, -inf  ;;  %v534_v61 = vsel %vm452_vm1, %v442_v51, -inf  ;;  %v288_v12 = vadd.f32 %v928_v45, %v287_v52  ;;  %v378_v13 = vadd.f32 %v928_v45, %v377_v53 }
  0xe5   :  { %v702_v62 = vpop.f32.mrf.mxu0  ;;  %v729_v63 = vpop.f32.mrf.mxu1  ;;  %v475_v2 = vmax.f32 %v470_v55, %v474_v60  ;;  %v535_v3 = vmax.f32 %v530_v56, %v534_v61  ;;  %v537_v20 = vmax.f32 %v532_v7, %v533_v6  ;;  %v427_v28 = vmax.f32 %v293_v10, 0.0 }
  0xe6   :  { %v303_v23 = vadd.f32 %v702_v62, %v928_v45  ;;  %v393_v24 = vadd.f32 %v729_v63, %v928_v45  ;;  %v445_v29 = vmax.f32 %v383_v11, 0.0  ;;  %v426_v30 = vmax.f32 %v288_v12, 0.0 }
  0xe7   :  { %v297_v8 = vpop.f32.mrf.mxu0  ;;  %v387_v9 = vpop.f32.mrf.mxu1  ;;  %v476_v21 = vmax.f32 %v475_v2, %v471_v54  ;;  %v536_v22 = vmax.f32 %v535_v3, %v531_v4  ;;  %v444_v31 = vmax.f32 %v378_v13, 0.0  ;;  %v485_v37 = vsel %vm452_vm1, %v425_v16, -inf }
  0xe8   :  { %v298_v25 = vadd.f32 %v928_v45, %v297_v8  ;;  %v388_v26 = vadd.f32 %v928_v45, %v387_v9  ;;  %v429_v32 = vmax.f32 %v303_v23, 0.0  ;;  %v447_v33 = vmax.f32 %v393_v24, 0.0 }
  0xe9   :  { %v705_v18 = vpop.f32.mrf.mxu0  ;;  %v732_v27 = vpop.f32.mrf.mxu1  ;;  %v545_v38 = vsel %vm452_vm1, %v443_v17, -inf  ;;  %v478_v39 = vmax.f32 %v476_v21, %v477_v15  ;;  %v538_v40 = vmax.f32 %v536_v22, %v537_v20  ;;  %v980_v41 = vmax.f32 %v462_v0, %v463_v19 }
  0xea   :  { %v428_v34 = vmax.f32 %v298_v25, 0.0  ;;  %v446_v35 = vmax.f32 %v388_v26, 0.0  ;;  %v524_v42 = vrot.slane %v523_v14, 4  ;;  %v489_v43 = vsel %vm457_vm2, %v429_v32, -inf }
  0xeb   :  { %v307_v36 = vpop.f32.mrf.mxu0  ;;  %v549_v44 = vsel %vm457_vm2, %v447_v33, -inf  ;;  %v397_v46 = vpop.f32.mrf.mxu1  ;;  %v487_v47 = vsel %vm452_vm1, %v427_v28, -inf  ;;  %v547_v48 = vsel %vm452_vm1, %v445_v29, -inf  ;;  %v490_v49 = vmax.f32 %v485_v37, %v489_v43 }
  0xec   :  { %v550_v50 = vmax.f32 %v545_v38, %v549_v44  ;;  %v486_v51 = vsel %vm452_vm1, %v426_v30, -inf  ;;  %v546_v52 = vsel %vm452_vm1, %v444_v31, -inf  ;;  %v488_v53 = vsel %vm452_vm1, %v428_v34, -inf }
  0xed   :  { %v548_v54 = vsel %vm452_vm1, %v446_v35, -inf  ;;  %v708_v55 = vpop.f32.mrf.mxu0  ;;  %v479_v56 = vrot.slane %v478_v39, 4  ;;  %v539_v57 = vrot.slane %v538_v40, 4  ;;  %v491_v58 = vmax.f32 %v490_v49, %v486_v51  ;;  %v735_v63 = vpop.f32.mrf.mxu1 }
  0xee   :  { %v313_v59 = vadd.f32 %v705_v18, %v928_v45  ;;  %v551_v60 = vmax.f32 %v550_v50, %v546_v52  ;;  %v492_v61 = vmax.f32 %v487_v47, %v488_v53  ;;  %v552_v62 = vmax.f32 %v547_v48, %v548_v54 }
  0xef   :  { %v308_v0 = vadd.f32 %v928_v45, %v307_v36  ;;  %v465_v1 = vrot.slane %v980_v41, 2  ;;  %v525_v2 = vmax.f32 %v523_v14, %v524_v42  ;;  %v398_v4 = vadd.f32 %v928_v45, %v397_v46  ;;  %v317_v5 = vpop.f32.mrf.mxu0  ;;  %v407_v15 = vpop.f32.mrf.mxu1 }
  0xf0   :  { %v493_v3 = vmax.f32 %v491_v58, %v492_v61  ;;  %v480_v6 = vmax.f32 %v478_v39, %v479_v56  ;;  %v540_v7 = vmax.f32 %v538_v40, %v539_v57  ;;  %v431_v8 = vmax.f32 %v313_v59, 0.0 }
  0xf1   :  { %v403_v9 = vadd.f32 %v732_v27, %v928_v45  ;;  %v553_v11 = vmax.f32 %v551_v60, %v552_v62  ;;  %v323_v12 = vadd.f32 %v708_v55, %v928_v45  ;;  %v413_v13 = vadd.f32 %v735_v63, %v928_v45 }
  0xf2   :  { %v494_v10 = vrot.slane %v493_v3, 4  ;;  %v500_v16 = vsel %vm469_vm3, %v429_v32, -inf  ;;  %v560_v14 = vsel %vm469_vm3, %v447_v33, -inf  ;;  %v430_v17 = vmax.f32 %v308_v0, 0.0 }
  0xf3   :  { %v318_v18 = vadd.f32 %v928_v45, %v317_v5  ;;  %v448_v20 = vmax.f32 %v398_v4, 0.0  ;;  %v433_v21 = vmax.f32 %v323_v12, 0.0  ;;  %v451_v22 = vmax.f32 %v413_v13, 0.0 }
  0xf4   :  { %v495_v19 = vmax.f32 %v493_v3, %v494_v10  ;;  %v481_v23 = vrot.slane %v480_v6, 2  ;;  %v449_v24 = vmax.f32 %v403_v9, 0.0  ;;  %v408_v26 = vadd.f32 %v928_v45, %v407_v15 }
  0xf5   :  { %v432_v25 = vmax.f32 %v318_v18, 0.0  ;;  %v554_v27 = vrot.slane %v553_v11, 4  ;;  %v502_v28 = vsel %vm452_vm1, %v431_v8, -inf  ;;  %v504_v29 = vsel %vm452_vm1, %v433_v21, -inf }
  0xf6   :  { %v564_v30 = vsel %vm452_vm1, %v451_v22, -inf  ;;  %v505_v31 = vmax.f32 %v500_v16, %v504_v29  ;;  %v450_v34 = vmax.f32 %v408_v26, 0.0  ;;  %v496_v35 = vrot.slane %v495_v19, 2 }
  0xf7   :  { %v565_v32 = vmax.f32 %v560_v14, %v564_v30  ;;  %v503_v33 = vsel %vm452_vm1, %v432_v25, -inf  ;;  %v501_v36 = vsel %vm452_vm1, %v430_v17, -inf  ;;  %v561_v37 = vsel %vm452_vm1, %v448_v20, -inf }
  0xf8   :  { %v507_v38 = vmax.f32 %v502_v28, %v503_v33  ;;  %v562_v45 = vsel %vm452_vm1, %v449_v24, -inf  ;;  %v506_v39 = vmax.f32 %v505_v31, %v501_v36  ;;  %v563_v42 = vsel %vm452_vm1, %v450_v34, -inf }
  0xf9   :  { %v566_v40 = vmax.f32 %v565_v32, %v561_v37  ;;  %v555_v43 = vmax.f32 %v553_v11, %v554_v27  ;;  %v567_v44 = vmax.f32 %v562_v45, %v563_v42  ;;  %v482_v46 = vmax.f32 %v480_v6, %v481_v23 }
  0xfa   :  { %v508_v47 = vmax.f32 %v506_v39, %v507_v38  ;;  %v526_v48 = vrot.slane %v525_v2, 2  ;;  %v497_v49 = vmax.f32 %v495_v19, %v496_v35  ;;  %v466_v51 = vmax.f32 %v980_v41, %v465_v1 }
  0xfb   :  { %v568_v50 = vmax.f32 %v566_v40, %v567_v44  ;;  %v541_v52 = vrot.slane %v540_v7, 2  ;;  %v556_v54 = vrot.slane %v555_v43, 2  ;;  %v483_v56 = vrot.slane %v482_v46, 1 }
  0xfc   :  { %v509_v53 = vrot.slane %v508_v47, 4  ;;  %v527_v58 = vmax.f32 %v525_v2, %v526_v48  ;;  %v498_v59 = vrot.slane %v497_v49, 1  ;;  %v467_v61 = vrot.slane %v466_v51, 1 }
  0xfd   :  { %v569_v55 = vrot.slane %v568_v50, 4  ;;  %v542_v62 = vmax.f32 %v540_v7, %v541_v52  ;;  %v557_v0 = vmax.f32 %v555_v43, %v556_v54  ;;  %v484_v4 = vmax.f32 %v482_v46, %v483_v56 }
  0xfe   :  { %v510_v57 = vmax.f32 %v508_v47, %v509_v53  ;;  %v528_v6 = vrot.slane %v527_v58, 1  ;;  %v499_v8 = vmax.f32 %v497_v49, %v498_v59  ;;  %v468_v1 = vmax.f32 %v466_v51, %v467_v61 }
  0xff   :  { %v570_v60 = vmax.f32 %v568_v50, %v569_v55  ;;  %v543_v9 = vrot.slane %v542_v62, 1  ;;  %v558_v11 = vrot.slane %v557_v0, 1 }
 0x100   :  { %v511_v63 = vrot.slane %v510_v57, 2  ;;  %v576_v2 = vsel %vm575_vm4, %v468_v1, %v484_v4  ;;  %v529_v7 = vmax.f32 %v527_v58, %v528_v6 }
 0x101   :  { %v571_v3 = vrot.slane %v570_v60, 2  ;;  %v578_v15 = vsel %vm577_vm5, %v576_v2, %v499_v8  ;;  %v544_v16 = vmax.f32 %v542_v62, %v543_v9  ;;  %v559_v17 = vmax.f32 %v557_v0, %v558_v11 }
 0x102   :  { %v512_v5 = vmax.f32 %v510_v57, %v511_v63 }
 0x103   :  { %v572_v41 = vmax.f32 %v570_v60, %v571_v3 }
 0x104   :  { %v513_v10 = vrot.slane %v512_v5, 1 }
 0x105   :  { %v573_v13 = vrot.slane %v572_v41, 1 }
 0x106   :  { %v514_v12 = vmax.f32 %v512_v5, %v513_v10 }
 0x107   :  { %v574_v19 = vmax.f32 %v572_v41, %v573_v13 }
 0x108   :  { %v580_v14 = vsel %vm579_vm6, %v578_v15, %v514_v12 }
 0x109   :  { %v582_v18 = vsel %vm581_vm7, %v580_v14, %v529_v7 }
 0x10a   :  { %v584_v20 = vsel %vm583_vm8, %v582_v18, %v544_v16 }
 0x10b   :  { %v586_v21 = vsel %vm585_vm9, %v584_v20, %v559_v17 }
 0x10c   :  { %v588_v22 = vsel %vm587_vm10, %v586_v21, %v574_v19 }
 0x10d   :  { %589 = vst.msk [vmem:[%s1017_s3] sm:$0xff] %vm452_vm1, %v588_v22 }

// kernel: bidaf_forward.21
= control target key start
LH: loop header
LB: loop body
LE: loop exit
PB: predicated region body
PF: predicated region fallthrough
CT: control target
= control target key end

     0   :  { %s699_s12 = smov 0   ;;  %s701_s13 = smov 0   ;;  %s848_s0 = inlined_call_operand.vmem [shape: f32[8,200], index: 0, kind: input, shape index: {}]   ;;  %s849_s1 = inlined_call_operand.vmem [shape: f32[2,200,512], index: 1, kind: input, shape index: {}]   ;;  %s850_s2 = inlined_call_operand.vmem [shape: f32[2,1,512], index: 2, kind: input, shape index: {}]   ;;  %s851_s3 = inlined_call_operand.vmem [shape: f32[2,8,512], index: 3, kind: output, shape index: {}]  }
   0x1   :  { %s703_s14 = smov 0  }
   0x2 LB: > { %s25_s15 = sadd.s32 1, %s673_s13  ;;  %p620_p0 = scmp.ge.s32.totalorder %s677_s14, 1  ;;  %s677_s14 = sphi %s703_s14, %s13_s14   ;;  %s673_s13 = sphi %s701_s13, %s853_s13   ;;  %s669_s12 = sphi %s699_s12, %s852_s12  }
   0x3   : > { %p27_p1 = scmp.ge.s32.totalorder %s25_s15, 2  ;;  %p170_p2 = scmp.lt.s32.totalorder %s677_s14, 3 }
   0x5   : > { %s855_s15 = smov (%p27_p1, %s25_s15), 0  ;;  %p171_p3 = pnand %p620_p0, %p170_p2 }
   0x6   : > { %p212_p4 = scmp.lt.s32.totalorder (!%p171_p3), %s669_s12, 1 }
   0x7   : > { %174 = sbr.rel (%p171_p3) target bundleno = 265 (0x109), region = 32 }
   0xc   : > { %v231_v0 = vld [vmem:[%s848_s0 + $0x8] sm:$0xff]  ;;  %vm354_vm0 = vcmask 588800   ;;  %s857_s12 = smov (!%p212_p4, %s669_s12), 1 }
   0xd   : > { %625 = vmatprep.mubr.msk.f32.mxu0 %vm354_vm0, %v231_v0  ;;  %626 = vmatprep.mubr.msk.f32.mxu1 %vm354_vm0, %v231_v0  ;;  %s630_s18 = smul.u32 800, %s857_s12  ;;  %s622_s24 = sshll.u32 %s857_s12, 2 }
   0xe   : > { %s220_s27 = scalar_lea.vmem %s850_s2, %s622_s24  ;;  %s629_s28 = sshll.u32 %s857_s12, 5 }
   0xf   : > { %s726_s21 = scalar_lea.vmem %s849_s1, %s630_s18  ;;  %s229_s4 = scalar_lea.vmem %s851_s3, %s629_s28 }
  0x10   : > { %v293_v1 = vld [vmem:[%s726_s21 + $0x1e8] sm:$0xff]  ;;  %v295_v2 = vld [vmem:[%s726_s21 + $0x1f8] sm:$0xff]  ;;  %v292_v3 = vld [vmem:[%s726_s21 + $0x1e0] sm:$0xff] }
  0x11   : > { %358 = vmatprep.subr.mxu0 %v293_v1  ;;  %429 = vmatprep.subr.mxu1 %v295_v2  ;;  %v294_v4 = vld [vmem:[%s726_s21 + $0x1f0] sm:$0xff]  ;;  %v289_v5 = vld [vmem:[%s726_s21 + $0x1c8] sm:$0xff]  ;;  %v291_v6 = vld [vmem:[%s726_s21 + $0x1d8] sm:$0xff] }
  0x12   : > { %359 = vmatpush1.msra.mxu0 %v292_v3  ;;  %430 = vmatpush1.msra.mxu1 %v294_v4  ;;  %v288_v7 = vld [vmem:[%s726_s21 + $0x1c0] sm:$0xff]  ;;  %v290_v8 = vld [vmem:[%s726_s21 + $0x1d0] sm:$0xff]  ;;  %v285_v9 = vld [vmem:[%s726_s21 + $0x1a8] sm:$0xff] }
  0x13   : > { %360 = vmatprep.subr.mxu0 %v289_v5  ;;  %431 = vmatprep.subr.mxu1 %v291_v6  ;;  %v287_v10 = vld [vmem:[%s726_s21 + $0x1b8] sm:$0xff]  ;;  %v284_v11 = vld [vmem:[%s726_s21 + $0x1a0] sm:$0xff]  ;;  %v286_v12 = vld [vmem:[%s726_s21 + $0x1b0] sm:$0xff] }
  0x14   : > { %361 = vmatpush1.msra.mxu0 %v288_v7  ;;  %432 = vmatpush1.msra.mxu1 %v290_v8  ;;  %v281_v13 = vld [vmem:[%s726_s21 + $0x188] sm:$0xff]  ;;  %v283_v14 = vld [vmem:[%s726_s21 + $0x198] sm:$0xff]  ;;  %v280_v15 = vld [vmem:[%s726_s21 + $0x180] sm:$0xff] }
  0x15   : > { %362 = vmatprep.subr.mxu0 %v285_v9  ;;  %433 = vmatprep.subr.mxu1 %v287_v10  ;;  %v282_v16 = vld [vmem:[%s726_s21 + $0x190] sm:$0xff]  ;;  %v277_v17 = vld [vmem:[%s726_s21 + $0x168] sm:$0xff]  ;;  %v279_v18 = vld [vmem:[%s726_s21 + $0x178] sm:$0xff] }
  0x16   : > { %363 = vmatpush1.msra.mxu0 %v284_v11  ;;  %434 = vmatpush1.msra.mxu1 %v286_v12  ;;  %v276_v19 = vld [vmem:[%s726_s21 + $0x160] sm:$0xff]  ;;  %v278_v20 = vld [vmem:[%s726_s21 + $0x170] sm:$0xff]  ;;  %v273_v21 = vld [vmem:[%s726_s21 + $0x148] sm:$0xff] }
  0x17   : > { %364 = vmatprep.subr.mxu0 %v281_v13  ;;  %435 = vmatprep.subr.mxu1 %v283_v14  ;;  %v275_v22 = vld [vmem:[%s726_s21 + $0x158] sm:$0xff]  ;;  %v272_v23 = vld [vmem:[%s726_s21 + $0x140] sm:$0xff]  ;;  %v274_v24 = vld [vmem:[%s726_s21 + $0x150] sm:$0xff] }
  0x18   : > { %365 = vmatpush1.msra.mxu0 %v280_v15  ;;  %436 = vmatpush1.msra.mxu1 %v282_v16  ;;  %v269_v25 = vld [vmem:[%s726_s21 + $0x128] sm:$0xff]  ;;  %v271_v26 = vld [vmem:[%s726_s21 + $0x138] sm:$0xff]  ;;  %v268_v27 = vld [vmem:[%s726_s21 + $0x120] sm:$0xff] }
  0x19   : > { %366 = vmatprep.subr.mxu0 %v277_v17  ;;  %437 = vmatprep.subr.mxu1 %v279_v18  ;;  %v270_v28 = vld [vmem:[%s726_s21 + $0x130] sm:$0xff]  ;;  %v265_v29 = vld [vmem:[%s726_s21 + $0x108] sm:$0xff]  ;;  %v267_v30 = vld [vmem:[%s726_s21 + $0x118] sm:$0xff] }
  0x1a   : > { %367 = vmatpush1.msra.mxu0 %v276_v19  ;;  %438 = vmatpush1.msra.mxu1 %v278_v20  ;;  %v264_v31 = vld [vmem:[%s726_s21 + $0x100] sm:$0xff]  ;;  %v266_v32 = vld [vmem:[%s726_s21 + $0x110] sm:$0xff]  ;;  %v261_v33 = vld [vmem:[%s726_s21 + $0xe8] sm:$0xff] }
  0x1b   : > { %368 = vmatprep.subr.mxu0 %v273_v21  ;;  %439 = vmatprep.subr.mxu1 %v275_v22  ;;  %v263_v34 = vld [vmem:[%s726_s21 + $0xf8] sm:$0xff]  ;;  %v260_v35 = vld [vmem:[%s726_s21 + $0xe0] sm:$0xff]  ;;  %v262_v36 = vld [vmem:[%s726_s21 + $0xf0] sm:$0xff] }
  0x1c   : > { %369 = vmatpush1.msra.mxu0 %v272_v23  ;;  %440 = vmatpush1.msra.mxu1 %v274_v24  ;;  %v257_v37 = vld [vmem:[%s726_s21 + $0xc8] sm:$0xff]  ;;  %v259_v38 = vld [vmem:[%s726_s21 + $0xd8] sm:$0xff]  ;;  %v256_v39 = vld [vmem:[%s726_s21 + $0xc0] sm:$0xff] }
  0x1d   : > { %370 = vmatprep.subr.mxu0 %v269_v25  ;;  %441 = vmatprep.subr.mxu1 %v271_v26  ;;  %v258_v40 = vld [vmem:[%s726_s21 + $0xd0] sm:$0xff]  ;;  %v253_v41 = vld [vmem:[%s726_s21 + $0xa8] sm:$0xff]  ;;  %v255_v42 = vld [vmem:[%s726_s21 + $0xb8] sm:$0xff] }
  0x1e   : > { %371 = vmatpush1.msra.mxu0 %v268_v27  ;;  %442 = vmatpush1.msra.mxu1 %v270_v28  ;;  %v252_v43 = vld [vmem:[%s726_s21 + $0xa0] sm:$0xff]  ;;  %v254_v44 = vld [vmem:[%s726_s21 + $0xb0] sm:$0xff]  ;;  %v249_v45 = vld [vmem:[%s726_s21 + $0x88] sm:$0xff] }
  0x1f   : > { %372 = vmatprep.subr.mxu0 %v265_v29  ;;  %443 = vmatprep.subr.mxu1 %v267_v30  ;;  %v251_v46 = vld [vmem:[%s726_s21 + $0x98] sm:$0xff]  ;;  %v248_v47 = vld [vmem:[%s726_s21 + $0x80] sm:$0xff]  ;;  %v250_v48 = vld [vmem:[%s726_s21 + $0x90] sm:$0xff] }
  0x20   : > { %373 = vmatpush1.msra.mxu0 %v264_v31  ;;  %444 = vmatpush1.msra.mxu1 %v266_v32  ;;  %v245_v49 = vld [vmem:[%s726_s21 + $0x68] sm:$0xff]  ;;  %v247_v50 = vld [vmem:[%s726_s21 + $0x78] sm:$0xff]  ;;  %v244_v51 = vld [vmem:[%s726_s21 + $0x60] sm:$0xff] }
  0x21   : > { %374 = vmatprep.subr.mxu0 %v261_v33  ;;  %445 = vmatprep.subr.mxu1 %v263_v34  ;;  %v246_v52 = vld [vmem:[%s726_s21 + $0x70] sm:$0xff]  ;;  %v241_v53 = vld [vmem:[%s726_s21 + $0x48] sm:$0xff]  ;;  %v243_v54 = vld [vmem:[%s726_s21 + $0x58] sm:$0xff] }
  0x22   : > { %375 = vmatpush1.msra.mxu0 %v260_v35  ;;  %446 = vmatpush1.msra.mxu1 %v262_v36  ;;  %v240_v55 = vld [vmem:[%s726_s21 + $0x40] sm:$0xff]  ;;  %v242_v56 = vld [vmem:[%s726_s21 + $0x50] sm:$0xff]  ;;  %v237_v57 = vld [vmem:[%s726_s21 + $0x28] sm:$0xff] }
  0x23   : > { %376 = vmatprep.subr.mxu0 %v257_v37  ;;  %447 = vmatprep.subr.mxu1 %v259_v38  ;;  %v239_v58 = vld [vmem:[%s726_s21 + $0x38] sm:$0xff]  ;;  %v236_v59 = vld [vmem:[%s726_s21 + $0x20] sm:$0xff]  ;;  %v238_v60 = vld [vmem:[%s726_s21 + $0x30] sm:$0xff]  ;;  %v334_v38 = vlaneseq }
  0x24   : > { %377 = vmatpush1.msra.mxu0 %v256_v39  ;;  %448 = vmatpush1.msra.mxu1 %v258_v40  ;;  %v233_v61 = vld [vmem:[%s726_s21 + $0x8] sm:$0xff]  ;;  %v235_v62 = vld [vmem:[%s726_s21 + $0x18] sm:$0xff]  ;;  %v232_v63 = vld [vmem:[%s726_s21] sm:$0xff] }
  0x25   : > { %378 = vmatprep.subr.mxu0 %v253_v41  ;;  %449 = vmatprep.subr.mxu1 %v255_v42  ;;  %v234_v0 = vld [vmem:[%s726_s21 + $0x10] sm:$0xff]  ;;  %v329_v1 = vld [vmem:[%s726_s21 + $0x308] sm:$0xff]  ;;  %v331_v2 = vld [vmem:[%s726_s21 + $0x318] sm:$0xff]  ;;  %v335_v39 = vshrl.u32 %v334_v38, 7 }
  0x26   : > { %379 = vmatpush1.msra.mxu0 %v252_v43  ;;  %450 = vmatpush1.msra.mxu1 %v254_v44  ;;  %v328_v3 = vld [vmem:[%s726_s21 + $0x300] sm:$0xff]  ;;  %v330_v4 = vld [vmem:[%s726_s21 + $0x310] sm:$0xff]  ;;  %v325_v5 = vld [vmem:[%s726_s21 + $0x2e8] sm:$0xff] }
  0x27   : > { %380 = vmatprep.subr.mxu0 %v249_v45  ;;  %451 = vmatprep.subr.mxu1 %v251_v46  ;;  %v327_v6 = vld [vmem:[%s726_s21 + $0x2f8] sm:$0xff]  ;;  %v324_v7 = vld [vmem:[%s726_s21 + $0x2e0] sm:$0xff]  ;;  %v326_v8 = vld [vmem:[%s726_s21 + $0x2f0] sm:$0xff]  ;;  %v336_v40 = vsub.s32 0, %v335_v39  ;;  %v344_v41 = vsub.s32 2, %v335_v39  ;;  %v340_v43 = vsub.s32 1, %v335_v39 }
  0x28   : > { %381 = vmatpush1.msra.mxu0 %v248_v47  ;;  %452 = vmatpush1.msra.mxu1 %v250_v48  ;;  %v321_v9 = vld [vmem:[%s726_s21 + $0x2c8] sm:$0xff]  ;;  %v323_v10 = vld [vmem:[%s726_s21 + $0x2d8] sm:$0xff]  ;;  %v320_v11 = vld [vmem:[%s726_s21 + $0x2c0] sm:$0xff]  ;;  %v348_v44 = vsub.s32 3, %v335_v39 }
  0x29   : > { %382 = vmatprep.subr.mxu0 %v245_v49  ;;  %453 = vmatprep.subr.mxu1 %v247_v50  ;;  %v322_v12 = vld [vmem:[%s726_s21 + $0x2d0] sm:$0xff]  ;;  %v317_v13 = vld [vmem:[%s726_s21 + $0x2a8] sm:$0xff]  ;;  %v319_v14 = vld [vmem:[%s726_s21 + $0x2b8] sm:$0xff] }
  0x2a   : > { %383 = vmatpush1.msra.mxu0 %v244_v51  ;;  %454 = vmatpush1.msra.mxu1 %v246_v52  ;;  %v316_v15 = vld [vmem:[%s726_s21 + $0x2a0] sm:$0xff]  ;;  %v318_v16 = vld [vmem:[%s726_s21 + $0x2b0] sm:$0xff]  ;;  %v313_v17 = vld [vmem:[%s726_s21 + $0x288] sm:$0xff] }
  0x2b   : > { %384 = vmatprep.subr.mxu0 %v241_v53  ;;  %455 = vmatprep.subr.mxu1 %v243_v54  ;;  %v315_v18 = vld [vmem:[%s726_s21 + $0x298] sm:$0xff]  ;;  %v312_v19 = vld [vmem:[%s726_s21 + $0x280] sm:$0xff]  ;;  %v314_v20 = vld [vmem:[%s726_s21 + $0x290] sm:$0xff] }
  0x2c   : > { %385 = vmatpush1.msra.mxu0 %v240_v55  ;;  %456 = vmatpush1.msra.mxu1 %v242_v56  ;;  %v309_v21 = vld [vmem:[%s726_s21 + $0x268] sm:$0xff]  ;;  %v311_v22 = vld [vmem:[%s726_s21 + $0x278] sm:$0xff]  ;;  %v308_v23 = vld [vmem:[%s726_s21 + $0x260] sm:$0xff] }
  0x2d   : > { %386 = vmatprep.subr.mxu0 %v237_v57  ;;  %457 = vmatprep.subr.mxu1 %v239_v58  ;;  %v310_v24 = vld [vmem:[%s726_s21 + $0x270] sm:$0xff]  ;;  %v305_v25 = vld [vmem:[%s726_s21 + $0x248] sm:$0xff]  ;;  %v307_v26 = vld [vmem:[%s726_s21 + $0x258] sm:$0xff] }
  0x2e   : > { %387 = vmatpush1.msra.mxu0 %v236_v59  ;;  %458 = vmatpush1.msra.mxu1 %v238_v60  ;;  %v304_v27 = vld [vmem:[%s726_s21 + $0x240] sm:$0xff]  ;;  %v306_v28 = vld [vmem:[%s726_s21 + $0x250] sm:$0xff]  ;;  %v301_v29 = vld [vmem:[%s726_s21 + $0x228] sm:$0xff] }
  0x2f   : > { %388 = vmatprep.subr.mxu0 %v233_v61  ;;  %459 = vmatprep.subr.mxu1 %v235_v62  ;;  %v303_v30 = vld [vmem:[%s726_s21 + $0x238] sm:$0xff]  ;;  %v300_v31 = vld [vmem:[%s726_s21 + $0x220] sm:$0xff]  ;;  %v302_v32 = vld [vmem:[%s726_s21 + $0x230] sm:$0xff] }
  0x30   : > { %389 = vmatpush1.msra.mxu0 %v232_v63  ;;  %460 = vmatpush1.msra.mxu1 %v234_v0  ;;  %v297_v33 = vld [vmem:[%s726_s21 + $0x208] sm:$0xff]  ;;  %v299_v34 = vld [vmem:[%s726_s21 + $0x218] sm:$0xff]  ;;  %v296_v35 = vld [vmem:[%s726_s21 + $0x200] sm:$0xff] }
  0x31   : > { %404 = vmatprep.subr.mxu0 %v329_v1  ;;  %475 = vmatprep.subr.mxu1 %v331_v2  ;;  %v298_v36 = vld [vmem:[%s726_s21 + $0x210] sm:$0xff]  ;;  %v230_v37 = vld [vmem:[%s848_s0] sm:$0xff] }
  0x32   : > { %405 = vmatpush2.msra.mxu0 %v328_v3  ;;  %476 = vmatpush2.msra.mxu1 %v330_v4  ;;  %v332_v42 = vld [vmem:[%s220_s27] sm:$0xf] }
  0x33   : > { %406 = vmatprep.subr.mxu0 %v325_v5  ;;  %477 = vmatprep.subr.mxu1 %v327_v6  ;;  %v337_v45 = vrot.slane %v332_v42, %v336_v40  ;;  %v345_v46 = vrot.slane %v332_v42, %v344_v41  ;;  %v341_v47 = vrot.slane %v332_v42, %v340_v43 }
  0x34   : > { %407 = vmatpush2.msra.mxu0 %v324_v7  ;;  %478 = vmatpush2.msra.mxu1 %v326_v8  ;;  %v349_v48 = vrot.slane %v332_v42, %v348_v44 }
  0x35   : > { %408 = vmatprep.subr.mxu0 %v321_v9  ;;  %479 = vmatprep.subr.mxu1 %v323_v10 }
  0x36   : > { %409 = vmatpush2.msra.mxu0 %v320_v11  ;;  %480 = vmatpush2.msra.mxu1 %v322_v12 }
  0x37   : > { %410 = vmatprep.subr.mxu0 %v317_v13  ;;  %481 = vmatprep.subr.mxu1 %v319_v14 }
  0x38   : > { %411 = vmatpush2.msra.mxu0 %v316_v15  ;;  %482 = vmatpush2.msra.mxu1 %v318_v16 }
  0x39   : > { %412 = vmatprep.subr.mxu0 %v313_v17  ;;  %483 = vmatprep.subr.mxu1 %v315_v18 }
  0x3a   : > { %413 = vmatpush2.msra.mxu0 %v312_v19  ;;  %484 = vmatpush2.msra.mxu1 %v314_v20 }
  0x3b   : > { %414 = vmatprep.subr.mxu0 %v309_v21  ;;  %485 = vmatprep.subr.mxu1 %v311_v22 }
  0x3c   : > { %415 = vmatpush2.msra.mxu0 %v308_v23  ;;  %486 = vmatpush2.msra.mxu1 %v310_v24 }
  0x3d   : > { %416 = vmatprep.subr.mxu0 %v305_v25  ;;  %487 = vmatprep.subr.mxu1 %v307_v26 }
  0x3e   : > { %417 = vmatpush2.msra.mxu0 %v304_v27  ;;  %488 = vmatpush2.msra.mxu1 %v306_v28 }
  0x3f   : > { %418 = vmatprep.subr.mxu0 %v301_v29  ;;  %489 = vmatprep.subr.mxu1 %v303_v30 }
  0x40   : > { %419 = vmatpush2.msra.mxu0 %v300_v31  ;;  %490 = vmatpush2.msra.mxu1 %v302_v32 }
  0x41   : > { %420 = vmatprep.subr.mxu0 %v297_v33  ;;  %491 = vmatprep.subr.mxu1 %v299_v34 }
  0x42   : > { %421 = vmatpush2.msra.mxu0 %v296_v35  ;;  %492 = vmatpush2.msra.mxu1 %v298_v36 }
  0x43   : > { %423 = vmatmul.mubr.f32.vlgmr.msra.gmra.mxu0 %v230_v37  ;;  %494 = vmatmul.mubr.f32.vlgmr.msra.gmra.mxu1 %v230_v37 }
 0x103   : > { %v424_v49 = vpop.f32.mrf.mxu0  ;;  %v495_v50 = vpop.f32.mrf.mxu1 }
 0x104   : > { %v425_v51 = vadd.f32 %v424_v49, %v337_v45  ;;  %v496_v52 = vadd.f32 %v495_v50, %v345_v46 }
 0x105   : > { %v426_v53 = vpop.f32.mrf.mxu0  ;;  %v497_v54 = vpop.f32.mrf.mxu1 }
 0x106   : > { %500 = vst [vmem:[%s229_s4] sm:$0xff] %v425_v51  ;;  %502 = vst [vmem:[%s229_s4 + $0x10] sm:$0xff] %v496_v52  ;;  %v427_v55 = vadd.f32 %v426_v53, %v341_v47  ;;  %v498_v56 = vadd.f32 %v497_v54, %v349_v48 }
 0x108   : > { %501 = vst [vmem:[%s229_s4 + $0x8] sm:$0xff] %v427_v55  ;;  %503 = vst [vmem:[%s229_s4 + $0x18] sm:$0xff] %v498_v56 }
 0x109 PF: > { %s13_s14 = sadd.s32 1, %s677_s14   ;;  %s852_s12 = smov %s673_s13 }
 0x10a   : > { %p10_p5 = scmp.ge.s32.totalorder %s13_s14, 4   ;;  %s853_s13 = smov %s855_s15 }
 0x10c   :  { %12 = sbr.rel (!%p10_p5) target bundleno = 2 (0x2), region = 68 }

// kernel: bidaf_forward.22
= control target key start
LH: loop header
LB: loop body
LE: loop exit
PB: predicated region body
PF: predicated region fallthrough
CT: control target
= control target key end

     0   :  { %s1481_s9 = smov 0   ;;  %s2017_s0 = inlined_call_operand.vmem [shape: f32[2,4,2,512], index: 0, kind: input, shape index: {}]   ;;  %s2018_s1 = inlined_call_operand.vmem [shape: f32[2,128,512], index: 1, kind: input, shape index: {}]   ;;  %s2019_s2 = inlined_call_operand.vmem [shape: f32[2,4,2,128], index: 2, kind: output, shape index: {}]  }
   0x1 LB: > { %s1487_s10 = sadd.s32 4294967295, %s1462_s9   ;;  %p1342_p0 = scmp.ge.s32.totalorder %s1462_s9, 1  ;;  %s1462_s9 = sphi %s1481_s9, %s12_s9  }
   0x2   : > { %p122_p1 = scmp.lt.s32.totalorder %s1462_s9, 3 }
   0x4   : > { %p123_p2 = pnand %p1342_p0, %p122_p1 }
   0x6   : > { %126 = sbr.rel (%p123_p2) target bundleno = 1103 (0x44f), region = 28 }
   0xb   : > { %p149_p3 = scmp.lt.s32.totalorder %s1487_s10, 1  ;;  %v2020_v0 = vmov 0.0   ;;  %p166_p4 = scmp.eq.s32.totalorder %s1487_s10, 0 }
   0xc   : > { %301 = vmatprep.mubr.f32.mxu0 %v2020_v0  ;;  %164 = vst [vmem:[#allocation2] sm:$0x3] %v2020_v0  ;;  %165 = vst [vmem:[#allocation3] sm:$0x3] %v2020_v0  ;;  %372 = vmatprep.mubr.f32.mxu1 %v2020_v0 }
   0xd   : > { %s1497_s11 = scalar_select %p149_p3, %s1487_s10, 1 }
   0xe   : > { %s1832_s16 = scalar_select %p166_p4, 0, 3 }
   0xf   : > { %s1376_s12 = sshll.u32 %s1497_s11, 9  ;;  %s1375_s17 = sshll.u32 %s1497_s11, 5 }
  0x10   : > { %s1503_s15 = scalar_lea.vmem %s2018_s1, %s1376_s12  ;;  %s1838_s20 = scalar_lea.vmem %s2017_s0, %s1375_s17 }
  0x11   : > { %v1506_v1 = vld [vmem:[%s1503_s15 + $0x1e8] sm:$0xff]  ;;  %v1509_v2 = vld [vmem:[%s1503_s15 + $0x1f8] sm:$0xff]  ;;  %v1512_v3 = vld [vmem:[%s1503_s15 + $0x1e0] sm:$0xff]  ;;  %s1378_s21 = sshll.u32 %s1832_s16, 3  ;;  %s1377_s23 = sshll.u32 %s1497_s11, 3 }
  0x12   : > { %237 = vmatprep.subr.mxu0 %v1506_v1  ;;  %308 = vmatprep.subr.mxu1 %v1509_v2  ;;  %v1517_v4 = vld [vmem:[%s1503_s15 + $0x1f0] sm:$0xff]  ;;  %v1520_v5 = vld [vmem:[%s1503_s15 + $0x1c8] sm:$0xff]  ;;  %v1523_v6 = vld [vmem:[%s1503_s15 + $0x1d8] sm:$0xff]  ;;  %s170_s22 = scalar_lea.vmem %s1838_s20, %s1378_s21  ;;  %s1850_s26 = scalar_lea.vmem %s2019_s2, %s1377_s23 }
  0x13   : > { %238 = vmatpush1.msra.mxu0 %v1512_v3  ;;  %309 = vmatpush1.msra.mxu1 %v1517_v4  ;;  %v1528_v7 = vld [vmem:[%s1503_s15 + $0x1c0] sm:$0xff]  ;;  %v1531_v8 = vld [vmem:[%s1503_s15 + $0x1d0] sm:$0xff]  ;;  %v1534_v9 = vld [vmem:[%s1503_s15 + $0x1a8] sm:$0xff]  ;;  %s1354_s27 = sshll.u32 %s1832_s16, 1 }
  0x14   : > { %239 = vmatprep.subr.mxu0 %v1520_v5  ;;  %310 = vmatprep.subr.mxu1 %v1523_v6  ;;  %v1539_v10 = vld [vmem:[%s1503_s15 + $0x1b8] sm:$0xff]  ;;  %v1542_v11 = vld [vmem:[%s1503_s15 + $0x1a0] sm:$0xff]  ;;  %v1545_v12 = vld [vmem:[%s1503_s15 + $0x1b0] sm:$0xff]  ;;  %s437_s28 = scalar_lea.vmem %s1850_s26, %s1354_s27 }
  0x15   : > { %240 = vmatpush1.msra.mxu0 %v1528_v7  ;;  %311 = vmatpush1.msra.mxu1 %v1531_v8  ;;  %v1550_v13 = vld [vmem:[%s1503_s15 + $0x188] sm:$0xff]  ;;  %v1553_v14 = vld [vmem:[%s1503_s15 + $0x198] sm:$0xff]  ;;  %v1558_v15 = vld [vmem:[%s1503_s15 + $0x180] sm:$0xff]  ;;  %s1920_s29 = scalar_select %p166_p4, 1, 2 }
  0x16   : > { %241 = vmatprep.subr.mxu0 %v1534_v9  ;;  %312 = vmatprep.subr.mxu1 %v1539_v10  ;;  %v1561_v16 = vld [vmem:[%s1503_s15 + $0x190] sm:$0xff]  ;;  %v1566_v17 = vld [vmem:[%s1503_s15 + $0x168] sm:$0xff]  ;;  %v1569_v18 = vld [vmem:[%s1503_s15 + $0x178] sm:$0xff]  ;;  %s1996_s6 = scalar_select %p166_p4, 2, 1 }
  0x17   : > { %242 = vmatpush1.msra.mxu0 %v1542_v11  ;;  %313 = vmatpush1.msra.mxu1 %v1545_v12  ;;  %v1574_v19 = vld [vmem:[%s1503_s15 + $0x160] sm:$0xff]  ;;  %v1577_v20 = vld [vmem:[%s1503_s15 + $0x170] sm:$0xff]  ;;  %v1582_v21 = vld [vmem:[%s1503_s15 + $0x148] sm:$0xff]  ;;  %s1379_s30 = sshll.u32 %s1920_s29, 3  ;;  %s1360_s4 = sshll.u32 %s1920_s29, 1 }
  0x18   : > { %243 = vmatprep.subr.mxu0 %v1550_v13  ;;  %314 = vmatprep.subr.mxu1 %v1553_v14  ;;  %v1585_v22 = vld [vmem:[%s1503_s15 + $0x158] sm:$0xff]  ;;  %v1590_v23 = vld [vmem:[%s1503_s15 + $0x140] sm:$0xff]  ;;  %v1593_v24 = vld [vmem:[%s1503_s15 + $0x150] sm:$0xff]  ;;  %s442_s3 = scalar_lea.vmem %s1838_s20, %s1379_s30  ;;  %s709_s5 = scalar_lea.vmem %s1850_s26, %s1360_s4 }
  0x19   : > { %244 = vmatpush1.msra.mxu0 %v1558_v15  ;;  %315 = vmatpush1.msra.mxu1 %v1561_v16  ;;  %v1598_v25 = vld [vmem:[%s1503_s15 + $0x128] sm:$0xff]  ;;  %v1601_v26 = vld [vmem:[%s1503_s15 + $0x138] sm:$0xff]  ;;  %v1606_v27 = vld [vmem:[%s1503_s15 + $0x120] sm:$0xff]  ;;  %s1380_s7 = sshll.u32 %s1996_s6, 3  ;;  %s1366_s11 = sshll.u32 %s1996_s6, 1 }
  0x1a   : > { %245 = vmatprep.subr.mxu0 %v1566_v17  ;;  %316 = vmatprep.subr.mxu1 %v1569_v18  ;;  %v1609_v28 = vld [vmem:[%s1503_s15 + $0x130] sm:$0xff]  ;;  %v1614_v29 = vld [vmem:[%s1503_s15 + $0x108] sm:$0xff]  ;;  %v1617_v30 = vld [vmem:[%s1503_s15 + $0x118] sm:$0xff]  ;;  %s714_s8 = scalar_lea.vmem %s1838_s20, %s1380_s7  ;;  %s981_s12 = scalar_lea.vmem %s1850_s26, %s1366_s11 }
  0x1b   : > { %246 = vmatpush1.msra.mxu0 %v1574_v19  ;;  %317 = vmatpush1.msra.mxu1 %v1577_v20  ;;  %v1622_v31 = vld [vmem:[%s1503_s15 + $0x100] sm:$0xff]  ;;  %v1625_v32 = vld [vmem:[%s1503_s15 + $0x110] sm:$0xff]  ;;  %v1630_v33 = vld [vmem:[%s1503_s15 + $0xe8] sm:$0xff]  ;;  %s2006_s13 = scalar_select %p166_p4, 3, 0 }
  0x1c   : > { %247 = vmatprep.subr.mxu0 %v1582_v21  ;;  %318 = vmatprep.subr.mxu1 %v1585_v22  ;;  %v1633_v34 = vld [vmem:[%s1503_s15 + $0xf8] sm:$0xff]  ;;  %v1638_v35 = vld [vmem:[%s1503_s15 + $0xe0] sm:$0xff]  ;;  %v1641_v36 = vld [vmem:[%s1503_s15 + $0xf0] sm:$0xff] }
  0x1d   : > { %248 = vmatpush1.msra.mxu0 %v1590_v23  ;;  %319 = vmatpush1.msra.mxu1 %v1593_v24  ;;  %v1646_v37 = vld [vmem:[%s1503_s15 + $0xc8] sm:$0xff]  ;;  %v1649_v38 = vld [vmem:[%s1503_s15 + $0xd8] sm:$0xff]  ;;  %v1654_v39 = vld [vmem:[%s1503_s15 + $0xc0] sm:$0xff]  ;;  %s1381_s14 = sshll.u32 %s2006_s13, 3  ;;  %s1372_s10 = sshll.u32 %s2006_s13, 1 }
  0x1e   : > { %249 = vmatprep.subr.mxu0 %v1598_v25  ;;  %320 = vmatprep.subr.mxu1 %v1601_v26  ;;  %v1657_v40 = vld [vmem:[%s1503_s15 + $0xd0] sm:$0xff]  ;;  %v1662_v41 = vld [vmem:[%s1503_s15 + $0xa8] sm:$0xff]  ;;  %v1665_v42 = vld [vmem:[%s1503_s15 + $0xb8] sm:$0xff]  ;;  %s1253_s16 = scalar_lea.vmem %s1850_s26, %s1372_s10 }
  0x1f   : > { %250 = vmatpush1.msra.mxu0 %v1606_v27  ;;  %321 = vmatpush1.msra.mxu1 %v1609_v28  ;;  %v1670_v43 = vld [vmem:[%s1503_s15 + $0xa0] sm:$0xff]  ;;  %v1673_v44 = vld [vmem:[%s1503_s15 + $0xb0] sm:$0xff]  ;;  %v1678_v45 = vld [vmem:[%s1503_s15 + $0x88] sm:$0xff] }
  0x20   : > { %251 = vmatprep.subr.mxu0 %v1614_v29  ;;  %322 = vmatprep.subr.mxu1 %v1617_v30  ;;  %v1681_v46 = vld [vmem:[%s1503_s15 + $0x98] sm:$0xff]  ;;  %v1686_v47 = vld [vmem:[%s1503_s15 + $0x80] sm:$0xff]  ;;  %v1689_v48 = vld [vmem:[%s1503_s15 + $0x90] sm:$0xff] }
  0x21   : > { %252 = vmatpush1.msra.mxu0 %v1622_v31  ;;  %323 = vmatpush1.msra.mxu1 %v1625_v32  ;;  %2042 = vst [vmem:[#allocation4_spill] sm:$0xff] %v1686_v47  ;;  %2043 = vst [vmem:[#allocation5_spill] sm:$0xff] %v1689_v48  ;;  %v1694_v49 = vld [vmem:[%s1503_s15 + $0x68] sm:$0xff]  ;;  %v1697_v50 = vld [vmem:[%s1503_s15 + $0x78] sm:$0xff] }
  0x22   : > { %253 = vmatprep.subr.mxu0 %v1630_v33  ;;  %324 = vmatprep.subr.mxu1 %v1633_v34  ;;  %2044 = vst [vmem:[#allocation6_spill] sm:$0xff] %v1694_v49  ;;  %2045 = vst [vmem:[#allocation7_spill] sm:$0xff] %v1697_v50  ;;  %v1702_v51 = vld [vmem:[%s1503_s15 + $0x60] sm:$0xff]  ;;  %v1705_v52 = vld [vmem:[%s1503_s15 + $0x70] sm:$0xff] }
  0x23   : > { %254 = vmatpush1.msra.mxu0 %v1638_v35  ;;  %325 = vmatpush1.msra.mxu1 %v1641_v36  ;;  %2046 = vst [vmem:[#allocation8_spill] sm:$0xff] %v1702_v51  ;;  %2047 = vst [vmem:[#allocation9_spill] sm:$0xff] %v1705_v52  ;;  %v1710_v53 = vld [vmem:[%s1503_s15 + $0x48] sm:$0xff]  ;;  %v1713_v54 = vld [vmem:[%s1503_s15 + $0x58] sm:$0xff] }
  0x24   : > { %255 = vmatprep.subr.mxu0 %v1646_v37  ;;  %326 = vmatprep.subr.mxu1 %v1649_v38  ;;  %2048 = vst [vmem:[#allocation10_spill] sm:$0xff] %v1710_v53  ;;  %2049 = vst [vmem:[#allocation11_spill] sm:$0xff] %v1713_v54  ;;  %v1718_v55 = vld [vmem:[%s1503_s15 + $0x40] sm:$0xff]  ;;  %v1721_v56 = vld [vmem:[%s1503_s15 + $0x50] sm:$0xff] }
  0x25   : > { %256 = vmatpush1.msra.mxu0 %v1654_v39  ;;  %327 = vmatpush1.msra.mxu1 %v1657_v40  ;;  %2050 = vst [vmem:[#allocation12_spill] sm:$0xff] %v1718_v55  ;;  %2051 = vst [vmem:[#allocation13_spill] sm:$0xff] %v1721_v56  ;;  %v1726_v57 = vld [vmem:[%s1503_s15 + $0x28] sm:$0xff]  ;;  %v1729_v58 = vld [vmem:[%s1503_s15 + $0x38] sm:$0xff] }
  0x26   : > { %257 = vmatprep.subr.mxu0 %v1662_v41  ;;  %328 = vmatprep.subr.mxu1 %v1665_v42  ;;  %2052 = vst [vmem:[#allocation14_spill] sm:$0xff] %v1726_v57  ;;  %2053 = vst [vmem:[#allocation15_spill] sm:$0xff] %v1729_v58  ;;  %v1734_v59 = vld [vmem:[%s1503_s15 + $0x20] sm:$0xff]  ;;  %v1737_v60 = vld [vmem:[%s1503_s15 + $0x30] sm:$0xff] }
  0x27   : > { %258 = vmatpush1.msra.mxu0 %v1670_v43  ;;  %329 = vmatpush1.msra.mxu1 %v1673_v44  ;;  %2054 = vst [vmem:[#allocation16_spill] sm:$0xff] %v1734_v59  ;;  %2055 = vst [vmem:[#allocation17_spill] sm:$0xff] %v1737_v60  ;;  %v1742_v61 = vld [vmem:[%s1503_s15 + $0x8] sm:$0xff]  ;;  %v1745_v62 = vld [vmem:[%s1503_s15 + $0x18] sm:$0xff] }
  0x28   : > { %259 = vmatprep.subr.mxu0 %v1678_v45  ;;  %330 = vmatprep.subr.mxu1 %v1681_v46  ;;  %2056 = vst [vmem:[#allocation18_spill] sm:$0xff] %v1742_v61  ;;  %2057 = vst [vmem:[#allocation19_spill] sm:$0xff] %v1745_v62  ;;  %v1750_v63 = vld [vmem:[%s1503_s15] sm:$0xff]  ;;  %v1753_v0 = vld [vmem:[%s1503_s15 + $0x10] sm:$0xff] }
  0x29   : > { %260 = vmatpush1.msra.mxu0 %v1686_v47  ;;  %331 = vmatpush1.msra.mxu1 %v1689_v48  ;;  %2058 = vst [vmem:[#allocation20_spill] sm:$0xff] %v1750_v63  ;;  %2059 = vst [vmem:[#allocation21_spill] sm:$0xff] %v1753_v0 }
  0x2a   : > { %261 = vmatprep.subr.mxu0 %v1694_v49  ;;  %332 = vmatprep.subr.mxu1 %v1697_v50 }
  0x2b   : > { %262 = vmatpush1.msra.mxu0 %v1702_v51  ;;  %333 = vmatpush1.msra.mxu1 %v1705_v52 }
  0x2c   : > { %263 = vmatprep.subr.mxu0 %v1710_v53  ;;  %334 = vmatprep.subr.mxu1 %v1713_v54  ;;  %v172_v54 = vld [vmem:[#allocation2] sm:$0x3] }
  0x2d   : > { %264 = vmatpush1.msra.mxu0 %v1718_v55  ;;  %335 = vmatpush1.msra.mxu1 %v1721_v56 }
  0x2e   : > { %265 = vmatprep.subr.mxu0 %v1726_v57  ;;  %336 = vmatprep.subr.mxu1 %v1729_v58 }
  0x2f   : > { %266 = vmatpush1.msra.mxu0 %v1734_v59  ;;  %337 = vmatpush1.msra.mxu1 %v1737_v60 }
  0x30   : > { %267 = vmatprep.subr.mxu0 %v1742_v61  ;;  %338 = vmatprep.subr.mxu1 %v1745_v62 }
  0x31   : > { %268 = vmatpush1.msra.mxu0 %v1750_v63  ;;  %339 = vmatpush1.msra.mxu1 %v1753_v0 }
  0x32   : > { %302 = vmatmul.mubr.f32.vlgmr.msra.gmra.mxu0 %v172_v54  ;;  %373 = vmatmul.mubr.f32.vlgmr.msra.gmra.mxu1 %v172_v54  ;;  %v2060_v54 = vld [vmem:[#allocation11_spill] sm:$0xff] }
  0x33   : > { %509 = vmatprep.subr.mxu0 %v1506_v1  ;;  %580 = vmatprep.subr.mxu1 %v1509_v2 }
  0x34   : > { %510 = vmatpush1.msra.mxu0 %v1512_v3  ;;  %581 = vmatpush1.msra.mxu1 %v1517_v4 }
  0x35   : > { %511 = vmatprep.subr.mxu0 %v1520_v5  ;;  %582 = vmatprep.subr.mxu1 %v1523_v6 }
  0x36   : > { %512 = vmatpush1.msra.mxu0 %v1528_v7  ;;  %583 = vmatpush1.msra.mxu1 %v1531_v8 }
  0x37   : > { %513 = vmatprep.subr.mxu0 %v1534_v9  ;;  %584 = vmatprep.subr.mxu1 %v1539_v10 }
  0x38   : > { %514 = vmatpush1.msra.mxu0 %v1542_v11  ;;  %585 = vmatpush1.msra.mxu1 %v1545_v12 }
  0x39   : > { %515 = vmatprep.subr.mxu0 %v1550_v13  ;;  %586 = vmatprep.subr.mxu1 %v1553_v14 }
  0x3a   : > { %516 = vmatpush1.msra.mxu0 %v1558_v15  ;;  %587 = vmatpush1.msra.mxu1 %v1561_v16 }
  0x3b   : > { %517 = vmatprep.subr.mxu0 %v1566_v17  ;;  %588 = vmatprep.subr.mxu1 %v1569_v18 }
  0x3c   : > { %518 = vmatpush1.msra.mxu0 %v1574_v19  ;;  %589 = vmatpush1.msra.mxu1 %v1577_v20 }
  0x3d   : > { %519 = vmatprep.subr.mxu0 %v1582_v21  ;;  %590 = vmatprep.subr.mxu1 %v1585_v22 }
  0x3e   : > { %520 = vmatpush1.msra.mxu0 %v1590_v23  ;;  %591 = vmatpush1.msra.mxu1 %v1593_v24 }
  0x3f   : > { %521 = vmatprep.subr.mxu0 %v1598_v25  ;;  %592 = vmatprep.subr.mxu1 %v1601_v26 }
  0x40   : > { %522 = vmatpush1.msra.mxu0 %v1606_v27  ;;  %593 = vmatpush1.msra.mxu1 %v1609_v28 }
  0x41   : > { %523 = vmatprep.subr.mxu0 %v1614_v29  ;;  %594 = vmatprep.subr.mxu1 %v1617_v30 }
  0x42   : > { %524 = vmatpush1.msra.mxu0 %v1622_v31  ;;  %595 = vmatpush1.msra.mxu1 %v1625_v32 }
  0x43   : > { %525 = vmatprep.subr.mxu0 %v1630_v33  ;;  %596 = vmatprep.subr.mxu1 %v1633_v34 }
  0x44   : > { %526 = vmatpush1.msra.mxu0 %v1638_v35  ;;  %597 = vmatpush1.msra.mxu1 %v1641_v36 }
  0x45   : > { %527 = vmatprep.subr.mxu0 %v1646_v37  ;;  %598 = vmatprep.subr.mxu1 %v1649_v38 }
  0x46   : > { %528 = vmatpush1.msra.mxu0 %v1654_v39  ;;  %599 = vmatpush1.msra.mxu1 %v1657_v40 }
  0x47   : > { %529 = vmatprep.subr.mxu0 %v1662_v41  ;;  %600 = vmatprep.subr.mxu1 %v1665_v42 }
  0x48   : > { %530 = vmatpush1.msra.mxu0 %v1670_v43  ;;  %601 = vmatpush1.msra.mxu1 %v1673_v44 }
  0x49   : > { %531 = vmatprep.subr.mxu0 %v1678_v45  ;;  %602 = vmatprep.subr.mxu1 %v1681_v46 }
  0x4a   : > { %532 = vmatpush1.msra.mxu0 %v1686_v47  ;;  %603 = vmatpush1.msra.mxu1 %v1689_v48 }
  0x4b   : > { %533 = vmatprep.subr.mxu0 %v1694_v49  ;;  %604 = vmatprep.subr.mxu1 %v1697_v50 }
  0x4c   : > { %534 = vmatpush1.msra.mxu0 %v1702_v51  ;;  %605 = vmatpush1.msra.mxu1 %v1705_v52 }
  0x4d   : > { %535 = vmatprep.subr.mxu0 %v1710_v53  ;;  %606 = vmatprep.subr.mxu1 %v2060_v54  ;;  %v2061_v54 = vmov 0.0  }
  0x4e   : > { %536 = vmatpush1.msra.mxu0 %v1718_v55  ;;  %607 = vmatpush1.msra.mxu1 %v1721_v56  ;;  %v171_v56 = vld [vmem:[%s170_s22] sm:$0xff] }
  0x4f   : > { %537 = vmatprep.subr.mxu0 %v1726_v57  ;;  %608 = vmatprep.subr.mxu1 %v1729_v58  ;;  %v388_v58 = vlaneseq }
  0x50   : > { %538 = vmatpush1.msra.mxu0 %v1734_v59  ;;  %609 = vmatpush1.msra.mxu1 %v1737_v60  ;;  %v1465_v59 = vmov 1983009808  }
  0x51   : > { %539 = vmatprep.subr.mxu0 %v1742_v61  ;;  %610 = vmatprep.subr.mxu1 %v1745_v62  ;;  %v386_v60 = vunpack.c.l.s4 %v1465_v59 }
  0x52   : > { %540 = vmatpush1.msra.mxu0 %v1750_v63  ;;  %573 = vmatprep.mubr.f32.mxu0 %v2061_v54  ;;  %v389_v63 = vshrl.u32 %v388_v58, 7 }
  0x53   : > { %611 = vmatpush1.msra.mxu1 %v1753_v0  ;;  %644 = vmatprep.mubr.f32.mxu1 %v2061_v54  ;;  %v387_v62 = vunpack.c.0.s8 %v386_v60 }
  0x54   : > { %781 = vmatprep.subr.mxu0 %v1506_v1  ;;  %852 = vmatprep.subr.mxu1 %v1509_v2 }
  0x55   : > { %v1841_v1 = vsub.s32 %v387_v62, %v389_v63 }
  0xf2   : > { %v303_v61 = vpop.f32.mrf.mxu0  ;;  %v374_v57 = vpop.f32.mrf.mxu1 }
  0xf4   : > { %v305_v2 = vpop.f32.mrf.mxu0  ;;  %v376_v59 = vpop.f32.mrf.mxu1 }
  0xf5   : > { %v383_v0 = vcombine.low %v303_v61, %v305_v2  ;;  %v384_v54 = vcombine.low %v374_v57, %v376_v59 }
  0xf7   : > { %v391_v60 = vrot.slane %v383_v0, %v1841_v1  ;;  %v398_v58 = vrot.slane %v384_v54, %v1841_v1 }
  0xf9   : > { %v399_v55 = vcombine.low %v391_v60, %v398_v58 }
  0xfb   : > { %v401_v53 = vadd.f32 %v399_v55, %v171_v56  ;;  %v428_v56 = vld [vmem:[#allocation3] sm:$0x3] }
  0xfd   : > { %v1351_v52 = vmul.f32 -1.442695, %v401_v53  ;;  %v409_v51 = vrot.slane %v401_v53, 2  ;;  %v420_v49 = vrot.slane %v401_v53, 6  ;;  %v417_v48 = vrot.slane %v401_v53, 4 }
  0xff   : > { %1392 = vpow2.f32 %v1351_v52  ;;  %v1352_v50 = vmul.f32 -1.442695, %v409_v51  ;;  %v1353_v62 = vmul.f32 -1.442695, %v420_v49 }
 0x101   : > { %1394 = vpow2.f32 %v1352_v50 }
 0x102   : > { %1396 = vpow2.f32 %v1353_v62 }
 0x10c   : > { %v1393_v63 = vpop.eup %1392 }
 0x10d   : > { %v405_v47 = vadd.f32 1.0, %v1393_v63 }
 0x10e   : > { %v1395_v61 = vpop.eup %1394 }
 0x10f   : > { %1398 = vrcp.f32 %v405_v47  ;;  %v414_v0 = vadd.f32 1.0, %v1395_v61  ;;  %v1397_v57 = vpop.eup %1396 }
 0x110   : > { %1400 = vtanh.f32 %v417_v48  ;;  %v425_v51 = vadd.f32 1.0, %v1397_v57 }
 0x111   : > { %1402 = vrcp.f32 %v414_v0 }
 0x112   : > { %1404 = vrcp.f32 %v425_v51  ;;  %v1049_v51 = vld [vmem:[%s1503_s15 + $0x1e0] sm:$0xff] }
 0x11c   : > { %v1399_v55 = vpop.eup %1398 }
 0x11d   : > { %v1401_v54 = vpop.eup %1400 }
 0x11e   : > { %v1403_v52 = vpop.eup %1402  ;;  %v430_v2 = vmul.f32 %v1401_v54, %v1399_v55  ;;  %v1050_v54 = vld [vmem:[%s1503_s15 + $0x1e8] sm:$0xff] }
 0x11f   : > { %v429_v50 = vmul.f32 %v1403_v52, %v428_v56  ;;  %v1405_v47 = vpop.eup %1404  ;;  %v1052_v52 = vld [vmem:[%s1503_s15 + $0x1f8] sm:$0xff] }
 0x121   : > { %v431_v49 = vadd.f32 %v430_v2, %v429_v50  ;;  %v1051_v50 = vld [vmem:[%s1503_s15 + $0x1f0] sm:$0xff]  ;;  %v1046_v2 = vld [vmem:[%s1503_s15 + $0x1c8] sm:$0xff] }
 0x123   : > { %1406 = vtanh.f32 %v431_v49  ;;  %434 = vst [vmem:[#allocation3] sm:$0x3] %v431_v49  ;;  %v1048_v49 = vld [vmem:[%s1503_s15 + $0x1d8] sm:$0xff] }
 0x12a   : > { %v700_v58 = vld [vmem:[#allocation3] sm:$0x3] }
 0x130   : > { %v1407_v48 = vpop.eup %1406 }
 0x131   : > { %v433_v53 = vmul.f32 %v1407_v48, %v1405_v47  ;;  %v1045_v47 = vld [vmem:[%s1503_s15 + $0x1c0] sm:$0xff]  ;;  %v1047_v48 = vld [vmem:[%s1503_s15 + $0x1d0] sm:$0xff] }
 0x133   : > { %435 = vst [vmem:[#allocation2] sm:$0x3] %v433_v53  ;;  %438 = vst [vmem:[%s437_s28] sm:$0x3] %v433_v53  ;;  %v1042_v53 = vld [vmem:[%s1503_s15 + $0x1a8] sm:$0xff] }
 0x13a   : > { %v444_v59 = vld [vmem:[#allocation2] sm:$0x3] }
 0x13b   : > { %574 = vmatmul.mubr.f32.vlgmr.msra.gmra.mxu0 %v444_v59  ;;  %645 = vmatmul.mubr.f32.vlgmr.msra.gmra.mxu1 %v444_v59  ;;  %v1044_v59 = vld [vmem:[%s1503_s15 + $0x1b8] sm:$0xff] }
 0x13c   : > { %782 = vmatpush1.msra.mxu0 %v1512_v3  ;;  %853 = vmatpush1.msra.mxu1 %v1517_v4  ;;  %v2062_v3 = vld [vmem:[#allocation4_spill] sm:$0xff]  ;;  %v2063_v4 = vld [vmem:[#allocation5_spill] sm:$0xff] }
 0x13d   : > { %783 = vmatprep.subr.mxu0 %v1520_v5  ;;  %854 = vmatprep.subr.mxu1 %v1523_v6  ;;  %v2064_v5 = vld [vmem:[#allocation6_spill] sm:$0xff]  ;;  %v2065_v6 = vld [vmem:[#allocation7_spill] sm:$0xff] }
 0x13e   : > { %784 = vmatpush1.msra.mxu0 %v1528_v7  ;;  %855 = vmatpush1.msra.mxu1 %v1531_v8  ;;  %v2066_v7 = vld [vmem:[#allocation8_spill] sm:$0xff]  ;;  %v2067_v8 = vld [vmem:[#allocation9_spill] sm:$0xff] }
 0x13f   : > { %785 = vmatprep.subr.mxu0 %v1534_v9  ;;  %856 = vmatprep.subr.mxu1 %v1539_v10  ;;  %v2068_v9 = vld [vmem:[#allocation10_spill] sm:$0xff]  ;;  %v2069_v10 = vld [vmem:[#allocation11_spill] sm:$0xff] }
 0x140   : > { %786 = vmatpush1.msra.mxu0 %v1542_v11  ;;  %857 = vmatpush1.msra.mxu1 %v1545_v12  ;;  %v2070_v11 = vld [vmem:[#allocation12_spill] sm:$0xff]  ;;  %v2071_v12 = vld [vmem:[#allocation13_spill] sm:$0xff] }
 0x141   : > { %787 = vmatprep.subr.mxu0 %v1550_v13  ;;  %858 = vmatprep.subr.mxu1 %v1553_v14  ;;  %v2072_v13 = vld [vmem:[#allocation14_spill] sm:$0xff]  ;;  %v2073_v14 = vld [vmem:[#allocation15_spill] sm:$0xff] }
 0x142   : > { %788 = vmatpush1.msra.mxu0 %v1558_v15  ;;  %859 = vmatpush1.msra.mxu1 %v1561_v16  ;;  %v2074_v15 = vld [vmem:[#allocation16_spill] sm:$0xff]  ;;  %v2075_v16 = vld [vmem:[#allocation17_spill] sm:$0xff] }
 0x143   : > { %789 = vmatprep.subr.mxu0 %v1566_v17  ;;  %860 = vmatprep.subr.mxu1 %v1569_v18  ;;  %v2076_v17 = vld [vmem:[#allocation18_spill] sm:$0xff]  ;;  %v2077_v18 = vld [vmem:[#allocation19_spill] sm:$0xff] }
 0x144   : > { %790 = vmatpush1.msra.mxu0 %v1574_v19  ;;  %861 = vmatpush1.msra.mxu1 %v1577_v20  ;;  %v2078_v19 = vld [vmem:[#allocation20_spill] sm:$0xff]  ;;  %v2079_v20 = vmov 0.0  }
 0x145   : > { %791 = vmatprep.subr.mxu0 %v1582_v21  ;;  %862 = vmatprep.subr.mxu1 %v1585_v22  ;;  %v2080_v21 = vld [vmem:[#allocation21_spill] sm:$0xff] }
 0x146   : > { %792 = vmatpush1.msra.mxu0 %v1590_v23  ;;  %863 = vmatpush1.msra.mxu1 %v1593_v24 }
 0x147   : > { %793 = vmatprep.subr.mxu0 %v1598_v25  ;;  %864 = vmatprep.subr.mxu1 %v1601_v26 }
 0x148   : > { %794 = vmatpush1.msra.mxu0 %v1606_v27  ;;  %865 = vmatpush1.msra.mxu1 %v1609_v28 }
 0x149   : > { %795 = vmatprep.subr.mxu0 %v1614_v29  ;;  %866 = vmatprep.subr.mxu1 %v1617_v30  ;;  %v443_v30 = vld [vmem:[%s442_s3] sm:$0xff] }
 0x14a   : > { %796 = vmatpush1.msra.mxu0 %v1622_v31  ;;  %867 = vmatpush1.msra.mxu1 %v1625_v32 }
 0x14b   : > { %797 = vmatprep.subr.mxu0 %v1630_v33  ;;  %868 = vmatprep.subr.mxu1 %v1633_v34 }
 0x14c   : > { %798 = vmatpush1.msra.mxu0 %v1638_v35  ;;  %869 = vmatpush1.msra.mxu1 %v1641_v36 }
 0x14d   : > { %799 = vmatprep.subr.mxu0 %v1646_v37  ;;  %870 = vmatprep.subr.mxu1 %v1649_v38 }
 0x14e   : > { %800 = vmatpush1.msra.mxu0 %v1654_v39  ;;  %871 = vmatpush1.msra.mxu1 %v1657_v40 }
 0x14f   : > { %801 = vmatprep.subr.mxu0 %v1662_v41  ;;  %872 = vmatprep.subr.mxu1 %v1665_v42 }
 0x150   : > { %802 = vmatpush1.msra.mxu0 %v1670_v43  ;;  %873 = vmatpush1.msra.mxu1 %v1673_v44 }
 0x151   : > { %803 = vmatprep.subr.mxu0 %v1678_v45  ;;  %874 = vmatprep.subr.mxu1 %v1681_v46 }
 0x152   : > { %804 = vmatpush1.msra.mxu0 %v2062_v3  ;;  %875 = vmatpush1.msra.mxu1 %v2063_v4  ;;  %v1041_v3 = vld [vmem:[%s1503_s15 + $0x1a0] sm:$0xff]  ;;  %v1043_v4 = vld [vmem:[%s1503_s15 + $0x1b0] sm:$0xff] }
 0x153   : > { %805 = vmatprep.subr.mxu0 %v2064_v5  ;;  %876 = vmatprep.subr.mxu1 %v2065_v6  ;;  %v1038_v5 = vld [vmem:[%s1503_s15 + $0x188] sm:$0xff]  ;;  %v1040_v6 = vld [vmem:[%s1503_s15 + $0x198] sm:$0xff] }
 0x154   : > { %806 = vmatpush1.msra.mxu0 %v2066_v7  ;;  %877 = vmatpush1.msra.mxu1 %v2067_v8  ;;  %v1037_v7 = vld [vmem:[%s1503_s15 + $0x180] sm:$0xff]  ;;  %v1039_v8 = vld [vmem:[%s1503_s15 + $0x190] sm:$0xff] }
 0x155   : > { %807 = vmatprep.subr.mxu0 %v2068_v9  ;;  %878 = vmatprep.subr.mxu1 %v2069_v10  ;;  %v1034_v9 = vld [vmem:[%s1503_s15 + $0x168] sm:$0xff]  ;;  %v1036_v10 = vld [vmem:[%s1503_s15 + $0x178] sm:$0xff] }
 0x156   : > { %808 = vmatpush1.msra.mxu0 %v2070_v11  ;;  %879 = vmatpush1.msra.mxu1 %v2071_v12  ;;  %v1033_v11 = vld [vmem:[%s1503_s15 + $0x160] sm:$0xff]  ;;  %v1035_v12 = vld [vmem:[%s1503_s15 + $0x170] sm:$0xff] }
 0x157   : > { %809 = vmatprep.subr.mxu0 %v2072_v13  ;;  %880 = vmatprep.subr.mxu1 %v2073_v14  ;;  %v1030_v13 = vld [vmem:[%s1503_s15 + $0x148] sm:$0xff]  ;;  %v1032_v14 = vld [vmem:[%s1503_s15 + $0x158] sm:$0xff] }
 0x158   : > { %810 = vmatpush1.msra.mxu0 %v2074_v15  ;;  %881 = vmatpush1.msra.mxu1 %v2075_v16  ;;  %v1029_v15 = vld [vmem:[%s1503_s15 + $0x140] sm:$0xff]  ;;  %v1031_v16 = vld [vmem:[%s1503_s15 + $0x150] sm:$0xff] }
 0x159   : > { %811 = vmatprep.subr.mxu0 %v2076_v17  ;;  %882 = vmatprep.subr.mxu1 %v2077_v18  ;;  %v1026_v17 = vld [vmem:[%s1503_s15 + $0x128] sm:$0xff]  ;;  %v1028_v18 = vld [vmem:[%s1503_s15 + $0x138] sm:$0xff] }
 0x15a   : > { %812 = vmatpush1.msra.mxu0 %v2078_v19  ;;  %845 = vmatprep.mubr.f32.mxu0 %v2079_v20  ;;  %v1025_v19 = vld [vmem:[%s1503_s15 + $0x120] sm:$0xff] }
 0x15b   : > { %883 = vmatpush1.msra.mxu1 %v2080_v21  ;;  %916 = vmatprep.mubr.f32.mxu1 %v2079_v20  ;;  %v1022_v21 = vld [vmem:[%s1503_s15 + $0x108] sm:$0xff] }
 0x15c   : > { %1053 = vmatprep.subr.mxu0 %v1050_v54  ;;  %1124 = vmatprep.subr.mxu1 %v1052_v52  ;;  %v991_v54 = vld [vmem:[%s1503_s15 + $0x10] sm:$0xff] }
 0x1fb   : > { %v575_v22 = vpop.f32.mrf.mxu0  ;;  %v646_v23 = vpop.f32.mrf.mxu1 }
 0x1fd   : > { %v577_v24 = vpop.f32.mrf.mxu0  ;;  %v648_v25 = vpop.f32.mrf.mxu1 }
 0x1fe   : > { %v655_v26 = vcombine.low %v575_v22, %v577_v24  ;;  %v656_v27 = vcombine.low %v646_v23, %v648_v25  ;;  %v1024_v22 = vld [vmem:[%s1503_s15 + $0x118] sm:$0xff]  ;;  %v1021_v23 = vld [vmem:[%s1503_s15 + $0x100] sm:$0xff]  ;;  %v1023_v24 = vld [vmem:[%s1503_s15 + $0x110] sm:$0xff] }
 0x1ff   : > { %v1018_v25 = vld [vmem:[%s1503_s15 + $0xe8] sm:$0xff] }
 0x200   : > { %v663_v28 = vrot.slane %v655_v26, %v1841_v1  ;;  %v670_v29 = vrot.slane %v656_v27, %v1841_v1  ;;  %v1020_v26 = vld [vmem:[%s1503_s15 + $0xf8] sm:$0xff]  ;;  %v1017_v27 = vld [vmem:[%s1503_s15 + $0xe0] sm:$0xff] }
 0x202   : > { %v671_v31 = vcombine.low %v663_v28, %v670_v29  ;;  %v1019_v28 = vld [vmem:[%s1503_s15 + $0xf0] sm:$0xff]  ;;  %v1014_v29 = vld [vmem:[%s1503_s15 + $0xc8] sm:$0xff] }
 0x204   : > { %v673_v32 = vadd.f32 %v671_v31, %v443_v30  ;;  %v1016_v30 = vld [vmem:[%s1503_s15 + $0xd8] sm:$0xff]  ;;  %v1013_v31 = vld [vmem:[%s1503_s15 + $0xc0] sm:$0xff] }
 0x206   : > { %v1357_v33 = vmul.f32 -1.442695, %v673_v32  ;;  %v681_v34 = vrot.slane %v673_v32, 2  ;;  %v692_v36 = vrot.slane %v673_v32, 6  ;;  %v689_v39 = vrot.slane %v673_v32, 4  ;;  %v1015_v32 = vld [vmem:[%s1503_s15 + $0xd0] sm:$0xff] }
 0x208   : > { %1408 = vpow2.f32 %v1357_v33  ;;  %v1358_v35 = vmul.f32 -1.442695, %v681_v34  ;;  %v1359_v37 = vmul.f32 -1.442695, %v692_v36  ;;  %v1010_v33 = vld [vmem:[%s1503_s15 + $0xa8] sm:$0xff]  ;;  %v1012_v34 = vld [vmem:[%s1503_s15 + $0xb8] sm:$0xff] }
 0x209   : > { %v1011_v36 = vld [vmem:[%s1503_s15 + $0xb0] sm:$0xff] }
 0x20a   : > { %1410 = vpow2.f32 %v1358_v35  ;;  %v1009_v35 = vld [vmem:[%s1503_s15 + $0xa0] sm:$0xff] }
 0x20b   : > { %1412 = vpow2.f32 %v1359_v37  ;;  %v1006_v37 = vld [vmem:[%s1503_s15 + $0x88] sm:$0xff] }
 0x215   : > { %v1409_v38 = vpop.eup %1408 }
 0x216   : > { %v677_v40 = vadd.f32 1.0, %v1409_v38  ;;  %v1008_v38 = vld [vmem:[%s1503_s15 + $0x98] sm:$0xff] }
 0x217   : > { %v1411_v41 = vpop.eup %1410 }
 0x218   : > { %1414 = vrcp.f32 %v677_v40  ;;  %v686_v42 = vadd.f32 1.0, %v1411_v41  ;;  %v1413_v43 = vpop.eup %1412  ;;  %v1007_v40 = vld [vmem:[%s1503_s15 + $0x90] sm:$0xff]  ;;  %v1002_v41 = vld [vmem:[%s1503_s15 + $0x68] sm:$0xff] }
 0x219   : > { %1416 = vtanh.f32 %v689_v39  ;;  %v697_v60 = vadd.f32 1.0, %v1413_v43  ;;  %v1005_v39 = vld [vmem:[%s1503_s15 + $0x80] sm:$0xff] }
 0x21a   : > { %1418 = vrcp.f32 %v686_v42  ;;  %v1004_v42 = vld [vmem:[%s1503_s15 + $0x78] sm:$0xff]  ;;  %v1001_v43 = vld [vmem:[%s1503_s15 + $0x60] sm:$0xff] }
 0x21b   : > { %1420 = vrcp.f32 %v697_v60  ;;  %v997_v60 = vld [vmem:[%s1503_s15 + $0x40] sm:$0xff] }
 0x225   : > { %v1415_v44 = vpop.eup %1414 }
 0x226   : > { %v1417_v45 = vpop.eup %1416 }
 0x227   : > { %v1419_v46 = vpop.eup %1418  ;;  %v702_v63 = vmul.f32 %v1417_v45, %v1415_v44  ;;  %v1003_v44 = vld [vmem:[%s1503_s15 + $0x70] sm:$0xff]  ;;  %v998_v45 = vld [vmem:[%s1503_s15 + $0x48] sm:$0xff] }
 0x228   : > { %v701_v62 = vmul.f32 %v1419_v46, %v700_v58  ;;  %v1421_v0 = vpop.eup %1420  ;;  %v1000_v46 = vld [vmem:[%s1503_s15 + $0x58] sm:$0xff]  ;;  %v999_v58 = vld [vmem:[%s1503_s15 + $0x50] sm:$0xff] }
 0x22a   : > { %v703_v61 = vadd.f32 %v702_v63, %v701_v62  ;;  %v994_v62 = vld [vmem:[%s1503_s15 + $0x28] sm:$0xff]  ;;  %v996_v63 = vld [vmem:[%s1503_s15 + $0x38] sm:$0xff] }
 0x22c   : > { %1422 = vtanh.f32 %v703_v61  ;;  %706 = vst [vmem:[#allocation3] sm:$0x3] %v703_v61  ;;  %v993_v61 = vld [vmem:[%s1503_s15 + $0x20] sm:$0xff] }
 0x239   : > { %v1423_v57 = vpop.eup %1422 }
 0x23a   : > { %v705_v55 = vmul.f32 %v1423_v57, %v1421_v0  ;;  %v995_v0 = vld [vmem:[%s1503_s15 + $0x30] sm:$0xff]  ;;  %v990_v57 = vld [vmem:[%s1503_s15 + $0x8] sm:$0xff] }
 0x23c   : > { %707 = vst [vmem:[#allocation2] sm:$0x3] %v705_v55  ;;  %710 = vst [vmem:[%s709_s5] sm:$0x3] %v705_v55  ;;  %v992_v55 = vld [vmem:[%s1503_s15 + $0x18] sm:$0xff] }
 0x243   : > { %v716_v56 = vld [vmem:[#allocation2] sm:$0x3] }
 0x244   : > { %846 = vmatmul.mubr.f32.vlgmr.msra.gmra.mxu0 %v716_v56  ;;  %917 = vmatmul.mubr.f32.vlgmr.msra.gmra.mxu1 %v716_v56  ;;  %v989_v56 = vld [vmem:[%s1503_s15] sm:$0xff] }
 0x245   : > { %1117 = vmatprep.mubr.f32.mxu0 %v2079_v20  ;;  %1188 = vmatprep.mubr.f32.mxu1 %v2079_v20  ;;  %v1027_v20 = vld [vmem:[%s1503_s15 + $0x130] sm:$0xff]  ;;  %s986_s15 = scalar_lea.vmem %s1838_s20, %s1381_s14 }
 0x246   : > { %1054 = vmatpush1.msra.mxu0 %v1049_v51  ;;  %1125 = vmatpush1.msra.mxu1 %v1051_v50 }
 0x247   : > { %1055 = vmatprep.subr.mxu0 %v1046_v2  ;;  %1126 = vmatprep.subr.mxu1 %v1048_v49 }
 0x248   : > { %1056 = vmatpush1.msra.mxu0 %v1045_v47  ;;  %1127 = vmatpush1.msra.mxu1 %v1047_v48 }
 0x249   : > { %1057 = vmatprep.subr.mxu0 %v1042_v53  ;;  %1128 = vmatprep.subr.mxu1 %v1044_v59  ;;  %v715_v59 = vld [vmem:[%s714_s8] sm:$0xff] }
 0x24a   : > { %1058 = vmatpush1.msra.mxu0 %v1041_v3  ;;  %1129 = vmatpush1.msra.mxu1 %v1043_v4 }
 0x24b   : > { %1059 = vmatprep.subr.mxu0 %v1038_v5  ;;  %1130 = vmatprep.subr.mxu1 %v1040_v6 }
 0x24c   : > { %1060 = vmatpush1.msra.mxu0 %v1037_v7  ;;  %1131 = vmatpush1.msra.mxu1 %v1039_v8 }
 0x24d   : > { %1061 = vmatprep.subr.mxu0 %v1034_v9  ;;  %1132 = vmatprep.subr.mxu1 %v1036_v10 }
 0x24e   : > { %1062 = vmatpush1.msra.mxu0 %v1033_v11  ;;  %1133 = vmatpush1.msra.mxu1 %v1035_v12 }
 0x24f   : > { %1063 = vmatprep.subr.mxu0 %v1030_v13  ;;  %1134 = vmatprep.subr.mxu1 %v1032_v14 }
 0x250   : > { %1064 = vmatpush1.msra.mxu0 %v1029_v15  ;;  %1135 = vmatpush1.msra.mxu1 %v1031_v16 }
 0x251   : > { %1065 = vmatprep.subr.mxu0 %v1026_v17  ;;  %1136 = vmatprep.subr.mxu1 %v1028_v18 }
 0x252   : > { %1066 = vmatpush1.msra.mxu0 %v1025_v19  ;;  %1137 = vmatpush1.msra.mxu1 %v1027_v20  ;;  %v972_v20 = vld [vmem:[#allocation3] sm:$0x3] }
 0x253   : > { %1067 = vmatprep.subr.mxu0 %v1022_v21  ;;  %1138 = vmatprep.subr.mxu1 %v1024_v22 }
 0x254   : > { %1068 = vmatpush1.msra.mxu0 %v1021_v23  ;;  %1139 = vmatpush1.msra.mxu1 %v1023_v24 }
 0x255   : > { %1069 = vmatprep.subr.mxu0 %v1018_v25  ;;  %1140 = vmatprep.subr.mxu1 %v1020_v26 }
 0x256   : > { %1070 = vmatpush1.msra.mxu0 %v1017_v27  ;;  %1141 = vmatpush1.msra.mxu1 %v1019_v28 }
 0x257   : > { %1071 = vmatprep.subr.mxu0 %v1014_v29  ;;  %1142 = vmatprep.subr.mxu1 %v1016_v30 }
 0x258   : > { %1072 = vmatpush1.msra.mxu0 %v1013_v31  ;;  %1143 = vmatpush1.msra.mxu1 %v1015_v32 }
 0x259   : > { %1073 = vmatprep.subr.mxu0 %v1010_v33  ;;  %1144 = vmatprep.subr.mxu1 %v1012_v34 }
 0x25a   : > { %1074 = vmatpush1.msra.mxu0 %v1009_v35  ;;  %1145 = vmatpush1.msra.mxu1 %v1011_v36  ;;  %v987_v36 = vld [vmem:[%s986_s15] sm:$0xff] }
 0x25b   : > { %1075 = vmatprep.subr.mxu0 %v1006_v37  ;;  %1146 = vmatprep.subr.mxu1 %v1008_v38 }
 0x25c   : > { %1076 = vmatpush1.msra.mxu0 %v1005_v39  ;;  %1147 = vmatpush1.msra.mxu1 %v1007_v40 }
 0x25d   : > { %1077 = vmatprep.subr.mxu0 %v1002_v41  ;;  %1148 = vmatprep.subr.mxu1 %v1004_v42 }
 0x25e   : > { %1078 = vmatpush1.msra.mxu0 %v1001_v43  ;;  %1149 = vmatpush1.msra.mxu1 %v1003_v44 }
 0x25f   : > { %1079 = vmatprep.subr.mxu0 %v998_v45  ;;  %1150 = vmatprep.subr.mxu1 %v1000_v46 }
 0x260   : > { %1080 = vmatpush1.msra.mxu0 %v997_v60  ;;  %1151 = vmatpush1.msra.mxu1 %v999_v58 }
 0x261   : > { %1081 = vmatprep.subr.mxu0 %v994_v62  ;;  %1152 = vmatprep.subr.mxu1 %v996_v63 }
 0x262   : > { %1082 = vmatpush1.msra.mxu0 %v993_v61  ;;  %1153 = vmatpush1.msra.mxu1 %v995_v0 }
 0x263   : > { %1083 = vmatprep.subr.mxu0 %v990_v57  ;;  %1154 = vmatprep.subr.mxu1 %v992_v55 }
 0x264   : > { %1084 = vmatpush1.msra.mxu0 %v989_v56  ;;  %1155 = vmatpush1.msra.mxu1 %v991_v54 }
 0x304   : > { %v847_v52 = vpop.f32.mrf.mxu0  ;;  %v918_v51 = vpop.f32.mrf.mxu1 }
 0x306   : > { %v849_v50 = vpop.f32.mrf.mxu0  ;;  %v920_v2 = vpop.f32.mrf.mxu1 }
 0x307   : > { %v927_v49 = vcombine.low %v847_v52, %v849_v50  ;;  %v928_v47 = vcombine.low %v918_v51, %v920_v2 }
 0x309   : > { %v935_v48 = vrot.slane %v927_v49, %v1841_v1  ;;  %v942_v53 = vrot.slane %v928_v47, %v1841_v1 }
 0x30b   : > { %v943_v3 = vcombine.low %v935_v48, %v942_v53 }
 0x30d   : > { %v945_v4 = vadd.f32 %v943_v3, %v715_v59 }
 0x30f   : > { %v1363_v5 = vmul.f32 -1.442695, %v945_v4  ;;  %v953_v6 = vrot.slane %v945_v4, 2  ;;  %v964_v8 = vrot.slane %v945_v4, 6  ;;  %v961_v11 = vrot.slane %v945_v4, 4 }
 0x311   : > { %1424 = vpow2.f32 %v1363_v5  ;;  %v1364_v7 = vmul.f32 -1.442695, %v953_v6  ;;  %v1365_v9 = vmul.f32 -1.442695, %v964_v8 }
 0x313   : > { %1426 = vpow2.f32 %v1364_v7 }
 0x314   : > { %1428 = vpow2.f32 %v1365_v9 }
 0x31e   : > { %v1425_v10 = vpop.eup %1424 }
 0x31f   : > { %v949_v12 = vadd.f32 1.0, %v1425_v10 }
 0x320   : > { %v1427_v13 = vpop.eup %1426 }
 0x321   : > { %1430 = vrcp.f32 %v949_v12  ;;  %v958_v14 = vadd.f32 1.0, %v1427_v13  ;;  %v1429_v15 = vpop.eup %1428 }
 0x322   : > { %1432 = vtanh.f32 %v961_v11  ;;  %v969_v19 = vadd.f32 1.0, %v1429_v15 }
 0x323   : > { %1434 = vrcp.f32 %v958_v14 }
 0x324   : > { %1436 = vrcp.f32 %v969_v19 }
 0x32e   : > { %v1431_v16 = vpop.eup %1430 }
 0x32f   : > { %v1433_v17 = vpop.eup %1432 }
 0x330   : > { %v1435_v18 = vpop.eup %1434  ;;  %v974_v22 = vmul.f32 %v1433_v17, %v1431_v16 }
 0x331   : > { %v973_v21 = vmul.f32 %v1435_v18, %v972_v20  ;;  %v1437_v24 = vpop.eup %1436 }
 0x333   : > { %v975_v23 = vadd.f32 %v974_v22, %v973_v21 }
 0x335   : > { %1438 = vtanh.f32 %v975_v23  ;;  %978 = vst [vmem:[#allocation3] sm:$0x3] %v975_v23 }
 0x33c   : > { %v1244_v57 = vld [vmem:[#allocation3] sm:$0x3] }
 0x342   : > { %v1439_v25 = vpop.eup %1438 }
 0x343   : > { %v977_v26 = vmul.f32 %v1439_v25, %v1437_v24 }
 0x345   : > { %982 = vst [vmem:[%s981_s12] sm:$0x3] %v977_v26  ;;  %979 = vst [vmem:[#allocation2] sm:$0x3] %v977_v26 }
 0x34c   : > { %v988_v27 = vld [vmem:[#allocation2] sm:$0x3] }
 0x34d   : > { %1118 = vmatmul.mubr.f32.vlgmr.msra.gmra.mxu0 %v988_v27  ;;  %1189 = vmatmul.mubr.f32.vlgmr.msra.gmra.mxu1 %v988_v27 }
 0x40d   : > { %v1119_v28 = vpop.f32.mrf.mxu0  ;;  %v1190_v29 = vpop.f32.mrf.mxu1 }
 0x40f   : > { %v1121_v30 = vpop.f32.mrf.mxu0  ;;  %v1192_v31 = vpop.f32.mrf.mxu1 }
 0x410   : > { %v1199_v32 = vcombine.low %v1119_v28, %v1121_v30  ;;  %v1200_v33 = vcombine.low %v1190_v29, %v1192_v31 }
 0x412   : > { %v1207_v34 = vrot.slane %v1199_v32, %v1841_v1  ;;  %v1214_v35 = vrot.slane %v1200_v33, %v1841_v1 }
 0x414   : > { %v1215_v37 = vcombine.low %v1207_v34, %v1214_v35 }
 0x416   : > { %v1217_v38 = vadd.f32 %v1215_v37, %v987_v36 }
 0x418   : > { %v1369_v39 = vmul.f32 -1.442695, %v1217_v38  ;;  %v1225_v40 = vrot.slane %v1217_v38, 2  ;;  %v1236_v42 = vrot.slane %v1217_v38, 6  ;;  %v1233_v45 = vrot.slane %v1217_v38, 4 }
 0x41a   : > { %1440 = vpow2.f32 %v1369_v39  ;;  %v1370_v41 = vmul.f32 -1.442695, %v1225_v40  ;;  %v1371_v43 = vmul.f32 -1.442695, %v1236_v42 }
 0x41c   : > { %1442 = vpow2.f32 %v1370_v41 }
 0x41d   : > { %1444 = vpow2.f32 %v1371_v43 }
 0x427   : > { %v1441_v44 = vpop.eup %1440 }
 0x428   : > { %v1221_v46 = vadd.f32 1.0, %v1441_v44 }
 0x429   : > { %v1443_v60 = vpop.eup %1442 }
 0x42a   : > { %1446 = vrcp.f32 %v1221_v46  ;;  %v1230_v58 = vadd.f32 1.0, %v1443_v60  ;;  %v1445_v1 = vpop.eup %1444 }
 0x42b   : > { %1448 = vtanh.f32 %v1233_v45  ;;  %v1241_v0 = vadd.f32 1.0, %v1445_v1 }
 0x42c   : > { %1450 = vrcp.f32 %v1230_v58 }
 0x42d   : > { %1452 = vrcp.f32 %v1241_v0 }
 0x437   : > { %v1447_v62 = vpop.eup %1446 }
 0x438   : > { %v1449_v63 = vpop.eup %1448 }
 0x439   : > { %v1451_v61 = vpop.eup %1450  ;;  %v1246_v56 = vmul.f32 %v1449_v63, %v1447_v62 }
 0x43a   : > { %v1245_v55 = vmul.f32 %v1451_v61, %v1244_v57  ;;  %v1453_v52 = vpop.eup %1452 }
 0x43c   : > { %v1247_v54 = vadd.f32 %v1246_v56, %v1245_v55 }
 0x43e   : > { %1454 = vtanh.f32 %v1247_v54  ;;  %1250 = vst [vmem:[#allocation3] sm:$0x3] %v1247_v54 }
 0x44b   : > { %v1455_v51 = vpop.eup %1454 }
 0x44c   : > { %v1249_v50 = vmul.f32 %v1455_v51, %v1453_v52 }
 0x44e   : > { %1251 = vst [vmem:[#allocation2] sm:$0x3] %v1249_v50  ;;  %1254 = vst [vmem:[%s1253_s16] sm:$0x3] %v1249_v50 }
 0x44f PF: > { %s12_s9 = sadd.s32 1, %s1462_s9  }
 0x450   : > { %p9_p5 = scmp.ge.s32.totalorder %s12_s9, 4  }
 0x452   :  { %11 = sbr.rel (!%p9_p5) target bundleno = 1 (0x1), region = 69 }

// kernel: bidaf_forward.16
= control target key start
LH: loop header
LB: loop body
LE: loop exit
PB: predicated region body
PF: predicated region fallthrough
CT: control target
= control target key end

     0   :  { %s997_s12 = smov 0   ;;  %s1194_s0 = inlined_call_operand.vmem [shape: f32[576,40], index: 0, kind: input, shape index: {}]   ;;  %s1195_s1 = inlined_call_operand.vmem [shape: f32[40,100], index: 1, kind: input, shape index: {}]   ;;  %s1196_s2 = inlined_call_operand.vmem [shape: f32[1,100], index: 2, kind: input, shape index: {}]   ;;  %s1197_s3 = inlined_call_operand.vmem [shape: f32[16,100], index: 3, kind: output, shape index: {}]  }
   0x1 LB: > { %s1003_s13 = sadd.s32 4294967295, %s975_s12   ;;  %p804_p0 = scmp.ge.s32.totalorder %s975_s12, 1  ;;  %s975_s12 = sphi %s997_s12, %s13_s12  }
   0x2   : > { %p138_p1 = scmp.lt.s32.totalorder %s975_s12, 3 }
   0x4   : > { %p139_p2 = pnand %p804_p0, %p138_p1 }
   0x5   : > { %s161_s18 = smul.u32 (!%p139_p2), 36, %s1003_s13  ;;  %p167_p4 = scmp.lt.s32.totalorder (!%p139_p2), %s1003_s13, 1 }
   0x6   : > { %142 = sbr.rel (%p139_p2) target bundleno = 280 (0x118), region = 32 }
   0x7   : > { %p162_p3 = scmp.lt.s32.totalorder (!%p139_p2), %s161_s18, 71 }
   0xb   : > { %v211_v0 = vld [vmem:[%s1195_s1 + $0x20] sm:$0xff]  ;;  %v210_v1 = vld [vmem:[%s1195_s1 + $0x18] sm:$0xff]  ;;  %v209_v2 = vld [vmem:[%s1195_s1 + $0x10] sm:$0xff]  ;;  %s1199_s18 = smov (!%p162_p3, %s161_s18), 71  ;;  %vm219_vm0 = vcmask 326656   ;;  %vm609_vm1 = vcmask 818176  }
   0xc   : > { %887 = vmatprep.subr.mxu0 %v211_v0  ;;  %951 = vmatprep.subr.mxu1 %v211_v0  ;;  %v208_v3 = vld [vmem:[%s1195_s1 + $0x8] sm:$0xff]  ;;  %v207_v4 = vld [vmem:[%s1195_s1] sm:$0xff]  ;;  %s805_s25 = sshll.u32 %s1199_s18, 3  ;;  %vm614_vm2 = vcmask 814080   ;;  %vm626_vm3 = vcmask 818180   ;;  %vm732_vm4 = vcmask 1040384  }
   0xd   : > { %888 = vmatpush3.msra.mxu0 %v211_v0  ;;  %956 = vmatpush3.msra.mxu1 %v211_v0  ;;  %s1026_s28 = scalar_lea.vmem %s1194_s0, %s805_s25  ;;  %v1103_v45 = vld [vmem:[%s1196_s2] ss:$0 sm:$0xff]  ;;  %s1201_s13 = smov (!%p167_p4, %s1003_s13), 1  ;;  %vm734_vm5 = vcmask 1041408   ;;  %vm736_vm6 = vcmask 1042432   ;;  %vm738_vm7 = vcmask 1043456  }
   0xe   : > { %889 = vmatprep.subr.mxu0 %v210_v1  ;;  %952 = vmatprep.subr.mxu1 %v210_v1  ;;  %v171_v5 = vld [vmem:[%s1026_s28] sm:$0xff]  ;;  %v189_v6 = vld [vmem:[%s1026_s28 + $0x90] sm:$0xff]  ;;  %v172_v7 = vld [vmem:[%s1026_s28 + $0x8] sm:$0xff]  ;;  %s806_s4 = sshll.u32 %s1201_s13, 3  ;;  %vm740_vm8 = vcmask 1044480   ;;  %vm742_vm9 = vcmask 1045504  }
   0xf   : > { %890 = vmatpush3.msra.mxu0 %v210_v1  ;;  %957 = vmatpush3.msra.mxu1 %v210_v1  ;;  %v190_v8 = vld [vmem:[%s1026_s28 + $0x98] sm:$0xff]  ;;  %v173_v9 = vld [vmem:[%s1026_s28 + $0x10] sm:$0xff]  ;;  %v191_v10 = vld [vmem:[%s1026_s28 + $0xa0] sm:$0xff]  ;;  %vm744_vm10 = vcmask 1046528   ;;  %s170_s7 = scalar_lea.vmem %s1197_s3, %s806_s4 }
  0x10   : > { %891 = vmatprep.subr.mxu0 %v209_v2  ;;  %953 = vmatprep.subr.mxu1 %v209_v2  ;;  %v174_v11 = vld [vmem:[%s1026_s28 + $0x18] sm:$0xff]  ;;  %v192_v12 = vld [vmem:[%s1026_s28 + $0xa8] sm:$0xff]  ;;  %v175_v13 = vld [vmem:[%s1026_s28 + $0x20] sm:$0xff] }
  0x11   : > { %892 = vmatpush3.msra.mxu0 %v209_v2  ;;  %958 = vmatpush3.msra.mxu1 %v209_v2  ;;  %v193_v14 = vld [vmem:[%s1026_s28 + $0xb0] sm:$0xff]  ;;  %v176_v15 = vld [vmem:[%s1026_s28 + $0x28] sm:$0xff]  ;;  %v194_v16 = vld [vmem:[%s1026_s28 + $0xb8] sm:$0xff] }
  0x12   : > { %893 = vmatprep.subr.mxu0 %v208_v3  ;;  %954 = vmatprep.subr.mxu1 %v208_v3  ;;  %v177_v17 = vld [vmem:[%s1026_s28 + $0x30] sm:$0xff]  ;;  %v195_v18 = vld [vmem:[%s1026_s28 + $0xc0] sm:$0xff]  ;;  %v178_v19 = vld [vmem:[%s1026_s28 + $0x38] sm:$0xff] }
  0x13   : > { %894 = vmatpush3.msra.mxu0 %v208_v3  ;;  %959 = vmatpush3.msra.mxu1 %v208_v3  ;;  %v196_v20 = vld [vmem:[%s1026_s28 + $0xc8] sm:$0xff]  ;;  %v179_v21 = vld [vmem:[%s1026_s28 + $0x40] sm:$0xff]  ;;  %v197_v22 = vld [vmem:[%s1026_s28 + $0xd0] sm:$0xff] }
  0x14   : > { %895 = vmatprep.subr.mxu0 %v207_v4  ;;  %955 = vmatprep.subr.mxu1 %v207_v4  ;;  %v180_v23 = vld [vmem:[%s1026_s28 + $0x48] sm:$0xff]  ;;  %v198_v24 = vld [vmem:[%s1026_s28 + $0xd8] sm:$0xff]  ;;  %v181_v25 = vld [vmem:[%s1026_s28 + $0x50] sm:$0xff] }
  0x15   : > { %896 = vmatpush3.msra.mxu0 %v207_v4  ;;  %960 = vmatpush3.msra.mxu1 %v207_v4  ;;  %v199_v26 = vld [vmem:[%s1026_s28 + $0xe0] sm:$0xff]  ;;  %v182_v27 = vld [vmem:[%s1026_s28 + $0x58] sm:$0xff]  ;;  %v200_v28 = vld [vmem:[%s1026_s28 + $0xe8] sm:$0xff] }
  0x16   : > { %897 = vmatprep.mubr.msk.f32.mxu0 %vm219_vm0, %v171_v5  ;;  %924 = vmatprep.mubr.msk.f32.mxu1 %vm219_vm0, %v189_v6  ;;  %v183_v29 = vld [vmem:[%s1026_s28 + $0x60] sm:$0xff]  ;;  %v201_v30 = vld [vmem:[%s1026_s28 + $0xf0] sm:$0xff]  ;;  %v184_v31 = vld [vmem:[%s1026_s28 + $0x68] sm:$0xff] }
  0x17   : > { %898 = vmatmul.mubr.msk.f32.vlgmr.msra.gmra.mxu0 %vm219_vm0, %v172_v7  ;;  %925 = vmatmul.mubr.msk.f32.vlgmr.msra.gmra.mxu1 %vm219_vm0, %v190_v8  ;;  %v202_v32 = vld [vmem:[%s1026_s28 + $0xf8] sm:$0xff]  ;;  %v185_v33 = vld [vmem:[%s1026_s28 + $0x70] sm:$0xff]  ;;  %v203_v34 = vld [vmem:[%s1026_s28 + $0x100] sm:$0xff] }
  0x18   : > { %900 = vmatprep.mubr.msk.f32.mxu0 %vm219_vm0, %v173_v9  ;;  %927 = vmatprep.mubr.msk.f32.mxu1 %vm219_vm0, %v191_v10  ;;  %v186_v35 = vld [vmem:[%s1026_s28 + $0x78] sm:$0xff]  ;;  %v204_v36 = vld [vmem:[%s1026_s28 + $0x108] sm:$0xff]  ;;  %v187_v37 = vld [vmem:[%s1026_s28 + $0x80] sm:$0xff] }
  0x19   : > { %v205_v38 = vld [vmem:[%s1026_s28 + $0x110] sm:$0xff]  ;;  %v188_v39 = vld [vmem:[%s1026_s28 + $0x88] sm:$0xff]  ;;  %v206_v40 = vld [vmem:[%s1026_s28 + $0x118] sm:$0xff] }
  0x1b   : > { %901 = vmatmul.mubr.msk.f32.gmra.mxu0 %vm219_vm0, %v174_v11  ;;  %928 = vmatmul.mubr.msk.f32.gmra.mxu1 %vm219_vm0, %v192_v12 }
  0x1c   : > { %903 = vmatprep.mubr.msk.f32.mxu0 %vm219_vm0, %v175_v13  ;;  %930 = vmatprep.mubr.msk.f32.mxu1 %vm219_vm0, %v193_v14 }
  0x1f   : > { %904 = vmatmul.mubr.msk.f32.gmra.mxu0 %vm219_vm0, %v176_v15  ;;  %931 = vmatmul.mubr.msk.f32.gmra.mxu1 %vm219_vm0, %v194_v16 }
  0x20   : > { %906 = vmatprep.mubr.msk.f32.mxu0 %vm219_vm0, %v177_v17  ;;  %933 = vmatprep.mubr.msk.f32.mxu1 %vm219_vm0, %v195_v18 }
  0x23   : > { %907 = vmatmul.mubr.msk.f32.gmra.mxu0 %vm219_vm0, %v178_v19  ;;  %934 = vmatmul.mubr.msk.f32.gmra.mxu1 %vm219_vm0, %v196_v20 }
  0x24   : > { %909 = vmatprep.mubr.msk.f32.mxu0 %vm219_vm0, %v179_v21  ;;  %936 = vmatprep.mubr.msk.f32.mxu1 %vm219_vm0, %v197_v22 }
  0x27   : > { %910 = vmatmul.mubr.msk.f32.gmra.mxu0 %vm219_vm0, %v180_v23  ;;  %937 = vmatmul.mubr.msk.f32.gmra.mxu1 %vm219_vm0, %v198_v24 }
  0x28   : > { %912 = vmatprep.mubr.msk.f32.mxu0 %vm219_vm0, %v181_v25  ;;  %939 = vmatprep.mubr.msk.f32.mxu1 %vm219_vm0, %v199_v26 }
  0x2b   : > { %913 = vmatmul.mubr.msk.f32.gmra.mxu0 %vm219_vm0, %v182_v27  ;;  %940 = vmatmul.mubr.msk.f32.gmra.mxu1 %vm219_vm0, %v200_v28 }
  0x2c   : > { %915 = vmatprep.mubr.msk.f32.mxu0 %vm219_vm0, %v183_v29  ;;  %942 = vmatprep.mubr.msk.f32.mxu1 %vm219_vm0, %v201_v30 }
  0x2f   : > { %916 = vmatmul.mubr.msk.f32.gmra.mxu0 %vm219_vm0, %v184_v31  ;;  %943 = vmatmul.mubr.msk.f32.gmra.mxu1 %vm219_vm0, %v202_v32 }
  0x30   : > { %918 = vmatprep.mubr.msk.f32.mxu0 %vm219_vm0, %v185_v33  ;;  %945 = vmatprep.mubr.msk.f32.mxu1 %vm219_vm0, %v203_v34 }
  0x33   : > { %919 = vmatmul.mubr.msk.f32.gmra.mxu0 %vm219_vm0, %v186_v35  ;;  %946 = vmatmul.mubr.msk.f32.gmra.mxu1 %vm219_vm0, %v204_v36 }
  0x34   : > { %921 = vmatprep.mubr.msk.f32.mxu0 %vm219_vm0, %v187_v37  ;;  %948 = vmatprep.mubr.msk.f32.mxu1 %vm219_vm0, %v205_v38 }
  0x37   : > { %922 = vmatmul.mubr.msk.f32.gmra.mxu0 %vm219_vm0, %v188_v39  ;;  %949 = vmatmul.mubr.msk.f32.gmra.mxu1 %vm219_vm0, %v206_v40 }
  0xd7   : > { %v899_v41 = vpop.f32.mrf.mxu0  ;;  %v926_v42 = vpop.f32.mrf.mxu1 }
  0xd8   : > { %v400_v50 = vadd.f32 %v899_v41, %v1103_v45  ;;  %v490_v56 = vadd.f32 %v926_v42, %v1103_v45 }
  0xd9   : > { %v394_v43 = vpop.f32.mrf.mxu0  ;;  %v484_v44 = vpop.f32.mrf.mxu1 }
  0xda   : > { %v395_v51 = vadd.f32 %v1103_v45, %v394_v43  ;;  %v485_v52 = vadd.f32 %v1103_v45, %v484_v44  ;;  %v574_v61 = vmax.f32 %v400_v50, 0.0  ;;  %v592_v6 = vmax.f32 %v490_v56, 0.0 }
  0xdb   : > { %v902_v46 = vpop.f32.mrf.mxu0  ;;  %v929_v47 = vpop.f32.mrf.mxu1 }
  0xdc   : > { %v500_v57 = vadd.f32 %v929_v47, %v1103_v45  ;;  %v573_v62 = vmax.f32 %v395_v51, 0.0  ;;  %v410_v63 = vadd.f32 %v902_v46, %v1103_v45  ;;  %v591_v0 = vmax.f32 %v485_v52, 0.0 }
  0xdd   : > { %v404_v48 = vpop.f32.mrf.mxu0  ;;  %v494_v49 = vpop.f32.mrf.mxu1  ;;  %v611_v13 = vsel %vm609_vm1, %v574_v61, -inf  ;;  %v673_v37 = vsel %vm609_vm1, %v592_v6, -inf }
  0xde   : > { %v405_v53 = vadd.f32 %v1103_v45, %v404_v48  ;;  %v495_v58 = vadd.f32 %v1103_v45, %v494_v49  ;;  %v594_v7 = vmax.f32 %v500_v57, 0.0  ;;  %v610_v14 = vsel %vm609_vm1, %v573_v62, -inf }
  0xdf   : > { %v905_v54 = vpop.f32.mrf.mxu0  ;;  %v932_v55 = vpop.f32.mrf.mxu1  ;;  %v576_v15 = vmax.f32 %v410_v63, 0.0  ;;  %v672_v17 = vsel %vm609_vm1, %v591_v0, -inf }
  0xe0   : > { %v575_v1 = vmax.f32 %v405_v53, 0.0  ;;  %v593_v8 = vmax.f32 %v495_v58, 0.0  ;;  %v420_v16 = vadd.f32 %v905_v54, %v1103_v45  ;;  %v510_v19 = vadd.f32 %v932_v55, %v1103_v45 }
  0xe1   : > { %v414_v59 = vpop.f32.mrf.mxu0  ;;  %v504_v60 = vpop.f32.mrf.mxu1  ;;  %v675_v27 = vsel %vm609_vm1, %v594_v7, -inf  ;;  %v613_v33 = vsel %vm609_vm1, %v576_v15, -inf }
  0xe2   : > { %v415_v2 = vadd.f32 %v1103_v45, %v414_v59  ;;  %v505_v3 = vadd.f32 %v1103_v45, %v504_v60  ;;  %v612_v18 = vsel %vm609_vm1, %v575_v1, -inf  ;;  %v674_v28 = vsel %vm609_vm1, %v593_v8, -inf }
  0xe3   : > { %v908_v4 = vpop.f32.mrf.mxu0  ;;  %v935_v5 = vpop.f32.mrf.mxu1  ;;  %v578_v34 = vmax.f32 %v420_v16, 0.0  ;;  %v618_v38 = vmax.f32 %v612_v18, %v613_v33  ;;  %v596_v39 = vmax.f32 %v510_v19, 0.0  ;;  %v679_v43 = vmax.f32 %v674_v28, %v675_v27 }
  0xe4   : > { %v577_v9 = vmax.f32 %v415_v2, 0.0  ;;  %v595_v10 = vmax.f32 %v505_v3, 0.0  ;;  %v430_v25 = vadd.f32 %v908_v4, %v1103_v45  ;;  %v520_v29 = vadd.f32 %v935_v5, %v1103_v45 }
  0xe5   : > { %v424_v11 = vpop.f32.mrf.mxu0  ;;  %v514_v12 = vpop.f32.mrf.mxu1  ;;  %v628_v54 = vsel %vm609_vm1, %v578_v34, -inf  ;;  %v688_v4 = vsel %vm609_vm1, %v596_v39, -inf }
  0xe6   : > { %v615_v20 = vsel %vm614_vm2, %v577_v9, -inf  ;;  %v676_v24 = vsel %vm614_vm2, %v595_v10, -inf  ;;  %v425_v26 = vadd.f32 %v1103_v45, %v424_v11  ;;  %v515_v30 = vadd.f32 %v1103_v45, %v514_v12 }
  0xe7   : > { %v911_v21 = vpop.f32.mrf.mxu0  ;;  %v938_v22 = vpop.f32.mrf.mxu1  ;;  %v616_v23 = vmax.f32 %v610_v14, %v615_v20  ;;  %v677_v40 = vmax.f32 %v672_v17, %v676_v24  ;;  %v580_v46 = vmax.f32 %v430_v25, 0.0  ;;  %v598_v48 = vmax.f32 %v520_v29, 0.0 }
  0xe8   : > { %v579_v47 = vmax.f32 %v425_v26, 0.0  ;;  %v597_v49 = vmax.f32 %v515_v30, 0.0  ;;  %v627_v55 = vsel %vm626_vm3, %v577_v9, -inf  ;;  %v687_v56 = vsel %vm626_vm3, %v595_v10, -inf }
  0xe9   : > { %v434_v31 = vpop.f32.mrf.mxu0  ;;  %v524_v32 = vpop.f32.mrf.mxu1  ;;  %v617_v44 = vmax.f32 %v616_v23, %v611_v13  ;;  %v440_v57 = vadd.f32 %v911_v21, %v1103_v45  ;;  %v678_v58 = vmax.f32 %v677_v40, %v673_v37  ;;  %v530_v59 = vadd.f32 %v938_v22, %v1103_v45 }
  0xea   : > { %v435_v35 = vadd.f32 %v1103_v45, %v434_v31  ;;  %v525_v36 = vadd.f32 %v1103_v45, %v524_v32  ;;  %v629_v1 = vsel %vm609_vm1, %v579_v47, -inf  ;;  %v630_v5 = vsel %vm609_vm1, %v580_v46, -inf }
  0xeb   : > { %v914_v41 = vpop.f32.mrf.mxu0  ;;  %v941_v42 = vpop.f32.mrf.mxu1  ;;  %v619_v0 = vmax.f32 %v617_v44, %v618_v38  ;;  %v690_v6 = vsel %vm609_vm1, %v598_v48, -inf  ;;  %v689_v7 = vsel %vm609_vm1, %v597_v49, -inf  ;;  %v680_v14 = vmax.f32 %v678_v58, %v679_v43 }
  0xec   : > { %v581_v50 = vmax.f32 %v435_v35, 0.0  ;;  %v599_v51 = vmax.f32 %v525_v36, 0.0  ;;  %v450_v10 = vadd.f32 %v914_v41, %v1103_v45  ;;  %v540_v11 = vadd.f32 %v941_v42, %v1103_v45 }
  0xed   : > { %v444_v52 = vpop.f32.mrf.mxu0  ;;  %v534_v53 = vpop.f32.mrf.mxu1  ;;  %v634_v15 = vmax.f32 %v629_v1, %v630_v5  ;;  %v582_v16 = vmax.f32 %v440_v57, 0.0  ;;  %v600_v17 = vmax.f32 %v530_v59, 0.0  ;;  %v620_v19 = vrot.slane %v619_v0, 4 }
  0xee   : > { %v631_v60 = vsel %vm609_vm1, %v581_v50, -inf  ;;  %v691_v61 = vsel %vm609_vm1, %v599_v51, -inf  ;;  %v445_v12 = vadd.f32 %v1103_v45, %v444_v52  ;;  %v535_v13 = vadd.f32 %v1103_v45, %v534_v53 }
  0xef   : > { %v917_v62 = vpop.f32.mrf.mxu0  ;;  %v944_v63 = vpop.f32.mrf.mxu1  ;;  %v632_v2 = vmax.f32 %v627_v55, %v631_v60  ;;  %v692_v3 = vmax.f32 %v687_v56, %v691_v61  ;;  %v694_v20 = vmax.f32 %v689_v7, %v690_v6  ;;  %v584_v28 = vmax.f32 %v450_v10, 0.0 }
  0xf0   : > { %v460_v23 = vadd.f32 %v917_v62, %v1103_v45  ;;  %v550_v24 = vadd.f32 %v944_v63, %v1103_v45  ;;  %v602_v29 = vmax.f32 %v540_v11, 0.0  ;;  %v583_v30 = vmax.f32 %v445_v12, 0.0 }
  0xf1   : > { %v454_v8 = vpop.f32.mrf.mxu0  ;;  %v544_v9 = vpop.f32.mrf.mxu1  ;;  %v633_v21 = vmax.f32 %v632_v2, %v628_v54  ;;  %v693_v22 = vmax.f32 %v692_v3, %v688_v4  ;;  %v601_v31 = vmax.f32 %v535_v13, 0.0  ;;  %v642_v37 = vsel %vm609_vm1, %v582_v16, -inf }
  0xf2   : > { %v455_v25 = vadd.f32 %v1103_v45, %v454_v8  ;;  %v545_v26 = vadd.f32 %v1103_v45, %v544_v9  ;;  %v586_v32 = vmax.f32 %v460_v23, 0.0  ;;  %v604_v33 = vmax.f32 %v550_v24, 0.0 }
  0xf3   : > { %v920_v18 = vpop.f32.mrf.mxu0  ;;  %v947_v27 = vpop.f32.mrf.mxu1  ;;  %v702_v38 = vsel %vm609_vm1, %v600_v17, -inf  ;;  %v635_v39 = vmax.f32 %v633_v21, %v634_v15  ;;  %v695_v40 = vmax.f32 %v693_v22, %v694_v20  ;;  %v1155_v41 = vmax.f32 %v619_v0, %v620_v19 }
  0xf4   : > { %v585_v34 = vmax.f32 %v455_v25, 0.0  ;;  %v603_v35 = vmax.f32 %v545_v26, 0.0  ;;  %v681_v42 = vrot.slane %v680_v14, 4  ;;  %v646_v43 = vsel %vm614_vm2, %v586_v32, -inf }
  0xf5   : > { %v464_v36 = vpop.f32.mrf.mxu0  ;;  %v706_v44 = vsel %vm614_vm2, %v604_v33, -inf  ;;  %v554_v46 = vpop.f32.mrf.mxu1  ;;  %v644_v47 = vsel %vm609_vm1, %v584_v28, -inf  ;;  %v704_v48 = vsel %vm609_vm1, %v602_v29, -inf  ;;  %v647_v49 = vmax.f32 %v642_v37, %v646_v43 }
  0xf6   : > { %v707_v50 = vmax.f32 %v702_v38, %v706_v44  ;;  %v643_v51 = vsel %vm609_vm1, %v583_v30, -inf  ;;  %v703_v52 = vsel %vm609_vm1, %v601_v31, -inf  ;;  %v645_v53 = vsel %vm609_vm1, %v585_v34, -inf }
  0xf7   : > { %v705_v54 = vsel %vm609_vm1, %v603_v35, -inf  ;;  %v923_v55 = vpop.f32.mrf.mxu0  ;;  %v636_v56 = vrot.slane %v635_v39, 4  ;;  %v696_v57 = vrot.slane %v695_v40, 4  ;;  %v648_v58 = vmax.f32 %v647_v49, %v643_v51  ;;  %v950_v63 = vpop.f32.mrf.mxu1 }
  0xf8   : > { %v470_v59 = vadd.f32 %v920_v18, %v1103_v45  ;;  %v708_v60 = vmax.f32 %v707_v50, %v703_v52  ;;  %v649_v61 = vmax.f32 %v644_v47, %v645_v53  ;;  %v709_v62 = vmax.f32 %v704_v48, %v705_v54 }
  0xf9   : > { %v465_v0 = vadd.f32 %v1103_v45, %v464_v36  ;;  %v622_v1 = vrot.slane %v1155_v41, 2  ;;  %v682_v2 = vmax.f32 %v680_v14, %v681_v42  ;;  %v555_v4 = vadd.f32 %v1103_v45, %v554_v46  ;;  %v474_v5 = vpop.f32.mrf.mxu0  ;;  %v564_v15 = vpop.f32.mrf.mxu1 }
  0xfa   : > { %v650_v3 = vmax.f32 %v648_v58, %v649_v61  ;;  %v637_v6 = vmax.f32 %v635_v39, %v636_v56  ;;  %v697_v7 = vmax.f32 %v695_v40, %v696_v57  ;;  %v588_v8 = vmax.f32 %v470_v59, 0.0 }
  0xfb   : > { %v560_v9 = vadd.f32 %v947_v27, %v1103_v45  ;;  %v710_v11 = vmax.f32 %v708_v60, %v709_v62  ;;  %v480_v12 = vadd.f32 %v923_v55, %v1103_v45  ;;  %v570_v13 = vadd.f32 %v950_v63, %v1103_v45 }
  0xfc   : > { %v651_v10 = vrot.slane %v650_v3, 4  ;;  %v657_v16 = vsel %vm626_vm3, %v586_v32, -inf  ;;  %v717_v14 = vsel %vm626_vm3, %v604_v33, -inf  ;;  %v587_v17 = vmax.f32 %v465_v0, 0.0 }
  0xfd   : > { %v475_v18 = vadd.f32 %v1103_v45, %v474_v5  ;;  %v605_v20 = vmax.f32 %v555_v4, 0.0  ;;  %v590_v21 = vmax.f32 %v480_v12, 0.0  ;;  %v608_v22 = vmax.f32 %v570_v13, 0.0 }
  0xfe   : > { %v652_v19 = vmax.f32 %v650_v3, %v651_v10  ;;  %v638_v23 = vrot.slane %v637_v6, 2  ;;  %v606_v24 = vmax.f32 %v560_v9, 0.0  ;;  %v565_v26 = vadd.f32 %v1103_v45, %v564_v15 }
  0xff   : > { %v589_v25 = vmax.f32 %v475_v18, 0.0  ;;  %v711_v27 = vrot.slane %v710_v11, 4  ;;  %v659_v28 = vsel %vm609_vm1, %v588_v8, -inf  ;;  %v661_v29 = vsel %vm609_vm1, %v590_v21, -inf }
 0x100   : > { %v721_v30 = vsel %vm609_vm1, %v608_v22, -inf  ;;  %v662_v31 = vmax.f32 %v657_v16, %v661_v29  ;;  %v607_v34 = vmax.f32 %v565_v26, 0.0  ;;  %v653_v35 = vrot.slane %v652_v19, 2 }
 0x101   : > { %v722_v32 = vmax.f32 %v717_v14, %v721_v30  ;;  %v660_v33 = vsel %vm609_vm1, %v589_v25, -inf  ;;  %v658_v36 = vsel %vm609_vm1, %v587_v17, -inf  ;;  %v718_v37 = vsel %vm609_vm1, %v605_v20, -inf }
 0x102   : > { %v664_v38 = vmax.f32 %v659_v28, %v660_v33  ;;  %v719_v45 = vsel %vm609_vm1, %v606_v24, -inf  ;;  %v663_v39 = vmax.f32 %v662_v31, %v658_v36  ;;  %v720_v42 = vsel %vm609_vm1, %v607_v34, -inf }
 0x103   : > { %v723_v40 = vmax.f32 %v722_v32, %v718_v37  ;;  %v712_v43 = vmax.f32 %v710_v11, %v711_v27  ;;  %v724_v44 = vmax.f32 %v719_v45, %v720_v42  ;;  %v639_v46 = vmax.f32 %v637_v6, %v638_v23 }
 0x104   : > { %v665_v47 = vmax.f32 %v663_v39, %v664_v38  ;;  %v683_v48 = vrot.slane %v682_v2, 2  ;;  %v654_v49 = vmax.f32 %v652_v19, %v653_v35  ;;  %v623_v51 = vmax.f32 %v1155_v41, %v622_v1 }
 0x105   : > { %v725_v50 = vmax.f32 %v723_v40, %v724_v44  ;;  %v698_v52 = vrot.slane %v697_v7, 2  ;;  %v713_v54 = vrot.slane %v712_v43, 2  ;;  %v640_v56 = vrot.slane %v639_v46, 1 }
 0x106   : > { %v666_v53 = vrot.slane %v665_v47, 4  ;;  %v684_v58 = vmax.f32 %v682_v2, %v683_v48  ;;  %v655_v59 = vrot.slane %v654_v49, 1  ;;  %v624_v61 = vrot.slane %v623_v51, 1 }
 0x107   : > { %v726_v55 = vrot.slane %v725_v50, 4  ;;  %v699_v62 = vmax.f32 %v697_v7, %v698_v52  ;;  %v714_v0 = vmax.f32 %v712_v43, %v713_v54  ;;  %v641_v4 = vmax.f32 %v639_v46, %v640_v56 }
 0x108   : > { %v667_v57 = vmax.f32 %v665_v47, %v666_v53  ;;  %v685_v6 = vrot.slane %v684_v58, 1  ;;  %v656_v41 = vmax.f32 %v654_v49, %v655_v59  ;;  %v625_v8 = vmax.f32 %v623_v51, %v624_v61 }
 0x109   : > { %v727_v60 = vmax.f32 %v725_v50, %v726_v55  ;;  %v700_v9 = vrot.slane %v699_v62, 1  ;;  %v715_v2 = vrot.slane %v714_v0, 1 }
 0x10a   : > { %v668_v63 = vrot.slane %v667_v57, 2  ;;  %v733_v11 = vsel %vm732_vm4, %v625_v8, %v641_v4  ;;  %v686_v13 = vmax.f32 %v684_v58, %v685_v6 }
 0x10b   : > { %v728_v3 = vrot.slane %v727_v60, 2  ;;  %v735_v15 = vsel %vm734_vm5, %v733_v11, %v656_v41  ;;  %v701_v16 = vmax.f32 %v699_v62, %v700_v9  ;;  %v716_v17 = vmax.f32 %v714_v0, %v715_v2 }
 0x10c   : > { %v669_v5 = vmax.f32 %v667_v57, %v668_v63 }
 0x10d   : > { %v729_v1 = vmax.f32 %v727_v60, %v728_v3 }
 0x10e   : > { %v670_v10 = vrot.slane %v669_v5, 1 }
 0x10f   : > { %v730_v7 = vrot.slane %v729_v1, 1 }
 0x110   : > { %v671_v12 = vmax.f32 %v669_v5, %v670_v10 }
 0x111   : > { %v731_v19 = vmax.f32 %v729_v1, %v730_v7 }
 0x112   : > { %v737_v14 = vsel %vm736_vm6, %v735_v15, %v671_v12 }
 0x113   : > { %v739_v18 = vsel %vm738_vm7, %v737_v14, %v686_v13 }
 0x114   : > { %v741_v20 = vsel %vm740_vm8, %v739_v18, %v701_v16 }
 0x115   : > { %v743_v21 = vsel %vm742_vm9, %v741_v20, %v716_v17 }
 0x116   : > { %v745_v22 = vsel %vm744_vm10, %v743_v21, %v731_v19 }
 0x117   : > { %746 = vst.msk [vmem:[%s170_s7] sm:$0xff] %vm609_vm1, %v745_v22 }
 0x118 PF: > { %s13_s12 = sadd.s32 1, %s975_s12  }
 0x119   : > { %p10_p5 = scmp.ge.s32.totalorder %s13_s12, 4  }
 0x11b   :  { %12 = sbr.rel (!%p10_p5) target bundleno = 1 (0x1), region = 62 }

// kernel: bidaf_forward.17
= control target key start
LH: loop header
LB: loop body
LE: loop exit
PB: predicated region body
PF: predicated region fallthrough
CT: control target
= control target key end

     0   :  { %vm92_vm0 = vcmask 588800   ;;  %s1353_s1 = inlined_call_operand.vmem [shape: f32[200,200], index: 1, kind: input, shape index: {}]   ;;  %s1354_s0 = inlined_call_operand.vmem [shape: f32[16,200], index: 0, kind: input, shape index: {}]   ;;  %s1355_s3 = inlined_call_operand.vmem [shape: f32[200,200], index: 3, kind: input, shape index: {}]   ;;  %s1356_s5 = inlined_call_operand.vmem [shape: f32[200,200], index: 5, kind: input, shape index: {}]   ;;  %s1357_s2 = inlined_call_operand.vmem [shape: f32[1,200], index: 2, kind: input, shape index: {}]   ;;  %s1358_s6 = inlined_call_operand.vmem [shape: f32[1,200], index: 6, kind: input, shape index: {}]   ;;  %s1359_s4 = inlined_call_operand.vmem [shape: f32[1,200], index: 4, kind: input, shape index: {}]   ;;  %s1360_s7 = inlined_call_operand.vmem [shape: f32[16,200], index: 7, kind: output, shape index: {}]  }
   0x1   :  { %v61_v0 = vld [vmem:[%s1353_s1 + $0xf8] sm:$0xff]  ;;  %v60_v1 = vld [vmem:[%s1353_s1 + $0xf0] sm:$0xff]  ;;  %v59_v2 = vld [vmem:[%s1353_s1 + $0xe8] sm:$0xff] }
   0x2   :  { %99 = vmatprep.subr.mxu0 %v61_v0  ;;  %v58_v3 = vld [vmem:[%s1353_s1 + $0xe0] sm:$0xff]  ;;  %v57_v4 = vld [vmem:[%s1353_s1 + $0xd8] sm:$0xff]  ;;  %v56_v5 = vld [vmem:[%s1353_s1 + $0xd0] sm:$0xff] }
   0x3   :  { %100 = vmatpush1.msra.mxu0 %v60_v1  ;;  %v55_v6 = vld [vmem:[%s1353_s1 + $0xc8] sm:$0xff]  ;;  %v54_v7 = vld [vmem:[%s1353_s1 + $0xc0] sm:$0xff]  ;;  %v53_v8 = vld [vmem:[%s1353_s1 + $0xb8] sm:$0xff] }
   0x4   :  { %101 = vmatprep.subr.mxu0 %v59_v2  ;;  %v52_v9 = vld [vmem:[%s1353_s1 + $0xb0] sm:$0xff]  ;;  %v51_v10 = vld [vmem:[%s1353_s1 + $0xa8] sm:$0xff]  ;;  %v50_v11 = vld [vmem:[%s1353_s1 + $0xa0] sm:$0xff] }
   0x5   :  { %102 = vmatpush1.msra.mxu0 %v58_v3  ;;  %v49_v12 = vld [vmem:[%s1353_s1 + $0x98] sm:$0xff]  ;;  %v48_v13 = vld [vmem:[%s1353_s1 + $0x90] sm:$0xff]  ;;  %v47_v14 = vld [vmem:[%s1353_s1 + $0x88] sm:$0xff] }
   0x6   :  { %103 = vmatprep.subr.mxu0 %v57_v4  ;;  %v46_v15 = vld [vmem:[%s1353_s1 + $0x80] sm:$0xff]  ;;  %v45_v16 = vld [vmem:[%s1353_s1 + $0x78] sm:$0xff]  ;;  %v44_v17 = vld [vmem:[%s1353_s1 + $0x70] sm:$0xff] }
   0x7   :  { %104 = vmatpush1.msra.mxu0 %v56_v5  ;;  %v43_v18 = vld [vmem:[%s1353_s1 + $0x68] sm:$0xff]  ;;  %v42_v20 = vld [vmem:[%s1353_s1 + $0x60] sm:$0xff]  ;;  %v41_v21 = vld [vmem:[%s1353_s1 + $0x58] sm:$0xff] }
   0x8   :  { %105 = vmatprep.subr.mxu0 %v55_v6  ;;  %v692_v19 = vld [vmem:[%s1354_s0 + $0x8] sm:$0xff]  ;;  %v40_v22 = vld [vmem:[%s1353_s1 + $0x50] sm:$0xff]  ;;  %v38_v24 = vld [vmem:[%s1353_s1 + $0x40] sm:$0xff] }
   0x9   :  { %106 = vmatpush1.msra.mxu0 %v54_v7  ;;  %1368 = vst [vmem:[#allocation2_spill] sm:$0xff] %v692_v19  ;;  %516 = vmatprep.mubr.msk.f32.mxu0 %vm92_vm0, %v692_v19  ;;  %v39_v23 = vld [vmem:[%s1353_s1 + $0x48] sm:$0xff]  ;;  %v37_v25 = vld [vmem:[%s1353_s1 + $0x38] sm:$0xff]  ;;  %v36_v26 = vld [vmem:[%s1353_s1 + $0x30] sm:$0xff] }
   0xa   :  { %107 = vmatprep.subr.mxu0 %v53_v8  ;;  %v35_v27 = vld [vmem:[%s1353_s1 + $0x28] sm:$0xff]  ;;  %v34_v28 = vld [vmem:[%s1353_s1 + $0x20] sm:$0xff]  ;;  %v33_v29 = vld [vmem:[%s1353_s1 + $0x18] sm:$0xff] }
   0xb   :  { %108 = vmatpush1.msra.mxu0 %v52_v9  ;;  %v32_v30 = vld [vmem:[%s1353_s1 + $0x10] sm:$0xff]  ;;  %v31_v31 = vld [vmem:[%s1353_s1 + $0x8] sm:$0xff]  ;;  %v211_v32 = vld [vmem:[%s1355_s3 + $0xf8] sm:$0xff] }
   0xc   :  { %109 = vmatprep.subr.mxu0 %v51_v10  ;;  %v30_v33 = vld [vmem:[%s1353_s1] sm:$0xff]  ;;  %248 = vmatprep.subr.mxu1 %v211_v32  ;;  %v210_v34 = vld [vmem:[%s1355_s3 + $0xf0] sm:$0xff]  ;;  %v209_v35 = vld [vmem:[%s1355_s3 + $0xe8] sm:$0xff] }
   0xd   :  { %110 = vmatpush1.msra.mxu0 %v50_v11  ;;  %v79_v36 = vld [vmem:[%s1353_s1 + $0x188] sm:$0xff]  ;;  %249 = vmatpush1.msra.mxu1 %v210_v34  ;;  %v208_v37 = vld [vmem:[%s1355_s3 + $0xe0] sm:$0xff]  ;;  %v207_v39 = vld [vmem:[%s1355_s3 + $0xd8] sm:$0xff] }
   0xe   :  { %111 = vmatprep.subr.mxu0 %v49_v12  ;;  %v78_v38 = vld [vmem:[%s1353_s1 + $0x180] sm:$0xff]  ;;  %250 = vmatprep.subr.mxu1 %v209_v35  ;;  %v206_v40 = vld [vmem:[%s1355_s3 + $0xd0] sm:$0xff]  ;;  %v77_v41 = vld [vmem:[%s1353_s1 + $0x178] sm:$0xff] }
   0xf   :  { %112 = vmatpush1.msra.mxu0 %v48_v13  ;;  %251 = vmatpush1.msra.mxu1 %v208_v37  ;;  %v205_v42 = vld [vmem:[%s1355_s3 + $0xc8] sm:$0xff]  ;;  %v76_v43 = vld [vmem:[%s1353_s1 + $0x170] sm:$0xff]  ;;  %v204_v44 = vld [vmem:[%s1355_s3 + $0xc0] sm:$0xff] }
  0x10   :  { %113 = vmatprep.subr.mxu0 %v47_v14  ;;  %252 = vmatprep.subr.mxu1 %v207_v39  ;;  %v75_v45 = vld [vmem:[%s1353_s1 + $0x168] sm:$0xff]  ;;  %v203_v46 = vld [vmem:[%s1355_s3 + $0xb8] sm:$0xff]  ;;  %v74_v47 = vld [vmem:[%s1353_s1 + $0x160] sm:$0xff] }
  0x11   :  { %114 = vmatpush1.msra.mxu0 %v46_v15  ;;  %253 = vmatpush1.msra.mxu1 %v206_v40  ;;  %v202_v48 = vld [vmem:[%s1355_s3 + $0xb0] sm:$0xff]  ;;  %v73_v49 = vld [vmem:[%s1353_s1 + $0x158] sm:$0xff]  ;;  %v201_v50 = vld [vmem:[%s1355_s3 + $0xa8] sm:$0xff] }
  0x12   :  { %115 = vmatprep.subr.mxu0 %v45_v16  ;;  %254 = vmatprep.subr.mxu1 %v205_v42  ;;  %v72_v51 = vld [vmem:[%s1353_s1 + $0x150] sm:$0xff]  ;;  %v200_v52 = vld [vmem:[%s1355_s3 + $0xa0] sm:$0xff]  ;;  %v71_v53 = vld [vmem:[%s1353_s1 + $0x148] sm:$0xff] }
  0x13   :  { %116 = vmatpush1.msra.mxu0 %v44_v17  ;;  %255 = vmatpush1.msra.mxu1 %v204_v44  ;;  %v199_v54 = vld [vmem:[%s1355_s3 + $0x98] sm:$0xff]  ;;  %v70_v55 = vld [vmem:[%s1353_s1 + $0x140] sm:$0xff]  ;;  %v198_v56 = vld [vmem:[%s1355_s3 + $0x90] sm:$0xff] }
  0x14   :  { %117 = vmatprep.subr.mxu0 %v43_v18  ;;  %256 = vmatprep.subr.mxu1 %v203_v46  ;;  %v69_v57 = vld [vmem:[%s1353_s1 + $0x138] sm:$0xff]  ;;  %v197_v58 = vld [vmem:[%s1355_s3 + $0x88] sm:$0xff]  ;;  %v68_v59 = vld [vmem:[%s1353_s1 + $0x130] sm:$0xff] }
  0x15   :  { %118 = vmatpush1.msra.mxu0 %v42_v20  ;;  %257 = vmatpush1.msra.mxu1 %v202_v48  ;;  %v196_v60 = vld [vmem:[%s1355_s3 + $0x80] sm:$0xff]  ;;  %v67_v61 = vld [vmem:[%s1353_s1 + $0x128] sm:$0xff]  ;;  %v195_v62 = vld [vmem:[%s1355_s3 + $0x78] sm:$0xff] }
  0x16   :  { %119 = vmatprep.subr.mxu0 %v41_v21  ;;  %258 = vmatprep.subr.mxu1 %v201_v50  ;;  %v66_v63 = vld [vmem:[%s1353_s1 + $0x120] sm:$0xff]  ;;  %v194_v0 = vld [vmem:[%s1355_s3 + $0x70] sm:$0xff]  ;;  %v65_v1 = vld [vmem:[%s1353_s1 + $0x118] sm:$0xff] }
  0x17   :  { %120 = vmatpush1.msra.mxu0 %v40_v22  ;;  %259 = vmatpush1.msra.mxu1 %v200_v52  ;;  %v193_v2 = vld [vmem:[%s1355_s3 + $0x68] sm:$0xff]  ;;  %v64_v3 = vld [vmem:[%s1353_s1 + $0x110] sm:$0xff]  ;;  %v192_v4 = vld [vmem:[%s1355_s3 + $0x60] sm:$0xff] }
  0x18   :  { %121 = vmatprep.subr.mxu0 %v39_v23  ;;  %260 = vmatprep.subr.mxu1 %v199_v54  ;;  %v63_v5 = vld [vmem:[%s1353_s1 + $0x108] sm:$0xff]  ;;  %v191_v6 = vld [vmem:[%s1355_s3 + $0x58] sm:$0xff]  ;;  %v62_v7 = vld [vmem:[%s1353_s1 + $0x100] sm:$0xff] }
  0x19   :  { %122 = vmatpush1.msra.mxu0 %v38_v24  ;;  %261 = vmatpush1.msra.mxu1 %v198_v56  ;;  %v190_v8 = vld [vmem:[%s1355_s3 + $0x50] sm:$0xff]  ;;  %v858_v9 = vld [vmem:[%s1354_s0] sm:$0xff]  ;;  %v863_v10 = vld [vmem:[%s1356_s5 + $0xf8] sm:$0xff] }
  0x1a   :  { %123 = vmatprep.subr.mxu0 %v37_v25  ;;  %262 = vmatprep.subr.mxu1 %v197_v58  ;;  %1369 = vst [vmem:[#allocation3_spill] sm:$0xff] %v858_v9  ;;  %v868_v11 = vld [vmem:[%s1354_s0 + $0x18] sm:$0xff]  ;;  %v873_v12 = vld [vmem:[%s1356_s5 + $0xf0] sm:$0xff]  ;;  %v878_v13 = vld [vmem:[%s1356_s5 + $0xe8] sm:$0xff] }
  0x1b   :  { %124 = vmatpush1.msra.mxu0 %v36_v26  ;;  %263 = vmatpush1.msra.mxu1 %v196_v60  ;;  %v189_v14 = vld [vmem:[%s1355_s3 + $0x48] sm:$0xff]  ;;  %v888_v15 = vld [vmem:[%s1356_s5 + $0xe0] sm:$0xff]  ;;  %v898_v17 = vld [vmem:[%s1354_s0 + $0x10] sm:$0xff] }
  0x1c   :  { %125 = vmatprep.subr.mxu0 %v35_v27  ;;  %264 = vmatprep.subr.mxu1 %v195_v62  ;;  %v188_v16 = vld [vmem:[%s1355_s3 + $0x40] sm:$0xff]  ;;  %1370 = vst [vmem:[#allocation4_spill] sm:$0xff] %v898_v17  ;;  %v904_v18 = vld [vmem:[%s1356_s5 + $0xd8] sm:$0xff]  ;;  %v910_v20 = vld [vmem:[%s1356_s5 + $0xd0] sm:$0xff] }
  0x1d   :  { %126 = vmatpush1.msra.mxu0 %v34_v28  ;;  %265 = vmatpush1.msra.mxu1 %v194_v0  ;;  %v916_v21 = vld [vmem:[%s1356_s5 + $0xc8] sm:$0xff]  ;;  %v187_v22 = vld [vmem:[%s1355_s3 + $0x38] sm:$0xff]  ;;  %v926_v23 = vld [vmem:[%s1356_s5 + $0xc0] sm:$0xff] }
  0x1e   :  { %127 = vmatprep.subr.mxu0 %v33_v29  ;;  %266 = vmatprep.subr.mxu1 %v193_v2  ;;  %v186_v24 = vld [vmem:[%s1355_s3 + $0x30] sm:$0xff]  ;;  %v935_v25 = vld [vmem:[%s1356_s5 + $0xb8] sm:$0xff]  ;;  %v185_v26 = vld [vmem:[%s1355_s3 + $0x28] sm:$0xff] }
  0x1f   :  { %128 = vmatpush1.msra.mxu0 %v32_v30  ;;  %267 = vmatpush1.msra.mxu1 %v192_v4  ;;  %v946_v27 = vld [vmem:[%s1356_s5 + $0xb0] sm:$0xff]  ;;  %v184_v28 = vld [vmem:[%s1355_s3 + $0x20] sm:$0xff]  ;;  %v955_v29 = vld [vmem:[%s1356_s5 + $0xa8] sm:$0xff] }
  0x20   :  { %129 = vmatprep.subr.mxu0 %v31_v31  ;;  %268 = vmatprep.subr.mxu1 %v191_v6  ;;  %v183_v30 = vld [vmem:[%s1355_s3 + $0x18] sm:$0xff]  ;;  %v964_v31 = vld [vmem:[%s1356_s5 + $0xa0] sm:$0xff]  ;;  %v182_v32 = vld [vmem:[%s1355_s3 + $0x10] sm:$0xff] }
  0x21   :  { %130 = vmatpush1.msra.mxu0 %v30_v33  ;;  %269 = vmatpush1.msra.mxu1 %v190_v8  ;;  %v973_v33 = vld [vmem:[%s1356_s5 + $0x98] sm:$0xff]  ;;  %v181_v34 = vld [vmem:[%s1355_s3 + $0x8] sm:$0xff]  ;;  %v982_v35 = vld [vmem:[%s1356_s5 + $0x90] sm:$0xff] }
  0x22   :  { %145 = vmatprep.subr.mxu0 %v79_v36  ;;  %270 = vmatprep.subr.mxu1 %v189_v14  ;;  %v180_v36 = vld [vmem:[%s1355_s3] sm:$0xff]  ;;  %v991_v37 = vld [vmem:[%s1356_s5 + $0x88] sm:$0xff]  ;;  %v227_v42 = vld [vmem:[%s1355_s3 + $0x178] sm:$0xff] }
  0x23   :  { %146 = vmatpush2.msra.mxu0 %v78_v38  ;;  %271 = vmatpush1.msra.mxu1 %v188_v16  ;;  %v229_v38 = vld [vmem:[%s1355_s3 + $0x188] sm:$0xff]  ;;  %v1000_v39 = vld [vmem:[%s1356_s5 + $0x80] sm:$0xff]  ;;  %v226_v44 = vld [vmem:[%s1355_s3 + $0x170] sm:$0xff] }
  0x24   :  { %147 = vmatprep.subr.mxu0 %v77_v41  ;;  %272 = vmatprep.subr.mxu1 %v187_v22  ;;  %v228_v40 = vld [vmem:[%s1355_s3 + $0x180] sm:$0xff]  ;;  %v1009_v41 = vld [vmem:[%s1356_s5 + $0x78] sm:$0xff]  ;;  %v225_v46 = vld [vmem:[%s1355_s3 + $0x168] sm:$0xff] }
  0x25   :  { %148 = vmatpush2.msra.mxu0 %v76_v43  ;;  %273 = vmatpush1.msra.mxu1 %v186_v24  ;;  %v1018_v43 = vld [vmem:[%s1356_s5 + $0x70] sm:$0xff]  ;;  %v224_v48 = vld [vmem:[%s1355_s3 + $0x160] sm:$0xff]  ;;  %v223_v50 = vld [vmem:[%s1355_s3 + $0x158] sm:$0xff] }
  0x26   :  { %149 = vmatprep.subr.mxu0 %v75_v45  ;;  %274 = vmatprep.subr.mxu1 %v185_v26  ;;  %v1027_v45 = vld [vmem:[%s1356_s5 + $0x68] sm:$0xff]  ;;  %v222_v52 = vld [vmem:[%s1355_s3 + $0x150] sm:$0xff]  ;;  %v220_v56 = vld [vmem:[%s1355_s3 + $0x140] sm:$0xff] }
  0x27   :  { %150 = vmatpush2.msra.mxu0 %v74_v47  ;;  %275 = vmatpush1.msra.mxu1 %v184_v28  ;;  %v1036_v47 = vld [vmem:[%s1356_s5 + $0x60] sm:$0xff]  ;;  %v221_v54 = vld [vmem:[%s1355_s3 + $0x148] sm:$0xff]  ;;  %v219_v58 = vld [vmem:[%s1355_s3 + $0x138] sm:$0xff] }
  0x28   :  { %151 = vmatprep.subr.mxu0 %v73_v49  ;;  %276 = vmatprep.subr.mxu1 %v183_v30  ;;  %v1045_v49 = vld [vmem:[%s1356_s5 + $0x58] sm:$0xff]  ;;  %v1096_v60 = vld [vmem:[%s1356_s5 + $0x28] sm:$0xff]  ;;  %v1174_v14 = vld [vmem:[%s1356_s5 + $0x150] sm:$0xff] }
  0x29   :  { %152 = vmatpush2.msra.mxu0 %v72_v51  ;;  %277 = vmatpush1.msra.mxu1 %v182_v32  ;;  %v1054_v51 = vld [vmem:[%s1356_s5 + $0x50] sm:$0xff]  ;;  %v1108_v62 = vld [vmem:[%s1356_s5 + $0x18] sm:$0xff]  ;;  %v1120_v0 = vld [vmem:[%s1356_s5 + $0x8] sm:$0xff] }
  0x2a   :  { %153 = vmatprep.subr.mxu0 %v71_v53  ;;  %278 = vmatprep.subr.mxu1 %v181_v34  ;;  %v1063_v53 = vld [vmem:[%s1356_s5 + $0x48] sm:$0xff]  ;;  %v1144_v4 = vld [vmem:[%s1356_s5 + $0x178] sm:$0xff]  ;;  %v1186_v22 = vld [vmem:[%s1356_s5 + $0x140] sm:$0xff] }
  0x2b   :  { %154 = vmatpush2.msra.mxu0 %v70_v55  ;;  %279 = vmatpush1.msra.mxu1 %v180_v36  ;;  %v1072_v55 = vld [vmem:[%s1356_s5 + $0x40] sm:$0xff]  ;;  %v1132_v2 = vld [vmem:[%s1356_s5 + $0x188] sm:$0xff]  ;;  %v1168_v8 = vld [vmem:[%s1356_s5 + $0x158] sm:$0xff] }
  0x2c   :  { %155 = vmatprep.subr.mxu0 %v69_v57  ;;  %294 = vmatprep.subr.mxu1 %v229_v38  ;;  %v1081_v57 = vld [vmem:[%s1356_s5 + $0x38] sm:$0xff]  ;;  %v1156_v6 = vld [vmem:[%s1356_s5 + $0x168] sm:$0xff]  ;;  %v1198_v26 = vld [vmem:[%s1356_s5 + $0x130] sm:$0xff] }
  0x2d   :  { %156 = vmatpush2.msra.mxu0 %v68_v59  ;;  %295 = vmatpush2.msra.mxu1 %v228_v40  ;;  %v1090_v59 = vld [vmem:[%s1356_s5 + $0x30] sm:$0xff]  ;;  %v1180_v16 = vld [vmem:[%s1356_s5 + $0x148] sm:$0xff]  ;;  %v1192_v24 = vld [vmem:[%s1356_s5 + $0x138] sm:$0xff] }
  0x2e   :  { %157 = vmatprep.subr.mxu0 %v67_v61  ;;  %296 = vmatprep.subr.mxu1 %v227_v42  ;;  %v1102_v61 = vld [vmem:[%s1356_s5 + $0x20] sm:$0xff]  ;;  %v1204_v28 = vld [vmem:[%s1356_s5 + $0x128] sm:$0xff]  ;;  %v1216_v32 = vld [vmem:[%s1356_s5 + $0x118] sm:$0xff] }
  0x2f   :  { %158 = vmatpush2.msra.mxu0 %v66_v63  ;;  %297 = vmatpush2.msra.mxu1 %v226_v44  ;;  %v1114_v63 = vld [vmem:[%s1356_s5 + $0x10] sm:$0xff]  ;;  %v1210_v30 = vld [vmem:[%s1356_s5 + $0x120] sm:$0xff]  ;;  %v1228_v36 = vld [vmem:[%s1356_s5 + $0x108] sm:$0xff] }
  0x30   :  { %159 = vmatprep.subr.mxu0 %v65_v1  ;;  %298 = vmatprep.subr.mxu1 %v225_v46  ;;  %v1126_v1 = vld [vmem:[%s1356_s5] sm:$0xff]  ;;  %v1222_v34 = vld [vmem:[%s1356_s5 + $0x110] sm:$0xff]  ;;  %1372 = vst [vmem:[#allocation6_spill] sm:$0xff] %v1228_v36  ;;  %v217_v42 = vld [vmem:[%s1355_s3 + $0x128] sm:$0xff] }
  0x31   :  { %160 = vmatpush2.msra.mxu0 %v64_v3  ;;  %299 = vmatpush2.msra.mxu1 %v224_v48  ;;  %v1138_v3 = vld [vmem:[%s1356_s5 + $0x180] sm:$0xff]  ;;  %1371 = vst [vmem:[#allocation5_spill] sm:$0xff] %v1222_v34  ;;  %v218_v40 = vld [vmem:[%s1355_s3 + $0x130] sm:$0xff]  ;;  %v215_v46 = vld [vmem:[%s1355_s3 + $0x118] sm:$0xff] }
  0x32   :  { %161 = vmatprep.subr.mxu0 %v63_v5  ;;  %300 = vmatprep.subr.mxu1 %v223_v50  ;;  %v1150_v5 = vld [vmem:[%s1356_s5 + $0x170] sm:$0xff]  ;;  %v1234_v38 = vld [vmem:[%s1356_s5 + $0x100] sm:$0xff]  ;;  %v213_v50 = vld [vmem:[%s1355_s3 + $0x108] sm:$0xff] }
  0x33   :  { %162 = vmatpush2.msra.mxu0 %v62_v7  ;;  %301 = vmatpush2.msra.mxu1 %v222_v52  ;;  %v1162_v7 = vld [vmem:[%s1356_s5 + $0x160] sm:$0xff]  ;;  %1373 = vst [vmem:[#allocation7_spill] sm:$0xff] %v1234_v38  ;;  %v214_v48 = vld [vmem:[%s1355_s3 + $0x110] sm:$0xff] }
  0x34   :  { %164 = vmatmul.mubr.f32.vlgmr.msra.gmra.mxu0 %v858_v9  ;;  %391 = vmatprep.subr.mxu0 %v863_v10  ;;  %v216_v44 = vld [vmem:[%s1355_s3 + $0x120] sm:$0xff] }
  0x35   :  { %517 = vmatprep.mubr.msk.f32.mxu0 %vm92_vm0, %v868_v11  ;;  %392 = vmatpush1.msra.mxu0 %v873_v12  ;;  %v212_v52 = vld [vmem:[%s1355_s3 + $0x100] sm:$0xff] }
  0x36   :  { %393 = vmatprep.subr.mxu0 %v878_v13  ;;  %302 = vmatprep.subr.mxu1 %v221_v54  ;;  %v82_v54 = vlaneseq }
  0x37   :  { %394 = vmatpush1.msra.mxu0 %v888_v15  ;;  %303 = vmatpush2.msra.mxu1 %v220_v56 }
  0x38   :  { %170 = vmatmul.mubr.f32.gmra.mxu0 %v898_v17  ;;  %395 = vmatprep.subr.mxu0 %v904_v18  ;;  %v83_v56 = vshrl.u32 %v82_v54, 7 }
  0x39   :  { %396 = vmatpush1.msra.mxu0 %v910_v20  ;;  %520 = vmatprep.mubr.msk.f32.mxu0 %vm92_vm0, %v692_v19 }
  0x3a   :  { %397 = vmatprep.subr.mxu0 %v916_v21  ;;  %304 = vmatprep.subr.mxu1 %v219_v58  ;;  %v1262_v58 = vsub.s32 0, %v83_v56 }
  0x3b   :  { %398 = vmatpush1.msra.mxu0 %v926_v23  ;;  %305 = vmatpush2.msra.mxu1 %v218_v40  ;;  %v80_v40 = vld [vmem:[%s1357_s2] sm:$0x3] }
  0x3c   :  { %399 = vmatprep.subr.mxu0 %v935_v25  ;;  %306 = vmatprep.subr.mxu1 %v217_v42  ;;  %v1267_v42 = vsub.s32 1, %v83_v56 }
  0x3d   :  { %400 = vmatpush1.msra.mxu0 %v946_v27  ;;  %307 = vmatpush2.msra.mxu1 %v216_v44  ;;  %v85_v44 = vrot.slane %v80_v40, %v1262_v58 }
  0x3e   :  { %401 = vmatprep.subr.mxu0 %v955_v29  ;;  %308 = vmatprep.subr.mxu1 %v215_v46  ;;  %v89_v46 = vrot.slane %v80_v40, %v1267_v42 }
  0x3f   :  { %402 = vmatpush1.msra.mxu0 %v964_v31  ;;  %309 = vmatpush2.msra.mxu1 %v214_v48 }
  0x40   :  { %403 = vmatprep.subr.mxu0 %v973_v33  ;;  %310 = vmatprep.subr.mxu1 %v213_v50 }
  0x41   :  { %404 = vmatpush1.msra.mxu0 %v982_v35  ;;  %311 = vmatpush2.msra.mxu1 %v212_v52 }
  0x42   :  { %405 = vmatprep.subr.mxu0 %v991_v37  ;;  %526 = vmatprep.subr.mxu1 %v863_v10 }
  0x43   :  { %406 = vmatpush1.msra.mxu0 %v1000_v39 }
  0x44   :  { %407 = vmatprep.subr.mxu0 %v1009_v41 }
  0x45   :  { %408 = vmatpush1.msra.mxu0 %v1018_v43 }
  0x46   :  { %409 = vmatprep.subr.mxu0 %v1027_v45 }
  0x47   :  { %410 = vmatpush1.msra.mxu0 %v1036_v47 }
  0x48   :  { %411 = vmatprep.subr.mxu0 %v1045_v49 }
  0x49   :  { %412 = vmatpush1.msra.mxu0 %v1054_v51 }
  0x4a   :  { %413 = vmatprep.subr.mxu0 %v1063_v53 }
  0x4b   :  { %414 = vmatpush1.msra.mxu0 %v1072_v55 }
  0x4c   :  { %415 = vmatprep.subr.mxu0 %v1081_v57 }
  0x4d   :  { %416 = vmatpush1.msra.mxu0 %v1090_v59 }
  0x4e   :  { %417 = vmatprep.subr.mxu0 %v1096_v60 }
  0x4f   :  { %418 = vmatpush1.msra.mxu0 %v1102_v61 }
  0x50   :  { %419 = vmatprep.subr.mxu0 %v1108_v62 }
  0x51   :  { %420 = vmatpush1.msra.mxu0 %v1114_v63 }
  0x52   :  { %421 = vmatprep.subr.mxu0 %v1120_v0 }
  0x53   :  { %422 = vmatpush1.msra.mxu0 %v1126_v1 }
  0x54   :  { %437 = vmatprep.subr.mxu0 %v1132_v2 }
  0x55   :  { %438 = vmatpush2.msra.mxu0 %v1138_v3 }
  0x56   :  { %439 = vmatprep.subr.mxu0 %v1144_v4 }
  0x57   :  { %440 = vmatpush2.msra.mxu0 %v1150_v5 }
  0x58   :  { %441 = vmatprep.subr.mxu0 %v1156_v6 }
  0x59   :  { %442 = vmatpush2.msra.mxu0 %v1162_v7 }
  0x5a   :  { %443 = vmatprep.subr.mxu0 %v1168_v8 }
  0x5b   :  { %444 = vmatpush2.msra.mxu0 %v1174_v14 }
  0x5c   :  { %445 = vmatprep.subr.mxu0 %v1180_v16 }
  0x5d   :  { %446 = vmatpush2.msra.mxu0 %v1186_v22 }
  0x5e   :  { %447 = vmatprep.subr.mxu0 %v1192_v24 }
  0x5f   :  { %448 = vmatpush2.msra.mxu0 %v1198_v26 }
  0x60   :  { %449 = vmatprep.subr.mxu0 %v1204_v28 }
  0x61   :  { %450 = vmatpush2.msra.mxu0 %v1210_v30 }
  0x62   :  { %451 = vmatprep.subr.mxu0 %v1216_v32 }
  0x63   :  { %452 = vmatpush2.msra.mxu0 %v1222_v34 }
  0x64   :  { %453 = vmatprep.subr.mxu0 %v1228_v36 }
  0x65   :  { %454 = vmatpush2.msra.mxu0 %v1234_v38 }
  0x66   :  { %456 = vmatmul.mubr.f32.vlgmr.msra.gmra.mxu0 %v858_v9 }
  0xf4   :  { %v165_v48 = vpop.f32.mrf.mxu0 }
  0xf5   :  { %v166_v50 = vadd.f32 %v165_v48, %v85_v44 }
  0xf6   :  { %v167_v19 = vpop.f32.mrf.mxu0 }
  0xf7   :  { %v168_v52 = vadd.f32 %v167_v19, %v89_v46  ;;  %v176_v54 = vmax.f32 %v166_v50, 0.0  ;;  %v1374_v19 = vld [vmem:[#allocation5_spill] sm:$0xff] }
  0xf8   :  { %v171_v9 = vpop.f32.mrf.mxu0 }
  0xf9   :  { %v177_v10 = vmax.f32 %v168_v52, 0.0  ;;  %v172_v17 = vadd.f32 %v171_v9, %v85_v44  ;;  %v1375_v9 = vld [vmem:[#allocation6_spill] sm:$0xff] }
  0xfa   :  { %v173_v38 = vpop.f32.mrf.mxu0 }
  0xfb   :  { %518 = vmatprep.mubr.msk.f32.mxu1 %vm92_vm0, %v177_v10  ;;  %v174_v36 = vadd.f32 %v173_v38, %v89_v46  ;;  %v178_v34 = vmax.f32 %v172_v17, 0.0 }
  0xfc   :  { %313 = vmatmul.mubr.f32.vlgmr.msra.gmra.mxu1 %v176_v54 }
  0xfd   :  { %551 = vmatpush1.msra.mxu1 %v873_v12  ;;  %v179_v56 = vmax.f32 %v174_v36, 0.0  ;;  %v1376_v12 = vld [vmem:[#allocation7_spill] sm:$0xff] }
  0xfe   :  { %527 = vmatprep.subr.mxu1 %v878_v13  ;;  %v1377_v13 = vld [vmem:[#allocation4_spill] sm:$0xff] }
  0xff   :  { %552 = vmatpush1.msra.mxu1 %v888_v15  ;;  %519 = vmatprep.mubr.msk.f32.mxu1 %vm92_vm0, %v179_v56  ;;  %v379_v15 = vld [vmem:[%s1358_s6] sm:$0x3] }
 0x100   :  { %528 = vmatprep.subr.mxu1 %v904_v18  ;;  %319 = vmatmul.mubr.f32.gmra.mxu1 %v178_v34  ;;  %v384_v18 = vrot.slane %v379_v15, %v1262_v58 }
 0x101   :  { %553 = vmatpush1.msra.mxu1 %v910_v20  ;;  %521 = vmatprep.mubr.msk.f32.mxu1 %vm92_vm0, %v868_v11  ;;  %v388_v20 = vrot.slane %v379_v15, %v1267_v42 }
 0x102   :  { %529 = vmatprep.subr.mxu1 %v916_v21 }
 0x103   :  { %554 = vmatpush1.msra.mxu1 %v926_v23 }
 0x104   :  { %530 = vmatprep.subr.mxu1 %v935_v25 }
 0x105   :  { %555 = vmatpush1.msra.mxu1 %v946_v27 }
 0x106   :  { %531 = vmatprep.subr.mxu1 %v955_v29 }
 0x107   :  { %556 = vmatpush1.msra.mxu1 %v964_v31 }
 0x108   :  { %532 = vmatprep.subr.mxu1 %v973_v33 }
 0x109   :  { %557 = vmatpush1.msra.mxu1 %v982_v35 }
 0x10a   :  { %533 = vmatprep.subr.mxu1 %v991_v37 }
 0x10b   :  { %558 = vmatpush1.msra.mxu1 %v1000_v39  ;;  %v230_v39 = vld [vmem:[%s1359_s4] sm:$0x3] }
 0x10c   :  { %534 = vmatprep.subr.mxu1 %v1009_v41 }
 0x10d   :  { %559 = vmatpush1.msra.mxu1 %v1018_v43  ;;  %v235_v43 = vrot.slane %v230_v39, %v1262_v58 }
 0x10e   :  { %535 = vmatprep.subr.mxu1 %v1027_v45 }
 0x10f   :  { %560 = vmatpush1.msra.mxu1 %v1036_v47 }
 0x110   :  { %536 = vmatprep.subr.mxu1 %v1045_v49  ;;  %v239_v49 = vrot.slane %v230_v39, %v1267_v42 }
 0x111   :  { %561 = vmatpush1.msra.mxu1 %v1054_v51 }
 0x112   :  { %537 = vmatprep.subr.mxu1 %v1063_v53 }
 0x113   :  { %562 = vmatpush1.msra.mxu1 %v1072_v55 }
 0x114   :  { %538 = vmatprep.subr.mxu1 %v1081_v57 }
 0x115   :  { %563 = vmatpush1.msra.mxu1 %v1090_v59 }
 0x116   :  { %539 = vmatprep.subr.mxu1 %v1096_v60  ;;  %v1378_v60 = vld [vmem:[#allocation3_spill] sm:$0xff] }
 0x117   :  { %564 = vmatpush1.msra.mxu1 %v1102_v61 }
 0x118   :  { %540 = vmatprep.subr.mxu1 %v1108_v62 }
 0x119   :  { %565 = vmatpush1.msra.mxu1 %v1114_v63 }
 0x11a   :  { %541 = vmatprep.subr.mxu1 %v1120_v0 }
 0x11b   :  { %566 = vmatpush1.msra.mxu1 %v1126_v1  ;;  %v1379_v1 = vld [vmem:[#allocation2_spill] sm:$0xff] }
 0x11c   :  { %542 = vmatprep.subr.mxu1 %v1132_v2 }
 0x11d   :  { %567 = vmatpush2.msra.mxu1 %v1138_v3 }
 0x11e   :  { %543 = vmatprep.subr.mxu1 %v1144_v4 }
 0x11f   :  { %568 = vmatpush2.msra.mxu1 %v1150_v5 }
 0x120   :  { %544 = vmatprep.subr.mxu1 %v1156_v6 }
 0x121   :  { %569 = vmatpush2.msra.mxu1 %v1162_v7 }
 0x122   :  { %545 = vmatprep.subr.mxu1 %v1168_v8 }
 0x123   :  { %570 = vmatpush2.msra.mxu1 %v1174_v14 }
 0x124   :  { %546 = vmatprep.subr.mxu1 %v1180_v16 }
 0x125   :  { %571 = vmatpush2.msra.mxu1 %v1186_v22 }
 0x126   :  { %547 = vmatprep.subr.mxu1 %v1192_v24  ;;  %v457_v17 = vpop.f32.mrf.mxu0 }
 0x127   :  { %572 = vmatpush2.msra.mxu1 %v1198_v26  ;;  %v458_v23 = vadd.f32 %v457_v17, %v384_v18 }
 0x128   :  { %548 = vmatprep.subr.mxu1 %v1204_v28  ;;  %v459_v21 = vpop.f32.mrf.mxu0 }
 0x129   :  { %573 = vmatpush2.msra.mxu1 %v1210_v30  ;;  %v460_v25 = vadd.f32 %v459_v21, %v388_v20  ;;  %v522_v27 = vmul.f32 -1.442695, %v458_v23 }
 0x12a   :  { %549 = vmatprep.subr.mxu1 %v1216_v32 }
 0x12b   :  { %574 = vmatpush2.msra.mxu1 %v1374_v19  ;;  %v523_v29 = vmul.f32 -1.442695, %v460_v25  ;;  %576 = vpow2.f32 %v522_v27 }
 0x12c   :  { %550 = vmatprep.subr.mxu1 %v1375_v9 }
 0x12d   :  { %575 = vmatpush2.msra.mxu1 %v1376_v12  ;;  %578 = vpow2.f32 %v523_v29 }
 0x12e   :  { %462 = vmatmul.mubr.f32.vlgmr.msra.gmra.mxu1 %v1377_v13 }
 0x138   :  { %v577_v31 = vpop.eup %576 }
 0x139   :  { %v480_v35 = vadd.f32 1.0, %v577_v31 }
 0x13a   :  { %v579_v33 = vpop.eup %578 }
 0x13b   :  { %v481_v37 = vadd.f32 1.0, %v579_v33  ;;  %580 = vrcp.f32 %v480_v35 }
 0x13d   :  { %582 = vrcp.f32 %v481_v37 }
 0x148   :  { %v581_v41 = vpop.eup %580 }
 0x149   :  { %v496_v47 = vsub.f32 1.0, %v581_v41 }
 0x14a   :  { %v583_v45 = vpop.eup %582 }
 0x14b   :  { %v497_v55 = vsub.f32 1.0, %v583_v45  ;;  %v500_v61 = vmul.f32 %v496_v47, %v1378_v60 }
 0x14d   :  { %v501_v2 = vmul.f32 %v497_v55, %v1379_v1 }
 0x1bc   :  { %v314_v51 = vpop.f32.mrf.mxu1 }
 0x1bd   :  { %v315_v53 = vadd.f32 %v314_v51, %v235_v43 }
 0x1be   :  { %v316_v57 = vpop.f32.mrf.mxu1 }
 0x1bf   :  { %v325_v59 = vmax.f32 %v315_v53, 0.0  ;;  %v317_v62 = vadd.f32 %v316_v57, %v239_v49 }
 0x1c0   :  { %v320_v6 = vpop.f32.mrf.mxu1 }
 0x1c1   :  { %v492_v63 = vmul.f32 %v581_v41, %v325_v59  ;;  %v326_v0 = vmax.f32 %v317_v62, 0.0  ;;  %v321_v36 = vadd.f32 %v320_v6, %v235_v43 }
 0x1c2   :  { %v322_v7 = vpop.f32.mrf.mxu1 }
 0x1c3   :  { %v504_v3 = vadd.f32 %v500_v61, %v492_v63  ;;  %v493_v4 = vmul.f32 %v583_v45, %v326_v0  ;;  %v323_v38 = vadd.f32 %v322_v7, %v239_v49  ;;  %v327_v40 = vmax.f32 %v321_v36, 0.0 }
 0x1c5   :  { %508 = vst [vmem:[%s1360_s7] sm:$0xff] %v504_v3  ;;  %v505_v5 = vadd.f32 %v501_v2, %v493_v4  ;;  %v328_v46 = vmax.f32 %v323_v38, 0.0 }
 0x1c7   :  { %509 = vst.msk [vmem:[%s1360_s7 + $0x8] sm:$0xff] %vm92_vm0, %v505_v5 }
 0x1ee   :  { %v463_v8 = vpop.f32.mrf.mxu1 }
 0x1ef   :  { %v464_v14 = vadd.f32 %v463_v8, %v384_v18 }
 0x1f0   :  { %v465_v16 = vpop.f32.mrf.mxu1 }
 0x1f1   :  { %v524_v22 = vmul.f32 -1.442695, %v464_v14  ;;  %v466_v24 = vadd.f32 %v465_v16, %v388_v20 }
 0x1f3   :  { %584 = vpow2.f32 %v524_v22  ;;  %v525_v26 = vmul.f32 -1.442695, %v466_v24 }
 0x1f5   :  { %586 = vpow2.f32 %v525_v26 }
 0x200   :  { %v585_v28 = vpop.eup %584 }
 0x201   :  { %v482_v30 = vadd.f32 1.0, %v585_v28 }
 0x202   :  { %v587_v32 = vpop.eup %586 }
 0x203   :  { %588 = vrcp.f32 %v482_v30  ;;  %v483_v34 = vadd.f32 1.0, %v587_v32 }
 0x205   :  { %590 = vrcp.f32 %v483_v34 }
 0x210   :  { %v589_v58 = vpop.eup %588 }
 0x211   :  { %v498_v42 = vsub.f32 1.0, %v589_v58  ;;  %v494_v48 = vmul.f32 %v589_v58, %v327_v40 }
 0x212   :  { %v591_v44 = vpop.eup %590 }
 0x213   :  { %v502_v50 = vmul.f32 %v498_v42, %v1377_v13  ;;  %v499_v52 = vsub.f32 1.0, %v591_v44  ;;  %v495_v54 = vmul.f32 %v591_v44, %v328_v46 }
 0x215   :  { %v506_v10 = vadd.f32 %v502_v50, %v494_v48  ;;  %v503_v56 = vmul.f32 %v499_v52, %v868_v11 }
 0x217   :  { %510 = vst [vmem:[%s1360_s7 + $0x10] sm:$0xff] %v506_v10  ;;  %v507_v19 = vadd.f32 %v503_v56, %v495_v54 }
 0x219   :  { %511 = vst.msk [vmem:[%s1360_s7 + $0x18] sm:$0xff] %vm92_vm0, %v507_v19 }

// kernel: bidaf_forward.18
= control target key start
LH: loop header
LB: loop body
LE: loop exit
PB: predicated region body
PF: predicated region fallthrough
CT: control target
= control target key end

     0   :  { %s733_s12 = smov 0   ;;  %s735_s13 = smov 0   ;;  %s892_s0 = inlined_call_operand.vmem [shape: f32[16,200], index: 0, kind: input, shape index: {}]   ;;  %s893_s1 = inlined_call_operand.vmem [shape: f32[2,200,512], index: 1, kind: input, shape index: {}]   ;;  %s894_s2 = inlined_call_operand.vmem [shape: f32[2,1,512], index: 2, kind: input, shape index: {}]   ;;  %s895_s3 = inlined_call_operand.vmem [shape: f32[2,16,512], index: 3, kind: output, shape index: {}]  }
   0x1   :  { %s737_s14 = smov 0  }
   0x2 LB: > { %s25_s15 = sadd.s32 1, %s707_s13  ;;  %p652_p0 = scmp.ge.s32.totalorder %s711_s14, 1  ;;  %s711_s14 = sphi %s737_s14, %s13_s14   ;;  %s707_s13 = sphi %s735_s13, %s897_s13   ;;  %s703_s12 = sphi %s733_s12, %s896_s12  }
   0x3   : > { %p27_p1 = scmp.ge.s32.totalorder %s25_s15, 2  ;;  %p172_p2 = scmp.lt.s32.totalorder %s711_s14, 3 }
   0x5   : > { %s899_s15 = smov (%p27_p1, %s25_s15), 0  ;;  %p173_p3 = pnand %p652_p0, %p172_p2 }
   0x6   : > { %p218_p4 = scmp.lt.s32.totalorder (!%p173_p3), %s703_s12, 1 }
   0x7   : > { %176 = sbr.rel (%p173_p3) target bundleno = 269 (0x10d), region = 32 }
   0xc   : > { %v239_v0 = vld [vmem:[%s892_s0 + $0x8] sm:$0xff]  ;;  %vm364_vm0 = vcmask 588800   ;;  %s901_s12 = smov (!%p218_p4, %s703_s12), 1 }
   0xd   : > { %657 = vmatprep.mubr.msk.f32.mxu0 %vm364_vm0, %v239_v0  ;;  %659 = vmatprep.mubr.msk.f32.mxu1 %vm364_vm0, %v239_v0  ;;  %s664_s18 = smul.u32 800, %s901_s12  ;;  %s654_s28 = sshll.u32 %s901_s12, 2 }
   0xe   : > { %s226_s4 = scalar_lea.vmem %s894_s2, %s654_s28  ;;  %s663_s5 = sshll.u32 %s901_s12, 6 }
   0xf   : > { %s762_s21 = scalar_lea.vmem %s893_s1, %s664_s18  ;;  %s236_s8 = scalar_lea.vmem %s895_s3, %s663_s5 }
  0x10   : > { %v303_v1 = vld [vmem:[%s762_s21 + $0x1e8] sm:$0xff]  ;;  %v305_v2 = vld [vmem:[%s762_s21 + $0x1f8] sm:$0xff]  ;;  %v302_v3 = vld [vmem:[%s762_s21 + $0x1e0] sm:$0xff] }
  0x11   : > { %371 = vmatprep.subr.mxu0 %v303_v1  ;;  %448 = vmatprep.subr.mxu1 %v305_v2  ;;  %v304_v4 = vld [vmem:[%s762_s21 + $0x1f0] sm:$0xff]  ;;  %v299_v5 = vld [vmem:[%s762_s21 + $0x1c8] sm:$0xff]  ;;  %v301_v6 = vld [vmem:[%s762_s21 + $0x1d8] sm:$0xff] }
  0x12   : > { %372 = vmatpush1.msra.mxu0 %v302_v3  ;;  %449 = vmatpush1.msra.mxu1 %v304_v4  ;;  %v298_v7 = vld [vmem:[%s762_s21 + $0x1c0] sm:$0xff]  ;;  %v300_v8 = vld [vmem:[%s762_s21 + $0x1d0] sm:$0xff]  ;;  %v295_v9 = vld [vmem:[%s762_s21 + $0x1a8] sm:$0xff] }
  0x13   : > { %373 = vmatprep.subr.mxu0 %v299_v5  ;;  %450 = vmatprep.subr.mxu1 %v301_v6  ;;  %v297_v10 = vld [vmem:[%s762_s21 + $0x1b8] sm:$0xff]  ;;  %v294_v11 = vld [vmem:[%s762_s21 + $0x1a0] sm:$0xff]  ;;  %v296_v12 = vld [vmem:[%s762_s21 + $0x1b0] sm:$0xff] }
  0x14   : > { %374 = vmatpush1.msra.mxu0 %v298_v7  ;;  %451 = vmatpush1.msra.mxu1 %v300_v8  ;;  %v291_v13 = vld [vmem:[%s762_s21 + $0x188] sm:$0xff]  ;;  %v293_v14 = vld [vmem:[%s762_s21 + $0x198] sm:$0xff]  ;;  %v290_v15 = vld [vmem:[%s762_s21 + $0x180] sm:$0xff] }
  0x15   : > { %375 = vmatprep.subr.mxu0 %v295_v9  ;;  %452 = vmatprep.subr.mxu1 %v297_v10  ;;  %v292_v16 = vld [vmem:[%s762_s21 + $0x190] sm:$0xff]  ;;  %v287_v17 = vld [vmem:[%s762_s21 + $0x168] sm:$0xff]  ;;  %v289_v18 = vld [vmem:[%s762_s21 + $0x178] sm:$0xff] }
  0x16   : > { %376 = vmatpush1.msra.mxu0 %v294_v11  ;;  %453 = vmatpush1.msra.mxu1 %v296_v12  ;;  %v286_v19 = vld [vmem:[%s762_s21 + $0x160] sm:$0xff]  ;;  %v288_v20 = vld [vmem:[%s762_s21 + $0x170] sm:$0xff]  ;;  %v283_v21 = vld [vmem:[%s762_s21 + $0x148] sm:$0xff] }
  0x17   : > { %377 = vmatprep.subr.mxu0 %v291_v13  ;;  %454 = vmatprep.subr.mxu1 %v293_v14  ;;  %v285_v22 = vld [vmem:[%s762_s21 + $0x158] sm:$0xff]  ;;  %v282_v23 = vld [vmem:[%s762_s21 + $0x140] sm:$0xff]  ;;  %v284_v24 = vld [vmem:[%s762_s21 + $0x150] sm:$0xff] }
  0x18   : > { %378 = vmatpush1.msra.mxu0 %v290_v15  ;;  %455 = vmatpush1.msra.mxu1 %v292_v16  ;;  %v279_v25 = vld [vmem:[%s762_s21 + $0x128] sm:$0xff]  ;;  %v281_v26 = vld [vmem:[%s762_s21 + $0x138] sm:$0xff]  ;;  %v278_v27 = vld [vmem:[%s762_s21 + $0x120] sm:$0xff] }
  0x19   : > { %379 = vmatprep.subr.mxu0 %v287_v17  ;;  %456 = vmatprep.subr.mxu1 %v289_v18  ;;  %v280_v28 = vld [vmem:[%s762_s21 + $0x130] sm:$0xff]  ;;  %v275_v29 = vld [vmem:[%s762_s21 + $0x108] sm:$0xff]  ;;  %v277_v30 = vld [vmem:[%s762_s21 + $0x118] sm:$0xff] }
  0x1a   : > { %380 = vmatpush1.msra.mxu0 %v286_v19  ;;  %457 = vmatpush1.msra.mxu1 %v288_v20  ;;  %v274_v31 = vld [vmem:[%s762_s21 + $0x100] sm:$0xff]  ;;  %v276_v32 = vld [vmem:[%s762_s21 + $0x110] sm:$0xff]  ;;  %v271_v33 = vld [vmem:[%s762_s21 + $0xe8] sm:$0xff] }
  0x1b   : > { %381 = vmatprep.subr.mxu0 %v283_v21  ;;  %458 = vmatprep.subr.mxu1 %v285_v22  ;;  %v273_v34 = vld [vmem:[%s762_s21 + $0xf8] sm:$0xff]  ;;  %v270_v35 = vld [vmem:[%s762_s21 + $0xe0] sm:$0xff]  ;;  %v272_v36 = vld [vmem:[%s762_s21 + $0xf0] sm:$0xff] }
  0x1c   : > { %382 = vmatpush1.msra.mxu0 %v282_v23  ;;  %459 = vmatpush1.msra.mxu1 %v284_v24  ;;  %v267_v37 = vld [vmem:[%s762_s21 + $0xc8] sm:$0xff]  ;;  %v269_v38 = vld [vmem:[%s762_s21 + $0xd8] sm:$0xff]  ;;  %v266_v39 = vld [vmem:[%s762_s21 + $0xc0] sm:$0xff] }
  0x1d   : > { %383 = vmatprep.subr.mxu0 %v279_v25  ;;  %460 = vmatprep.subr.mxu1 %v281_v26  ;;  %v268_v40 = vld [vmem:[%s762_s21 + $0xd0] sm:$0xff]  ;;  %v263_v41 = vld [vmem:[%s762_s21 + $0xa8] sm:$0xff]  ;;  %v265_v42 = vld [vmem:[%s762_s21 + $0xb8] sm:$0xff] }
  0x1e   : > { %384 = vmatpush1.msra.mxu0 %v278_v27  ;;  %461 = vmatpush1.msra.mxu1 %v280_v28  ;;  %v262_v43 = vld [vmem:[%s762_s21 + $0xa0] sm:$0xff]  ;;  %v264_v44 = vld [vmem:[%s762_s21 + $0xb0] sm:$0xff]  ;;  %v259_v45 = vld [vmem:[%s762_s21 + $0x88] sm:$0xff] }
  0x1f   : > { %385 = vmatprep.subr.mxu0 %v275_v29  ;;  %462 = vmatprep.subr.mxu1 %v277_v30  ;;  %v261_v46 = vld [vmem:[%s762_s21 + $0x98] sm:$0xff]  ;;  %v258_v47 = vld [vmem:[%s762_s21 + $0x80] sm:$0xff]  ;;  %v260_v48 = vld [vmem:[%s762_s21 + $0x90] sm:$0xff] }
  0x20   : > { %386 = vmatpush1.msra.mxu0 %v274_v31  ;;  %463 = vmatpush1.msra.mxu1 %v276_v32  ;;  %v255_v49 = vld [vmem:[%s762_s21 + $0x68] sm:$0xff]  ;;  %v257_v50 = vld [vmem:[%s762_s21 + $0x78] sm:$0xff]  ;;  %v254_v51 = vld [vmem:[%s762_s21 + $0x60] sm:$0xff] }
  0x21   : > { %387 = vmatprep.subr.mxu0 %v271_v33  ;;  %464 = vmatprep.subr.mxu1 %v273_v34  ;;  %v256_v52 = vld [vmem:[%s762_s21 + $0x70] sm:$0xff]  ;;  %v251_v53 = vld [vmem:[%s762_s21 + $0x48] sm:$0xff]  ;;  %v253_v54 = vld [vmem:[%s762_s21 + $0x58] sm:$0xff] }
  0x22   : > { %388 = vmatpush1.msra.mxu0 %v270_v35  ;;  %465 = vmatpush1.msra.mxu1 %v272_v36  ;;  %v250_v55 = vld [vmem:[%s762_s21 + $0x40] sm:$0xff]  ;;  %v252_v56 = vld [vmem:[%s762_s21 + $0x50] sm:$0xff]  ;;  %v247_v57 = vld [vmem:[%s762_s21 + $0x28] sm:$0xff] }
  0x23   : > { %389 = vmatprep.subr.mxu0 %v267_v37  ;;  %466 = vmatprep.subr.mxu1 %v269_v38  ;;  %v249_v58 = vld [vmem:[%s762_s21 + $0x38] sm:$0xff]  ;;  %v246_v59 = vld [vmem:[%s762_s21 + $0x20] sm:$0xff]  ;;  %v248_v60 = vld [vmem:[%s762_s21 + $0x30] sm:$0xff] }
  0x24   : > { %390 = vmatpush1.msra.mxu0 %v266_v39  ;;  %467 = vmatpush1.msra.mxu1 %v268_v40  ;;  %v243_v61 = vld [vmem:[%s762_s21 + $0x8] sm:$0xff]  ;;  %v245_v62 = vld [vmem:[%s762_s21 + $0x18] sm:$0xff]  ;;  %v242_v63 = vld [vmem:[%s762_s21] sm:$0xff]  ;;  %v344_v40 = vlaneseq }
  0x25   : > { %391 = vmatprep.subr.mxu0 %v263_v41  ;;  %468 = vmatprep.subr.mxu1 %v265_v42  ;;  %v244_v0 = vld [vmem:[%s762_s21 + $0x10] sm:$0xff]  ;;  %v339_v1 = vld [vmem:[%s762_s21 + $0x308] sm:$0xff]  ;;  %v341_v2 = vld [vmem:[%s762_s21 + $0x318] sm:$0xff] }
  0x26   : > { %392 = vmatpush1.msra.mxu0 %v262_v43  ;;  %469 = vmatpush1.msra.mxu1 %v264_v44  ;;  %v338_v3 = vld [vmem:[%s762_s21 + $0x300] sm:$0xff]  ;;  %v340_v4 = vld [vmem:[%s762_s21 + $0x310] sm:$0xff]  ;;  %v335_v5 = vld [vmem:[%s762_s21 + $0x2e8] sm:$0xff]  ;;  %v345_v41 = vshrl.u32 %v344_v40, 7 }
  0x27   : > { %393 = vmatprep.subr.mxu0 %v259_v45  ;;  %470 = vmatprep.subr.mxu1 %v261_v46  ;;  %v337_v6 = vld [vmem:[%s762_s21 + $0x2f8] sm:$0xff]  ;;  %v334_v7 = vld [vmem:[%s762_s21 + $0x2e0] sm:$0xff]  ;;  %v336_v8 = vld [vmem:[%s762_s21 + $0x2f0] sm:$0xff] }
  0x28   : > { %394 = vmatpush1.msra.mxu0 %v258_v47  ;;  %471 = vmatpush1.msra.mxu1 %v260_v48  ;;  %v331_v9 = vld [vmem:[%s762_s21 + $0x2c8] sm:$0xff]  ;;  %v333_v10 = vld [vmem:[%s762_s21 + $0x2d8] sm:$0xff]  ;;  %v330_v11 = vld [vmem:[%s762_s21 + $0x2c0] sm:$0xff]  ;;  %v346_v42 = vsub.s32 0, %v345_v41  ;;  %v354_v43 = vsub.s32 2, %v345_v41  ;;  %v350_v45 = vsub.s32 1, %v345_v41 }
  0x29   : > { %395 = vmatprep.subr.mxu0 %v255_v49  ;;  %472 = vmatprep.subr.mxu1 %v257_v50  ;;  %v332_v12 = vld [vmem:[%s762_s21 + $0x2d0] sm:$0xff]  ;;  %v327_v13 = vld [vmem:[%s762_s21 + $0x2a8] sm:$0xff]  ;;  %v329_v14 = vld [vmem:[%s762_s21 + $0x2b8] sm:$0xff]  ;;  %v358_v46 = vsub.s32 3, %v345_v41 }
  0x2a   : > { %396 = vmatpush1.msra.mxu0 %v254_v51  ;;  %473 = vmatpush1.msra.mxu1 %v256_v52  ;;  %v326_v15 = vld [vmem:[%s762_s21 + $0x2a0] sm:$0xff]  ;;  %v328_v16 = vld [vmem:[%s762_s21 + $0x2b0] sm:$0xff]  ;;  %v323_v17 = vld [vmem:[%s762_s21 + $0x288] sm:$0xff] }
  0x2b   : > { %397 = vmatprep.subr.mxu0 %v251_v53  ;;  %474 = vmatprep.subr.mxu1 %v253_v54  ;;  %v325_v18 = vld [vmem:[%s762_s21 + $0x298] sm:$0xff]  ;;  %v322_v19 = vld [vmem:[%s762_s21 + $0x280] sm:$0xff]  ;;  %v324_v20 = vld [vmem:[%s762_s21 + $0x290] sm:$0xff] }
  0x2c   : > { %398 = vmatpush1.msra.mxu0 %v250_v55  ;;  %475 = vmatpush1.msra.mxu1 %v252_v56  ;;  %v319_v21 = vld [vmem:[%s762_s21 + $0x268] sm:$0xff]  ;;  %v321_v22 = vld [vmem:[%s762_s21 + $0x278] sm:$0xff]  ;;  %v318_v23 = vld [vmem:[%s762_s21 + $0x260] sm:$0xff] }
  0x2d   : > { %399 = vmatprep.subr.mxu0 %v247_v57  ;;  %476 = vmatprep.subr.mxu1 %v249_v58  ;;  %v320_v24 = vld [vmem:[%s762_s21 + $0x270] sm:$0xff]  ;;  %v315_v25 = vld [vmem:[%s762_s21 + $0x248] sm:$0xff]  ;;  %v317_v26 = vld [vmem:[%s762_s21 + $0x258] sm:$0xff] }
  0x2e   : > { %400 = vmatpush1.msra.mxu0 %v246_v59  ;;  %477 = vmatpush1.msra.mxu1 %v248_v60  ;;  %v314_v27 = vld [vmem:[%s762_s21 + $0x240] sm:$0xff]  ;;  %v316_v28 = vld [vmem:[%s762_s21 + $0x250] sm:$0xff]  ;;  %v311_v29 = vld [vmem:[%s762_s21 + $0x228] sm:$0xff] }
  0x2f   : > { %401 = vmatprep.subr.mxu0 %v243_v61  ;;  %478 = vmatprep.subr.mxu1 %v245_v62  ;;  %v313_v30 = vld [vmem:[%s762_s21 + $0x238] sm:$0xff]  ;;  %v310_v31 = vld [vmem:[%s762_s21 + $0x220] sm:$0xff]  ;;  %v312_v32 = vld [vmem:[%s762_s21 + $0x230] sm:$0xff] }
  0x30   : > { %402 = vmatpush1.msra.mxu0 %v242_v63  ;;  %479 = vmatpush1.msra.mxu1 %v244_v0  ;;  %v307_v33 = vld [vmem:[%s762_s21 + $0x208] sm:$0xff]  ;;  %v309_v34 = vld [vmem:[%s762_s21 + $0x218] sm:$0xff]  ;;  %v306_v35 = vld [vmem:[%s762_s21 + $0x200] sm:$0xff] }
  0x31   : > { %417 = vmatprep.subr.mxu0 %v339_v1  ;;  %494 = vmatprep.subr.mxu1 %v341_v2  ;;  %v308_v36 = vld [vmem:[%s762_s21 + $0x210] sm:$0xff]  ;;  %v238_v37 = vld [vmem:[%s892_s0] sm:$0xff]  ;;  %v241_v38 = vld [vmem:[%s892_s0 + $0x18] sm:$0xff] }
  0x32   : > { %418 = vmatpush2.msra.mxu0 %v338_v3  ;;  %495 = vmatpush2.msra.mxu1 %v340_v4  ;;  %v240_v39 = vld [vmem:[%s892_s0 + $0x10] sm:$0xff]  ;;  %v342_v44 = vld [vmem:[%s226_s4] sm:$0xf] }
  0x33   : > { %419 = vmatprep.subr.mxu0 %v335_v5  ;;  %496 = vmatprep.subr.mxu1 %v337_v6  ;;  %v347_v47 = vrot.slane %v342_v44, %v346_v42  ;;  %v355_v48 = vrot.slane %v342_v44, %v354_v43  ;;  %v351_v49 = vrot.slane %v342_v44, %v350_v45 }
  0x34   : > { %420 = vmatpush2.msra.mxu0 %v334_v7  ;;  %497 = vmatpush2.msra.mxu1 %v336_v8  ;;  %v359_v50 = vrot.slane %v342_v44, %v358_v46 }
  0x35   : > { %421 = vmatprep.subr.mxu0 %v331_v9  ;;  %498 = vmatprep.subr.mxu1 %v333_v10 }
  0x36   : > { %422 = vmatpush2.msra.mxu0 %v330_v11  ;;  %499 = vmatpush2.msra.mxu1 %v332_v12 }
  0x37   : > { %423 = vmatprep.subr.mxu0 %v327_v13  ;;  %500 = vmatprep.subr.mxu1 %v329_v14 }
  0x38   : > { %424 = vmatpush2.msra.mxu0 %v326_v15  ;;  %501 = vmatpush2.msra.mxu1 %v328_v16 }
  0x39   : > { %425 = vmatprep.subr.mxu0 %v323_v17  ;;  %502 = vmatprep.subr.mxu1 %v325_v18 }
  0x3a   : > { %426 = vmatpush2.msra.mxu0 %v322_v19  ;;  %503 = vmatpush2.msra.mxu1 %v324_v20 }
  0x3b   : > { %427 = vmatprep.subr.mxu0 %v319_v21  ;;  %504 = vmatprep.subr.mxu1 %v321_v22 }
  0x3c   : > { %428 = vmatpush2.msra.mxu0 %v318_v23  ;;  %505 = vmatpush2.msra.mxu1 %v320_v24 }
  0x3d   : > { %429 = vmatprep.subr.mxu0 %v315_v25  ;;  %506 = vmatprep.subr.mxu1 %v317_v26 }
  0x3e   : > { %430 = vmatpush2.msra.mxu0 %v314_v27  ;;  %507 = vmatpush2.msra.mxu1 %v316_v28 }
  0x3f   : > { %431 = vmatprep.subr.mxu0 %v311_v29  ;;  %508 = vmatprep.subr.mxu1 %v313_v30 }
  0x40   : > { %432 = vmatpush2.msra.mxu0 %v310_v31  ;;  %509 = vmatpush2.msra.mxu1 %v312_v32 }
  0x41   : > { %433 = vmatprep.subr.mxu0 %v307_v33  ;;  %510 = vmatprep.subr.mxu1 %v309_v34 }
  0x42   : > { %434 = vmatpush2.msra.mxu0 %v306_v35  ;;  %511 = vmatpush2.msra.mxu1 %v308_v36 }
  0x43   : > { %436 = vmatmul.mubr.f32.vlgmr.msra.gmra.mxu0 %v238_v37  ;;  %513 = vmatmul.mubr.f32.vlgmr.msra.gmra.mxu1 %v238_v37 }
  0x44   : > { %658 = vmatprep.mubr.msk.f32.mxu0 %vm364_vm0, %v241_v38  ;;  %660 = vmatprep.mubr.msk.f32.mxu1 %vm364_vm0, %v241_v38 }
  0x47   : > { %442 = vmatmul.mubr.f32.gmra.mxu0 %v240_v39  ;;  %519 = vmatmul.mubr.f32.gmra.mxu1 %v240_v39 }
 0x103   : > { %v437_v51 = vpop.f32.mrf.mxu0  ;;  %v514_v52 = vpop.f32.mrf.mxu1 }
 0x104   : > { %v438_v53 = vadd.f32 %v437_v51, %v347_v47  ;;  %v515_v54 = vadd.f32 %v514_v52, %v355_v48 }
 0x105   : > { %v439_v55 = vpop.f32.mrf.mxu0  ;;  %v516_v56 = vpop.f32.mrf.mxu1 }
 0x106   : > { %525 = vst [vmem:[%s236_s8] sm:$0xff] %v438_v53  ;;  %527 = vst [vmem:[%s236_s8 + $0x10] sm:$0xff] %v515_v54  ;;  %v440_v57 = vadd.f32 %v439_v55, %v351_v49  ;;  %v517_v58 = vadd.f32 %v516_v56, %v359_v50 }
 0x107   : > { %v443_v59 = vpop.f32.mrf.mxu0  ;;  %v520_v60 = vpop.f32.mrf.mxu1 }
 0x108   : > { %526 = vst [vmem:[%s236_s8 + $0x8] sm:$0xff] %v440_v57  ;;  %528 = vst [vmem:[%s236_s8 + $0x18] sm:$0xff] %v517_v58  ;;  %v444_v61 = vadd.f32 %v443_v59, %v347_v47  ;;  %v521_v62 = vadd.f32 %v520_v60, %v355_v48 }
 0x109   : > { %v445_v63 = vpop.f32.mrf.mxu0  ;;  %v522_v0 = vpop.f32.mrf.mxu1 }
 0x10a   : > { %529 = vst [vmem:[%s236_s8 + $0x20] sm:$0xff] %v444_v61  ;;  %531 = vst [vmem:[%s236_s8 + $0x30] sm:$0xff] %v521_v62  ;;  %v446_v1 = vadd.f32 %v445_v63, %v351_v49  ;;  %v523_v2 = vadd.f32 %v522_v0, %v359_v50 }
 0x10c   : > { %530 = vst [vmem:[%s236_s8 + $0x28] sm:$0xff] %v446_v1  ;;  %532 = vst [vmem:[%s236_s8 + $0x38] sm:$0xff] %v523_v2 }
 0x10d PF: > { %s13_s14 = sadd.s32 1, %s711_s14   ;;  %s896_s12 = smov %s707_s13 }
 0x10e   : > { %p10_p5 = scmp.ge.s32.totalorder %s13_s14, 4   ;;  %s897_s13 = smov %s899_s15 }
 0x110   :  { %12 = sbr.rel (!%p10_p5) target bundleno = 2 (0x2), region = 68 }

// kernel: bidaf_forward.23
= control target key start
LH: loop header
LB: loop body
LE: loop exit
PB: predicated region body
PF: predicated region fallthrough
CT: control target
= control target key end

     0   :  { %s996_s0 = inlined_call_operand.vmem [shape: f32[2,8,200], index: 0, kind: input, shape index: {}]   ;;  %s997_s1 = inlined_call_operand.vmem [shape: f32[2,4,200], index: 1, kind: input, shape index: {}]   ;;  %s998_s2 = inlined_call_operand.vmem [shape: f32[1,200], index: 2, kind: input, shape index: {}]   ;;  %s999_s3 = inlined_call_operand.vmem [shape: f32[1,200], index: 3, kind: input, shape index: {}]   ;;  %s1000_s4 = inlined_call_operand.vmem [shape: f32[1,200], index: 4, kind: input, shape index: {}]   ;;  %s1001_s5 = inlined_call_operand.<no memory space> [shape: f32[1,1], index: 5, kind: input, shape index: {}]   ;;  %s1002_s6 = inlined_call_operand.vmem [shape: f32[2,8,800], index: 6, kind: output, shape index: {0}]   ;;  %s1003_s7 = inlined_call_operand.hbm [shape: f32[2,1,8], index: 7, kind: output, shape index: {1}]  }
   0x1   :  { %v13_v0 = vstv %s1001_s5 }
   0x2   :  { %14 = vst [vmem:[#allocation2] sm:$0x1] %v13_v0 }
   0x3   :  { %v32_v1 = vld [vmem:[%s997_s1] sm:$0xff]  ;;  %vm52_vm0 = vcmask 588800   ;;  %v33_v2 = vld [vmem:[%s997_s1 + $0x8] sm:$0xff]  ;;  %v38_v3 = vlaneseq  ;;  %v846_v9 = vld [vmem:[%s996_s0 + $0x10] sm:$0xff]  ;;  %v778_v10 = vmov 0  }
   0x4   :  { %v108_v4 = vcombine.high %v32_v1, %v32_v1  ;;  %v185_v5 = vcombine.high %v33_v2, %v33_v2  ;;  %v837_v6 = vld [vmem:[%s996_s0] sm:$0xff]  ;;  %736 = vset.pattern.permute.xlu0 %v778_v10  ;;  %737 = vset.pattern.permute.xlu1 %v778_v10  ;;  %678 = vst [vmem:[%s1002_s6 + $0x38] sm:$0xff] %v846_v9 }
   0x5   :  { %v39_v7 = vshrl.u32 %v38_v3, 7  ;;  %v264_v8 = vand.u32 127, %v38_v3  ;;  %670 = vst [vmem:[%s1002_s6] sm:$0xff] %v837_v6  ;;  %v36_v11 = vld [vmem:[%s1000_s4] sm:$0x3] }
   0x6   :  { %718 = vmatprep.subr.msk.mxu0 %vm52_vm0, %v108_v4  ;;  %720 = vmatprep.subr.msk.mxu1 %vm52_vm0, %v185_v5  ;;  %v34_v12 = vld [vmem:[%s998_s2] sm:$0x3] }
   0x7   :  { %15 = vsyncpa [#allocation4], 0  ;;  %145 = vmatpush1.xpose.msra.mxu0 %v32_v1  ;;  %222 = vmatpush1.xpose.msra.mxu1 %v33_v2  ;;  %v860_v13 = vsub.s32 0, %v39_v7  ;;  %v862_v14 = vsub.s32 1, %v39_v7  ;;  %v864_v15 = vsub.s32 %v264_v8, %v39_v7  ;;  %v35_v16 = vld [vmem:[%s999_s3] sm:$0x3] }
   0x8   :  { %vm80_vm1 = vcmask 1043456   ;;  %v872_v17 = vld [vmem:[%s996_s0 + $0x8] sm:$0xff]  ;;  %v877_v18 = vld [vmem:[%s996_s0 + $0x18] sm:$0xff]  ;;  %vm82_vm2 = vcmask 584704   ;;  %vm308_vm3 = vcmask 31744   ;;  %vm273_vm4 = vcmask 1041409  }
   0x9   :  { %723 = vmatprep.subr.msk.mxu0 %vm80_vm1, %v108_v4  ;;  %726 = vmatprep.subr.msk.mxu1 %vm80_vm1, %v185_v5  ;;  %v96_v19 = vrot.slane %v36_v11, %v860_v13  ;;  %v100_v20 = vrot.slane %v36_v11, %v862_v14  ;;  %v41_v21 = vrot.slane %v34_v12, %v860_v13  ;;  %v722_v48 = vld [vmem:[#allocation2] ss:$0 sm:$0xff]  ;;  %vm499_vm5 = vcmask 58368   ;;  %s780_s0 = smov 72   ;;  %s781_s3 = smov 16  }
   0xa   :  { %v45_v22 = vrot.slane %v34_v12, %v862_v14  ;;  %v65_v23 = vrot.slane %v35_v16, %v860_v13  ;;  %v69_v24 = vrot.slane %v35_v16, %v862_v14  ;;  %vm695_vm6 = vcmask 57344   ;;  %s782_s21 = smov [#allocation3]   ;;  %s783_s23 = smov 88  }
   0xb   :  { %v104_v25 = vmul.f32 %v100_v20, %v872_v17  ;;  %v106_v26 = vmul.f32 %v100_v20, %v877_v18  ;;  %v103_v27 = vmul.f32 %v96_v19, %v837_v6  ;;  %v105_v28 = vmul.f32 %v96_v19, %v846_v9  ;;  %s705_s22 = sshll.u32 %s782_s21, 4  ;;  %s706_s22 = int_to_ptr.vmem [resolvable:$true] %s705_s22 }
   0xc   :  { %v48_v29 = vmul.f32 %v41_v21, %v837_v6  ;;  %v49_v30 = vmul.f32 %v45_v22, %v872_v17  ;;  %v70_v31 = vcombine.low %v65_v23, %v69_v24  ;;  %v50_v32 = vmul.f32 %v41_v21, %v846_v9  ;;  %s756_s26 = scalar_lea.vmem %s706_s22, 32  ;;  %p761_p1 = scmp.lt.s32.totalorder %s706_s22, %s706_s22 }
   0xd   :  { %719 = vmatprep.mubr.msk.f32.mxu0 %vm52_vm0, %v104_v25  ;;  %721 = vmatprep.mubr.msk.f32.mxu1 %vm52_vm0, %v106_v26  ;;  %v51_v33 = vmul.f32 %v45_v22, %v877_v18  ;;  %v779_v25 = vmov 0.0   ;;  %vm636_vm7 = vcmask 130048   ;;  %p757_p0 = scmp.ne.s32.totalorder %s706_s22, %s756_s26  ;;  %p762_p2 = scmp.lt.s32.totalorder %s756_s26, %s756_s26 }
   0xe   :  { %179 = vmatmul.mubr.f32.vlgmr.msra.gmra.mxu0 %v103_v27  ;;  %256 = vmatmul.mubr.f32.vlgmr.msra.gmra.mxu1 %v105_v28  ;;  %v53_v34 = vsel %vm52_vm0, %v49_v30, 0.0  ;;  %v72_v35 = vmul.f32 %v70_v31, %v32_v1  ;;  %v73_v36 = vmul.f32 %v70_v31, %v33_v2 }
   0xf   :  { %v54_v37 = vadd.f32 %v53_v34, %v48_v29  ;;  %v57_v38 = vsel %vm52_vm0, %v51_v33, 0.0  ;;  %724 = vmatpush1.msk.msra.mxu0 %vm80_vm1, %v32_v1  ;;  %727 = vmatpush1.msk.msra.mxu1 %vm80_vm1, %v33_v2  ;;  %p763_p3 = por %p762_p2, %p761_p1 }
  0x10   :  { %v76_v39 = vcombine.high %v72_v35, %v72_v35  ;;  %v81_v40 = vsel %vm80_vm1, %v72_v35, 0.0  ;;  %v77_v41 = vcombine.high %v73_v36, %v73_v36  ;;  %v58_v42 = vadd.f32 %v57_v38, %v50_v32  ;;  %402 = vmatprep.mubr.f32.mxu0 %v779_v25  ;;  %480 = vmatprep.mubr.f32.mxu1 %v779_v25 }
  0x11   :  { %55 = vadd.xlane.f32.xlu0 %v54_v37  ;;  %v87_v44 = vsel %vm80_vm1, %v73_v36, 0.0  ;;  %p764_p4 = pnand %p763_p3, %p757_p0 }
  0x12   :  { %v83_v43 = vsel %vm82_vm2, %v76_v39, 0.0  ;;  %v88_v45 = vsel %vm82_vm2, %v77_v41, 0.0 }
  0x13   :  { %v84_v46 = vadd.f32 %v83_v43, %v81_v40  ;;  %v89_v47 = vadd.f32 %v88_v45, %v87_v44 }
  0x15   :  { %85 = vadd.xlane.f32.xlu1 %v84_v46  ;;  %59 = vadd.xlane.f32.xlu0 %v58_v42 }
  0x19   :  { %90 = vadd.xlane.f32.xlu1 %v89_v47 }
  0x2b   :  { %303 = vperm.xlu0 %736, %v722_v48  }
  0x9a   :  { %v56_v50 = vpop.xlane.xlu0 %55 }
  0x9e   :  { %v86_v49 = vpop.xlane.xlu1 %85  ;;  %v60_v52 = vpop.xlane.xlu0 %59 }
  0x9f   :  { %v268_v53 = vrot.slane %v86_v49, %v864_v15 }
  0xa2   :  { %v91_v51 = vpop.xlane.xlu1 %90 }
  0xa3   :  { %v272_v54 = vrot.slane %v91_v51, %v864_v15 }
  0xa6   :  { %v304_v59 = vpop.permute.xlu0 %303 }
  0xce   :  { %v180_v55 = vpop.f32.mrf.mxu0  ;;  %v257_v56 = vpop.f32.mrf.mxu1 }
  0xcf   :  { %v181_v57 = vadd.f32 %v180_v55, %v56_v50  ;;  %v258_v58 = vadd.f32 %v257_v56, %v60_v52 }
  0xd0   :  { %v182_v60 = vpop.f32.mrf.mxu0  ;;  %v259_v61 = vpop.f32.mrf.mxu1 }
  0xd1   :  { %v294_v62 = vadd.f32 %v268_v53, %v181_v57  ;;  %v295_v63 = vadd.f32 %v272_v54, %v258_v58 }
  0xd3   :  { %v306_v0 = vadd.f32 %v304_v59, %v294_v62  ;;  %v307_v1 = vadd.f32 %v304_v59, %v295_v63 }
  0xd5   :  { %v309_v2 = vsel %vm308_vm3, %v306_v0, -inf  ;;  %v312_v3 = vsel %vm308_vm3, %v307_v1, -inf }
  0xd6   :  { %310 = vmax.xlane.f32.xlu1 %v309_v2 }
  0xda   :  { %313 = vmax.xlane.f32.xlu1 %v312_v3 }
 0x15f   :  { %v311_v4 = vpop.xlane.xlu1 %310 }
 0x160   :  { %v315_v5 = vsub.f32 %v306_v0, %v311_v4  ;;  %v492_v10 = vrot.slane %v311_v4, %v864_v15 }
 0x162   :  { %v317_v7 = vmul.f32 1.442695, %v315_v5 }
 0x163   :  { %v314_v8 = vpop.xlane.xlu1 %313 }
 0x164   :  { %740 = vpow2.f32 %v317_v7  ;;  %v316_v11 = vsub.f32 %v307_v1, %v314_v8  ;;  %v496_v12 = vrot.slane %v314_v8, %v864_v15 }
 0x166   :  { %v319_v16 = vmul.f32 1.442695, %v316_v11  ;;  %v497_v19 = vsel %vm273_vm4, %v496_v12, %v492_v10 }
 0x167   :  { %v500_v20 = vsel %vm499_vm5, %v497_v19, -inf }
 0x168   :  { %742 = vpow2.f32 %v319_v16  ;;  %501 = vmax.xlane.f32.xlu1 %v500_v20 }
 0x171   :  { %v741_v21 = vpop.eup %740 }
 0x172   :  { %v321_v22 = vsel %vm308_vm3, %v741_v21, 0.0 }
 0x173   :  { %322 = vadd.xlane.f32.xlu1 %v321_v22 }
 0x175   :  { %v743_v23 = vpop.eup %742 }
 0x176   :  { %v324_v24 = vsel %vm308_vm3, %v743_v23, 0.0 }
 0x177   :  { %325 = vadd.xlane.f32.xlu1 %v324_v24 }
 0x1f1   :  { %v502_v26 = vpop.xlane.xlu1 %501 }
 0x1f2   :  { %v507_v27 = vrot.slane %v502_v26, %v860_v13  ;;  %v511_v28 = vrot.slane %v502_v26, %v862_v14 }
 0x1f4   :  { %v514_v29 = vsub.f32 %v311_v4, %v507_v27  ;;  %v515_v30 = vsub.f32 %v314_v8, %v511_v28 }
 0x1f6   :  { %v516_v31 = vmul.f32 1.442695, %v514_v29  ;;  %v518_v32 = vmul.f32 1.442695, %v515_v30 }
 0x1f8   :  { %744 = vpow2.f32 %v516_v31 }
 0x1f9   :  { %746 = vpow2.f32 %v518_v32 }
 0x1fc   :  { %v323_v33 = vpop.xlane.xlu1 %322 }
 0x1fd   :  { %748 = vrcp.f32 %v323_v33 }
 0x200   :  { %v326_v34 = vpop.xlane.xlu1 %325 }
 0x201   :  { %750 = vrcp.f32 %v326_v34 }
 0x205   :  { %v745_v35 = vpop.eup %744 }
 0x206   :  { %523 = vperm.xlu1 %737, %v745_v35   ;;  %v747_v36 = vpop.eup %746 }
 0x20a   :  { %v749_v37 = vpop.eup %748  ;;  %526 = vperm.xlu1 %737, %v747_v36  }
 0x20b   :  { %v328_v38 = vmul.f32 %v749_v37, %v741_v21 }
 0x20d   :  { %725 = vmatmul.mubr.msk.f32.vlgmr.msra.gmra.mxu0 %vm308_vm3, %v328_v38 }
 0x20e   :  { %v751_v39 = vpop.eup %750 }
 0x20f   :  { %v330_v40 = vmul.f32 %v751_v39, %v743_v23 }
 0x211   :  { %728 = vmatmul.mubr.msk.f32.vlgmr.msra.gmra.mxu1 %vm308_vm3, %v330_v40 }
 0x281   :  { %v524_v41 = vpop.permute.xlu1 %523 }
 0x282   :  { %v531_v43 = vrot.slane %v524_v41, %v864_v15 }
 0x285   :  { %v527_v42 = vpop.permute.xlu1 %526 }
 0x286   :  { %v535_v44 = vrot.slane %v527_v42, %v864_v15 }
 0x288   :  { %v536_v45 = vsel %vm273_vm4, %v535_v44, %v531_v43 }
 0x289   :  { %v538_v46 = vsel %vm499_vm5, %v536_v45, 0.0 }
 0x28a   :  { %539 = vadd.xlane.f32.xlu1 %v538_v46 }
 0x2cd   :  { %v404_v56 = vpop.f32.mrf.mxu0 }
 0x2ce   :  { %v596_v57 = vmul.f32 %v404_v56, %v837_v6 }
 0x2cf   :  { %v406_v58 = vpop.f32.mrf.mxu0 }
 0x2d0   :  { %v597_v59 = vmul.f32 %v406_v58, %v872_v17 }
 0x2d1   :  { %v482_v47 = vpop.f32.mrf.mxu1 }
 0x2d3   :  { %v484_v48 = vpop.f32.mrf.mxu1 }
 0x2d4   :  { %614 = vrot.lane.b32.xlu1 %v484_v48, %s780_s0 }
 0x313   :  { %v540_v49 = vpop.xlane.xlu1 %539 }
 0x314   :  { %v545_v50 = vrot.slane %v540_v49, %v860_v13  ;;  %v549_v51 = vrot.slane %v540_v49, %v862_v14  ;;  %v598_v13 = vmul.f32 %v482_v47, %v846_v9  ;;  %v599_v14 = vmul.f32 %v484_v48, %v877_v18 }
 0x316   :  { %752 = vrcp.f32 %v545_v50 }
 0x317   :  { %754 = vrcp.f32 %v549_v51 }
 0x323   :  { %v753_v52 = vpop.eup %752 }
 0x324   :  { %v553_v53 = vmul.f32 %v753_v52, %v745_v35  ;;  %v755_v54 = vpop.eup %754 }
 0x325   :  { %v555_v55 = vmul.f32 %v755_v54, %v747_v36 }
 0x326   :  { %558 = vperm.xlu0 %736, %v553_v53  }
 0x32a   :  { %563 = vperm.xlu0 %736, %v555_v55  }
 0x32e   :  { %628 = vrot.lane.b32.xlu0 %v596_v57, %s781_s3 }
 0x332   :  { %630 = vrot.lane.b32.xlu0 %v597_v59, %s781_s3 }
 0x336   :  { %632 = vrot.lane.b32.xlu0 %v598_v13, %s781_s3 }
 0x33a   :  { %634 = vrot.lane.b32.xlu0 %v599_v14, %s781_s3 }
 0x33e   :  { %608 = vrot.lane.b32.xlu0 %v404_v56, %s780_s0 }
 0x342   :  { %610 = vrot.lane.b32.xlu0 %v406_v58, %s780_s0 }
 0x346   :  { %612 = vrot.lane.b32.xlu0 %v482_v47, %s780_s0  ;;  %v615_v36 = vpop.permute.xlu1 %614 }
 0x3a1   :  { %v559_v60 = vpop.permute.xlu0 %558 }
 0x3a2   :  { %v566_v61 = vmul.f32 %v559_v60, %v837_v6  ;;  %v567_v62 = vmul.f32 %v559_v60, %v872_v17  ;;  %v688_v63 = vrot.slane %v559_v60, %v864_v15 }
 0x3a4   :  { %v570_v0 = vrot.slane %v566_v61, 4  ;;  %v576_v1 = vsel %vm52_vm0, %v567_v62, 0.0  ;;  %696 = vst.msk [vmem:[#allocation3] sm:$0x1] %vm695_vm6, %v688_v63 }
 0x3a5   :  { %v577_v2 = vrot.slane %v576_v1, 4  ;;  %v564_v3 = vpop.permute.xlu0 %563 }
 0x3a6   :  { %v571_v4 = vadd.f32 %v570_v0, %v566_v61  ;;  %v568_v5 = vmul.f32 %v564_v3, %v846_v9  ;;  %v569_v7 = vmul.f32 %v564_v3, %v877_v18  ;;  %v692_v8 = vrot.slane %v564_v3, %v864_v15 }
 0x3a7   :  { %v578_v10 = vadd.f32 %v577_v2, %v576_v1 }
 0x3a8   :  { %v572_v11 = vrot.slane %v571_v4, 2  ;;  %v583_v12 = vrot.slane %v568_v5, 4  ;;  %v589_v16 = vsel %vm52_vm0, %v569_v7, 0.0  ;;  %697 = vst.msk [vmem:[#allocation3 + $0x1] sm:$0x1] %vm695_vm6, %v692_v8 }
 0x3a9   :  { %v579_v19 = vrot.slane %v578_v10, 2  ;;  %v590_v20 = vrot.slane %v589_v16, 4  ;;  %v629_v21 = vpop.permute.xlu0 %628 }
 0x3aa   :  { %v573_v22 = vadd.f32 %v572_v11, %v571_v4  ;;  %v584_v23 = vadd.f32 %v583_v12, %v568_v5 }
 0x3ab   :  { %v591_v24 = vadd.f32 %v590_v20, %v589_v16  ;;  %v580_v27 = vadd.f32 %v579_v19, %v578_v10 }
 0x3ac   :  { %v585_v25 = vrot.slane %v584_v23, 2  ;;  %v574_v26 = vrot.slane %v573_v22, 1 }
 0x3ad   :  { %v592_v28 = vrot.slane %v591_v24, 2  ;;  %v631_v29 = vpop.permute.xlu0 %630  ;;  %v581_v34 = vrot.slane %v580_v27, 1 }
 0x3ae   :  { %v586_v15 = vadd.f32 %v585_v25, %v584_v23  ;;  %v637_v30 = vsel %vm636_vm7, %v629_v21, %v631_v29  ;;  %v575_v31 = vadd.f32 %v574_v26, %v573_v22 }
 0x3af   :  { %v593_v35 = vadd.f32 %v592_v28, %v591_v24 }
 0x3b0   :  { %v600_v32 = vmul.f32 %v575_v31, %v837_v6  ;;  %v587_v33 = vrot.slane %v586_v15, 1 }
 0x3b1   :  { %v633_v37 = vpop.permute.xlu0 %632 }
 0x3b2   :  { %v667_v38 = vsel %vm636_vm7, %v615_v36, %v633_v37  ;;  %647 = vrot.lane.b32.xlu0 %v600_v32, %s783_s23  ;;  %v588_v39 = vadd.f32 %v587_v33, %v586_v15 }
 0x3b3   :  { %681 = vst [vmem:[%s1002_s6 + $0x50] sm:$0xff] %v667_v38 }
 0x3b4   :  { %767 = shalt.err (!%p764_p4)
}
 0x3b5   :  { %s784_s27 = smov 1   ;;  %v602_v6 = vmul.f32 %v588_v39, %v846_v9  ;;  %v582_v40 = vadd.f32 %v581_v34, %v580_v27  ;;  %v594_v41 = vrot.slane %v593_v35, 1  ;;  %v635_v42 = vpop.permute.xlu0 %634  ;;  %vm655_vm8 = vcmask 719872  }
 0x3b6   :  { %711 = dma.vmem_to_hbm [thread:$0]  %s706_s22, 32, %s1003_s7, [#allocation4], %s781_s3, %s781_s3, %s784_s27   ;;  %v638_v43 = vsel %vm636_vm7, %v633_v37, %v635_v42  ;;  %vm676_vm9 = vcmask 261120  }
 0x3b7   :  { %651 = vrot.lane.b32.xlu0 %v602_v6, %s783_s23  ;;  %v601_v44 = vmul.f32 %v582_v40, %v872_v17  ;;  %v595_v45 = vadd.f32 %v594_v41, %v593_v35 }
 0x3b9   :  { %v609_v46 = vpop.permute.xlu0 %608  ;;  %v603_v9 = vmul.f32 %v595_v45, %v877_v18 }
 0x3ba   :  { %v664_v47 = vsel %vm52_vm0, %v872_v17, %v609_v46 }
 0x3bb   :  { %649 = vrot.lane.b32.xlu0 %v601_v44, %s783_s23  ;;  %671 = vst [vmem:[%s1002_s6 + $0x8] sm:$0xff] %v664_v47 }
 0x3bd   :  { %v611_v48 = vpop.permute.xlu0 %610 }
 0x3be   :  { %v616_v49 = vsel %vm52_vm0, %v609_v46, %v611_v48  ;;  %v666_v50 = vsel %vm636_vm7, %v611_v48, %v629_v21 }
 0x3bf   :  { %653 = vrot.lane.b32.xlu0 %v603_v9, %s783_s23  ;;  %672 = vst [vmem:[%s1002_s6 + $0x10] sm:$0xff] %v616_v49  ;;  %673 = vst [vmem:[%s1002_s6 + $0x18] sm:$0xff] %v666_v50 }
 0x3c1   :  { %v613_v17 = vpop.permute.xlu0 %612 }
 0x3c2   :  { %v617_v51 = vsel %vm52_vm0, %v613_v17, %v615_v36  ;;  %v665_v52 = vsel %vm52_vm0, %v877_v18, %v613_v17 }
 0x3c3   :  { %679 = vst [vmem:[%s1002_s6 + $0x40] sm:$0xff] %v665_v52  ;;  %680 = vst [vmem:[%s1002_s6 + $0x48] sm:$0xff] %v617_v51 }
 0x424   :  { %v648_v53 = vpop.permute.xlu0 %647 }
 0x425   :  { %v668_v54 = vsel %vm655_vm8, %v637_v30, %v648_v53 }
 0x426   :  { %674 = vst [vmem:[%s1002_s6 + $0x20] sm:$0xff] %v668_v54 }
 0x429   :  { %v652_v55 = vpop.permute.xlu0 %651 }
 0x42a   :  { %v669_v56 = vsel %vm655_vm8, %v638_v43, %v652_v55 }
 0x42b   :  { %682 = vst [vmem:[%s1002_s6 + $0x58] sm:$0xff] %v669_v56 }
 0x42d   :  { %v650_v18 = vpop.permute.xlu0 %649 }
 0x42e   :  { %v656_v57 = vsel %vm655_vm8, %v648_v53, %v650_v18  ;;  %677 = vst.msk [vmem:[%s1002_s6 + $0x30] sm:$0xff] %vm676_vm9, %v650_v18 }
 0x42f   :  { %675 = vst [vmem:[%s1002_s6 + $0x28] sm:$0xff] %v656_v57 }
 0x431   :  { %v654_v58 = vpop.permute.xlu0 %653 }
 0x432   :  { %v657_v59 = vsel %vm655_vm8, %v652_v55, %v654_v58  ;;  %684 = vst.msk [vmem:[%s1002_s6 + $0x68] sm:$0xff] %vm676_vm9, %v654_v58 }
 0x433   :  { %683 = vst [vmem:[%s1002_s6 + $0x60] sm:$0xff] %v657_v59 }
 0x434   :  { %776 = dma.done.wait [#allocation4], 32  }
 0x435   :  { %777 = vsyncadd [#allocation4], 4294967264 }
 0x436   :  { %717 = vsyncpa [#allocation4], 1 }

// kernel: bidaf_forward.28
= control target key start
LH: loop header
LB: loop body
LE: loop exit
PB: predicated region body
PF: predicated region fallthrough
CT: control target
= control target key end

     0   :  { %s419_s0 = inlined_call_operand.vmem [shape: f32[2,8,800], index: 0, kind: input, shape index: {}]   ;;  %s420_s1 = inlined_call_operand.vmem [shape: f32[2,8,200], index: 1, kind: input, shape index: {}]   ;;  %s421_s2 = inlined_call_operand.vmem [shape: f32[1,800], index: 2, kind: input, shape index: {}]   ;;  %s422_s3 = inlined_call_operand.vmem [shape: f32[1,200], index: 3, kind: input, shape index: {}]   ;;  %s423_s4 = inlined_call_operand.<no memory space> [shape: f32[1,1], index: 4, kind: input, shape index: {}]   ;;  %s424_s5 = inlined_call_operand.hbm [shape: f32[2,8], index: 5, kind: output, shape index: {}]  }
   0x1   :  { %v10_v0 = vstv %s423_s4 }
   0x2   :  { %11 = vst [vmem:[#allocation2] sm:$0x1] %v10_v0 }
   0x3   :  { %v39_v1 = vlaneseq  ;;  %v289_v3 = vmov 0   ;;  %v111_v4 = vld [vmem:[%s422_s3] sm:$0x3]  ;;  %v108_v11 = vld [vmem:[%s420_s1 + $0x8] sm:$0xff]  ;;  %v25_v19 = vld [vmem:[%s419_s0 + $0x10] sm:$0xff]  ;;  %vm127_vm0 = vcmask 588800  }
   0x4   :  { %259 = vset.pattern.permute.xlu0 %v289_v3  ;;  %260 = vset.pattern.permute.xlu1 %v289_v3  ;;  %v37_v5 = vld [vmem:[%s421_s2] sm:$0x7f]  ;;  %v24_v18 = vld [vmem:[%s419_s0 + $0x8] sm:$0xff]  ;;  %v26_v22 = vld [vmem:[%s419_s0 + $0x18] sm:$0xff] }
   0x5   :  { %v325_v2 = vshrl.u32 %v39_v1, 7  ;;  %v107_v10 = vld [vmem:[%s420_s1] sm:$0xff]  ;;  %v109_v25 = vld [vmem:[%s420_s1 + $0x10] sm:$0xff] }
   0x6   :  { %v23_v12 = vld [vmem:[%s419_s0] sm:$0xff] }
   0x7   :  { %v334_v6 = vsub.s32 0, %v325_v2  ;;  %v337_v7 = vsub.s32 1, %v325_v2  ;;  %v49_v8 = vsub.s32 2, %v325_v2  ;;  %v53_v9 = vsub.s32 3, %v325_v2 }
   0x8   :  { %v57_v13 = vsub.s32 4, %v325_v2  ;;  %v61_v14 = vsub.s32 5, %v325_v2  ;;  %v65_v15 = vsub.s32 6, %v325_v2 }
   0x9   :  { %v116_v16 = vrot.slane %v111_v4, %v334_v6  ;;  %v120_v17 = vrot.slane %v111_v4, %v337_v7  ;;  %v42_v20 = vrot.slane %v37_v5, %v334_v6  ;;  %v46_v21 = vrot.slane %v37_v5, %v337_v7 }
   0xa   :  { %v50_v23 = vrot.slane %v37_v5, %v49_v8  ;;  %v54_v24 = vrot.slane %v37_v5, %v53_v9 }
   0xb   :  { %12 = vsyncpa [#allocation4], 0  ;;  %v123_v26 = vmul.f32 %v116_v16, %v107_v10  ;;  %v124_v27 = vmul.f32 %v120_v17, %v108_v11  ;;  %v74_v28 = vmul.f32 %v42_v20, %v23_v12  ;;  %v110_v29 = vld [vmem:[%s420_s1 + $0x18] sm:$0xff]  ;;  %v58_v31 = vrot.slane %v37_v5, %v57_v13  ;;  %v31_v35 = vld [vmem:[%s419_s0 + $0x40] sm:$0xff] }
   0xc   :  { %v30_v30 = vld [vmem:[%s419_s0 + $0x38] sm:$0xff]  ;;  %v62_v32 = vrot.slane %v37_v5, %v61_v14  ;;  %v75_v33 = vmul.f32 %v46_v21, %v24_v18  ;;  %v76_v34 = vmul.f32 %v50_v23, %v25_v19  ;;  %v32_v36 = vld [vmem:[%s419_s0 + $0x48] sm:$0xff]  ;;  %v27_v38 = vld [vmem:[%s419_s0 + $0x20] sm:$0xff]  ;;  %v66_v39 = vrot.slane %v37_v5, %v65_v15 }
   0xd   :  { %v128_v37 = vsel %vm127_vm0, %v124_v27, 0.0  ;;  %v77_v40 = vmul.f32 %v54_v24, %v26_v22  ;;  %v125_v41 = vmul.f32 %v116_v16, %v109_v25  ;;  %v29_v43 = vld [vmem:[%s419_s0 + $0x30] sm:$0xff]  ;;  %v126_v45 = vmul.f32 %v120_v17, %v110_v29  ;;  %v28_v48 = vld [vmem:[%s419_s0 + $0x28] sm:$0xff]  ;;  %v34_v54 = vld [vmem:[%s419_s0 + $0x58] sm:$0xff] }
   0xe   :  { %v129_v42 = vadd.f32 %v128_v37, %v123_v26  ;;  %v88_v44 = vadd.f32 %v75_v33, %v74_v28  ;;  %v33_v46 = vld [vmem:[%s419_s0 + $0x50] sm:$0xff]  ;;  %v81_v47 = vmul.f32 %v42_v20, %v30_v30  ;;  %v82_v49 = vmul.f32 %v46_v21, %v31_v35  ;;  %v36_v57 = vld [vmem:[%s419_s0 + $0x68] sm:$0xff]  ;;  %v35_v62 = vld [vmem:[%s419_s0 + $0x60] sm:$0xff]  ;;  %s290_s0 = smov [#allocation3]  }
   0xf   :  { %v83_v50 = vmul.f32 %v50_v23, %v32_v36  ;;  %v78_v51 = vmul.f32 %v58_v31, %v27_v38  ;;  %v132_v53 = vsel %vm127_vm0, %v126_v45, 0.0  ;;  %v80_v55 = vmul.f32 %v66_v39, %v29_v43  ;;  %v256_v18 = vld [vmem:[#allocation2] ss:$0 sm:$0xff]  ;;  %s248_s28 = sshll.u32 %s290_s0, 4  ;;  %s249_s28 = int_to_ptr.vmem [resolvable:$true] %s248_s28 }
  0x10   :  { %130 = vadd.xlane.f32.xlu1 %v129_v42  ;;  %v89_v52 = vadd.f32 %v88_v44, %v76_v34  ;;  %v133_v56 = vadd.f32 %v132_v53, %v125_v41  ;;  %v84_v58 = vmul.f32 %v54_v24, %v33_v46  ;;  %v98_v59 = vadd.f32 %v82_v49, %v81_v47  ;;  %s267_s29 = scalar_lea.vmem %s249_s28, 32  ;;  %p272_p1 = scmp.lt.s32.totalorder %s249_s28, %s249_s28 }
  0x11   :  { %v79_v60 = vmul.f32 %v62_v32, %v28_v48  ;;  %vm93_vm1 = vcmask 261120   ;;  %v85_v63 = vmul.f32 %v58_v31, %v34_v54  ;;  %v87_v4 = vmul.f32 %v66_v39, %v36_v57  ;;  %p268_p0 = scmp.ne.s32.totalorder %s249_s28, %s267_s29  ;;  %p273_p2 = scmp.lt.s32.totalorder %s267_s29, %s267_s29 }
  0x12   :  { %v90_v61 = vadd.f32 %v89_v52, %v77_v40  ;;  %v99_v0 = vadd.f32 %v98_v59, %v83_v50  ;;  %v94_v5 = vsel %vm93_vm1, %v80_v55, 0.0  ;;  %v86_v8 = vmul.f32 %v62_v32, %v35_v62 }
  0x13   :  { %v103_v13 = vsel %vm93_vm1, %v87_v4, 0.0  ;;  %v153_v16 = vand.u32 127, %v39_v1  ;;  %vm162_vm2 = vcmask 1041409   ;;  %vm165_vm3 = vcmask 58368   ;;  %p274_p3 = por %p273_p2, %p272_p1 }
  0x14   :  { %v91_v3 = vadd.f32 %v90_v61, %v78_v51  ;;  %134 = vadd.xlane.f32.xlu1 %v133_v56  ;;  %v100_v9 = vadd.f32 %v99_v0, %v84_v58 }
  0x15   :  { %v156_v17 = vsub.s32 %v153_v16, %v325_v2  ;;  %p275_p4 = pnand %p274_p3, %p268_p0 }
  0x16   :  { %v92_v10 = vadd.f32 %v91_v3, %v79_v60  ;;  %v101_v11 = vadd.f32 %v100_v9, %v85_v63 }
  0x18   :  { %v95_v12 = vadd.f32 %v94_v5, %v92_v10  ;;  %v102_v14 = vadd.f32 %v101_v11, %v86_v8 }
  0x1a   :  { %96 = vadd.xlane.f32.xlu0 %v95_v12  ;;  %v104_v15 = vadd.f32 %v103_v13, %v102_v14 }
  0x1e   :  { %105 = vadd.xlane.f32.xlu0 %v104_v15 }
  0x34   :  { %145 = vperm.xlu0 %259, %v256_v18  }
  0x99   :  { %v131_v19 = vpop.xlane.xlu1 %130 }
  0x9d   :  { %v135_v21 = vpop.xlane.xlu1 %134 }
  0xa3   :  { %v97_v20 = vpop.xlane.xlu0 %96 }
  0xa4   :  { %v136_v23 = vadd.f32 %v131_v19, %v97_v20 }
  0xa7   :  { %v106_v22 = vpop.xlane.xlu0 %105 }
  0xa8   :  { %v137_v24 = vadd.f32 %v135_v21, %v106_v22 }
  0xaf   :  { %v146_v25 = vpop.permute.xlu0 %145 }
  0xb0   :  { %v148_v26 = vadd.f32 %v146_v25, %v136_v23  ;;  %v149_v27 = vadd.f32 %v146_v25, %v137_v24 }
  0xb2   :  { %v157_v28 = vrot.slane %v148_v26, %v156_v17  ;;  %v161_v29 = vrot.slane %v149_v27, %v156_v17 }
  0xb4   :  { %v163_v30 = vsel %vm162_vm2, %v161_v29, %v157_v28 }
  0xb5   :  { %v166_v1 = vsel %vm165_vm3, %v163_v30, -inf }
  0xb6   :  { %167 = vmax.xlane.f32.xlu1 %v166_v1 }
 0x13f   :  { %v168_v2 = vpop.xlane.xlu1 %167 }
 0x140   :  { %v173_v31 = vrot.slane %v168_v2, %v334_v6  ;;  %v177_v32 = vrot.slane %v168_v2, %v337_v7 }
 0x142   :  { %v180_v33 = vsub.f32 %v148_v26, %v173_v31  ;;  %v181_v34 = vsub.f32 %v149_v27, %v177_v32 }
 0x144   :  { %v182_v35 = vmul.f32 1.442695, %v180_v33  ;;  %v184_v36 = vmul.f32 1.442695, %v181_v34 }
 0x146   :  { %261 = vpow2.f32 %v182_v35 }
 0x147   :  { %263 = vpow2.f32 %v184_v36 }
 0x153   :  { %v262_v37 = vpop.eup %261 }
 0x154   :  { %189 = vperm.xlu1 %260, %v262_v37   ;;  %v264_v38 = vpop.eup %263 }
 0x158   :  { %192 = vperm.xlu1 %260, %v264_v38  }
 0x1cf   :  { %v190_v39 = vpop.permute.xlu1 %189 }
 0x1d0   :  { %v197_v41 = vrot.slane %v190_v39, %v156_v17 }
 0x1d3   :  { %v193_v40 = vpop.permute.xlu1 %192 }
 0x1d4   :  { %v201_v42 = vrot.slane %v193_v40, %v156_v17 }
 0x1d6   :  { %v202_v43 = vsel %vm162_vm2, %v201_v42, %v197_v41 }
 0x1d7   :  { %v204_v44 = vsel %vm165_vm3, %v202_v43, 0.0 }
 0x1d8   :  { %205 = vadd.xlane.f32.xlu1 %v204_v44 }
 0x261   :  { %v206_v45 = vpop.xlane.xlu1 %205 }
 0x262   :  { %265 = vlog2.f32 %v206_v45 }
 0x26f   :  { %v266_v46 = vpop.eup %265 }
 0x270   :  { %v208_v47 = vmul.f32 0.6931472, %v266_v46 }
 0x272   :  { %v209_v48 = vadd.f32 %v208_v47, %v168_v2 }
 0x274   :  { %v214_v49 = vrot.slane %v209_v48, %v334_v6  ;;  %v218_v51 = vrot.slane %v209_v48, %v337_v7 }
 0x276   :  { %v221_v50 = vsub.f32 %v148_v26, %v214_v49  ;;  %v222_v52 = vsub.f32 %v149_v27, %v218_v51 }
 0x278   :  { %226 = vperm.xlu0 %259, %v221_v50  }
 0x27c   :  { %229 = vperm.xlu0 %259, %v222_v52  }
 0x2f3   :  { %v227_v53 = vpop.permute.xlu0 %226 }
 0x2f4   :  { %v234_v55 = vrot.slane %v227_v53, %v156_v17 }
 0x2f7   :  { %v230_v54 = vpop.permute.xlu0 %229 }
 0x2f8   :  { %v238_v56 = vrot.slane %v230_v54, %v156_v17 }
 0x2fa   :  { %v239_v57 = vsel %vm162_vm2, %v238_v56, %v234_v55 }
 0x2fb   :  { %241 = vst.msk [vmem:[#allocation3] sm:$0x3] %vm165_vm3, %v239_v57 }
 0x2fc   :  { %278 = shalt.err (!%p275_p4)
}
 0x2fd   :  { %251 = dma.vmem_to_hbm [thread:$0]  %s249_s28, 32, %s424_s5, [#allocation4]  }
 0x2fe   :  { %287 = dma.done.wait [#allocation4], 32  }
 0x2ff   :  { %288 = vsyncadd [#allocation4], 4294967264 }
 0x300   :  { %255 = vsyncpa [#allocation4], 1 }

// kernel: bidaf_forward.24
= control target key start
LH: loop header
LB: loop body
LE: loop exit
PB: predicated region body
PF: predicated region fallthrough
CT: control target
= control target key end

     0   :  { %s1515_s12 = smov 0   ;;  %s1517_s13 = smov 0   ;;  %s2066_s0 = inlined_call_operand.vmem [shape: f32[16,800], index: 0, kind: input, shape index: {}]   ;;  %s2067_s1 = inlined_call_operand.vmem [shape: f32[2,800,512], index: 1, kind: input, shape index: {}]   ;;  %s2068_s2 = inlined_call_operand.vmem [shape: f32[2,1,512], index: 2, kind: input, shape index: {}]   ;;  %s2069_s3 = inlined_call_operand.vmem [shape: f32[2,16,512], index: 3, kind: output, shape index: {}]  }
   0x1   :  { %s1519_s14 = smov 0  }
   0x2 LB: > { %s25_s15 = sadd.s32 1, %s1488_s13  ;;  %p1424_p0 = scmp.ge.s32.totalorder %s1492_s14, 1  ;;  %s1492_s14 = sphi %s1519_s14, %s13_s14   ;;  %s1488_s13 = sphi %s1517_s13, %s2071_s13   ;;  %s1484_s12 = sphi %s1515_s12, %s2070_s12  }
   0x3   : > { %p27_p1 = scmp.ge.s32.totalorder %s25_s15, 2  ;;  %p172_p2 = scmp.lt.s32.totalorder %s1492_s14, 3 }
   0x5   : > { %s2073_s15 = smov (%p27_p1, %s25_s15), 0  ;;  %p173_p3 = pnand %p1424_p0, %p172_p2 }
   0x6   : > { %p218_p4 = scmp.lt.s32.totalorder (!%p173_p3), %s1484_s12, 1 }
   0x7   : > { %176 = sbr.rel (%p173_p3) target bundleno = 433 (0x1b1), region = 32 }
   0xc   : > { %v239_v0 = vld [vmem:[%s2066_s0 + $0x8] sm:$0xff]  ;;  %v241_v1 = vld [vmem:[%s2066_s0 + $0x18] sm:$0xff]  ;;  %s2075_s12 = smov (!%p218_p4, %s1484_s12), 1  ;;  %vm674_vm0 = vcmask 261120  }
   0xd   : > { %745 = vmatprep.mubr.f32.mxu0 %v239_v0  ;;  %822 = vmatprep.mubr.f32.mxu1 %v241_v1  ;;  %s1436_s20 = smul.u32 3200, %s2075_s12  ;;  %s1435_s22 = sshll.u32 %s2075_s12, 6 }
   0xe   : > { %s2047_s26 = scalar_lea.vmem %s2069_s3, %s1435_s22 }
   0xf   : > { %s1545_s23 = scalar_lea.vmem %s2067_s1, %s1436_s20 }
  0x10   : > { %v313_v2 = vld [vmem:[%s1545_s23 + $0x1e8] sm:$0xff]  ;;  %v312_v4 = vld [vmem:[%s1545_s23 + $0x1e0] sm:$0xff] }
  0x11   : > { %v441_v3 = vld [vmem:[%s1545_s23 + $0x5e8] sm:$0xff]  ;;  %681 = vmatprep.subr.mxu0 %v313_v2  ;;  %v440_v5 = vld [vmem:[%s1545_s23 + $0x5e0] sm:$0xff] }
  0x12   : > { %758 = vmatprep.subr.mxu1 %v441_v3  ;;  %v309_v6 = vld [vmem:[%s1545_s23 + $0x1c8] sm:$0xff]  ;;  %682 = vmatpush1.msra.mxu0 %v312_v4  ;;  %v308_v8 = vld [vmem:[%s1545_s23 + $0x1c0] sm:$0xff] }
  0x13   : > { %v437_v7 = vld [vmem:[%s1545_s23 + $0x5c8] sm:$0xff]  ;;  %759 = vmatpush1.msra.mxu1 %v440_v5  ;;  %v436_v9 = vld [vmem:[%s1545_s23 + $0x5c0] sm:$0xff]  ;;  %683 = vmatprep.subr.mxu0 %v309_v6 }
  0x14   : > { %v305_v10 = vld [vmem:[%s1545_s23 + $0x1a8] sm:$0xff]  ;;  %760 = vmatprep.subr.mxu1 %v437_v7  ;;  %v304_v12 = vld [vmem:[%s1545_s23 + $0x1a0] sm:$0xff]  ;;  %684 = vmatpush1.msra.mxu0 %v308_v8 }
  0x15   : > { %v433_v11 = vld [vmem:[%s1545_s23 + $0x5a8] sm:$0xff]  ;;  %v432_v13 = vld [vmem:[%s1545_s23 + $0x5a0] sm:$0xff]  ;;  %761 = vmatpush1.msra.mxu1 %v436_v9  ;;  %685 = vmatprep.subr.mxu0 %v305_v10 }
  0x16   : > { %v301_v14 = vld [vmem:[%s1545_s23 + $0x188] sm:$0xff]  ;;  %762 = vmatprep.subr.mxu1 %v433_v11  ;;  %v300_v16 = vld [vmem:[%s1545_s23 + $0x180] sm:$0xff]  ;;  %686 = vmatpush1.msra.mxu0 %v304_v12 }
  0x17   : > { %v429_v15 = vld [vmem:[%s1545_s23 + $0x588] sm:$0xff]  ;;  %v428_v17 = vld [vmem:[%s1545_s23 + $0x580] sm:$0xff]  ;;  %763 = vmatpush1.msra.mxu1 %v432_v13  ;;  %687 = vmatprep.subr.mxu0 %v301_v14 }
  0x18   : > { %v297_v18 = vld [vmem:[%s1545_s23 + $0x168] sm:$0xff]  ;;  %764 = vmatprep.subr.mxu1 %v429_v15  ;;  %v296_v20 = vld [vmem:[%s1545_s23 + $0x160] sm:$0xff]  ;;  %688 = vmatpush1.msra.mxu0 %v300_v16 }
  0x19   : > { %v425_v19 = vld [vmem:[%s1545_s23 + $0x568] sm:$0xff]  ;;  %v424_v21 = vld [vmem:[%s1545_s23 + $0x560] sm:$0xff]  ;;  %765 = vmatpush1.msra.mxu1 %v428_v17  ;;  %689 = vmatprep.subr.mxu0 %v297_v18 }
  0x1a   : > { %v293_v22 = vld [vmem:[%s1545_s23 + $0x148] sm:$0xff]  ;;  %766 = vmatprep.subr.mxu1 %v425_v19  ;;  %v292_v24 = vld [vmem:[%s1545_s23 + $0x140] sm:$0xff]  ;;  %690 = vmatpush1.msra.mxu0 %v296_v20 }
  0x1b   : > { %v421_v23 = vld [vmem:[%s1545_s23 + $0x548] sm:$0xff]  ;;  %v420_v25 = vld [vmem:[%s1545_s23 + $0x540] sm:$0xff]  ;;  %767 = vmatpush1.msra.mxu1 %v424_v21  ;;  %691 = vmatprep.subr.mxu0 %v293_v22 }
  0x1c   : > { %v289_v26 = vld [vmem:[%s1545_s23 + $0x128] sm:$0xff]  ;;  %768 = vmatprep.subr.mxu1 %v421_v23  ;;  %v288_v28 = vld [vmem:[%s1545_s23 + $0x120] sm:$0xff]  ;;  %692 = vmatpush1.msra.mxu0 %v292_v24 }
  0x1d   : > { %v417_v27 = vld [vmem:[%s1545_s23 + $0x528] sm:$0xff]  ;;  %v416_v29 = vld [vmem:[%s1545_s23 + $0x520] sm:$0xff]  ;;  %769 = vmatpush1.msra.mxu1 %v420_v25  ;;  %693 = vmatprep.subr.mxu0 %v289_v26 }
  0x1e   : > { %v285_v30 = vld [vmem:[%s1545_s23 + $0x108] sm:$0xff]  ;;  %770 = vmatprep.subr.mxu1 %v417_v27  ;;  %v284_v32 = vld [vmem:[%s1545_s23 + $0x100] sm:$0xff]  ;;  %694 = vmatpush1.msra.mxu0 %v288_v28 }
  0x1f   : > { %v413_v31 = vld [vmem:[%s1545_s23 + $0x508] sm:$0xff]  ;;  %v412_v33 = vld [vmem:[%s1545_s23 + $0x500] sm:$0xff]  ;;  %771 = vmatpush1.msra.mxu1 %v416_v29  ;;  %695 = vmatprep.subr.mxu0 %v285_v30 }
  0x20   : > { %v281_v34 = vld [vmem:[%s1545_s23 + $0xe8] sm:$0xff]  ;;  %772 = vmatprep.subr.mxu1 %v413_v31  ;;  %v280_v36 = vld [vmem:[%s1545_s23 + $0xe0] sm:$0xff]  ;;  %696 = vmatpush1.msra.mxu0 %v284_v32 }
  0x21   : > { %v409_v35 = vld [vmem:[%s1545_s23 + $0x4e8] sm:$0xff]  ;;  %v408_v37 = vld [vmem:[%s1545_s23 + $0x4e0] sm:$0xff]  ;;  %773 = vmatpush1.msra.mxu1 %v412_v33  ;;  %697 = vmatprep.subr.mxu0 %v281_v34 }
  0x22   : > { %v277_v38 = vld [vmem:[%s1545_s23 + $0xc8] sm:$0xff]  ;;  %774 = vmatprep.subr.mxu1 %v409_v35  ;;  %v276_v40 = vld [vmem:[%s1545_s23 + $0xc0] sm:$0xff]  ;;  %698 = vmatpush1.msra.mxu0 %v280_v36 }
  0x23   : > { %v405_v39 = vld [vmem:[%s1545_s23 + $0x4c8] sm:$0xff]  ;;  %v404_v41 = vld [vmem:[%s1545_s23 + $0x4c0] sm:$0xff]  ;;  %775 = vmatpush1.msra.mxu1 %v408_v37  ;;  %699 = vmatprep.subr.mxu0 %v277_v38 }
  0x24   : > { %v273_v42 = vld [vmem:[%s1545_s23 + $0xa8] sm:$0xff]  ;;  %776 = vmatprep.subr.mxu1 %v405_v39  ;;  %v272_v44 = vld [vmem:[%s1545_s23 + $0xa0] sm:$0xff]  ;;  %700 = vmatpush1.msra.mxu0 %v276_v40 }
  0x25   : > { %v401_v43 = vld [vmem:[%s1545_s23 + $0x4a8] sm:$0xff]  ;;  %v400_v45 = vld [vmem:[%s1545_s23 + $0x4a0] sm:$0xff]  ;;  %777 = vmatpush1.msra.mxu1 %v404_v41  ;;  %701 = vmatprep.subr.mxu0 %v273_v42 }
  0x26   : > { %v269_v46 = vld [vmem:[%s1545_s23 + $0x88] sm:$0xff]  ;;  %778 = vmatprep.subr.mxu1 %v401_v43  ;;  %v268_v48 = vld [vmem:[%s1545_s23 + $0x80] sm:$0xff]  ;;  %702 = vmatpush1.msra.mxu0 %v272_v44 }
  0x27   : > { %v397_v47 = vld [vmem:[%s1545_s23 + $0x488] sm:$0xff]  ;;  %v396_v49 = vld [vmem:[%s1545_s23 + $0x480] sm:$0xff]  ;;  %779 = vmatpush1.msra.mxu1 %v400_v45  ;;  %703 = vmatprep.subr.mxu0 %v269_v46 }
  0x28   : > { %v265_v50 = vld [vmem:[%s1545_s23 + $0x68] sm:$0xff]  ;;  %780 = vmatprep.subr.mxu1 %v397_v47  ;;  %v264_v52 = vld [vmem:[%s1545_s23 + $0x60] sm:$0xff]  ;;  %704 = vmatpush1.msra.mxu0 %v268_v48 }
  0x29   : > { %v393_v51 = vld [vmem:[%s1545_s23 + $0x468] sm:$0xff]  ;;  %v392_v53 = vld [vmem:[%s1545_s23 + $0x460] sm:$0xff]  ;;  %781 = vmatpush1.msra.mxu1 %v396_v49  ;;  %705 = vmatprep.subr.mxu0 %v265_v50 }
  0x2a   : > { %v261_v54 = vld [vmem:[%s1545_s23 + $0x48] sm:$0xff]  ;;  %782 = vmatprep.subr.mxu1 %v393_v51  ;;  %v260_v56 = vld [vmem:[%s1545_s23 + $0x40] sm:$0xff]  ;;  %706 = vmatpush1.msra.mxu0 %v264_v52 }
  0x2b   : > { %v389_v55 = vld [vmem:[%s1545_s23 + $0x448] sm:$0xff]  ;;  %v388_v57 = vld [vmem:[%s1545_s23 + $0x440] sm:$0xff]  ;;  %783 = vmatpush1.msra.mxu1 %v392_v53  ;;  %707 = vmatprep.subr.mxu0 %v261_v54 }
  0x2c   : > { %v257_v58 = vld [vmem:[%s1545_s23 + $0x28] sm:$0xff]  ;;  %784 = vmatprep.subr.mxu1 %v389_v55  ;;  %v256_v60 = vld [vmem:[%s1545_s23 + $0x20] sm:$0xff]  ;;  %708 = vmatpush1.msra.mxu0 %v260_v56 }
  0x2d   : > { %v385_v59 = vld [vmem:[%s1545_s23 + $0x428] sm:$0xff]  ;;  %v384_v61 = vld [vmem:[%s1545_s23 + $0x420] sm:$0xff]  ;;  %785 = vmatpush1.msra.mxu1 %v388_v57  ;;  %709 = vmatprep.subr.mxu0 %v257_v58 }
  0x2e   : > { %v253_v62 = vld [vmem:[%s1545_s23 + $0x8] sm:$0xff]  ;;  %786 = vmatprep.subr.mxu1 %v385_v59  ;;  %v252_v0 = vld [vmem:[%s1545_s23] sm:$0xff]  ;;  %710 = vmatpush1.msra.mxu0 %v256_v60 }
  0x2f   : > { %v381_v63 = vld [vmem:[%s1545_s23 + $0x408] sm:$0xff]  ;;  %v380_v1 = vld [vmem:[%s1545_s23 + $0x400] sm:$0xff]  ;;  %787 = vmatpush1.msra.mxu1 %v384_v61  ;;  %711 = vmatprep.subr.mxu0 %v253_v62 }
  0x30   : > { %v377_v2 = vld [vmem:[%s1545_s23 + $0x3e8] sm:$0xff]  ;;  %788 = vmatprep.subr.mxu1 %v381_v63  ;;  %v376_v4 = vld [vmem:[%s1545_s23 + $0x3e0] sm:$0xff]  ;;  %712 = vmatpush1.msra.mxu0 %v252_v0 }
  0x31   : > { %v505_v3 = vld [vmem:[%s1545_s23 + $0x7e8] sm:$0xff]  ;;  %v504_v5 = vld [vmem:[%s1545_s23 + $0x7e0] sm:$0xff]  ;;  %789 = vmatpush1.msra.mxu1 %v380_v1  ;;  %713 = vmatprep.subr.mxu0 %v377_v2 }
  0x32   : > { %v373_v6 = vld [vmem:[%s1545_s23 + $0x3c8] sm:$0xff]  ;;  %790 = vmatprep.subr.mxu1 %v505_v3  ;;  %v372_v8 = vld [vmem:[%s1545_s23 + $0x3c0] sm:$0xff]  ;;  %714 = vmatpush2.msra.mxu0 %v376_v4  ;;  %v240_v3 = vld [vmem:[%s2066_s0 + $0x10] sm:$0xff] }
  0x33   : > { %v501_v7 = vld [vmem:[%s1545_s23 + $0x7c8] sm:$0xff]  ;;  %v500_v9 = vld [vmem:[%s1545_s23 + $0x7c0] sm:$0xff]  ;;  %791 = vmatpush2.msra.mxu1 %v504_v5  ;;  %715 = vmatprep.subr.mxu0 %v373_v6 }
  0x34   : > { %v369_v10 = vld [vmem:[%s1545_s23 + $0x3a8] sm:$0xff]  ;;  %792 = vmatprep.subr.mxu1 %v501_v7  ;;  %v368_v12 = vld [vmem:[%s1545_s23 + $0x3a0] sm:$0xff]  ;;  %716 = vmatpush2.msra.mxu0 %v372_v8 }
  0x35   : > { %v497_v11 = vld [vmem:[%s1545_s23 + $0x7a8] sm:$0xff]  ;;  %v496_v13 = vld [vmem:[%s1545_s23 + $0x7a0] sm:$0xff]  ;;  %793 = vmatpush2.msra.mxu1 %v500_v9  ;;  %717 = vmatprep.subr.mxu0 %v369_v10 }
  0x36   : > { %v365_v14 = vld [vmem:[%s1545_s23 + $0x388] sm:$0xff]  ;;  %794 = vmatprep.subr.mxu1 %v497_v11  ;;  %v364_v16 = vld [vmem:[%s1545_s23 + $0x380] sm:$0xff]  ;;  %718 = vmatpush2.msra.mxu0 %v368_v12  ;;  %v248_v11 = vld [vmem:[%s2066_s0 + $0x50] sm:$0xff] }
  0x37   : > { %v493_v15 = vld [vmem:[%s1545_s23 + $0x788] sm:$0xff]  ;;  %v492_v17 = vld [vmem:[%s1545_s23 + $0x780] sm:$0xff]  ;;  %795 = vmatpush2.msra.mxu1 %v496_v13  ;;  %719 = vmatprep.subr.mxu0 %v365_v14  ;;  %v245_v14 = vld [vmem:[%s2066_s0 + $0x38] sm:$0xff] }
  0x38   : > { %v361_v18 = vld [vmem:[%s1545_s23 + $0x368] sm:$0xff]  ;;  %796 = vmatprep.subr.mxu1 %v493_v15  ;;  %v360_v20 = vld [vmem:[%s1545_s23 + $0x360] sm:$0xff]  ;;  %720 = vmatpush2.msra.mxu0 %v364_v16 }
  0x39   : > { %v489_v19 = vld [vmem:[%s1545_s23 + $0x768] sm:$0xff]  ;;  %v488_v21 = vld [vmem:[%s1545_s23 + $0x760] sm:$0xff]  ;;  %797 = vmatpush2.msra.mxu1 %v492_v17  ;;  %721 = vmatprep.subr.mxu0 %v361_v18 }
  0x3a   : > { %v357_v22 = vld [vmem:[%s1545_s23 + $0x348] sm:$0xff]  ;;  %798 = vmatprep.subr.mxu1 %v489_v19  ;;  %v356_v24 = vld [vmem:[%s1545_s23 + $0x340] sm:$0xff]  ;;  %722 = vmatpush2.msra.mxu0 %v360_v20 }
  0x3b   : > { %v485_v23 = vld [vmem:[%s1545_s23 + $0x748] sm:$0xff]  ;;  %v484_v25 = vld [vmem:[%s1545_s23 + $0x740] sm:$0xff]  ;;  %799 = vmatpush2.msra.mxu1 %v488_v21  ;;  %723 = vmatprep.subr.mxu0 %v357_v22 }
  0x3c   : > { %v353_v26 = vld [vmem:[%s1545_s23 + $0x328] sm:$0xff]  ;;  %800 = vmatprep.subr.mxu1 %v485_v23  ;;  %v352_v28 = vld [vmem:[%s1545_s23 + $0x320] sm:$0xff]  ;;  %724 = vmatpush2.msra.mxu0 %v356_v24 }
  0x3d   : > { %v481_v27 = vld [vmem:[%s1545_s23 + $0x728] sm:$0xff]  ;;  %v480_v29 = vld [vmem:[%s1545_s23 + $0x720] sm:$0xff]  ;;  %801 = vmatpush2.msra.mxu1 %v484_v25  ;;  %725 = vmatprep.subr.mxu0 %v353_v26  ;;  %v244_v25 = vld [vmem:[%s2066_s0 + $0x30] sm:$0xff] }
  0x3e   : > { %v349_v30 = vld [vmem:[%s1545_s23 + $0x308] sm:$0xff]  ;;  %802 = vmatprep.subr.mxu1 %v481_v27  ;;  %v348_v32 = vld [vmem:[%s1545_s23 + $0x300] sm:$0xff]  ;;  %726 = vmatpush2.msra.mxu0 %v352_v28  ;;  %v315_v26 = vld [vmem:[%s1545_s23 + $0x1f8] sm:$0xff] }
  0x3f   : > { %v477_v31 = vld [vmem:[%s1545_s23 + $0x708] sm:$0xff]  ;;  %v476_v33 = vld [vmem:[%s1545_s23 + $0x700] sm:$0xff]  ;;  %803 = vmatpush2.msra.mxu1 %v480_v29  ;;  %727 = vmatprep.subr.mxu0 %v349_v30  ;;  %v314_v28 = vld [vmem:[%s1545_s23 + $0x1f0] sm:$0xff]  ;;  %v1494_v29 = vmov 0.0  }
  0x40   : > { %v345_v34 = vld [vmem:[%s1545_s23 + $0x2e8] sm:$0xff]  ;;  %804 = vmatprep.subr.mxu1 %v477_v31  ;;  %v344_v36 = vld [vmem:[%s1545_s23 + $0x2e0] sm:$0xff]  ;;  %728 = vmatpush2.msra.mxu0 %v348_v32  ;;  %v311_v31 = vld [vmem:[%s1545_s23 + $0x1d8] sm:$0xff] }
  0x41   : > { %v473_v35 = vld [vmem:[%s1545_s23 + $0x6e8] sm:$0xff]  ;;  %v472_v37 = vld [vmem:[%s1545_s23 + $0x6e0] sm:$0xff]  ;;  %805 = vmatpush2.msra.mxu1 %v476_v33  ;;  %729 = vmatprep.subr.mxu0 %v345_v34  ;;  %v310_v33 = vld [vmem:[%s1545_s23 + $0x1d0] sm:$0xff] }
  0x42   : > { %v341_v38 = vld [vmem:[%s1545_s23 + $0x2c8] sm:$0xff]  ;;  %806 = vmatprep.subr.mxu1 %v473_v35  ;;  %v340_v40 = vld [vmem:[%s1545_s23 + $0x2c0] sm:$0xff]  ;;  %730 = vmatpush2.msra.mxu0 %v344_v36  ;;  %v307_v35 = vld [vmem:[%s1545_s23 + $0x1b8] sm:$0xff] }
  0x43   : > { %v469_v39 = vld [vmem:[%s1545_s23 + $0x6c8] sm:$0xff]  ;;  %v468_v41 = vld [vmem:[%s1545_s23 + $0x6c0] sm:$0xff]  ;;  %807 = vmatpush2.msra.mxu1 %v472_v37  ;;  %731 = vmatprep.subr.mxu0 %v341_v38  ;;  %v306_v37 = vld [vmem:[%s1545_s23 + $0x1b0] sm:$0xff] }
  0x44   : > { %v337_v42 = vld [vmem:[%s1545_s23 + $0x2a8] sm:$0xff]  ;;  %808 = vmatprep.subr.mxu1 %v469_v39  ;;  %v336_v44 = vld [vmem:[%s1545_s23 + $0x2a0] sm:$0xff]  ;;  %732 = vmatpush2.msra.mxu0 %v340_v40  ;;  %v303_v39 = vld [vmem:[%s1545_s23 + $0x198] sm:$0xff] }
  0x45   : > { %v465_v43 = vld [vmem:[%s1545_s23 + $0x6a8] sm:$0xff]  ;;  %v464_v45 = vld [vmem:[%s1545_s23 + $0x6a0] sm:$0xff]  ;;  %809 = vmatpush2.msra.mxu1 %v468_v41  ;;  %733 = vmatprep.subr.mxu0 %v337_v42  ;;  %v302_v41 = vld [vmem:[%s1545_s23 + $0x190] sm:$0xff] }
  0x46   : > { %v333_v46 = vld [vmem:[%s1545_s23 + $0x288] sm:$0xff]  ;;  %810 = vmatprep.subr.mxu1 %v465_v43  ;;  %v332_v48 = vld [vmem:[%s1545_s23 + $0x280] sm:$0xff]  ;;  %734 = vmatpush2.msra.mxu0 %v336_v44  ;;  %v299_v43 = vld [vmem:[%s1545_s23 + $0x178] sm:$0xff] }
  0x47   : > { %v461_v47 = vld [vmem:[%s1545_s23 + $0x688] sm:$0xff]  ;;  %v460_v49 = vld [vmem:[%s1545_s23 + $0x680] sm:$0xff]  ;;  %811 = vmatpush2.msra.mxu1 %v464_v45  ;;  %735 = vmatprep.subr.mxu0 %v333_v46  ;;  %v298_v45 = vld [vmem:[%s1545_s23 + $0x170] sm:$0xff] }
  0x48   : > { %v329_v50 = vld [vmem:[%s1545_s23 + $0x268] sm:$0xff]  ;;  %812 = vmatprep.subr.mxu1 %v461_v47  ;;  %v328_v52 = vld [vmem:[%s1545_s23 + $0x260] sm:$0xff]  ;;  %736 = vmatpush2.msra.mxu0 %v332_v48  ;;  %v295_v47 = vld [vmem:[%s1545_s23 + $0x158] sm:$0xff] }
  0x49   : > { %v457_v51 = vld [vmem:[%s1545_s23 + $0x668] sm:$0xff]  ;;  %v456_v53 = vld [vmem:[%s1545_s23 + $0x660] sm:$0xff]  ;;  %813 = vmatpush2.msra.mxu1 %v460_v49  ;;  %737 = vmatprep.subr.mxu0 %v329_v50  ;;  %v294_v49 = vld [vmem:[%s1545_s23 + $0x150] sm:$0xff] }
  0x4a   : > { %v325_v54 = vld [vmem:[%s1545_s23 + $0x248] sm:$0xff]  ;;  %814 = vmatprep.subr.mxu1 %v457_v51  ;;  %v324_v56 = vld [vmem:[%s1545_s23 + $0x240] sm:$0xff]  ;;  %738 = vmatpush2.msra.mxu0 %v328_v52  ;;  %v291_v51 = vld [vmem:[%s1545_s23 + $0x138] sm:$0xff] }
  0x4b   : > { %v453_v55 = vld [vmem:[%s1545_s23 + $0x648] sm:$0xff]  ;;  %v452_v57 = vld [vmem:[%s1545_s23 + $0x640] sm:$0xff]  ;;  %815 = vmatpush2.msra.mxu1 %v456_v53  ;;  %739 = vmatprep.subr.mxu0 %v325_v54  ;;  %v290_v53 = vld [vmem:[%s1545_s23 + $0x130] sm:$0xff] }
  0x4c   : > { %v321_v58 = vld [vmem:[%s1545_s23 + $0x228] sm:$0xff]  ;;  %816 = vmatprep.subr.mxu1 %v453_v55  ;;  %v320_v60 = vld [vmem:[%s1545_s23 + $0x220] sm:$0xff]  ;;  %740 = vmatpush2.msra.mxu0 %v324_v56  ;;  %v287_v55 = vld [vmem:[%s1545_s23 + $0x118] sm:$0xff] }
  0x4d   : > { %v449_v59 = vld [vmem:[%s1545_s23 + $0x628] sm:$0xff]  ;;  %v448_v61 = vld [vmem:[%s1545_s23 + $0x620] sm:$0xff]  ;;  %817 = vmatpush2.msra.mxu1 %v452_v57  ;;  %741 = vmatprep.subr.mxu0 %v321_v58  ;;  %v286_v57 = vld [vmem:[%s1545_s23 + $0x110] sm:$0xff] }
  0x4e   : > { %v317_v62 = vld [vmem:[%s1545_s23 + $0x208] sm:$0xff]  ;;  %818 = vmatprep.subr.mxu1 %v449_v59  ;;  %v316_v0 = vld [vmem:[%s1545_s23 + $0x200] sm:$0xff]  ;;  %742 = vmatpush2.msra.mxu0 %v320_v60  ;;  %v283_v59 = vld [vmem:[%s1545_s23 + $0xf8] sm:$0xff] }
  0x4f   : > { %v445_v63 = vld [vmem:[%s1545_s23 + $0x608] sm:$0xff]  ;;  %v444_v1 = vld [vmem:[%s1545_s23 + $0x600] sm:$0xff]  ;;  %819 = vmatpush2.msra.mxu1 %v448_v61  ;;  %743 = vmatprep.subr.mxu0 %v317_v62  ;;  %v282_v61 = vld [vmem:[%s1545_s23 + $0xf0] sm:$0xff] }
  0x50   : > { %v1678_v2 = vld [vmem:[%s2066_s0] sm:$0xff]  ;;  %820 = vmatprep.subr.mxu1 %v445_v63  ;;  %v569_v4 = vld [vmem:[%s1545_s23 + $0x9e8] sm:$0xff]  ;;  %744 = vmatpush2.msra.mxu0 %v316_v0  ;;  %v279_v63 = vld [vmem:[%s1545_s23 + $0xd8] sm:$0xff] }
  0x51   : > { %v649_v5 = vld [vmem:[%s1545_s23 + $0xc68] sm:$0xff]  ;;  %821 = vmatpush2.msra.mxu1 %v444_v1  ;;  %v568_v6 = vld [vmem:[%s1545_s23 + $0x9e0] sm:$0xff]  ;;  %746 = vmatmul.mubr.f32.vlgmr.msra.gmra.mxu0 %v1678_v2  ;;  %v278_v1 = vld [vmem:[%s1545_s23 + $0xd0] sm:$0xff] }
  0x52   : > { %v648_v7 = vld [vmem:[%s1545_s23 + $0xc60] sm:$0xff]  ;;  %823 = vmatmul.mubr.f32.vlgmr.msra.gmra.mxu1 %v240_v3  ;;  %v565_v8 = vld [vmem:[%s1545_s23 + $0x9c8] sm:$0xff]  ;;  %835 = vmatprep.subr.mxu0 %v569_v4  ;;  %v275_v4 = vld [vmem:[%s1545_s23 + $0xb8] sm:$0xff] }
  0x53   : > { %v645_v9 = vld [vmem:[%s1545_s23 + $0xc48] sm:$0xff]  ;;  %936 = vmatprep.subr.mxu1 %v649_v5  ;;  %v246_v10 = vld [vmem:[%s2066_s0 + $0x40] sm:$0xff]  ;;  %836 = vmatpush1.msra.mxu0 %v568_v6  ;;  %v274_v6 = vld [vmem:[%s1545_s23 + $0xb0] sm:$0xff] }
  0x54   : > { %937 = vmatpush1.msra.mxu1 %v648_v7  ;;  %v564_v12 = vld [vmem:[%s1545_s23 + $0x9c0] sm:$0xff]  ;;  %837 = vmatprep.subr.mxu0 %v565_v8  ;;  %v247_v15 = vld [vmem:[%s2066_s0 + $0x48] sm:$0xff]  ;;  %v271_v8 = vld [vmem:[%s1545_s23 + $0x98] sm:$0xff] }
  0x55   : > { %v644_v13 = vld [vmem:[%s1545_s23 + $0xc40] sm:$0xff]  ;;  %938 = vmatprep.subr.mxu1 %v645_v9  ;;  %751 = vmatprep.mubr.f32.mxu0 %v246_v10  ;;  %v561_v16 = vld [vmem:[%s1545_s23 + $0x9a8] sm:$0xff]  ;;  %v270_v10 = vld [vmem:[%s1545_s23 + $0x90] sm:$0xff] }
  0x56   : > { %828 = vmatprep.mubr.f32.mxu1 %v248_v11  ;;  %v641_v17 = vld [vmem:[%s1545_s23 + $0xc28] sm:$0xff]  ;;  %838 = vmatpush1.msra.mxu0 %v564_v12  ;;  %v560_v18 = vld [vmem:[%s1545_s23 + $0x9a0] sm:$0xff]  ;;  %v267_v12 = vld [vmem:[%s1545_s23 + $0x78] sm:$0xff] }
  0x57   : > { %939 = vmatpush1.msra.mxu1 %v644_v13  ;;  %v640_v19 = vld [vmem:[%s1545_s23 + $0xc20] sm:$0xff]  ;;  %752 = vmatmul.mubr.f32.gmra.mxu0 %v245_v14  ;;  %v557_v20 = vld [vmem:[%s1545_s23 + $0x988] sm:$0xff]  ;;  %v266_v14 = vld [vmem:[%s1545_s23 + $0x70] sm:$0xff] }
  0x58   : > { %829 = vmatmul.mubr.f32.gmra.mxu1 %v247_v15  ;;  %v637_v21 = vld [vmem:[%s1545_s23 + $0xc08] sm:$0xff]  ;;  %839 = vmatprep.subr.mxu0 %v561_v16  ;;  %v556_v22 = vld [vmem:[%s1545_s23 + $0x980] sm:$0xff]  ;;  %v263_v16 = vld [vmem:[%s1545_s23 + $0x58] sm:$0xff] }
  0x59   : > { %940 = vmatprep.subr.mxu1 %v641_v17  ;;  %v636_v23 = vld [vmem:[%s1545_s23 + $0xc00] sm:$0xff]  ;;  %840 = vmatpush1.msra.mxu0 %v560_v18  ;;  %v553_v24 = vld [vmem:[%s1545_s23 + $0x968] sm:$0xff]  ;;  %v262_v18 = vld [vmem:[%s1545_s23 + $0x50] sm:$0xff] }
  0x5a   : > { %941 = vmatpush1.msra.mxu1 %v640_v19  ;;  %841 = vmatprep.subr.mxu0 %v557_v20  ;;  %v552_v27 = vld [vmem:[%s1545_s23 + $0x960] sm:$0xff]  ;;  %v549_v30 = vld [vmem:[%s1545_s23 + $0x948] sm:$0xff]  ;;  %v259_v20 = vld [vmem:[%s1545_s23 + $0x38] sm:$0xff] }
  0x5b   : > { %942 = vmatprep.subr.mxu1 %v637_v21  ;;  %842 = vmatpush1.msra.mxu0 %v556_v22  ;;  %v548_v32 = vld [vmem:[%s1545_s23 + $0x940] sm:$0xff]  ;;  %v545_v34 = vld [vmem:[%s1545_s23 + $0x928] sm:$0xff]  ;;  %v258_v22 = vld [vmem:[%s1545_s23 + $0x30] sm:$0xff] }
  0x5c   : > { %943 = vmatpush1.msra.mxu1 %v636_v23  ;;  %976 = vmatprep.mubr.f32.mxu1 %v1494_v29  ;;  %v544_v36 = vld [vmem:[%s1545_s23 + $0x920] sm:$0xff]  ;;  %v541_v38 = vld [vmem:[%s1545_s23 + $0x908] sm:$0xff] }
  0x5d   : > { %843 = vmatprep.subr.mxu0 %v553_v24  ;;  %1429 = vmatmul.mubr.msk.f32.vlgmr.msra.gmra.mxu1 %vm674_vm0, %v244_v25  ;;  %v540_v40 = vld [vmem:[%s1545_s23 + $0x900] sm:$0xff]  ;;  %v537_v42 = vld [vmem:[%s1545_s23 + $0x8e8] sm:$0xff]  ;;  %v255_v24 = vld [vmem:[%s1545_s23 + $0x18] sm:$0xff] }
  0x5e   : > { %989 = vmatprep.subr.mxu1 %v315_v26  ;;  %844 = vmatpush1.msra.mxu0 %v552_v27  ;;  %v536_v44 = vld [vmem:[%s1545_s23 + $0x8e0] sm:$0xff]  ;;  %v533_v46 = vld [vmem:[%s1545_s23 + $0x8c8] sm:$0xff]  ;;  %v254_v26 = vld [vmem:[%s1545_s23 + $0x10] sm:$0xff] }
  0x5f   : > { %990 = vmatpush1.msra.mxu1 %v314_v28  ;;  %845 = vmatprep.subr.mxu0 %v549_v30  ;;  %v532_v48 = vld [vmem:[%s1545_s23 + $0x8c0] sm:$0xff]  ;;  %v529_v50 = vld [vmem:[%s1545_s23 + $0x8a8] sm:$0xff]  ;;  %v379_v28 = vld [vmem:[%s1545_s23 + $0x3f8] sm:$0xff] }
  0x60   : > { %991 = vmatprep.subr.mxu1 %v311_v31  ;;  %846 = vmatpush1.msra.mxu0 %v548_v32  ;;  %v528_v52 = vld [vmem:[%s1545_s23 + $0x8a0] sm:$0xff]  ;;  %v525_v54 = vld [vmem:[%s1545_s23 + $0x888] sm:$0xff]  ;;  %v378_v31 = vld [vmem:[%s1545_s23 + $0x3f0] sm:$0xff] }
  0x61   : > { %992 = vmatpush1.msra.mxu1 %v310_v33  ;;  %847 = vmatprep.subr.mxu0 %v545_v34  ;;  %v524_v56 = vld [vmem:[%s1545_s23 + $0x880] sm:$0xff]  ;;  %v521_v58 = vld [vmem:[%s1545_s23 + $0x868] sm:$0xff]  ;;  %v375_v33 = vld [vmem:[%s1545_s23 + $0x3d8] sm:$0xff] }
  0x62   : > { %993 = vmatprep.subr.mxu1 %v307_v35  ;;  %848 = vmatpush1.msra.mxu0 %v544_v36  ;;  %v520_v60 = vld [vmem:[%s1545_s23 + $0x860] sm:$0xff]  ;;  %v517_v62 = vld [vmem:[%s1545_s23 + $0x848] sm:$0xff]  ;;  %v374_v35 = vld [vmem:[%s1545_s23 + $0x3d0] sm:$0xff] }
  0x63   : > { %994 = vmatpush1.msra.mxu1 %v306_v37  ;;  %849 = vmatprep.subr.mxu0 %v541_v38  ;;  %v516_v0 = vld [vmem:[%s1545_s23 + $0x840] sm:$0xff]  ;;  %v513_v3 = vld [vmem:[%s1545_s23 + $0x828] sm:$0xff]  ;;  %v371_v37 = vld [vmem:[%s1545_s23 + $0x3b8] sm:$0xff] }
  0x64   : > { %995 = vmatprep.subr.mxu1 %v303_v39  ;;  %850 = vmatpush1.msra.mxu0 %v540_v40  ;;  %v512_v5 = vld [vmem:[%s1545_s23 + $0x820] sm:$0xff]  ;;  %v509_v7 = vld [vmem:[%s1545_s23 + $0x808] sm:$0xff]  ;;  %v370_v39 = vld [vmem:[%s1545_s23 + $0x3b0] sm:$0xff] }
  0x65   : > { %996 = vmatpush1.msra.mxu1 %v302_v41  ;;  %851 = vmatprep.subr.mxu0 %v537_v42  ;;  %v508_v9 = vld [vmem:[%s1545_s23 + $0x800] sm:$0xff]  ;;  %v633_v11 = vld [vmem:[%s1545_s23 + $0xbe8] sm:$0xff]  ;;  %v367_v41 = vld [vmem:[%s1545_s23 + $0x398] sm:$0xff] }
  0x66   : > { %997 = vmatprep.subr.mxu1 %v299_v43  ;;  %852 = vmatpush1.msra.mxu0 %v536_v44  ;;  %v632_v13 = vld [vmem:[%s1545_s23 + $0xbe0] sm:$0xff]  ;;  %v629_v15 = vld [vmem:[%s1545_s23 + $0xbc8] sm:$0xff]  ;;  %v366_v43 = vld [vmem:[%s1545_s23 + $0x390] sm:$0xff] }
  0x67   : > { %998 = vmatpush1.msra.mxu1 %v298_v45  ;;  %853 = vmatprep.subr.mxu0 %v533_v46  ;;  %v628_v17 = vld [vmem:[%s1545_s23 + $0xbc0] sm:$0xff]  ;;  %v625_v19 = vld [vmem:[%s1545_s23 + $0xba8] sm:$0xff]  ;;  %v363_v45 = vld [vmem:[%s1545_s23 + $0x378] sm:$0xff] }
  0x68   : > { %999 = vmatprep.subr.mxu1 %v295_v47  ;;  %854 = vmatpush1.msra.mxu0 %v532_v48  ;;  %v624_v21 = vld [vmem:[%s1545_s23 + $0xba0] sm:$0xff]  ;;  %v621_v23 = vld [vmem:[%s1545_s23 + $0xb88] sm:$0xff]  ;;  %v362_v47 = vld [vmem:[%s1545_s23 + $0x370] sm:$0xff] }
  0x69   : > { %1000 = vmatpush1.msra.mxu1 %v294_v49  ;;  %855 = vmatprep.subr.mxu0 %v529_v50  ;;  %v620_v25 = vld [vmem:[%s1545_s23 + $0xb80] sm:$0xff]  ;;  %v617_v27 = vld [vmem:[%s1545_s23 + $0xb68] sm:$0xff]  ;;  %v359_v49 = vld [vmem:[%s1545_s23 + $0x358] sm:$0xff] }
  0x6a   : > { %1001 = vmatprep.subr.mxu1 %v291_v51  ;;  %856 = vmatpush1.msra.mxu0 %v528_v52  ;;  %v616_v30 = vld [vmem:[%s1545_s23 + $0xb60] sm:$0xff]  ;;  %v613_v32 = vld [vmem:[%s1545_s23 + $0xb48] sm:$0xff]  ;;  %v358_v51 = vld [vmem:[%s1545_s23 + $0x350] sm:$0xff] }
  0x6b   : > { %1002 = vmatpush1.msra.mxu1 %v290_v53  ;;  %857 = vmatprep.subr.mxu0 %v525_v54  ;;  %v612_v34 = vld [vmem:[%s1545_s23 + $0xb40] sm:$0xff]  ;;  %v609_v36 = vld [vmem:[%s1545_s23 + $0xb28] sm:$0xff]  ;;  %v355_v53 = vld [vmem:[%s1545_s23 + $0x338] sm:$0xff] }
  0x6c   : > { %1003 = vmatprep.subr.mxu1 %v287_v55  ;;  %858 = vmatpush1.msra.mxu0 %v524_v56  ;;  %v608_v38 = vld [vmem:[%s1545_s23 + $0xb20] sm:$0xff]  ;;  %v605_v40 = vld [vmem:[%s1545_s23 + $0xb08] sm:$0xff]  ;;  %v354_v55 = vld [vmem:[%s1545_s23 + $0x330] sm:$0xff] }
  0x6d   : > { %1004 = vmatpush1.msra.mxu1 %v286_v57  ;;  %859 = vmatprep.subr.mxu0 %v521_v58  ;;  %v604_v42 = vld [vmem:[%s1545_s23 + $0xb00] sm:$0xff]  ;;  %v601_v44 = vld [vmem:[%s1545_s23 + $0xae8] sm:$0xff]  ;;  %v351_v57 = vld [vmem:[%s1545_s23 + $0x318] sm:$0xff] }
  0x6e   : > { %1005 = vmatprep.subr.mxu1 %v283_v59  ;;  %860 = vmatpush1.msra.mxu0 %v520_v60  ;;  %v600_v46 = vld [vmem:[%s1545_s23 + $0xae0] sm:$0xff]  ;;  %v597_v48 = vld [vmem:[%s1545_s23 + $0xac8] sm:$0xff]  ;;  %v350_v59 = vld [vmem:[%s1545_s23 + $0x310] sm:$0xff] }
  0x6f   : > { %1006 = vmatpush1.msra.mxu1 %v282_v61  ;;  %861 = vmatprep.subr.mxu0 %v517_v62  ;;  %v596_v50 = vld [vmem:[%s1545_s23 + $0xac0] sm:$0xff]  ;;  %v593_v52 = vld [vmem:[%s1545_s23 + $0xaa8] sm:$0xff]  ;;  %v347_v61 = vld [vmem:[%s1545_s23 + $0x2f8] sm:$0xff] }
  0x70   : > { %1007 = vmatprep.subr.mxu1 %v279_v63  ;;  %862 = vmatpush1.msra.mxu0 %v516_v0  ;;  %v592_v54 = vld [vmem:[%s1545_s23 + $0xaa0] sm:$0xff]  ;;  %v589_v56 = vld [vmem:[%s1545_s23 + $0xa88] sm:$0xff]  ;;  %v346_v63 = vld [vmem:[%s1545_s23 + $0x2f0] sm:$0xff] }
  0x71   : > { %1008 = vmatpush1.msra.mxu1 %v278_v1  ;;  %863 = vmatprep.subr.mxu0 %v513_v3  ;;  %v588_v58 = vld [vmem:[%s1545_s23 + $0xa80] sm:$0xff]  ;;  %v585_v60 = vld [vmem:[%s1545_s23 + $0xa68] sm:$0xff]  ;;  %v343_v1 = vld [vmem:[%s1545_s23 + $0x2d8] sm:$0xff] }
  0x72   : > { %1009 = vmatprep.subr.mxu1 %v275_v4  ;;  %864 = vmatpush1.msra.mxu0 %v512_v5  ;;  %v584_v62 = vld [vmem:[%s1545_s23 + $0xa60] sm:$0xff]  ;;  %v581_v0 = vld [vmem:[%s1545_s23 + $0xa48] sm:$0xff]  ;;  %v342_v4 = vld [vmem:[%s1545_s23 + $0x2d0] sm:$0xff] }
  0x73   : > { %1010 = vmatpush1.msra.mxu1 %v274_v6  ;;  %865 = vmatprep.subr.mxu0 %v509_v7  ;;  %v580_v3 = vld [vmem:[%s1545_s23 + $0xa40] sm:$0xff]  ;;  %v577_v5 = vld [vmem:[%s1545_s23 + $0xa28] sm:$0xff]  ;;  %v339_v6 = vld [vmem:[%s1545_s23 + $0x2b8] sm:$0xff] }
  0x74   : > { %1011 = vmatprep.subr.mxu1 %v271_v8  ;;  %866 = vmatpush1.msra.mxu0 %v508_v9  ;;  %v576_v7 = vld [vmem:[%s1545_s23 + $0xa20] sm:$0xff]  ;;  %v338_v8 = vld [vmem:[%s1545_s23 + $0x2b0] sm:$0xff]  ;;  %v573_v9 = vld [vmem:[%s1545_s23 + $0xa08] sm:$0xff] }
  0x75   : > { %1012 = vmatpush1.msra.mxu1 %v270_v10  ;;  %867 = vmatprep.subr.mxu0 %v633_v11  ;;  %v335_v10 = vld [vmem:[%s1545_s23 + $0x298] sm:$0xff]  ;;  %v572_v11 = vld [vmem:[%s1545_s23 + $0xa00] sm:$0xff] }
  0x76   : > { %1013 = vmatprep.subr.mxu1 %v267_v12  ;;  %868 = vmatpush2.msra.mxu0 %v632_v13  ;;  %v1831_v12 = vld [vmem:[%s2066_s0 + $0x28] sm:$0xff]  ;;  %v334_v13 = vld [vmem:[%s1545_s23 + $0x290] sm:$0xff] }
  0x77   : > { %1014 = vmatpush1.msra.mxu1 %v266_v14  ;;  %869 = vmatprep.subr.mxu0 %v629_v15  ;;  %v1837_v14 = vld [vmem:[%s2066_s0 + $0x20] sm:$0xff]  ;;  %v331_v15 = vld [vmem:[%s1545_s23 + $0x278] sm:$0xff] }
  0x78   : > { %1015 = vmatprep.subr.mxu1 %v263_v16  ;;  %870 = vmatpush2.msra.mxu0 %v628_v17  ;;  %v443_v16 = vld [vmem:[%s1545_s23 + $0x5f8] sm:$0xff]  ;;  %v330_v17 = vld [vmem:[%s1545_s23 + $0x270] sm:$0xff] }
  0x79   : > { %1016 = vmatpush1.msra.mxu1 %v262_v18  ;;  %871 = vmatprep.subr.mxu0 %v625_v19  ;;  %v442_v18 = vld [vmem:[%s1545_s23 + $0x5f0] sm:$0xff]  ;;  %v327_v19 = vld [vmem:[%s1545_s23 + $0x258] sm:$0xff] }
  0x7a   : > { %1017 = vmatprep.subr.mxu1 %v259_v20  ;;  %872 = vmatpush2.msra.mxu0 %v624_v21  ;;  %v439_v20 = vld [vmem:[%s1545_s23 + $0x5d8] sm:$0xff]  ;;  %v1850_v21 = vld [vmem:[%s2066_s0 + $0x60] sm:$0xff] }
  0x7b   : > { %1018 = vmatpush1.msra.mxu1 %v258_v22  ;;  %873 = vmatprep.subr.mxu0 %v621_v23  ;;  %v1855_v22 = vld [vmem:[%s2066_s0 + $0x68] sm:$0xff]  ;;  %v438_v23 = vld [vmem:[%s1545_s23 + $0x5d0] sm:$0xff] }
  0x7c   : > { %1019 = vmatprep.subr.mxu1 %v255_v24  ;;  %874 = vmatpush2.msra.mxu0 %v620_v25  ;;  %v326_v24 = vld [vmem:[%s1545_s23 + $0x250] sm:$0xff]  ;;  %v1863_v25 = vld [vmem:[%s2066_s0 + $0x58] sm:$0xff] }
  0x7d   : > { %1020 = vmatpush1.msra.mxu1 %v254_v26  ;;  %875 = vmatprep.subr.mxu0 %v617_v27  ;;  %v323_v26 = vld [vmem:[%s1545_s23 + $0x238] sm:$0xff] }
  0x7e   : > { %1021 = vmatprep.subr.mxu1 %v379_v28  ;;  %876 = vmatpush2.msra.mxu0 %v616_v30  ;;  %v435_v27 = vld [vmem:[%s1545_s23 + $0x5b8] sm:$0xff]  ;;  %v322_v28 = vld [vmem:[%s1545_s23 + $0x230] sm:$0xff] }
  0x7f   : > { %1022 = vmatpush2.msra.mxu1 %v378_v31  ;;  %877 = vmatprep.subr.mxu0 %v613_v32  ;;  %v434_v30 = vld [vmem:[%s1545_s23 + $0x5b0] sm:$0xff]  ;;  %v319_v31 = vld [vmem:[%s1545_s23 + $0x218] sm:$0xff] }
  0x80   : > { %1023 = vmatprep.subr.mxu1 %v375_v33  ;;  %878 = vmatpush2.msra.mxu0 %v612_v34  ;;  %v431_v32 = vld [vmem:[%s1545_s23 + $0x598] sm:$0xff]  ;;  %v318_v33 = vld [vmem:[%s1545_s23 + $0x210] sm:$0xff] }
  0x81   : > { %1024 = vmatpush2.msra.mxu1 %v374_v35  ;;  %879 = vmatprep.subr.mxu0 %v609_v36  ;;  %v430_v34 = vld [vmem:[%s1545_s23 + $0x590] sm:$0xff]  ;;  %v427_v35 = vld [vmem:[%s1545_s23 + $0x578] sm:$0xff] }
  0x82   : > { %1025 = vmatprep.subr.mxu1 %v371_v37  ;;  %880 = vmatpush2.msra.mxu0 %v608_v38  ;;  %v571_v36 = vld [vmem:[%s1545_s23 + $0x9f8] sm:$0xff]  ;;  %v1462_v37 = vld [vmem:[%s2066_s0 + $0x8] sm:$0xff]  ;;  %v426_v38 = vld [vmem:[%s1545_s23 + $0x570] sm:$0xff] }
  0x83   : > { %1026 = vmatpush2.msra.mxu1 %v370_v39  ;;  %881 = vmatprep.subr.mxu0 %v605_v40  ;;  %v570_v39 = vld [vmem:[%s1545_s23 + $0x9f0] sm:$0xff]  ;;  %v423_v40 = vld [vmem:[%s1545_s23 + $0x558] sm:$0xff] }
  0x84   : > { %1027 = vmatprep.subr.mxu1 %v367_v41  ;;  %882 = vmatpush2.msra.mxu0 %v604_v42  ;;  %v567_v41 = vld [vmem:[%s1545_s23 + $0x9d8] sm:$0xff]  ;;  %v422_v42 = vld [vmem:[%s1545_s23 + $0x550] sm:$0xff] }
  0x85   : > { %1028 = vmatpush2.msra.mxu1 %v366_v43  ;;  %883 = vmatprep.subr.mxu0 %v601_v44  ;;  %v566_v43 = vld [vmem:[%s1545_s23 + $0x9d0] sm:$0xff]  ;;  %v419_v44 = vld [vmem:[%s1545_s23 + $0x538] sm:$0xff] }
  0x86   : > { %1029 = vmatprep.subr.mxu1 %v363_v45  ;;  %884 = vmatpush2.msra.mxu0 %v600_v46  ;;  %v563_v45 = vld [vmem:[%s1545_s23 + $0x9b8] sm:$0xff]  ;;  %v418_v46 = vld [vmem:[%s1545_s23 + $0x530] sm:$0xff] }
  0x87   : > { %1030 = vmatpush2.msra.mxu1 %v362_v47  ;;  %885 = vmatprep.subr.mxu0 %v597_v48  ;;  %v415_v47 = vld [vmem:[%s1545_s23 + $0x518] sm:$0xff] }
  0x88   : > { %1031 = vmatprep.subr.mxu1 %v359_v49  ;;  %886 = vmatpush2.msra.mxu0 %v596_v50  ;;  %v559_v48 = vld [vmem:[%s1545_s23 + $0x998] sm:$0xff]  ;;  %v414_v49 = vld [vmem:[%s1545_s23 + $0x510] sm:$0xff] }
  0x89   : > { %1032 = vmatpush2.msra.mxu1 %v358_v51  ;;  %887 = vmatprep.subr.mxu0 %v593_v52  ;;  %v558_v50 = vld [vmem:[%s1545_s23 + $0x990] sm:$0xff]  ;;  %v411_v51 = vld [vmem:[%s1545_s23 + $0x4f8] sm:$0xff] }
  0x8a   : > { %1033 = vmatprep.subr.mxu1 %v355_v53  ;;  %888 = vmatpush2.msra.mxu0 %v592_v54  ;;  %v555_v52 = vld [vmem:[%s1545_s23 + $0x978] sm:$0xff]  ;;  %v410_v53 = vld [vmem:[%s1545_s23 + $0x4f0] sm:$0xff] }
  0x8b   : > { %1034 = vmatpush2.msra.mxu1 %v354_v55  ;;  %889 = vmatprep.subr.mxu0 %v589_v56  ;;  %v554_v54 = vld [vmem:[%s1545_s23 + $0x970] sm:$0xff]  ;;  %v407_v55 = vld [vmem:[%s1545_s23 + $0x4d8] sm:$0xff] }
  0x8c   : > { %1035 = vmatprep.subr.mxu1 %v351_v57  ;;  %890 = vmatpush2.msra.mxu0 %v588_v58  ;;  %v551_v56 = vld [vmem:[%s1545_s23 + $0x958] sm:$0xff]  ;;  %v406_v57 = vld [vmem:[%s1545_s23 + $0x4d0] sm:$0xff] }
  0x8d   : > { %1036 = vmatpush2.msra.mxu1 %v350_v59  ;;  %891 = vmatprep.subr.mxu0 %v585_v60  ;;  %v550_v58 = vld [vmem:[%s1545_s23 + $0x950] sm:$0xff]  ;;  %v403_v59 = vld [vmem:[%s1545_s23 + $0x4b8] sm:$0xff] }
  0x8e   : > { %1037 = vmatprep.subr.mxu1 %v347_v61  ;;  %892 = vmatpush2.msra.mxu0 %v584_v62  ;;  %v547_v60 = vld [vmem:[%s1545_s23 + $0x938] sm:$0xff]  ;;  %v402_v61 = vld [vmem:[%s1545_s23 + $0x4b0] sm:$0xff] }
  0x8f   : > { %1038 = vmatpush2.msra.mxu1 %v346_v63  ;;  %893 = vmatprep.subr.mxu0 %v581_v0  ;;  %v546_v62 = vld [vmem:[%s1545_s23 + $0x930] sm:$0xff]  ;;  %v399_v63 = vld [vmem:[%s1545_s23 + $0x498] sm:$0xff] }
  0x90   : > { %1039 = vmatprep.subr.mxu1 %v343_v1  ;;  %894 = vmatpush2.msra.mxu0 %v580_v3  ;;  %v543_v0 = vld [vmem:[%s1545_s23 + $0x918] sm:$0xff]  ;;  %v398_v1 = vld [vmem:[%s1545_s23 + $0x490] sm:$0xff] }
  0x91   : > { %1040 = vmatpush2.msra.mxu1 %v342_v4  ;;  %895 = vmatprep.subr.mxu0 %v577_v5  ;;  %v542_v3 = vld [vmem:[%s1545_s23 + $0x910] sm:$0xff]  ;;  %v395_v4 = vld [vmem:[%s1545_s23 + $0x478] sm:$0xff] }
  0x92   : > { %1041 = vmatprep.subr.mxu1 %v339_v6  ;;  %896 = vmatpush2.msra.mxu0 %v576_v7  ;;  %v539_v5 = vld [vmem:[%s1545_s23 + $0x8f8] sm:$0xff]  ;;  %v394_v6 = vld [vmem:[%s1545_s23 + $0x470] sm:$0xff] }
  0x93   : > { %1042 = vmatpush2.msra.mxu1 %v338_v8  ;;  %897 = vmatprep.subr.mxu0 %v573_v9  ;;  %v538_v7 = vld [vmem:[%s1545_s23 + $0x8f0] sm:$0xff]  ;;  %v391_v8 = vld [vmem:[%s1545_s23 + $0x458] sm:$0xff] }
  0x94   : > { %1043 = vmatprep.subr.mxu1 %v335_v10  ;;  %898 = vmatpush2.msra.mxu0 %v572_v11  ;;  %v535_v9 = vld [vmem:[%s1545_s23 + $0x8d8] sm:$0xff]  ;;  %v390_v10 = vld [vmem:[%s1545_s23 + $0x450] sm:$0xff] }
  0x95   : > { %899 = vmatprep.mubr.f32.mxu0 %v1831_v12  ;;  %1044 = vmatpush2.msra.mxu1 %v334_v13  ;;  %v534_v11 = vld [vmem:[%s1545_s23 + $0x8d0] sm:$0xff]  ;;  %v387_v13 = vld [vmem:[%s1545_s23 + $0x438] sm:$0xff] }
  0x96   : > { %900 = vmatmul.mubr.f32.vlgmr.msra.gmra.mxu0 %v1837_v14  ;;  %1045 = vmatprep.subr.mxu1 %v331_v15  ;;  %v531_v15 = vld [vmem:[%s1545_s23 + $0x8b8] sm:$0xff] }
  0x97   : > { %1066 = vmatprep.subr.mxu0 %v443_v16  ;;  %1046 = vmatpush2.msra.mxu1 %v330_v17  ;;  %v386_v16 = vld [vmem:[%s1545_s23 + $0x430] sm:$0xff] }
  0x98   : > { %1067 = vmatpush1.msra.mxu0 %v442_v18  ;;  %982 = vmatprep.mubr.f32.mxu1 %v1494_v29  ;;  %v530_v17 = vld [vmem:[%s1545_s23 + $0x8b0] sm:$0xff]  ;;  %v383_v18 = vld [vmem:[%s1545_s23 + $0x418] sm:$0xff] }
  0x99   : > { %1047 = vmatprep.subr.mxu1 %v327_v19  ;;  %1068 = vmatprep.subr.mxu0 %v439_v20  ;;  %v527_v19 = vld [vmem:[%s1545_s23 + $0x898] sm:$0xff]  ;;  %v382_v20 = vld [vmem:[%s1545_s23 + $0x410] sm:$0xff] }
  0x9a   : > { %905 = vmatprep.mubr.f32.mxu0 %v1850_v21  ;;  %1430 = vmatmul.mubr.msk.f32.gmra.mxu1 %vm674_vm0, %v1855_v22 }
  0x9b   : > { %1069 = vmatpush1.msra.mxu0 %v438_v23  ;;  %1048 = vmatpush2.msra.mxu1 %v326_v24  ;;  %v526_v23 = vld [vmem:[%s1545_s23 + $0x890] sm:$0xff]  ;;  %v507_v24 = vld [vmem:[%s1545_s23 + $0x7f8] sm:$0xff] }
  0x9c   : > { %906 = vmatmul.mubr.f32.gmra.mxu0 %v1863_v25  ;;  %1049 = vmatprep.subr.mxu1 %v323_v26  ;;  %v523_v26 = vld [vmem:[%s1545_s23 + $0x878] sm:$0xff] }
  0x9d   : > { %1070 = vmatprep.subr.mxu0 %v435_v27  ;;  %1050 = vmatpush2.msra.mxu1 %v322_v28  ;;  %v506_v27 = vld [vmem:[%s1545_s23 + $0x7f0] sm:$0xff] }
  0x9e   : > { %1071 = vmatpush1.msra.mxu0 %v434_v30  ;;  %1051 = vmatprep.subr.mxu1 %v319_v31  ;;  %v522_v28 = vld [vmem:[%s1545_s23 + $0x870] sm:$0xff]  ;;  %v503_v30 = vld [vmem:[%s1545_s23 + $0x7d8] sm:$0xff] }
  0x9f   : > { %1072 = vmatprep.subr.mxu0 %v431_v32  ;;  %1052 = vmatpush2.msra.mxu1 %v318_v33  ;;  %v519_v31 = vld [vmem:[%s1545_s23 + $0x858] sm:$0xff]  ;;  %v502_v32 = vld [vmem:[%s1545_s23 + $0x7d0] sm:$0xff] }
  0xa0   : > { %1053 = vmatprep.mubr.f32.mxu1 %v1462_v37  ;;  %1073 = vmatpush1.msra.mxu0 %v430_v34  ;;  %v518_v33 = vld [vmem:[%s1545_s23 + $0x850] sm:$0xff]  ;;  %v499_v34 = vld [vmem:[%s1545_s23 + $0x7b8] sm:$0xff] }
  0xa1   : > { %1054 = vmatmul.mubr.f32.vlgmr.msra.gmra.mxu1 %v1678_v2  ;;  %1074 = vmatprep.subr.mxu0 %v427_v35  ;;  %v562_v2 = vld [vmem:[%s1545_s23 + $0x9b0] sm:$0xff]  ;;  %v515_v35 = vld [vmem:[%s1545_s23 + $0x838] sm:$0xff] }
  0xa2   : > { %1143 = vmatprep.subr.mxu1 %v571_v36  ;;  %1075 = vmatpush1.msra.mxu0 %v426_v38  ;;  %v498_v36 = vld [vmem:[%s1545_s23 + $0x7b0] sm:$0xff]  ;;  %v495_v38 = vld [vmem:[%s1545_s23 + $0x798] sm:$0xff] }
  0xa3   : > { %1144 = vmatpush1.msra.mxu1 %v570_v39  ;;  %1076 = vmatprep.subr.mxu0 %v423_v40  ;;  %v514_v37 = vld [vmem:[%s1545_s23 + $0x830] sm:$0xff]  ;;  %v511_v39 = vld [vmem:[%s1545_s23 + $0x818] sm:$0xff] }
  0xa4   : > { %1145 = vmatprep.subr.mxu1 %v567_v41  ;;  %1077 = vmatpush1.msra.mxu0 %v422_v42  ;;  %v494_v40 = vld [vmem:[%s1545_s23 + $0x790] sm:$0xff]  ;;  %v491_v42 = vld [vmem:[%s1545_s23 + $0x778] sm:$0xff] }
  0xa5   : > { %1146 = vmatpush1.msra.mxu1 %v566_v43  ;;  %1078 = vmatprep.subr.mxu0 %v419_v44  ;;  %v510_v41 = vld [vmem:[%s1545_s23 + $0x810] sm:$0xff]  ;;  %v635_v43 = vld [vmem:[%s1545_s23 + $0xbf8] sm:$0xff] }
  0xa6   : > { %1147 = vmatprep.subr.mxu1 %v563_v45  ;;  %1079 = vmatpush1.msra.mxu0 %v418_v46  ;;  %v490_v44 = vld [vmem:[%s1545_s23 + $0x770] sm:$0xff]  ;;  %v487_v46 = vld [vmem:[%s1545_s23 + $0x758] sm:$0xff] }
  0xa7   : > { %1148 = vmatpush1.msra.mxu1 %v562_v2  ;;  %1080 = vmatprep.subr.mxu0 %v415_v47  ;;  %v634_v45 = vld [vmem:[%s1545_s23 + $0xbf0] sm:$0xff]  ;;  %v631_v2 = vld [vmem:[%s1545_s23 + $0xbd8] sm:$0xff] }
  0xa8   : > { %1149 = vmatprep.subr.mxu1 %v559_v48  ;;  %1081 = vmatpush1.msra.mxu0 %v414_v49  ;;  %v486_v47 = vld [vmem:[%s1545_s23 + $0x750] sm:$0xff]  ;;  %v483_v49 = vld [vmem:[%s1545_s23 + $0x738] sm:$0xff] }
  0xa9   : > { %1150 = vmatpush1.msra.mxu1 %v558_v50  ;;  %1082 = vmatprep.subr.mxu0 %v411_v51  ;;  %v630_v48 = vld [vmem:[%s1545_s23 + $0xbd0] sm:$0xff]  ;;  %v627_v50 = vld [vmem:[%s1545_s23 + $0xbb8] sm:$0xff] }
  0xaa   : > { %1151 = vmatprep.subr.mxu1 %v555_v52  ;;  %1083 = vmatpush1.msra.mxu0 %v410_v53  ;;  %v482_v51 = vld [vmem:[%s1545_s23 + $0x730] sm:$0xff]  ;;  %v479_v53 = vld [vmem:[%s1545_s23 + $0x718] sm:$0xff] }
  0xab   : > { %1152 = vmatpush1.msra.mxu1 %v554_v54  ;;  %1084 = vmatprep.subr.mxu0 %v407_v55  ;;  %v626_v52 = vld [vmem:[%s1545_s23 + $0xbb0] sm:$0xff]  ;;  %v623_v54 = vld [vmem:[%s1545_s23 + $0xb98] sm:$0xff] }
  0xac   : > { %1153 = vmatprep.subr.mxu1 %v551_v56  ;;  %1085 = vmatpush1.msra.mxu0 %v406_v57  ;;  %v478_v55 = vld [vmem:[%s1545_s23 + $0x710] sm:$0xff]  ;;  %v475_v57 = vld [vmem:[%s1545_s23 + $0x6f8] sm:$0xff] }
  0xad   : > { %1154 = vmatpush1.msra.mxu1 %v550_v58  ;;  %1086 = vmatprep.subr.mxu0 %v403_v59  ;;  %v622_v56 = vld [vmem:[%s1545_s23 + $0xb90] sm:$0xff]  ;;  %v619_v58 = vld [vmem:[%s1545_s23 + $0xb78] sm:$0xff] }
  0xae   : > { %1155 = vmatprep.subr.mxu1 %v547_v60  ;;  %1087 = vmatpush1.msra.mxu0 %v402_v61  ;;  %v474_v59 = vld [vmem:[%s1545_s23 + $0x6f0] sm:$0xff]  ;;  %v471_v61 = vld [vmem:[%s1545_s23 + $0x6d8] sm:$0xff] }
  0xaf   : > { %1156 = vmatpush1.msra.mxu1 %v546_v62  ;;  %1088 = vmatprep.subr.mxu0 %v399_v63  ;;  %v618_v60 = vld [vmem:[%s1545_s23 + $0xb70] sm:$0xff]  ;;  %v615_v62 = vld [vmem:[%s1545_s23 + $0xb58] sm:$0xff] }
  0xb0   : > { %1157 = vmatprep.subr.mxu1 %v543_v0  ;;  %1089 = vmatpush1.msra.mxu0 %v398_v1  ;;  %v470_v63 = vld [vmem:[%s1545_s23 + $0x6d0] sm:$0xff]  ;;  %v467_v1 = vld [vmem:[%s1545_s23 + $0x6b8] sm:$0xff] }
  0xb1   : > { %1158 = vmatpush1.msra.mxu1 %v542_v3  ;;  %1090 = vmatprep.subr.mxu0 %v395_v4  ;;  %v614_v0 = vld [vmem:[%s1545_s23 + $0xb50] sm:$0xff]  ;;  %v611_v3 = vld [vmem:[%s1545_s23 + $0xb38] sm:$0xff] }
  0xb2   : > { %1159 = vmatprep.subr.mxu1 %v539_v5  ;;  %1091 = vmatpush1.msra.mxu0 %v394_v6  ;;  %v466_v4 = vld [vmem:[%s1545_s23 + $0x6b0] sm:$0xff]  ;;  %v463_v6 = vld [vmem:[%s1545_s23 + $0x698] sm:$0xff] }
  0xb3   : > { %1160 = vmatpush1.msra.mxu1 %v538_v7  ;;  %1092 = vmatprep.subr.mxu0 %v391_v8  ;;  %v610_v5 = vld [vmem:[%s1545_s23 + $0xb30] sm:$0xff]  ;;  %v607_v7 = vld [vmem:[%s1545_s23 + $0xb18] sm:$0xff] }
  0xb4   : > { %1161 = vmatprep.subr.mxu1 %v535_v9  ;;  %1093 = vmatpush1.msra.mxu0 %v390_v10  ;;  %v462_v8 = vld [vmem:[%s1545_s23 + $0x690] sm:$0xff]  ;;  %v459_v10 = vld [vmem:[%s1545_s23 + $0x678] sm:$0xff] }
  0xb5   : > { %1162 = vmatpush1.msra.mxu1 %v534_v11  ;;  %1094 = vmatprep.subr.mxu0 %v387_v13  ;;  %v606_v9 = vld [vmem:[%s1545_s23 + $0xb10] sm:$0xff]  ;;  %v603_v11 = vld [vmem:[%s1545_s23 + $0xaf8] sm:$0xff] }
  0xb6   : > { %1163 = vmatprep.subr.mxu1 %v531_v15  ;;  %1095 = vmatpush1.msra.mxu0 %v386_v16  ;;  %v458_v13 = vld [vmem:[%s1545_s23 + $0x670] sm:$0xff]  ;;  %v455_v16 = vld [vmem:[%s1545_s23 + $0x658] sm:$0xff] }
  0xb7   : > { %1164 = vmatpush1.msra.mxu1 %v530_v17  ;;  %1096 = vmatprep.subr.mxu0 %v383_v18  ;;  %v602_v15 = vld [vmem:[%s1545_s23 + $0xaf0] sm:$0xff]  ;;  %v599_v17 = vld [vmem:[%s1545_s23 + $0xad8] sm:$0xff] }
  0xb8   : > { %1165 = vmatprep.subr.mxu1 %v527_v19  ;;  %1097 = vmatpush1.msra.mxu0 %v382_v20  ;;  %v454_v18 = vld [vmem:[%s1545_s23 + $0x650] sm:$0xff]  ;;  %v451_v20 = vld [vmem:[%s1545_s23 + $0x638] sm:$0xff] }
  0xb9   : > { %1166 = vmatpush1.msra.mxu1 %v526_v23  ;;  %1098 = vmatprep.subr.mxu0 %v507_v24  ;;  %v598_v19 = vld [vmem:[%s1545_s23 + $0xad0] sm:$0xff]  ;;  %v595_v23 = vld [vmem:[%s1545_s23 + $0xab8] sm:$0xff] }
  0xba   : > { %1167 = vmatprep.subr.mxu1 %v523_v26  ;;  %1099 = vmatpush2.msra.mxu0 %v506_v27  ;;  %v450_v24 = vld [vmem:[%s1545_s23 + $0x630] sm:$0xff]  ;;  %v447_v27 = vld [vmem:[%s1545_s23 + $0x618] sm:$0xff] }
  0xbb   : > { %1168 = vmatpush1.msra.mxu1 %v522_v28  ;;  %1100 = vmatprep.subr.mxu0 %v503_v30  ;;  %v594_v26 = vld [vmem:[%s1545_s23 + $0xab0] sm:$0xff]  ;;  %v591_v28 = vld [vmem:[%s1545_s23 + $0xa98] sm:$0xff] }
  0xbc   : > { %1169 = vmatprep.subr.mxu1 %v519_v31  ;;  %1101 = vmatpush2.msra.mxu0 %v502_v32  ;;  %v446_v30 = vld [vmem:[%s1545_s23 + $0x610] sm:$0xff]  ;;  %v587_v32 = vld [vmem:[%s1545_s23 + $0xa78] sm:$0xff] }
  0xbd   : > { %1170 = vmatpush1.msra.mxu1 %v518_v33  ;;  %1102 = vmatprep.subr.mxu0 %v499_v34  ;;  %v590_v31 = vld [vmem:[%s1545_s23 + $0xa90] sm:$0xff]  ;;  %v651_v33 = vld [vmem:[%s1545_s23 + $0xc78] sm:$0xff] }
  0xbe   : > { %1171 = vmatprep.subr.mxu1 %v515_v35  ;;  %1103 = vmatpush2.msra.mxu0 %v498_v36  ;;  %v1463_v34 = vld [vmem:[%s2066_s0 + $0x18] sm:$0xff]  ;;  %v586_v35 = vld [vmem:[%s1545_s23 + $0xa70] sm:$0xff] }
  0xbf   : > { %1172 = vmatpush1.msra.mxu1 %v514_v37  ;;  %1104 = vmatprep.subr.mxu0 %v495_v38  ;;  %v1464_v36 = vld [vmem:[%s2066_s0 + $0x10] sm:$0xff]  ;;  %v583_v38 = vld [vmem:[%s1545_s23 + $0xa58] sm:$0xff] }
  0xc0   : > { %1173 = vmatprep.subr.mxu1 %v511_v39  ;;  %1105 = vmatpush2.msra.mxu0 %v494_v40  ;;  %v650_v37 = vld [vmem:[%s1545_s23 + $0xc70] sm:$0xff]  ;;  %v647_v39 = vld [vmem:[%s1545_s23 + $0xc58] sm:$0xff]  ;;  %v1465_v40 = vld [vmem:[%s2066_s0 + $0x40] sm:$0xff] }
  0xc1   : > { %1174 = vmatpush1.msra.mxu1 %v510_v41  ;;  %1106 = vmatprep.subr.mxu0 %v491_v42  ;;  %v582_v41 = vld [vmem:[%s1545_s23 + $0xa50] sm:$0xff]  ;;  %v1466_v42 = vld [vmem:[%s2066_s0 + $0x38] sm:$0xff] }
  0xc2   : > { %1175 = vmatprep.subr.mxu1 %v635_v43  ;;  %1107 = vmatpush2.msra.mxu0 %v490_v44  ;;  %v646_v43 = vld [vmem:[%s1545_s23 + $0xc50] sm:$0xff]  ;;  %v579_v44 = vld [vmem:[%s1545_s23 + $0xa38] sm:$0xff] }
  0xc3   : > { %1176 = vmatpush2.msra.mxu1 %v634_v45  ;;  %1108 = vmatprep.subr.mxu0 %v487_v46  ;;  %v643_v45 = vld [vmem:[%s1545_s23 + $0xc38] sm:$0xff]  ;;  %v1467_v46 = vld [vmem:[%s2066_s0 + $0x50] sm:$0xff] }
  0xc4   : > { %1177 = vmatprep.subr.mxu1 %v631_v2  ;;  %1109 = vmatpush2.msra.mxu0 %v486_v47  ;;  %v578_v2 = vld [vmem:[%s1545_s23 + $0xa30] sm:$0xff] }
  0xc5   : > { %1178 = vmatpush2.msra.mxu1 %v630_v48  ;;  %1110 = vmatprep.subr.mxu0 %v483_v49  ;;  %v642_v47 = vld [vmem:[%s1545_s23 + $0xc30] sm:$0xff]  ;;  %v575_v48 = vld [vmem:[%s1545_s23 + $0xa18] sm:$0xff] }
  0xc6   : > { %1179 = vmatprep.subr.mxu1 %v627_v50  ;;  %1111 = vmatpush2.msra.mxu0 %v482_v51  ;;  %v639_v49 = vld [vmem:[%s1545_s23 + $0xc18] sm:$0xff]  ;;  %v1468_v50 = vld [vmem:[%s2066_s0 + $0x48] sm:$0xff]  ;;  %v574_v51 = vld [vmem:[%s1545_s23 + $0xa10] sm:$0xff] }
  0xc7   : > { %1180 = vmatpush2.msra.mxu1 %v626_v52  ;;  %1112 = vmatprep.subr.mxu0 %v479_v53  ;;  %v638_v52 = vld [vmem:[%s1545_s23 + $0xc10] sm:$0xff]  ;;  %s1426_s23 = sshll.u32 %s2075_s12, 2 }
  0xc8   : > { %1181 = vmatprep.subr.mxu1 %v623_v54  ;;  %1113 = vmatpush2.msra.mxu0 %v478_v55  ;;  %v1469_v53 = vld [vmem:[%s2066_s0 + $0x30] sm:$0xff]  ;;  %s226_s21 = scalar_lea.vmem %s2068_s2, %s1426_s23 }
  0xc9   : > { %1182 = vmatpush2.msra.mxu1 %v622_v56  ;;  %1114 = vmatprep.subr.mxu0 %v475_v57  ;;  %v652_v57 = vld [vmem:[%s226_s21] sm:$0xf] }
  0xca   : > { %1183 = vmatprep.subr.mxu1 %v619_v58  ;;  %1115 = vmatpush2.msra.mxu0 %v474_v59 }
  0xcb   : > { %1184 = vmatpush2.msra.mxu1 %v618_v60  ;;  %1116 = vmatprep.subr.mxu0 %v471_v61 }
  0xcc   : > { %1185 = vmatprep.subr.mxu1 %v615_v62  ;;  %1117 = vmatpush2.msra.mxu0 %v470_v63 }
  0xcd   : > { %1186 = vmatpush2.msra.mxu1 %v614_v0  ;;  %1118 = vmatprep.subr.mxu0 %v467_v1 }
  0xce   : > { %1187 = vmatprep.subr.mxu1 %v611_v3  ;;  %1119 = vmatpush2.msra.mxu0 %v466_v4 }
  0xcf   : > { %1188 = vmatpush2.msra.mxu1 %v610_v5  ;;  %1120 = vmatprep.subr.mxu0 %v463_v6 }
  0xd0   : > { %1189 = vmatprep.subr.mxu1 %v607_v7  ;;  %1121 = vmatpush2.msra.mxu0 %v462_v8 }
  0xd1   : > { %1190 = vmatpush2.msra.mxu1 %v606_v9  ;;  %1122 = vmatprep.subr.mxu0 %v459_v10 }
  0xd2   : > { %1191 = vmatprep.subr.mxu1 %v603_v11  ;;  %1123 = vmatpush2.msra.mxu0 %v458_v13 }
  0xd3   : > { %1192 = vmatpush2.msra.mxu1 %v602_v15  ;;  %1124 = vmatprep.subr.mxu0 %v455_v16 }
  0xd4   : > { %1193 = vmatprep.subr.mxu1 %v599_v17  ;;  %1125 = vmatpush2.msra.mxu0 %v454_v18 }
  0xd5   : > { %1194 = vmatpush2.msra.mxu1 %v598_v19  ;;  %1126 = vmatprep.subr.mxu0 %v451_v20 }
  0xd6   : > { %1195 = vmatprep.subr.mxu1 %v595_v23  ;;  %1127 = vmatpush2.msra.mxu0 %v450_v24 }
  0xd7   : > { %1196 = vmatpush2.msra.mxu1 %v594_v26  ;;  %1128 = vmatprep.subr.mxu0 %v447_v27 }
  0xd8   : > { %1197 = vmatprep.subr.mxu1 %v591_v28  ;;  %1129 = vmatpush2.msra.mxu0 %v446_v30 }
  0xd9   : > { %1130 = vmatprep.mubr.f32.mxu0 %v1463_v34  ;;  %1198 = vmatpush2.msra.mxu1 %v590_v31 }
  0xda   : > { %1131 = vmatmul.mubr.f32.vlgmr.msra.gmra.mxu0 %v1464_v36  ;;  %1199 = vmatprep.subr.mxu1 %v587_v32 }
  0xdb   : > { %1244 = vmatprep.subr.mxu0 %v651_v33  ;;  %1059 = vmatprep.mubr.f32.mxu1 %v1465_v40 }
  0xdc   : > { %1200 = vmatpush2.msra.mxu1 %v586_v35  ;;  %1245 = vmatpush1.msra.mxu0 %v650_v37 }
  0xdd   : > { %1060 = vmatmul.mubr.f32.gmra.mxu1 %v1466_v42  ;;  %1201 = vmatprep.subr.mxu1 %v583_v38 }
  0xde   : > { %1246 = vmatprep.subr.mxu0 %v647_v39  ;;  %1136 = vmatprep.mubr.f32.mxu0 %v1467_v46 }
  0xdf   : > { %1202 = vmatpush2.msra.mxu1 %v582_v41  ;;  %1247 = vmatpush1.msra.mxu0 %v646_v43 }
  0xe0   : > { %1203 = vmatprep.subr.mxu1 %v579_v44  ;;  %1137 = vmatmul.mubr.f32.gmra.mxu0 %v1468_v50 }
  0xe1   : > { %1248 = vmatprep.subr.mxu0 %v643_v45  ;;  %1204 = vmatpush2.msra.mxu1 %v578_v2 }
  0xe2   : > { %1249 = vmatpush1.msra.mxu0 %v642_v47  ;;  %1205 = vmatprep.subr.mxu1 %v575_v48 }
  0xe3   : > { %1250 = vmatprep.subr.mxu0 %v639_v49  ;;  %1206 = vmatpush2.msra.mxu1 %v574_v51 }
  0xe4   : > { %1207 = vmatprep.mubr.f32.mxu1 %v1831_v12  ;;  %1251 = vmatpush1.msra.mxu0 %v638_v52  ;;  %v654_v12 = vlaneseq }
  0xe5   : > { %1284 = vmatprep.mubr.f32.mxu0 %v1494_v29  ;;  %1208 = vmatmul.mubr.f32.vlgmr.msra.gmra.mxu1 %v1837_v14 }
  0xe6   : > { %1431 = vmatmul.mubr.msk.f32.vlgmr.msra.gmra.mxu0 %vm674_vm0, %v1469_v53  ;;  %1213 = vmatprep.mubr.f32.mxu1 %v1850_v21  ;;  %v655_v54 = vshrl.u32 %v654_v12, 7 }
  0xe7   : > { %1290 = vmatprep.mubr.f32.mxu0 %v1494_v29 }
  0xe8   : > { %v656_v56 = vsub.s32 0, %v655_v54  ;;  %v660_v58 = vsub.s32 1, %v655_v54  ;;  %v664_v32 = vsub.s32 2, %v655_v54  ;;  %v668_v33 = vsub.s32 3, %v655_v54 }
  0xe9   : > { %1214 = vmatmul.mubr.f32.gmra.mxu1 %v1863_v25 }
  0xea   : > { %1432 = vmatmul.mubr.msk.f32.gmra.mxu0 %vm674_vm0, %v1855_v22  ;;  %v657_v59 = vrot.slane %v652_v57, %v656_v56  ;;  %v661_v60 = vrot.slane %v652_v57, %v660_v58  ;;  %v665_v36 = vrot.slane %v652_v57, %v664_v32  ;;  %v669_v38 = vrot.slane %v652_v57, %v668_v33 }
 0x111   : > { %v747_v14 = vpop.f32.mrf.mxu0 }
 0x112   : > { %v824_v55 = vpop.f32.mrf.mxu1  ;;  %v748_v22 = vadd.f32 %v747_v14, %v657_v59 }
 0x113   : > { %v749_v29 = vpop.f32.mrf.mxu0 }
 0x114   : > { %v826_v21 = vpop.f32.mrf.mxu1  ;;  %v750_v63 = vadd.f32 %v749_v29, %v661_v60  ;;  %v825_v1 = vadd.f32 %v824_v55, %v748_v22 }
 0x116   : > { %v827_v5 = vadd.f32 %v826_v21, %v750_v63 }
 0x117   : > { %v753_v61 = vpop.f32.mrf.mxu0 }
 0x118   : > { %v830_v25 = vpop.f32.mrf.mxu1  ;;  %v754_v6 = vadd.f32 %v753_v61, %v657_v59 }
 0x119   : > { %v755_v0 = vpop.f32.mrf.mxu0 }
 0x11a   : > { %v832_v62 = vpop.f32.mrf.mxu1  ;;  %v756_v9 = vadd.f32 %v755_v0, %v661_v60  ;;  %v831_v15 = vadd.f32 %v830_v25, %v754_v6 }
 0x11c   : > { %v833_v19 = vadd.f32 %v832_v62, %v756_v9 }
 0x11d   : > { %v978_v3 = vpop.f32.mrf.mxu1 }
 0x11f   : > { %v980_v13 = vpop.f32.mrf.mxu1 }
 0x156   : > { %v901_v4 = vpop.f32.mrf.mxu0 }
 0x157   : > { %v902_v7 = vadd.f32 %v901_v4, %v825_v1 }
 0x158   : > { %v903_v8 = vpop.f32.mrf.mxu0 }
 0x159   : > { %v979_v10 = vadd.f32 %v978_v3, %v902_v7  ;;  %v904_v11 = vadd.f32 %v903_v8, %v827_v5 }
 0x15a   : > { %v984_v17 = vpop.f32.mrf.mxu1 }
 0x15b   : > { %1297 = vst [vmem:[%s2047_s26] sm:$0xff] %v979_v10  ;;  %v981_v16 = vadd.f32 %v980_v13, %v904_v11 }
 0x15c   : > { %v907_v18 = vpop.f32.mrf.mxu0  ;;  %v986_v27 = vpop.f32.mrf.mxu1 }
 0x15d   : > { %1298 = vst [vmem:[%s2047_s26 + $0x8] sm:$0xff] %v981_v16  ;;  %v908_v20 = vadd.f32 %v907_v18, %v831_v15 }
 0x15e   : > { %v909_v23 = vpop.f32.mrf.mxu0 }
 0x15f   : > { %v985_v24 = vadd.f32 %v984_v17, %v908_v20  ;;  %v910_v26 = vadd.f32 %v909_v23, %v833_v19 }
 0x161   : > { %1301 = vst [vmem:[%s2047_s26 + $0x20] sm:$0xff] %v985_v24  ;;  %v987_v28 = vadd.f32 %v986_v27, %v910_v26  ;;  %v1055_v30 = vpop.f32.mrf.mxu1 }
 0x162   : > { %v1056_v40 = vadd.f32 %v1055_v30, %v665_v36 }
 0x163   : > { %1302 = vst [vmem:[%s2047_s26 + $0x28] sm:$0xff] %v987_v28  ;;  %v1057_v35 = vpop.f32.mrf.mxu1 }
 0x164   : > { %v1058_v43 = vadd.f32 %v1057_v35, %v669_v38 }
 0x19a   : > { %v1132_v31 = vpop.f32.mrf.mxu0 }
 0x19b   : > { %v1133_v44 = vadd.f32 %v1132_v31, %v1056_v40 }
 0x19c   : > { %v1134_v34 = vpop.f32.mrf.mxu0 }
 0x19d   : > { %v1061_v37 = vpop.f32.mrf.mxu1  ;;  %v1135_v47 = vadd.f32 %v1134_v34, %v1058_v43 }
 0x19e   : > { %v1062_v45 = vadd.f32 %v1061_v37, %v665_v36 }
 0x19f   : > { %v1063_v42 = vpop.f32.mrf.mxu1 }
 0x1a0   : > { %v1138_v39 = vpop.f32.mrf.mxu0  ;;  %v1064_v48 = vadd.f32 %v1063_v42, %v669_v38 }
 0x1a1   : > { %v1139_v52 = vadd.f32 %v1138_v39, %v1062_v45 }
 0x1a2   : > { %v1140_v41 = vpop.f32.mrf.mxu0 }
 0x1a3   : > { %v1141_v14 = vadd.f32 %v1140_v41, %v1064_v48 }
 0x1a5   : > { %v1209_v46 = vpop.f32.mrf.mxu1 }
 0x1a6   : > { %v1286_v2 = vpop.f32.mrf.mxu0  ;;  %v1210_v49 = vadd.f32 %v1209_v46, %v1133_v44 }
 0x1a7   : > { %v1211_v50 = vpop.f32.mrf.mxu1 }
 0x1a8   : > { %v1288_v51 = vpop.f32.mrf.mxu0  ;;  %v1287_v53 = vadd.f32 %v1286_v2, %v1210_v49  ;;  %v1212_v12 = vadd.f32 %v1211_v50, %v1135_v47 }
 0x1a9   : > { %v1215_v54 = vpop.f32.mrf.mxu1 }
 0x1aa   : > { %v1292_v55 = vpop.f32.mrf.mxu0  ;;  %1299 = vst [vmem:[%s2047_s26 + $0x10] sm:$0xff] %v1287_v53  ;;  %v1289_v56 = vadd.f32 %v1288_v51, %v1212_v12  ;;  %v1216_v57 = vadd.f32 %v1215_v54, %v1139_v52 }
 0x1ab   : > { %v1217_v21 = vpop.f32.mrf.mxu1 }
 0x1ac   : > { %1300 = vst [vmem:[%s2047_s26 + $0x18] sm:$0xff] %v1289_v56  ;;  %v1293_v58 = vadd.f32 %v1292_v55, %v1216_v57  ;;  %v1218_v29 = vadd.f32 %v1217_v21, %v1141_v14  ;;  %v1294_v59 = vpop.f32.mrf.mxu0 }
 0x1ae   : > { %1303 = vst [vmem:[%s2047_s26 + $0x30] sm:$0xff] %v1293_v58  ;;  %v1295_v25 = vadd.f32 %v1294_v59, %v1218_v29 }
 0x1b0   : > { %1304 = vst [vmem:[%s2047_s26 + $0x38] sm:$0xff] %v1295_v25 }
 0x1b1 PF: > { %s13_s14 = sadd.s32 1, %s1492_s14   ;;  %s2070_s12 = smov %s1488_s13 }
 0x1b2   : > { %p10_p5 = scmp.ge.s32.totalorder %s13_s14, 4   ;;  %s2071_s13 = smov %s2073_s15 }
 0x1b4   :  { %12 = sbr.rel (!%p10_p5) target bundleno = 2 (0x2), region = 68 }

// kernel: bidaf_forward.19
= control target key start
LH: loop header
LB: loop body
LE: loop exit
PB: predicated region body
PF: predicated region fallthrough
CT: control target
= control target key end

     0   :  { %s2677_s9 = smov 0   ;;  %s3901_s0 = inlined_call_operand.vmem [shape: f32[2,8,2,512], index: 0, kind: input, shape index: {}]   ;;  %s3902_s1 = inlined_call_operand.vmem [shape: f32[2,128,512], index: 1, kind: input, shape index: {}]   ;;  %s3903_s2 = inlined_call_operand.vmem [shape: f32[2,8,2,128], index: 2, kind: output, shape index: {}]  }
   0x1 LB: > { %s2683_s10 = sadd.s32 4294967295, %s2658_s9   ;;  %p2446_p0 = scmp.ge.s32.totalorder %s2658_s9, 1  ;;  %s2658_s9 = sphi %s2677_s9, %s12_s9  }
   0x2   : > { %p122_p1 = scmp.lt.s32.totalorder %s2658_s9, 3 }
   0x4   : > { %p123_p2 = pnand %p2446_p0, %p122_p1 }
   0x6   : > { %126 = sbr.rel (%p123_p2) target bundleno = 2163 (0x873), region = 28 }
   0xb   : > { %p149_p3 = scmp.lt.s32.totalorder %s2683_s10, 1  ;;  %v3904_v0 = vmov 0.0   ;;  %p166_p4 = scmp.eq.s32.totalorder %s2683_s10, 0 }
   0xc   : > { %301 = vmatprep.mubr.f32.mxu0 %v3904_v0  ;;  %164 = vst [vmem:[#allocation2] sm:$0x3] %v3904_v0  ;;  %165 = vst [vmem:[#allocation3] sm:$0x3] %v3904_v0  ;;  %372 = vmatprep.mubr.f32.mxu1 %v3904_v0 }
   0xd   : > { %s2693_s11 = scalar_select %p149_p3, %s2683_s10, 1 }
   0xe   : > { %s3028_s16 = scalar_select %p166_p4, 0, 7 }
   0xf   : > { %s2504_s12 = sshll.u32 %s2693_s11, 9  ;;  %s2503_s17 = sshll.u32 %s2693_s11, 6 }
  0x10   : > { %s2699_s15 = scalar_lea.vmem %s3902_s1, %s2504_s12  ;;  %s3034_s20 = scalar_lea.vmem %s3901_s0, %s2503_s17 }
  0x11   : > { %v2702_v1 = vld [vmem:[%s2699_s15 + $0x1e8] sm:$0xff]  ;;  %v2705_v2 = vld [vmem:[%s2699_s15 + $0x1f8] sm:$0xff]  ;;  %v2708_v3 = vld [vmem:[%s2699_s15 + $0x1e0] sm:$0xff]  ;;  %s2506_s21 = sshll.u32 %s3028_s16, 3  ;;  %s2505_s23 = sshll.u32 %s2693_s11, 4 }
  0x12   : > { %237 = vmatprep.subr.mxu0 %v2702_v1  ;;  %308 = vmatprep.subr.mxu1 %v2705_v2  ;;  %v2713_v4 = vld [vmem:[%s2699_s15 + $0x1f0] sm:$0xff]  ;;  %v2716_v5 = vld [vmem:[%s2699_s15 + $0x1c8] sm:$0xff]  ;;  %v2719_v6 = vld [vmem:[%s2699_s15 + $0x1d8] sm:$0xff]  ;;  %s170_s22 = scalar_lea.vmem %s3034_s20, %s2506_s21  ;;  %s3046_s26 = scalar_lea.vmem %s3903_s2, %s2505_s23 }
  0x13   : > { %238 = vmatpush1.msra.mxu0 %v2708_v3  ;;  %309 = vmatpush1.msra.mxu1 %v2713_v4  ;;  %v2724_v7 = vld [vmem:[%s2699_s15 + $0x1c0] sm:$0xff]  ;;  %v2727_v8 = vld [vmem:[%s2699_s15 + $0x1d0] sm:$0xff]  ;;  %v2730_v9 = vld [vmem:[%s2699_s15 + $0x1a8] sm:$0xff]  ;;  %s2458_s27 = sshll.u32 %s3028_s16, 1 }
  0x14   : > { %239 = vmatprep.subr.mxu0 %v2716_v5  ;;  %310 = vmatprep.subr.mxu1 %v2719_v6  ;;  %v2735_v10 = vld [vmem:[%s2699_s15 + $0x1b8] sm:$0xff]  ;;  %v2738_v11 = vld [vmem:[%s2699_s15 + $0x1a0] sm:$0xff]  ;;  %v2741_v12 = vld [vmem:[%s2699_s15 + $0x1b0] sm:$0xff]  ;;  %s437_s28 = scalar_lea.vmem %s3046_s26, %s2458_s27 }
  0x15   : > { %240 = vmatpush1.msra.mxu0 %v2724_v7  ;;  %311 = vmatpush1.msra.mxu1 %v2727_v8  ;;  %v2746_v13 = vld [vmem:[%s2699_s15 + $0x188] sm:$0xff]  ;;  %v2749_v14 = vld [vmem:[%s2699_s15 + $0x198] sm:$0xff]  ;;  %v2754_v15 = vld [vmem:[%s2699_s15 + $0x180] sm:$0xff]  ;;  %s3116_s29 = scalar_select %p166_p4, 1, 6 }
  0x16   : > { %241 = vmatprep.subr.mxu0 %v2730_v9  ;;  %312 = vmatprep.subr.mxu1 %v2735_v10  ;;  %v2757_v16 = vld [vmem:[%s2699_s15 + $0x190] sm:$0xff]  ;;  %v2762_v17 = vld [vmem:[%s2699_s15 + $0x168] sm:$0xff]  ;;  %v2765_v18 = vld [vmem:[%s2699_s15 + $0x178] sm:$0xff]  ;;  %s3386_s6 = scalar_select %p166_p4, 2, 5 }
  0x17   : > { %242 = vmatpush1.msra.mxu0 %v2738_v11  ;;  %313 = vmatpush1.msra.mxu1 %v2741_v12  ;;  %v2770_v19 = vld [vmem:[%s2699_s15 + $0x160] sm:$0xff]  ;;  %v2773_v20 = vld [vmem:[%s2699_s15 + $0x170] sm:$0xff]  ;;  %v2778_v21 = vld [vmem:[%s2699_s15 + $0x148] sm:$0xff]  ;;  %s2507_s30 = sshll.u32 %s3116_s29, 3  ;;  %s2464_s4 = sshll.u32 %s3116_s29, 1 }
  0x18   : > { %243 = vmatprep.subr.mxu0 %v2746_v13  ;;  %314 = vmatprep.subr.mxu1 %v2749_v14  ;;  %v2781_v22 = vld [vmem:[%s2699_s15 + $0x158] sm:$0xff]  ;;  %v2786_v23 = vld [vmem:[%s2699_s15 + $0x140] sm:$0xff]  ;;  %v2789_v24 = vld [vmem:[%s2699_s15 + $0x150] sm:$0xff]  ;;  %s442_s3 = scalar_lea.vmem %s3034_s20, %s2507_s30  ;;  %s709_s5 = scalar_lea.vmem %s3046_s26, %s2464_s4 }
  0x19   : > { %244 = vmatpush1.msra.mxu0 %v2754_v15  ;;  %315 = vmatpush1.msra.mxu1 %v2757_v16  ;;  %v2794_v25 = vld [vmem:[%s2699_s15 + $0x128] sm:$0xff]  ;;  %v2797_v26 = vld [vmem:[%s2699_s15 + $0x138] sm:$0xff]  ;;  %v2802_v27 = vld [vmem:[%s2699_s15 + $0x120] sm:$0xff]  ;;  %s2508_s7 = sshll.u32 %s3386_s6, 3  ;;  %s2470_s11 = sshll.u32 %s3386_s6, 1 }
  0x1a   : > { %245 = vmatprep.subr.mxu0 %v2762_v17  ;;  %316 = vmatprep.subr.mxu1 %v2765_v18  ;;  %v2805_v28 = vld [vmem:[%s2699_s15 + $0x130] sm:$0xff]  ;;  %v2810_v29 = vld [vmem:[%s2699_s15 + $0x108] sm:$0xff]  ;;  %v2813_v30 = vld [vmem:[%s2699_s15 + $0x118] sm:$0xff]  ;;  %s714_s8 = scalar_lea.vmem %s3034_s20, %s2508_s7  ;;  %s981_s12 = scalar_lea.vmem %s3046_s26, %s2470_s11 }
  0x1b   : > { %246 = vmatpush1.msra.mxu0 %v2770_v19  ;;  %317 = vmatpush1.msra.mxu1 %v2773_v20  ;;  %v2818_v31 = vld [vmem:[%s2699_s15 + $0x100] sm:$0xff]  ;;  %v2821_v32 = vld [vmem:[%s2699_s15 + $0x110] sm:$0xff]  ;;  %v2826_v33 = vld [vmem:[%s2699_s15 + $0xe8] sm:$0xff]  ;;  %s3462_s13 = scalar_select %p166_p4, 3, 4 }
  0x1c   : > { %247 = vmatprep.subr.mxu0 %v2778_v21  ;;  %318 = vmatprep.subr.mxu1 %v2781_v22  ;;  %v2829_v34 = vld [vmem:[%s2699_s15 + $0xf8] sm:$0xff]  ;;  %v2834_v35 = vld [vmem:[%s2699_s15 + $0xe0] sm:$0xff]  ;;  %v2837_v36 = vld [vmem:[%s2699_s15 + $0xf0] sm:$0xff]  ;;  %s3536_s19 = scalar_select %p166_p4, 4, 3 }
  0x1d   : > { %248 = vmatpush1.msra.mxu0 %v2786_v23  ;;  %319 = vmatpush1.msra.mxu1 %v2789_v24  ;;  %v2842_v37 = vld [vmem:[%s2699_s15 + $0xc8] sm:$0xff]  ;;  %v2845_v38 = vld [vmem:[%s2699_s15 + $0xd8] sm:$0xff]  ;;  %v2850_v39 = vld [vmem:[%s2699_s15 + $0xc0] sm:$0xff]  ;;  %s2509_s14 = sshll.u32 %s3462_s13, 3  ;;  %s2476_s17 = sshll.u32 %s3462_s13, 1 }
  0x1e   : > { %249 = vmatprep.subr.mxu0 %v2794_v25  ;;  %320 = vmatprep.subr.mxu1 %v2797_v26  ;;  %v2853_v40 = vld [vmem:[%s2699_s15 + $0xd0] sm:$0xff]  ;;  %v2858_v41 = vld [vmem:[%s2699_s15 + $0xa8] sm:$0xff]  ;;  %v2861_v42 = vld [vmem:[%s2699_s15 + $0xb8] sm:$0xff]  ;;  %s986_s16 = scalar_lea.vmem %s3034_s20, %s2509_s14  ;;  %s1253_s18 = scalar_lea.vmem %s3046_s26, %s2476_s17 }
  0x1f   : > { %250 = vmatpush1.msra.mxu0 %v2802_v27  ;;  %321 = vmatpush1.msra.mxu1 %v2805_v28  ;;  %v2866_v43 = vld [vmem:[%s2699_s15 + $0xa0] sm:$0xff]  ;;  %v2869_v44 = vld [vmem:[%s2699_s15 + $0xb0] sm:$0xff]  ;;  %v2874_v45 = vld [vmem:[%s2699_s15 + $0x88] sm:$0xff]  ;;  %s2510_s21 = sshll.u32 %s3536_s19, 3  ;;  %s2482_s23 = sshll.u32 %s3536_s19, 1 }
  0x20   : > { %251 = vmatprep.subr.mxu0 %v2810_v29  ;;  %322 = vmatprep.subr.mxu1 %v2813_v30  ;;  %v2877_v46 = vld [vmem:[%s2699_s15 + $0x98] sm:$0xff]  ;;  %v2882_v47 = vld [vmem:[%s2699_s15 + $0x80] sm:$0xff]  ;;  %v2885_v48 = vld [vmem:[%s2699_s15 + $0x90] sm:$0xff]  ;;  %s1525_s24 = scalar_lea.vmem %s3046_s26, %s2482_s23 }
  0x21   : > { %252 = vmatpush1.msra.mxu0 %v2818_v31  ;;  %323 = vmatpush1.msra.mxu1 %v2821_v32  ;;  %3985 = vst [vmem:[#allocation4_spill] sm:$0xff] %v2882_v47  ;;  %3986 = vst [vmem:[#allocation5_spill] sm:$0xff] %v2885_v48  ;;  %v2890_v49 = vld [vmem:[%s2699_s15 + $0x68] sm:$0xff]  ;;  %v2893_v50 = vld [vmem:[%s2699_s15 + $0x78] sm:$0xff]  ;;  %s3880_s30 = scalar_select %p166_p4, 6, 1 }
  0x22   : > { %253 = vmatprep.subr.mxu0 %v2826_v33  ;;  %324 = vmatprep.subr.mxu1 %v2829_v34  ;;  %3987 = vst [vmem:[#allocation6_spill] sm:$0xff] %v2890_v49  ;;  %3988 = vst [vmem:[#allocation7_spill] sm:$0xff] %v2893_v50  ;;  %v2898_v51 = vld [vmem:[%s2699_s15 + $0x60] sm:$0xff]  ;;  %v2901_v52 = vld [vmem:[%s2699_s15 + $0x70] sm:$0xff]  ;;  %s3890_s7 = scalar_select %p166_p4, 7, 0 }
  0x23   : > { %254 = vmatpush1.msra.mxu0 %v2834_v35  ;;  %325 = vmatpush1.msra.mxu1 %v2837_v36  ;;  %3989 = vst [vmem:[#allocation8_spill] sm:$0xff] %v2898_v51  ;;  %3990 = vst [vmem:[#allocation9_spill] sm:$0xff] %v2901_v52  ;;  %v2906_v53 = vld [vmem:[%s2699_s15 + $0x48] sm:$0xff]  ;;  %v2909_v54 = vld [vmem:[%s2699_s15 + $0x58] sm:$0xff] }
  0x24   : > { %255 = vmatprep.subr.mxu0 %v2842_v37  ;;  %326 = vmatprep.subr.mxu1 %v2845_v38  ;;  %3991 = vst [vmem:[#allocation10_spill] sm:$0xff] %v2906_v53  ;;  %3992 = vst [vmem:[#allocation11_spill] sm:$0xff] %v2909_v54  ;;  %v2914_v55 = vld [vmem:[%s2699_s15 + $0x40] sm:$0xff]  ;;  %v2917_v56 = vld [vmem:[%s2699_s15 + $0x50] sm:$0xff]  ;;  %s2500_s10 = sshll.u32 %s3890_s7, 1 }
  0x25   : > { %256 = vmatpush1.msra.mxu0 %v2850_v39  ;;  %327 = vmatpush1.msra.mxu1 %v2853_v40  ;;  %3993 = vst [vmem:[#allocation12_spill] sm:$0xff] %v2914_v55  ;;  %3994 = vst [vmem:[#allocation13_spill] sm:$0xff] %v2917_v56  ;;  %v2922_v57 = vld [vmem:[%s2699_s15 + $0x28] sm:$0xff]  ;;  %v2925_v58 = vld [vmem:[%s2699_s15 + $0x38] sm:$0xff] }
  0x26   : > { %257 = vmatprep.subr.mxu0 %v2858_v41  ;;  %328 = vmatprep.subr.mxu1 %v2861_v42  ;;  %3995 = vst [vmem:[#allocation14_spill] sm:$0xff] %v2922_v57  ;;  %3996 = vst [vmem:[#allocation15_spill] sm:$0xff] %v2925_v58  ;;  %v2930_v59 = vld [vmem:[%s2699_s15 + $0x20] sm:$0xff]  ;;  %v2933_v60 = vld [vmem:[%s2699_s15 + $0x30] sm:$0xff] }
  0x27   : > { %258 = vmatpush1.msra.mxu0 %v2866_v43  ;;  %329 = vmatpush1.msra.mxu1 %v2869_v44  ;;  %3997 = vst [vmem:[#allocation16_spill] sm:$0xff] %v2930_v59  ;;  %3998 = vst [vmem:[#allocation17_spill] sm:$0xff] %v2933_v60  ;;  %v2938_v61 = vld [vmem:[%s2699_s15 + $0x8] sm:$0xff]  ;;  %v2941_v62 = vld [vmem:[%s2699_s15 + $0x18] sm:$0xff] }
  0x28   : > { %259 = vmatprep.subr.mxu0 %v2874_v45  ;;  %330 = vmatprep.subr.mxu1 %v2877_v46  ;;  %3999 = vst [vmem:[#allocation18_spill] sm:$0xff] %v2938_v61  ;;  %4000 = vst [vmem:[#allocation19_spill] sm:$0xff] %v2941_v62  ;;  %v2946_v63 = vld [vmem:[%s2699_s15] sm:$0xff]  ;;  %v2949_v0 = vld [vmem:[%s2699_s15 + $0x10] sm:$0xff] }
  0x29   : > { %260 = vmatpush1.msra.mxu0 %v2882_v47  ;;  %331 = vmatpush1.msra.mxu1 %v2885_v48  ;;  %4001 = vst [vmem:[#allocation20_spill] sm:$0xff] %v2946_v63  ;;  %4002 = vst [vmem:[#allocation21_spill] sm:$0xff] %v2949_v0 }
  0x2a   : > { %261 = vmatprep.subr.mxu0 %v2890_v49  ;;  %332 = vmatprep.subr.mxu1 %v2893_v50 }
  0x2b   : > { %262 = vmatpush1.msra.mxu0 %v2898_v51  ;;  %333 = vmatpush1.msra.mxu1 %v2901_v52 }
  0x2c   : > { %263 = vmatprep.subr.mxu0 %v2906_v53  ;;  %334 = vmatprep.subr.mxu1 %v2909_v54  ;;  %v172_v54 = vld [vmem:[#allocation2] sm:$0x3] }
  0x2d   : > { %264 = vmatpush1.msra.mxu0 %v2914_v55  ;;  %335 = vmatpush1.msra.mxu1 %v2917_v56 }
  0x2e   : > { %265 = vmatprep.subr.mxu0 %v2922_v57  ;;  %336 = vmatprep.subr.mxu1 %v2925_v58 }
  0x2f   : > { %266 = vmatpush1.msra.mxu0 %v2930_v59  ;;  %337 = vmatpush1.msra.mxu1 %v2933_v60 }
  0x30   : > { %267 = vmatprep.subr.mxu0 %v2938_v61  ;;  %338 = vmatprep.subr.mxu1 %v2941_v62 }
  0x31   : > { %268 = vmatpush1.msra.mxu0 %v2946_v63  ;;  %339 = vmatpush1.msra.mxu1 %v2949_v0 }
  0x32   : > { %302 = vmatmul.mubr.f32.vlgmr.msra.gmra.mxu0 %v172_v54  ;;  %373 = vmatmul.mubr.f32.vlgmr.msra.gmra.mxu1 %v172_v54  ;;  %v4003_v54 = vld [vmem:[#allocation11_spill] sm:$0xff] }
  0x33   : > { %509 = vmatprep.subr.mxu0 %v2702_v1  ;;  %580 = vmatprep.subr.mxu1 %v2705_v2 }
  0x34   : > { %510 = vmatpush1.msra.mxu0 %v2708_v3  ;;  %581 = vmatpush1.msra.mxu1 %v2713_v4 }
  0x35   : > { %511 = vmatprep.subr.mxu0 %v2716_v5  ;;  %582 = vmatprep.subr.mxu1 %v2719_v6 }
  0x36   : > { %512 = vmatpush1.msra.mxu0 %v2724_v7  ;;  %583 = vmatpush1.msra.mxu1 %v2727_v8 }
  0x37   : > { %513 = vmatprep.subr.mxu0 %v2730_v9  ;;  %584 = vmatprep.subr.mxu1 %v2735_v10 }
  0x38   : > { %514 = vmatpush1.msra.mxu0 %v2738_v11  ;;  %585 = vmatpush1.msra.mxu1 %v2741_v12 }
  0x39   : > { %515 = vmatprep.subr.mxu0 %v2746_v13  ;;  %586 = vmatprep.subr.mxu1 %v2749_v14 }
  0x3a   : > { %516 = vmatpush1.msra.mxu0 %v2754_v15  ;;  %587 = vmatpush1.msra.mxu1 %v2757_v16 }
  0x3b   : > { %517 = vmatprep.subr.mxu0 %v2762_v17  ;;  %588 = vmatprep.subr.mxu1 %v2765_v18 }
  0x3c   : > { %518 = vmatpush1.msra.mxu0 %v2770_v19  ;;  %589 = vmatpush1.msra.mxu1 %v2773_v20 }
  0x3d   : > { %519 = vmatprep.subr.mxu0 %v2778_v21  ;;  %590 = vmatprep.subr.mxu1 %v2781_v22 }
  0x3e   : > { %520 = vmatpush1.msra.mxu0 %v2786_v23  ;;  %591 = vmatpush1.msra.mxu1 %v2789_v24 }
  0x3f   : > { %521 = vmatprep.subr.mxu0 %v2794_v25  ;;  %592 = vmatprep.subr.mxu1 %v2797_v26 }
  0x40   : > { %522 = vmatpush1.msra.mxu0 %v2802_v27  ;;  %593 = vmatpush1.msra.mxu1 %v2805_v28 }
  0x41   : > { %523 = vmatprep.subr.mxu0 %v2810_v29  ;;  %594 = vmatprep.subr.mxu1 %v2813_v30 }
  0x42   : > { %524 = vmatpush1.msra.mxu0 %v2818_v31  ;;  %595 = vmatpush1.msra.mxu1 %v2821_v32 }
  0x43   : > { %525 = vmatprep.subr.mxu0 %v2826_v33  ;;  %596 = vmatprep.subr.mxu1 %v2829_v34 }
  0x44   : > { %526 = vmatpush1.msra.mxu0 %v2834_v35  ;;  %597 = vmatpush1.msra.mxu1 %v2837_v36 }
  0x45   : > { %527 = vmatprep.subr.mxu0 %v2842_v37  ;;  %598 = vmatprep.subr.mxu1 %v2845_v38 }
  0x46   : > { %528 = vmatpush1.msra.mxu0 %v2850_v39  ;;  %599 = vmatpush1.msra.mxu1 %v2853_v40 }
  0x47   : > { %529 = vmatprep.subr.mxu0 %v2858_v41  ;;  %600 = vmatprep.subr.mxu1 %v2861_v42 }
  0x48   : > { %530 = vmatpush1.msra.mxu0 %v2866_v43  ;;  %601 = vmatpush1.msra.mxu1 %v2869_v44 }
  0x49   : > { %531 = vmatprep.subr.mxu0 %v2874_v45  ;;  %602 = vmatprep.subr.mxu1 %v2877_v46 }
  0x4a   : > { %532 = vmatpush1.msra.mxu0 %v2882_v47  ;;  %603 = vmatpush1.msra.mxu1 %v2885_v48 }
  0x4b   : > { %533 = vmatprep.subr.mxu0 %v2890_v49  ;;  %604 = vmatprep.subr.mxu1 %v2893_v50 }
  0x4c   : > { %534 = vmatpush1.msra.mxu0 %v2898_v51  ;;  %605 = vmatpush1.msra.mxu1 %v2901_v52 }
  0x4d   : > { %535 = vmatprep.subr.mxu0 %v2906_v53  ;;  %606 = vmatprep.subr.mxu1 %v4003_v54  ;;  %v4004_v54 = vmov 0.0  }
  0x4e   : > { %536 = vmatpush1.msra.mxu0 %v2914_v55  ;;  %607 = vmatpush1.msra.mxu1 %v2917_v56  ;;  %v171_v56 = vld [vmem:[%s170_s22] sm:$0xff]  ;;  %s1258_s22 = scalar_lea.vmem %s3034_s20, %s2510_s21 }
  0x4f   : > { %537 = vmatprep.subr.mxu0 %v2922_v57  ;;  %608 = vmatprep.subr.mxu1 %v2925_v58  ;;  %v388_v58 = vlaneseq }
  0x50   : > { %538 = vmatpush1.msra.mxu0 %v2930_v59  ;;  %609 = vmatpush1.msra.mxu1 %v2933_v60  ;;  %v2661_v59 = vmov 1983009808  }
  0x51   : > { %539 = vmatprep.subr.mxu0 %v2938_v61  ;;  %610 = vmatprep.subr.mxu1 %v2941_v62  ;;  %v386_v60 = vunpack.c.l.s4 %v2661_v59 }
  0x52   : > { %540 = vmatpush1.msra.mxu0 %v2946_v63  ;;  %573 = vmatprep.mubr.f32.mxu0 %v4004_v54  ;;  %v389_v63 = vshrl.u32 %v388_v58, 7 }
  0x53   : > { %611 = vmatpush1.msra.mxu1 %v2949_v0  ;;  %644 = vmatprep.mubr.f32.mxu1 %v4004_v54  ;;  %v387_v62 = vunpack.c.0.s8 %v386_v60 }
  0x54   : > { %781 = vmatprep.subr.mxu0 %v2702_v1  ;;  %852 = vmatprep.subr.mxu1 %v2705_v2 }
  0x55   : > { %v3037_v1 = vsub.s32 %v387_v62, %v389_v63 }
  0xf2   : > { %v303_v61 = vpop.f32.mrf.mxu0  ;;  %v374_v57 = vpop.f32.mrf.mxu1 }
  0xf4   : > { %v305_v2 = vpop.f32.mrf.mxu0  ;;  %v376_v59 = vpop.f32.mrf.mxu1 }
  0xf5   : > { %v383_v0 = vcombine.low %v303_v61, %v305_v2  ;;  %v384_v54 = vcombine.low %v374_v57, %v376_v59 }
  0xf7   : > { %v391_v60 = vrot.slane %v383_v0, %v3037_v1  ;;  %v398_v58 = vrot.slane %v384_v54, %v3037_v1 }
  0xf9   : > { %v399_v55 = vcombine.low %v391_v60, %v398_v58 }
  0xfb   : > { %v401_v53 = vadd.f32 %v399_v55, %v171_v56  ;;  %v428_v56 = vld [vmem:[#allocation3] sm:$0x3] }
  0xfd   : > { %v2455_v52 = vmul.f32 -1.442695, %v401_v53  ;;  %v409_v51 = vrot.slane %v401_v53, 2  ;;  %v420_v49 = vrot.slane %v401_v53, 6  ;;  %v417_v48 = vrot.slane %v401_v53, 4 }
  0xff   : > { %2524 = vpow2.f32 %v2455_v52  ;;  %v2456_v50 = vmul.f32 -1.442695, %v409_v51  ;;  %v2457_v62 = vmul.f32 -1.442695, %v420_v49 }
 0x101   : > { %2526 = vpow2.f32 %v2456_v50 }
 0x102   : > { %2528 = vpow2.f32 %v2457_v62 }
 0x10c   : > { %v2525_v63 = vpop.eup %2524 }
 0x10d   : > { %v405_v47 = vadd.f32 1.0, %v2525_v63 }
 0x10e   : > { %v2527_v61 = vpop.eup %2526 }
 0x10f   : > { %2530 = vrcp.f32 %v405_v47  ;;  %v414_v0 = vadd.f32 1.0, %v2527_v61  ;;  %v2529_v57 = vpop.eup %2528 }
 0x110   : > { %2532 = vtanh.f32 %v417_v48  ;;  %v425_v51 = vadd.f32 1.0, %v2529_v57 }
 0x111   : > { %2534 = vrcp.f32 %v414_v0 }
 0x112   : > { %2536 = vrcp.f32 %v425_v51  ;;  %v3135_v51 = vld [vmem:[%s2699_s15 + $0x1e0] sm:$0xff] }
 0x11c   : > { %v2531_v55 = vpop.eup %2530 }
 0x11d   : > { %v2533_v54 = vpop.eup %2532 }
 0x11e   : > { %v2535_v52 = vpop.eup %2534  ;;  %v430_v2 = vmul.f32 %v2533_v54, %v2531_v55  ;;  %v3127_v54 = vld [vmem:[%s2699_s15 + $0x1e8] sm:$0xff] }
 0x11f   : > { %v429_v50 = vmul.f32 %v2535_v52, %v428_v56  ;;  %v2537_v47 = vpop.eup %2536  ;;  %v3130_v52 = vld [vmem:[%s2699_s15 + $0x1f8] sm:$0xff] }
 0x121   : > { %v431_v49 = vadd.f32 %v430_v2, %v429_v50  ;;  %v3138_v50 = vld [vmem:[%s2699_s15 + $0x1f0] sm:$0xff]  ;;  %v3143_v2 = vld [vmem:[%s2699_s15 + $0x1c8] sm:$0xff] }
 0x123   : > { %2538 = vtanh.f32 %v431_v49  ;;  %434 = vst [vmem:[#allocation3] sm:$0x3] %v431_v49  ;;  %v3146_v49 = vld [vmem:[%s2699_s15 + $0x1d8] sm:$0xff] }
 0x12a   : > { %v700_v58 = vld [vmem:[#allocation3] sm:$0x3] }
 0x130   : > { %v2539_v48 = vpop.eup %2538 }
 0x131   : > { %v433_v53 = vmul.f32 %v2539_v48, %v2537_v47  ;;  %v3151_v47 = vld [vmem:[%s2699_s15 + $0x1c0] sm:$0xff]  ;;  %v3154_v48 = vld [vmem:[%s2699_s15 + $0x1d0] sm:$0xff] }
 0x133   : > { %435 = vst [vmem:[#allocation2] sm:$0x3] %v433_v53  ;;  %438 = vst [vmem:[%s437_s28] sm:$0x3] %v433_v53  ;;  %v3159_v53 = vld [vmem:[%s2699_s15 + $0x1a8] sm:$0xff] }
 0x13a   : > { %v444_v59 = vld [vmem:[#allocation2] sm:$0x3] }
 0x13b   : > { %574 = vmatmul.mubr.f32.vlgmr.msra.gmra.mxu0 %v444_v59  ;;  %645 = vmatmul.mubr.f32.vlgmr.msra.gmra.mxu1 %v444_v59  ;;  %v3162_v59 = vld [vmem:[%s2699_s15 + $0x1b8] sm:$0xff] }
 0x13c   : > { %782 = vmatpush1.msra.mxu0 %v2708_v3  ;;  %853 = vmatpush1.msra.mxu1 %v2713_v4  ;;  %v4005_v3 = vld [vmem:[#allocation4_spill] sm:$0xff]  ;;  %v4006_v4 = vld [vmem:[#allocation5_spill] sm:$0xff] }
 0x13d   : > { %783 = vmatprep.subr.mxu0 %v2716_v5  ;;  %854 = vmatprep.subr.mxu1 %v2719_v6  ;;  %v4007_v5 = vld [vmem:[#allocation6_spill] sm:$0xff]  ;;  %v4008_v6 = vld [vmem:[#allocation7_spill] sm:$0xff]  ;;  %4024 = vst [vmem:[#allocation4_spill] sm:$0xff] %v3127_v54  ;;  %4025 = vst [vmem:[#allocation5_spill] sm:$0xff] %v3130_v52 }
 0x13e   : > { %784 = vmatpush1.msra.mxu0 %v2724_v7  ;;  %855 = vmatpush1.msra.mxu1 %v2727_v8  ;;  %v4009_v7 = vld [vmem:[#allocation8_spill] sm:$0xff]  ;;  %v4010_v8 = vld [vmem:[#allocation9_spill] sm:$0xff] }
 0x13f   : > { %785 = vmatprep.subr.mxu0 %v2730_v9  ;;  %856 = vmatprep.subr.mxu1 %v2735_v10  ;;  %v4011_v9 = vld [vmem:[#allocation10_spill] sm:$0xff]  ;;  %v4012_v10 = vld [vmem:[#allocation11_spill] sm:$0xff] }
 0x140   : > { %786 = vmatpush1.msra.mxu0 %v2738_v11  ;;  %857 = vmatpush1.msra.mxu1 %v2741_v12  ;;  %v4013_v11 = vld [vmem:[#allocation12_spill] sm:$0xff]  ;;  %v4014_v12 = vld [vmem:[#allocation13_spill] sm:$0xff] }
 0x141   : > { %787 = vmatprep.subr.mxu0 %v2746_v13  ;;  %858 = vmatprep.subr.mxu1 %v2749_v14  ;;  %v4015_v13 = vld [vmem:[#allocation14_spill] sm:$0xff]  ;;  %v4016_v14 = vld [vmem:[#allocation15_spill] sm:$0xff] }
 0x142   : > { %788 = vmatpush1.msra.mxu0 %v2754_v15  ;;  %859 = vmatpush1.msra.mxu1 %v2757_v16  ;;  %v4017_v15 = vld [vmem:[#allocation16_spill] sm:$0xff]  ;;  %v4018_v16 = vld [vmem:[#allocation17_spill] sm:$0xff] }
 0x143   : > { %789 = vmatprep.subr.mxu0 %v2762_v17  ;;  %860 = vmatprep.subr.mxu1 %v2765_v18  ;;  %v4019_v17 = vld [vmem:[#allocation18_spill] sm:$0xff]  ;;  %v4020_v18 = vld [vmem:[#allocation19_spill] sm:$0xff] }
 0x144   : > { %790 = vmatpush1.msra.mxu0 %v2770_v19  ;;  %861 = vmatpush1.msra.mxu1 %v2773_v20  ;;  %v4021_v19 = vld [vmem:[#allocation20_spill] sm:$0xff]  ;;  %v4022_v20 = vmov 0.0  }
 0x145   : > { %791 = vmatprep.subr.mxu0 %v2778_v21  ;;  %862 = vmatprep.subr.mxu1 %v2781_v22  ;;  %v4023_v21 = vld [vmem:[#allocation21_spill] sm:$0xff] }
 0x146   : > { %792 = vmatpush1.msra.mxu0 %v2786_v23  ;;  %863 = vmatpush1.msra.mxu1 %v2789_v24 }
 0x147   : > { %793 = vmatprep.subr.mxu0 %v2794_v25  ;;  %864 = vmatprep.subr.mxu1 %v2797_v26 }
 0x148   : > { %794 = vmatpush1.msra.mxu0 %v2802_v27  ;;  %865 = vmatpush1.msra.mxu1 %v2805_v28 }
 0x149   : > { %795 = vmatprep.subr.mxu0 %v2810_v29  ;;  %866 = vmatprep.subr.mxu1 %v2813_v30  ;;  %v443_v30 = vld [vmem:[%s442_s3] sm:$0xff]  ;;  %s2512_s3 = sshll.u32 %s3880_s30, 3 }
 0x14a   : > { %796 = vmatpush1.msra.mxu0 %v2818_v31  ;;  %867 = vmatpush1.msra.mxu1 %v2821_v32  ;;  %s1802_s4 = scalar_lea.vmem %s3034_s20, %s2512_s3 }
 0x14b   : > { %797 = vmatprep.subr.mxu0 %v2826_v33  ;;  %868 = vmatprep.subr.mxu1 %v2829_v34 }
 0x14c   : > { %798 = vmatpush1.msra.mxu0 %v2834_v35  ;;  %869 = vmatpush1.msra.mxu1 %v2837_v36 }
 0x14d   : > { %799 = vmatprep.subr.mxu0 %v2842_v37  ;;  %870 = vmatprep.subr.mxu1 %v2845_v38 }
 0x14e   : > { %800 = vmatpush1.msra.mxu0 %v2850_v39  ;;  %871 = vmatpush1.msra.mxu1 %v2853_v40 }
 0x14f   : > { %801 = vmatprep.subr.mxu0 %v2858_v41  ;;  %872 = vmatprep.subr.mxu1 %v2861_v42 }
 0x150   : > { %802 = vmatpush1.msra.mxu0 %v2866_v43  ;;  %873 = vmatpush1.msra.mxu1 %v2869_v44 }
 0x151   : > { %803 = vmatprep.subr.mxu0 %v2874_v45  ;;  %874 = vmatprep.subr.mxu1 %v2877_v46 }
 0x152   : > { %804 = vmatpush1.msra.mxu0 %v4005_v3  ;;  %875 = vmatpush1.msra.mxu1 %v4006_v4  ;;  %v3167_v3 = vld [vmem:[%s2699_s15 + $0x1a0] sm:$0xff]  ;;  %v3170_v4 = vld [vmem:[%s2699_s15 + $0x1b0] sm:$0xff] }
 0x153   : > { %805 = vmatprep.subr.mxu0 %v4007_v5  ;;  %876 = vmatprep.subr.mxu1 %v4008_v6  ;;  %v3175_v5 = vld [vmem:[%s2699_s15 + $0x188] sm:$0xff]  ;;  %v3178_v6 = vld [vmem:[%s2699_s15 + $0x198] sm:$0xff] }
 0x154   : > { %806 = vmatpush1.msra.mxu0 %v4009_v7  ;;  %877 = vmatpush1.msra.mxu1 %v4010_v8  ;;  %v3183_v7 = vld [vmem:[%s2699_s15 + $0x180] sm:$0xff]  ;;  %v3186_v8 = vld [vmem:[%s2699_s15 + $0x190] sm:$0xff] }
 0x155   : > { %807 = vmatprep.subr.mxu0 %v4011_v9  ;;  %878 = vmatprep.subr.mxu1 %v4012_v10  ;;  %v3191_v9 = vld [vmem:[%s2699_s15 + $0x168] sm:$0xff]  ;;  %v3194_v10 = vld [vmem:[%s2699_s15 + $0x178] sm:$0xff] }
 0x156   : > { %808 = vmatpush1.msra.mxu0 %v4013_v11  ;;  %879 = vmatpush1.msra.mxu1 %v4014_v12  ;;  %v3199_v11 = vld [vmem:[%s2699_s15 + $0x160] sm:$0xff]  ;;  %v3202_v12 = vld [vmem:[%s2699_s15 + $0x170] sm:$0xff] }
 0x157   : > { %809 = vmatprep.subr.mxu0 %v4015_v13  ;;  %880 = vmatprep.subr.mxu1 %v4016_v14  ;;  %v3207_v13 = vld [vmem:[%s2699_s15 + $0x148] sm:$0xff]  ;;  %v3210_v14 = vld [vmem:[%s2699_s15 + $0x158] sm:$0xff] }
 0x158   : > { %810 = vmatpush1.msra.mxu0 %v4017_v15  ;;  %881 = vmatpush1.msra.mxu1 %v4018_v16  ;;  %v3215_v15 = vld [vmem:[%s2699_s15 + $0x140] sm:$0xff]  ;;  %v3218_v16 = vld [vmem:[%s2699_s15 + $0x150] sm:$0xff] }
 0x159   : > { %811 = vmatprep.subr.mxu0 %v4019_v17  ;;  %882 = vmatprep.subr.mxu1 %v4020_v18  ;;  %v3223_v17 = vld [vmem:[%s2699_s15 + $0x128] sm:$0xff]  ;;  %v3226_v18 = vld [vmem:[%s2699_s15 + $0x138] sm:$0xff] }
 0x15a   : > { %812 = vmatpush1.msra.mxu0 %v4021_v19  ;;  %845 = vmatprep.mubr.f32.mxu0 %v4022_v20  ;;  %v3231_v19 = vld [vmem:[%s2699_s15 + $0x120] sm:$0xff] }
 0x15b   : > { %883 = vmatpush1.msra.mxu1 %v4023_v21  ;;  %916 = vmatprep.mubr.f32.mxu1 %v4022_v20  ;;  %v3234_v21 = vld [vmem:[%s2699_s15 + $0x130] sm:$0xff] }
 0x15c   : > { %1053 = vmatprep.subr.mxu0 %v3127_v54  ;;  %1124 = vmatprep.subr.mxu1 %v3130_v52 }
 0x1fb   : > { %v575_v22 = vpop.f32.mrf.mxu0  ;;  %v646_v23 = vpop.f32.mrf.mxu1 }
 0x1fd   : > { %v577_v24 = vpop.f32.mrf.mxu0  ;;  %v648_v25 = vpop.f32.mrf.mxu1 }
 0x1fe   : > { %v655_v26 = vcombine.low %v575_v22, %v577_v24  ;;  %v656_v27 = vcombine.low %v646_v23, %v648_v25  ;;  %v3239_v22 = vld [vmem:[%s2699_s15 + $0x108] sm:$0xff]  ;;  %v3242_v23 = vld [vmem:[%s2699_s15 + $0x118] sm:$0xff]  ;;  %v3247_v24 = vld [vmem:[%s2699_s15 + $0x100] sm:$0xff] }
 0x1ff   : > { %v3250_v25 = vld [vmem:[%s2699_s15 + $0x110] sm:$0xff] }
 0x200   : > { %v663_v28 = vrot.slane %v655_v26, %v3037_v1  ;;  %v670_v29 = vrot.slane %v656_v27, %v3037_v1  ;;  %v3255_v26 = vld [vmem:[%s2699_s15 + $0xe8] sm:$0xff]  ;;  %v3258_v27 = vld [vmem:[%s2699_s15 + $0xf8] sm:$0xff] }
 0x202   : > { %v671_v31 = vcombine.low %v663_v28, %v670_v29  ;;  %v3263_v28 = vld [vmem:[%s2699_s15 + $0xe0] sm:$0xff]  ;;  %v3266_v29 = vld [vmem:[%s2699_s15 + $0xf0] sm:$0xff] }
 0x204   : > { %v673_v32 = vadd.f32 %v671_v31, %v443_v30  ;;  %v3271_v30 = vld [vmem:[%s2699_s15 + $0xc8] sm:$0xff]  ;;  %v3274_v31 = vld [vmem:[%s2699_s15 + $0xd8] sm:$0xff] }
 0x206   : > { %v2461_v33 = vmul.f32 -1.442695, %v673_v32  ;;  %v681_v34 = vrot.slane %v673_v32, 2  ;;  %v692_v36 = vrot.slane %v673_v32, 6  ;;  %v689_v39 = vrot.slane %v673_v32, 4  ;;  %v3279_v32 = vld [vmem:[%s2699_s15 + $0xc0] sm:$0xff] }
 0x208   : > { %2540 = vpow2.f32 %v2461_v33  ;;  %v2462_v35 = vmul.f32 -1.442695, %v681_v34  ;;  %v2463_v37 = vmul.f32 -1.442695, %v692_v36  ;;  %v3282_v33 = vld [vmem:[%s2699_s15 + $0xd0] sm:$0xff]  ;;  %v3287_v34 = vld [vmem:[%s2699_s15 + $0xa8] sm:$0xff] }
 0x209   : > { %v3295_v36 = vld [vmem:[%s2699_s15 + $0xa0] sm:$0xff] }
 0x20a   : > { %2542 = vpow2.f32 %v2462_v35  ;;  %v3290_v35 = vld [vmem:[%s2699_s15 + $0xb8] sm:$0xff] }
 0x20b   : > { %2544 = vpow2.f32 %v2463_v37  ;;  %v3298_v37 = vld [vmem:[%s2699_s15 + $0xb0] sm:$0xff] }
 0x215   : > { %v2541_v38 = vpop.eup %2540 }
 0x216   : > { %v677_v40 = vadd.f32 1.0, %v2541_v38  ;;  %v3303_v38 = vld [vmem:[%s2699_s15 + $0x88] sm:$0xff] }
 0x217   : > { %v2543_v41 = vpop.eup %2542 }
 0x218   : > { %2546 = vrcp.f32 %v677_v40  ;;  %v686_v42 = vadd.f32 1.0, %v2543_v41  ;;  %v2545_v43 = vpop.eup %2544  ;;  %v3311_v40 = vld [vmem:[%s2699_s15 + $0x80] sm:$0xff]  ;;  %v3314_v41 = vld [vmem:[%s2699_s15 + $0x90] sm:$0xff] }
 0x219   : > { %2548 = vtanh.f32 %v689_v39  ;;  %v697_v60 = vadd.f32 1.0, %v2545_v43  ;;  %v3306_v39 = vld [vmem:[%s2699_s15 + $0x98] sm:$0xff]  ;;  %4026 = vst [vmem:[#allocation6_spill] sm:$0xff] %v3311_v40  ;;  %4027 = vst [vmem:[#allocation7_spill] sm:$0xff] %v3314_v41 }
 0x21a   : > { %2550 = vrcp.f32 %v686_v42  ;;  %v3319_v42 = vld [vmem:[%s2699_s15 + $0x68] sm:$0xff]  ;;  %v3322_v43 = vld [vmem:[%s2699_s15 + $0x78] sm:$0xff] }
 0x21b   : > { %2552 = vrcp.f32 %v697_v60  ;;  %4028 = vst [vmem:[#allocation8_spill] sm:$0xff] %v3319_v42  ;;  %4029 = vst [vmem:[#allocation9_spill] sm:$0xff] %v3322_v43  ;;  %v3336_v60 = vld [vmem:[%s2699_s15 + $0x58] sm:$0xff] }
 0x21c   : > { %4033 = vst [vmem:[#allocation13_spill] sm:$0xff] %v3336_v60 }
 0x225   : > { %v2547_v44 = vpop.eup %2546 }
 0x226   : > { %v2549_v45 = vpop.eup %2548 }
 0x227   : > { %v2551_v46 = vpop.eup %2550  ;;  %v702_v63 = vmul.f32 %v2549_v45, %v2547_v44  ;;  %v3325_v44 = vld [vmem:[%s2699_s15 + $0x60] sm:$0xff]  ;;  %v3330_v45 = vld [vmem:[%s2699_s15 + $0x70] sm:$0xff] }
 0x228   : > { %v701_v62 = vmul.f32 %v2551_v46, %v700_v58  ;;  %v2553_v0 = vpop.eup %2552  ;;  %4030 = vst [vmem:[#allocation10_spill] sm:$0xff] %v3325_v44  ;;  %4031 = vst [vmem:[#allocation11_spill] sm:$0xff] %v3330_v45  ;;  %v3333_v46 = vld [vmem:[%s2699_s15 + $0x48] sm:$0xff]  ;;  %v3341_v58 = vld [vmem:[%s2699_s15 + $0x40] sm:$0xff] }
 0x229   : > { %4032 = vst [vmem:[#allocation12_spill] sm:$0xff] %v3333_v46  ;;  %4034 = vst [vmem:[#allocation14_spill] sm:$0xff] %v3341_v58 }
 0x22a   : > { %v703_v61 = vadd.f32 %v702_v63, %v701_v62  ;;  %v3344_v62 = vld [vmem:[%s2699_s15 + $0x50] sm:$0xff]  ;;  %v3347_v63 = vld [vmem:[%s2699_s15 + $0x28] sm:$0xff] }
 0x22b   : > { %4035 = vst [vmem:[#allocation15_spill] sm:$0xff] %v3344_v62  ;;  %4036 = vst [vmem:[#allocation16_spill] sm:$0xff] %v3347_v63 }
 0x22c   : > { %2554 = vtanh.f32 %v703_v61  ;;  %706 = vst [vmem:[#allocation3] sm:$0x3] %v703_v61  ;;  %v3352_v61 = vld [vmem:[%s2699_s15 + $0x38] sm:$0xff] }
 0x22d   : > { %4037 = vst [vmem:[#allocation17_spill] sm:$0xff] %v3352_v61 }
 0x239   : > { %v2555_v57 = vpop.eup %2554 }
 0x23a   : > { %v705_v55 = vmul.f32 %v2555_v57, %v2553_v0  ;;  %v3355_v0 = vld [vmem:[%s2699_s15 + $0x20] sm:$0xff]  ;;  %v3358_v57 = vld [vmem:[%s2699_s15 + $0x30] sm:$0xff] }
 0x23b   : > { %4038 = vst [vmem:[#allocation18_spill] sm:$0xff] %v3355_v0  ;;  %4039 = vst [vmem:[#allocation19_spill] sm:$0xff] %v3358_v57 }
 0x23c   : > { %707 = vst [vmem:[#allocation2] sm:$0x3] %v705_v55  ;;  %710 = vst [vmem:[%s709_s5] sm:$0x3] %v705_v55  ;;  %v3363_v55 = vld [vmem:[%s2699_s15 + $0x8] sm:$0xff]  ;;  %s2494_s5 = sshll.u32 %s3880_s30, 1 }
 0x23d   : > { %4040 = vst [vmem:[#allocation20_spill] sm:$0xff] %v3363_v55  ;;  %s2069_s6 = scalar_lea.vmem %s3046_s26, %s2494_s5 }
 0x243   : > { %v716_v56 = vld [vmem:[#allocation2] sm:$0x3] }
 0x244   : > { %846 = vmatmul.mubr.f32.vlgmr.msra.gmra.mxu0 %v716_v56  ;;  %917 = vmatmul.mubr.f32.vlgmr.msra.gmra.mxu1 %v716_v56  ;;  %v3366_v56 = vld [vmem:[%s2699_s15 + $0x18] sm:$0xff] }
 0x245   : > { %1117 = vmatprep.mubr.f32.mxu0 %v4022_v20  ;;  %1188 = vmatprep.mubr.f32.mxu1 %v4022_v20  ;;  %4041 = vst [vmem:[#allocation21_spill] sm:$0xff] %v3366_v56  ;;  %v3371_v20 = vld [vmem:[%s2699_s15] sm:$0xff] }
 0x246   : > { %1054 = vmatpush1.msra.mxu0 %v3135_v51  ;;  %1125 = vmatpush1.msra.mxu1 %v3138_v50  ;;  %4042 = vst [vmem:[#allocation22_spill] sm:$0xff] %v3371_v20 }
 0x247   : > { %1055 = vmatprep.subr.mxu0 %v3143_v2  ;;  %1126 = vmatprep.subr.mxu1 %v3146_v49 }
 0x248   : > { %1056 = vmatpush1.msra.mxu0 %v3151_v47  ;;  %1127 = vmatpush1.msra.mxu1 %v3154_v48 }
 0x249   : > { %1057 = vmatprep.subr.mxu0 %v3159_v53  ;;  %1128 = vmatprep.subr.mxu1 %v3162_v59 }
 0x24a   : > { %1058 = vmatpush1.msra.mxu0 %v3167_v3  ;;  %1129 = vmatpush1.msra.mxu1 %v3170_v4 }
 0x24b   : > { %1059 = vmatprep.subr.mxu0 %v3175_v5  ;;  %1130 = vmatprep.subr.mxu1 %v3178_v6 }
 0x24c   : > { %1060 = vmatpush1.msra.mxu0 %v3183_v7  ;;  %1131 = vmatpush1.msra.mxu1 %v3186_v8 }
 0x24d   : > { %1061 = vmatprep.subr.mxu0 %v3191_v9  ;;  %1132 = vmatprep.subr.mxu1 %v3194_v10 }
 0x24e   : > { %1062 = vmatpush1.msra.mxu0 %v3199_v11  ;;  %1133 = vmatpush1.msra.mxu1 %v3202_v12 }
 0x24f   : > { %1063 = vmatprep.subr.mxu0 %v3207_v13  ;;  %1134 = vmatprep.subr.mxu1 %v3210_v14 }
 0x250   : > { %1064 = vmatpush1.msra.mxu0 %v3215_v15  ;;  %1135 = vmatpush1.msra.mxu1 %v3218_v16 }
 0x251   : > { %1065 = vmatprep.subr.mxu0 %v3223_v17  ;;  %1136 = vmatprep.subr.mxu1 %v3226_v18 }
 0x252   : > { %1066 = vmatpush1.msra.mxu0 %v3231_v19  ;;  %1137 = vmatpush1.msra.mxu1 %v3234_v21 }
 0x253   : > { %1067 = vmatprep.subr.mxu0 %v3239_v22  ;;  %1138 = vmatprep.subr.mxu1 %v3242_v23 }
 0x254   : > { %1068 = vmatpush1.msra.mxu0 %v3247_v24  ;;  %1139 = vmatpush1.msra.mxu1 %v3250_v25 }
 0x255   : > { %1069 = vmatprep.subr.mxu0 %v3255_v26  ;;  %1140 = vmatprep.subr.mxu1 %v3258_v27 }
 0x256   : > { %1070 = vmatpush1.msra.mxu0 %v3263_v28  ;;  %1141 = vmatpush1.msra.mxu1 %v3266_v29 }
 0x257   : > { %1071 = vmatprep.subr.mxu0 %v3271_v30  ;;  %1142 = vmatprep.subr.mxu1 %v3274_v31 }
 0x258   : > { %1072 = vmatpush1.msra.mxu0 %v3279_v32  ;;  %1143 = vmatpush1.msra.mxu1 %v3282_v33 }
 0x259   : > { %1073 = vmatprep.subr.mxu0 %v3287_v34  ;;  %1144 = vmatprep.subr.mxu1 %v3290_v35 }
 0x25a   : > { %1074 = vmatpush1.msra.mxu0 %v3295_v36  ;;  %1145 = vmatpush1.msra.mxu1 %v3298_v37 }
 0x25b   : > { %1075 = vmatprep.subr.mxu0 %v3303_v38  ;;  %1146 = vmatprep.subr.mxu1 %v3306_v39 }
 0x25c   : > { %1076 = vmatpush1.msra.mxu0 %v3311_v40  ;;  %1147 = vmatpush1.msra.mxu1 %v3314_v41 }
 0x25d   : > { %1077 = vmatprep.subr.mxu0 %v3319_v42  ;;  %1148 = vmatprep.subr.mxu1 %v3322_v43 }
 0x25e   : > { %1078 = vmatpush1.msra.mxu0 %v3325_v44  ;;  %1149 = vmatpush1.msra.mxu1 %v3330_v45 }
 0x25f   : > { %1079 = vmatprep.subr.mxu0 %v3333_v46  ;;  %1150 = vmatprep.subr.mxu1 %v3336_v60  ;;  %v3374_v60 = vld [vmem:[%s2699_s15 + $0x10] sm:$0xff] }
 0x260   : > { %1080 = vmatpush1.msra.mxu0 %v3341_v58  ;;  %1151 = vmatpush1.msra.mxu1 %v3344_v62  ;;  %4043 = vst [vmem:[#allocation23_spill] sm:$0xff] %v3374_v60  ;;  %v715_v62 = vld [vmem:[%s714_s8] sm:$0xff]  ;;  %s2513_s8 = sshll.u32 %s3890_s7, 3 }
 0x261   : > { %1081 = vmatprep.subr.mxu0 %v3347_v63  ;;  %1152 = vmatprep.subr.mxu1 %v3352_v61  ;;  %s2074_s11 = scalar_lea.vmem %s3034_s20, %s2513_s8 }
 0x262   : > { %1082 = vmatpush1.msra.mxu0 %v3355_v0  ;;  %1153 = vmatpush1.msra.mxu1 %v3358_v57 }
 0x263   : > { %1083 = vmatprep.subr.mxu0 %v3363_v55  ;;  %1154 = vmatprep.subr.mxu1 %v3366_v56 }
 0x264   : > { %1084 = vmatpush1.msra.mxu0 %v3371_v20  ;;  %1155 = vmatpush1.msra.mxu1 %v3374_v60 }
 0x265   : > { %1325 = vmatprep.subr.mxu0 %v3127_v54  ;;  %1396 = vmatprep.subr.mxu1 %v3130_v52 }
 0x304   : > { %v847_v61 = vpop.f32.mrf.mxu0  ;;  %v918_v0 = vpop.f32.mrf.mxu1 }
 0x306   : > { %v849_v57 = vpop.f32.mrf.mxu0  ;;  %v920_v63 = vpop.f32.mrf.mxu1 }
 0x307   : > { %v927_v55 = vcombine.low %v847_v61, %v849_v57  ;;  %v928_v56 = vcombine.low %v918_v0, %v920_v63  ;;  %v4045_v57 = vld [vmem:[#allocation7_spill] sm:$0xff] }
 0x309   : > { %v935_v20 = vrot.slane %v927_v55, %v3037_v1  ;;  %v942_v60 = vrot.slane %v928_v56, %v3037_v1  ;;  %v4046_v55 = vld [vmem:[#allocation8_spill] sm:$0xff]  ;;  %v4047_v56 = vld [vmem:[#allocation9_spill] sm:$0xff] }
 0x30b   : > { %v943_v54 = vcombine.low %v935_v20, %v942_v60 }
 0x30d   : > { %v945_v58 = vadd.f32 %v943_v54, %v715_v62 }
 0x30f   : > { %v2467_v52 = vmul.f32 -1.442695, %v945_v58  ;;  %v953_v46 = vrot.slane %v945_v58, 2  ;;  %v964_v44 = vrot.slane %v945_v58, 6  ;;  %v961_v41 = vrot.slane %v945_v58, 4  ;;  %v4044_v58 = vld [vmem:[#allocation6_spill] sm:$0xff] }
 0x311   : > { %2556 = vpow2.f32 %v2467_v52  ;;  %v2468_v45 = vmul.f32 -1.442695, %v953_v46  ;;  %v2469_v43 = vmul.f32 -1.442695, %v964_v44  ;;  %v972_v46 = vld [vmem:[#allocation3] sm:$0x3] }
 0x313   : > { %2558 = vpow2.f32 %v2468_v45 }
 0x314   : > { %2560 = vpow2.f32 %v2469_v43 }
 0x31e   : > { %v2557_v42 = vpop.eup %2556 }
 0x31f   : > { %v949_v40 = vadd.f32 1.0, %v2557_v42 }
 0x320   : > { %v2559_v61 = vpop.eup %2558 }
 0x321   : > { %2562 = vrcp.f32 %v949_v40  ;;  %v958_v63 = vadd.f32 1.0, %v2559_v61  ;;  %v2561_v20 = vpop.eup %2560  ;;  %v4048_v61 = vld [vmem:[#allocation10_spill] sm:$0xff] }
 0x322   : > { %2564 = vtanh.f32 %v961_v41  ;;  %v969_v52 = vadd.f32 1.0, %v2561_v20  ;;  %v4050_v20 = vld [vmem:[#allocation12_spill] sm:$0xff] }
 0x323   : > { %2566 = vrcp.f32 %v958_v63  ;;  %v4049_v63 = vld [vmem:[#allocation11_spill] sm:$0xff] }
 0x324   : > { %2568 = vrcp.f32 %v969_v52  ;;  %v4054_v52 = vld [vmem:[#allocation16_spill] sm:$0xff] }
 0x32e   : > { %v2563_v54 = vpop.eup %2562 }
 0x32f   : > { %v2565_v60 = vpop.eup %2564 }
 0x330   : > { %v2567_v62 = vpop.eup %2566  ;;  %v974_v0 = vmul.f32 %v2565_v60, %v2563_v54  ;;  %v4051_v54 = vld [vmem:[#allocation13_spill] sm:$0xff]  ;;  %v4052_v60 = vld [vmem:[#allocation14_spill] sm:$0xff] }
 0x331   : > { %v973_v45 = vmul.f32 %v2567_v62, %v972_v46  ;;  %v2569_v42 = vpop.eup %2568  ;;  %v4053_v62 = vld [vmem:[#allocation15_spill] sm:$0xff]  ;;  %v4055_v46 = vld [vmem:[#allocation17_spill] sm:$0xff] }
 0x333   : > { %v975_v44 = vadd.f32 %v974_v0, %v973_v45  ;;  %v4056_v45 = vld [vmem:[#allocation18_spill] sm:$0xff]  ;;  %v4057_v0 = vld [vmem:[#allocation19_spill] sm:$0xff] }
 0x335   : > { %2570 = vtanh.f32 %v975_v44  ;;  %978 = vst [vmem:[#allocation3] sm:$0x3] %v975_v44  ;;  %v4058_v44 = vld [vmem:[#allocation20_spill] sm:$0xff] }
 0x342   : > { %v2571_v40 = vpop.eup %2570 }
 0x343   : > { %v977_v43 = vmul.f32 %v2571_v40, %v2569_v42  ;;  %v4059_v42 = vld [vmem:[#allocation21_spill] sm:$0xff]  ;;  %v4060_v40 = vld [vmem:[#allocation22_spill] sm:$0xff] }
 0x345   : > { %979 = vst [vmem:[#allocation2] sm:$0x3] %v977_v43  ;;  %982 = vst [vmem:[%s981_s12] sm:$0x3] %v977_v43  ;;  %v4061_v43 = vmov 0.0  }
 0x34c   : > { %v988_v41 = vld [vmem:[#allocation2] sm:$0x3] }
 0x34d   : > { %1118 = vmatmul.mubr.f32.vlgmr.msra.gmra.mxu0 %v988_v41  ;;  %1189 = vmatmul.mubr.f32.vlgmr.msra.gmra.mxu1 %v988_v41  ;;  %v4062_v41 = vld [vmem:[#allocation23_spill] sm:$0xff] }
 0x34e   : > { %1326 = vmatpush1.msra.mxu0 %v3135_v51  ;;  %1397 = vmatpush1.msra.mxu1 %v3138_v50 }
 0x34f   : > { %1327 = vmatprep.subr.mxu0 %v3143_v2  ;;  %1398 = vmatprep.subr.mxu1 %v3146_v49 }
 0x350   : > { %1328 = vmatpush1.msra.mxu0 %v3151_v47  ;;  %1399 = vmatpush1.msra.mxu1 %v3154_v48 }
 0x351   : > { %1329 = vmatprep.subr.mxu0 %v3159_v53  ;;  %1400 = vmatprep.subr.mxu1 %v3162_v59 }
 0x352   : > { %1330 = vmatpush1.msra.mxu0 %v3167_v3  ;;  %1401 = vmatpush1.msra.mxu1 %v3170_v4 }
 0x353   : > { %1331 = vmatprep.subr.mxu0 %v3175_v5  ;;  %1402 = vmatprep.subr.mxu1 %v3178_v6 }
 0x354   : > { %1332 = vmatpush1.msra.mxu0 %v3183_v7  ;;  %1403 = vmatpush1.msra.mxu1 %v3186_v8 }
 0x355   : > { %1333 = vmatprep.subr.mxu0 %v3191_v9  ;;  %1404 = vmatprep.subr.mxu1 %v3194_v10 }
 0x356   : > { %1334 = vmatpush1.msra.mxu0 %v3199_v11  ;;  %1405 = vmatpush1.msra.mxu1 %v3202_v12 }
 0x357   : > { %1335 = vmatprep.subr.mxu0 %v3207_v13  ;;  %1406 = vmatprep.subr.mxu1 %v3210_v14 }
 0x358   : > { %1336 = vmatpush1.msra.mxu0 %v3215_v15  ;;  %1407 = vmatpush1.msra.mxu1 %v3218_v16 }
 0x359   : > { %1337 = vmatprep.subr.mxu0 %v3223_v17  ;;  %1408 = vmatprep.subr.mxu1 %v3226_v18 }
 0x35a   : > { %1338 = vmatpush1.msra.mxu0 %v3231_v19  ;;  %1409 = vmatpush1.msra.mxu1 %v3234_v21 }
 0x35b   : > { %1339 = vmatprep.subr.mxu0 %v3239_v22  ;;  %1410 = vmatprep.subr.mxu1 %v3242_v23 }
 0x35c   : > { %1340 = vmatpush1.msra.mxu0 %v3247_v24  ;;  %1411 = vmatpush1.msra.mxu1 %v3250_v25 }
 0x35d   : > { %1341 = vmatprep.subr.mxu0 %v3255_v26  ;;  %1412 = vmatprep.subr.mxu1 %v3258_v27 }
 0x35e   : > { %1342 = vmatpush1.msra.mxu0 %v3263_v28  ;;  %1413 = vmatpush1.msra.mxu1 %v3266_v29 }
 0x35f   : > { %1343 = vmatprep.subr.mxu0 %v3271_v30  ;;  %1414 = vmatprep.subr.mxu1 %v3274_v31 }
 0x360   : > { %1344 = vmatpush1.msra.mxu0 %v3279_v32  ;;  %1415 = vmatpush1.msra.mxu1 %v3282_v33 }
 0x361   : > { %1345 = vmatprep.subr.mxu0 %v3287_v34  ;;  %1416 = vmatprep.subr.mxu1 %v3290_v35 }
 0x362   : > { %1346 = vmatpush1.msra.mxu0 %v3295_v36  ;;  %1417 = vmatpush1.msra.mxu1 %v3298_v37 }
 0x363   : > { %1347 = vmatprep.subr.mxu0 %v3303_v38  ;;  %1418 = vmatprep.subr.mxu1 %v3306_v39 }
 0x364   : > { %1348 = vmatpush1.msra.mxu0 %v4044_v58  ;;  %1419 = vmatpush1.msra.mxu1 %v4045_v57 }
 0x365   : > { %1349 = vmatprep.subr.mxu0 %v4046_v55  ;;  %1420 = vmatprep.subr.mxu1 %v4047_v56 }
 0x366   : > { %1350 = vmatpush1.msra.mxu0 %v4048_v61  ;;  %1421 = vmatpush1.msra.mxu1 %v4049_v63 }
 0x367   : > { %1351 = vmatprep.subr.mxu0 %v4050_v20  ;;  %1422 = vmatprep.subr.mxu1 %v4051_v54 }
 0x368   : > { %1352 = vmatpush1.msra.mxu0 %v4052_v60  ;;  %1423 = vmatpush1.msra.mxu1 %v4053_v62  ;;  %v987_v60 = vld [vmem:[%s986_s16] sm:$0xff] }
 0x369   : > { %1353 = vmatprep.subr.mxu0 %v4054_v52  ;;  %1424 = vmatprep.subr.mxu1 %v4055_v46  ;;  %v4063_v52 = vld [vmem:[#allocation4_spill] sm:$0xff]  ;;  %v4064_v46 = vld [vmem:[#allocation5_spill] sm:$0xff] }
 0x36a   : > { %1354 = vmatpush1.msra.mxu0 %v4056_v45  ;;  %1425 = vmatpush1.msra.mxu1 %v4057_v0 }
 0x36b   : > { %1355 = vmatprep.subr.mxu0 %v4058_v44  ;;  %1426 = vmatprep.subr.mxu1 %v4059_v42 }
 0x36c   : > { %1356 = vmatpush1.msra.mxu0 %v4060_v40  ;;  %1389 = vmatprep.mubr.f32.mxu0 %v4061_v43 }
 0x36d   : > { %1427 = vmatpush1.msra.mxu1 %v4062_v41  ;;  %1460 = vmatprep.mubr.f32.mxu1 %v4061_v43 }
 0x36e   : > { %1597 = vmatprep.subr.mxu0 %v4063_v52  ;;  %1668 = vmatprep.subr.mxu1 %v4064_v46 }
 0x40d   : > { %v1119_v0 = vpop.f32.mrf.mxu0  ;;  %v1190_v44 = vpop.f32.mrf.mxu1 }
 0x40f   : > { %v1121_v42 = vpop.f32.mrf.mxu0  ;;  %v1192_v45 = vpop.f32.mrf.mxu1 }
 0x410   : > { %v1199_v40 = vcombine.low %v1119_v0, %v1121_v42  ;;  %v1200_v62 = vcombine.low %v1190_v44, %v1192_v45 }
 0x412   : > { %v1207_v41 = vrot.slane %v1199_v40, %v3037_v1  ;;  %v1214_v43 = vrot.slane %v1200_v62, %v3037_v1 }
 0x414   : > { %v1215_v52 = vcombine.low %v1207_v41, %v1214_v43 }
 0x416   : > { %v1217_v54 = vadd.f32 %v1215_v52, %v987_v60 }
 0x418   : > { %v2473_v46 = vmul.f32 -1.442695, %v1217_v54  ;;  %v1225_v20 = vrot.slane %v1217_v54, 2  ;;  %v1236_v61 = vrot.slane %v1217_v54, 6  ;;  %v1233_v57 = vrot.slane %v1217_v54, 4 }
 0x41a   : > { %2572 = vpow2.f32 %v2473_v46  ;;  %v2474_v63 = vmul.f32 -1.442695, %v1225_v20  ;;  %v2475_v56 = vmul.f32 -1.442695, %v1236_v61  ;;  %v1244_v20 = vld [vmem:[#allocation3] sm:$0x3] }
 0x41c   : > { %2574 = vpow2.f32 %v2474_v63 }
 0x41d   : > { %2576 = vpow2.f32 %v2475_v56 }
 0x427   : > { %v2573_v55 = vpop.eup %2572 }
 0x428   : > { %v1221_v58 = vadd.f32 1.0, %v2573_v55 }
 0x429   : > { %v2575_v0 = vpop.eup %2574 }
 0x42a   : > { %2578 = vrcp.f32 %v1221_v58  ;;  %v1230_v45 = vadd.f32 1.0, %v2575_v0  ;;  %v2577_v62 = vpop.eup %2576 }
 0x42b   : > { %2580 = vtanh.f32 %v1233_v57  ;;  %v1241_v40 = vadd.f32 1.0, %v2577_v62 }
 0x42c   : > { %2582 = vrcp.f32 %v1230_v45 }
 0x42d   : > { %2584 = vrcp.f32 %v1241_v40  ;;  %v3550_v40 = vld [vmem:[%s2699_s15 + $0x1f8] sm:$0xff] }
 0x437   : > { %v2579_v60 = vpop.eup %2578 }
 0x438   : > { %v2581_v44 = vpop.eup %2580 }
 0x439   : > { %v2583_v42 = vpop.eup %2582  ;;  %v1246_v43 = vmul.f32 %v2581_v44, %v2579_v60 }
 0x43a   : > { %v1245_v63 = vmul.f32 %v2583_v42, %v1244_v20  ;;  %v2585_v55 = vpop.eup %2584  ;;  %v3547_v42 = vld [vmem:[%s2699_s15 + $0x1e8] sm:$0xff]  ;;  %v3555_v20 = vld [vmem:[%s2699_s15 + $0x1e0] sm:$0xff] }
 0x43c   : > { %v1247_v61 = vadd.f32 %v1246_v43, %v1245_v63  ;;  %v3558_v63 = vld [vmem:[%s2699_s15 + $0x1f0] sm:$0xff]  ;;  %v3563_v43 = vld [vmem:[%s2699_s15 + $0x1c8] sm:$0xff] }
 0x43e   : > { %2586 = vtanh.f32 %v1247_v61  ;;  %1250 = vst [vmem:[#allocation3] sm:$0x3] %v1247_v61  ;;  %v3566_v61 = vld [vmem:[%s2699_s15 + $0x1d8] sm:$0xff] }
 0x445   : > { %v1516_v41 = vld [vmem:[#allocation3] sm:$0x3] }
 0x44b   : > { %v2587_v58 = vpop.eup %2586 }
 0x44c   : > { %v1249_v56 = vmul.f32 %v2587_v58, %v2585_v55  ;;  %v3571_v55 = vld [vmem:[%s2699_s15 + $0x1c0] sm:$0xff]  ;;  %v3574_v58 = vld [vmem:[%s2699_s15 + $0x1d0] sm:$0xff] }
 0x44e   : > { %1254 = vst [vmem:[%s1253_s18] sm:$0x3] %v1249_v56  ;;  %1251 = vst [vmem:[#allocation2] sm:$0x3] %v1249_v56  ;;  %v3579_v56 = vld [vmem:[%s2699_s15 + $0x1a8] sm:$0xff] }
 0x455   : > { %v1260_v57 = vld [vmem:[#allocation2] sm:$0x3] }
 0x456   : > { %1390 = vmatmul.mubr.f32.vlgmr.msra.gmra.mxu0 %v1260_v57  ;;  %1461 = vmatmul.mubr.f32.vlgmr.msra.gmra.mxu1 %v1260_v57  ;;  %v3582_v57 = vld [vmem:[%s2699_s15 + $0x1b8] sm:$0xff] }
 0x457   : > { %1598 = vmatpush1.msra.mxu0 %v3135_v51  ;;  %1669 = vmatpush1.msra.mxu1 %v3138_v50  ;;  %v4065_v51 = vld [vmem:[#allocation6_spill] sm:$0xff]  ;;  %v4066_v50 = vld [vmem:[#allocation7_spill] sm:$0xff] }
 0x458   : > { %1599 = vmatprep.subr.mxu0 %v3143_v2  ;;  %1670 = vmatprep.subr.mxu1 %v3146_v49  ;;  %v4067_v2 = vld [vmem:[#allocation8_spill] sm:$0xff]  ;;  %v4068_v49 = vld [vmem:[#allocation9_spill] sm:$0xff] }
 0x459   : > { %1600 = vmatpush1.msra.mxu0 %v3151_v47  ;;  %1671 = vmatpush1.msra.mxu1 %v3154_v48  ;;  %v4069_v47 = vld [vmem:[#allocation10_spill] sm:$0xff]  ;;  %v4070_v48 = vld [vmem:[#allocation11_spill] sm:$0xff] }
 0x45a   : > { %1601 = vmatprep.subr.mxu0 %v3159_v53  ;;  %1672 = vmatprep.subr.mxu1 %v3162_v59  ;;  %v4071_v53 = vld [vmem:[#allocation12_spill] sm:$0xff]  ;;  %v4072_v59 = vld [vmem:[#allocation13_spill] sm:$0xff] }
 0x45b   : > { %1602 = vmatpush1.msra.mxu0 %v3167_v3  ;;  %1673 = vmatpush1.msra.mxu1 %v3170_v4  ;;  %v4073_v3 = vld [vmem:[#allocation14_spill] sm:$0xff]  ;;  %v4074_v4 = vld [vmem:[#allocation15_spill] sm:$0xff] }
 0x45c   : > { %1603 = vmatprep.subr.mxu0 %v3175_v5  ;;  %1674 = vmatprep.subr.mxu1 %v3178_v6  ;;  %v4075_v5 = vld [vmem:[#allocation16_spill] sm:$0xff]  ;;  %v4076_v6 = vld [vmem:[#allocation17_spill] sm:$0xff] }
 0x45d   : > { %1604 = vmatpush1.msra.mxu0 %v3183_v7  ;;  %1675 = vmatpush1.msra.mxu1 %v3186_v8  ;;  %v4077_v7 = vld [vmem:[#allocation18_spill] sm:$0xff]  ;;  %v4078_v8 = vld [vmem:[#allocation19_spill] sm:$0xff] }
 0x45e   : > { %1605 = vmatprep.subr.mxu0 %v3191_v9  ;;  %1676 = vmatprep.subr.mxu1 %v3194_v10  ;;  %v4079_v9 = vld [vmem:[#allocation20_spill] sm:$0xff]  ;;  %v4080_v10 = vld [vmem:[#allocation21_spill] sm:$0xff] }
 0x45f   : > { %1606 = vmatpush1.msra.mxu0 %v3199_v11  ;;  %1677 = vmatpush1.msra.mxu1 %v3202_v12  ;;  %v4081_v11 = vld [vmem:[#allocation22_spill] sm:$0xff]  ;;  %v4082_v12 = vmov 0.0  }
 0x460   : > { %1607 = vmatprep.subr.mxu0 %v3207_v13  ;;  %1678 = vmatprep.subr.mxu1 %v3210_v14  ;;  %v4083_v13 = vld [vmem:[#allocation23_spill] sm:$0xff] }
 0x461   : > { %1608 = vmatpush1.msra.mxu0 %v3215_v15  ;;  %1679 = vmatpush1.msra.mxu1 %v3218_v16 }
 0x462   : > { %1609 = vmatprep.subr.mxu0 %v3223_v17  ;;  %1680 = vmatprep.subr.mxu1 %v3226_v18 }
 0x463   : > { %1610 = vmatpush1.msra.mxu0 %v3231_v19  ;;  %1681 = vmatpush1.msra.mxu1 %v3234_v21 }
 0x464   : > { %1611 = vmatprep.subr.mxu0 %v3239_v22  ;;  %1682 = vmatprep.subr.mxu1 %v3242_v23  ;;  %v1259_v23 = vld [vmem:[%s1258_s22] sm:$0xff] }
 0x465   : > { %1612 = vmatpush1.msra.mxu0 %v3247_v24  ;;  %1683 = vmatpush1.msra.mxu1 %v3250_v25 }
 0x466   : > { %1613 = vmatprep.subr.mxu0 %v3255_v26  ;;  %1684 = vmatprep.subr.mxu1 %v3258_v27 }
 0x467   : > { %1614 = vmatpush1.msra.mxu0 %v3263_v28  ;;  %1685 = vmatpush1.msra.mxu1 %v3266_v29 }
 0x468   : > { %1615 = vmatprep.subr.mxu0 %v3271_v30  ;;  %1686 = vmatprep.subr.mxu1 %v3274_v31 }
 0x469   : > { %1616 = vmatpush1.msra.mxu0 %v3279_v32  ;;  %1687 = vmatpush1.msra.mxu1 %v3282_v33 }
 0x46a   : > { %1617 = vmatprep.subr.mxu0 %v3287_v34  ;;  %1688 = vmatprep.subr.mxu1 %v3290_v35 }
 0x46b   : > { %1618 = vmatpush1.msra.mxu0 %v3295_v36  ;;  %1689 = vmatpush1.msra.mxu1 %v3298_v37 }
 0x46c   : > { %1619 = vmatprep.subr.mxu0 %v3303_v38  ;;  %1690 = vmatprep.subr.mxu1 %v3306_v39 }
 0x46d   : > { %1620 = vmatpush1.msra.mxu0 %v4065_v51  ;;  %1691 = vmatpush1.msra.mxu1 %v4066_v50  ;;  %v3587_v51 = vld [vmem:[%s2699_s15 + $0x1a0] sm:$0xff]  ;;  %v3590_v50 = vld [vmem:[%s2699_s15 + $0x1b0] sm:$0xff] }
 0x46e   : > { %1621 = vmatprep.subr.mxu0 %v4067_v2  ;;  %1692 = vmatprep.subr.mxu1 %v4068_v49  ;;  %v3595_v2 = vld [vmem:[%s2699_s15 + $0x188] sm:$0xff]  ;;  %v3598_v49 = vld [vmem:[%s2699_s15 + $0x198] sm:$0xff] }
 0x46f   : > { %1622 = vmatpush1.msra.mxu0 %v4069_v47  ;;  %1693 = vmatpush1.msra.mxu1 %v4070_v48  ;;  %v3603_v47 = vld [vmem:[%s2699_s15 + $0x180] sm:$0xff]  ;;  %v3606_v48 = vld [vmem:[%s2699_s15 + $0x190] sm:$0xff] }
 0x470   : > { %1623 = vmatprep.subr.mxu0 %v4071_v53  ;;  %1694 = vmatprep.subr.mxu1 %v4072_v59  ;;  %v3611_v53 = vld [vmem:[%s2699_s15 + $0x168] sm:$0xff]  ;;  %v3614_v59 = vld [vmem:[%s2699_s15 + $0x178] sm:$0xff] }
 0x471   : > { %1624 = vmatpush1.msra.mxu0 %v4073_v3  ;;  %1695 = vmatpush1.msra.mxu1 %v4074_v4  ;;  %v3619_v3 = vld [vmem:[%s2699_s15 + $0x160] sm:$0xff]  ;;  %v3622_v4 = vld [vmem:[%s2699_s15 + $0x170] sm:$0xff] }
 0x472   : > { %1625 = vmatprep.subr.mxu0 %v4075_v5  ;;  %1696 = vmatprep.subr.mxu1 %v4076_v6  ;;  %v3627_v5 = vld [vmem:[%s2699_s15 + $0x148] sm:$0xff]  ;;  %v3630_v6 = vld [vmem:[%s2699_s15 + $0x158] sm:$0xff] }
 0x473   : > { %1626 = vmatpush1.msra.mxu0 %v4077_v7  ;;  %1697 = vmatpush1.msra.mxu1 %v4078_v8  ;;  %v3635_v7 = vld [vmem:[%s2699_s15 + $0x140] sm:$0xff]  ;;  %v3638_v8 = vld [vmem:[%s2699_s15 + $0x150] sm:$0xff] }
 0x474   : > { %1627 = vmatprep.subr.mxu0 %v4079_v9  ;;  %1698 = vmatprep.subr.mxu1 %v4080_v10  ;;  %v3643_v9 = vld [vmem:[%s2699_s15 + $0x128] sm:$0xff]  ;;  %v3646_v10 = vld [vmem:[%s2699_s15 + $0x138] sm:$0xff] }
 0x475   : > { %1628 = vmatpush1.msra.mxu0 %v4081_v11  ;;  %1661 = vmatprep.mubr.f32.mxu0 %v4082_v12  ;;  %v3651_v11 = vld [vmem:[%s2699_s15 + $0x120] sm:$0xff] }
 0x476   : > { %1699 = vmatpush1.msra.mxu1 %v4083_v13  ;;  %1732 = vmatprep.mubr.f32.mxu1 %v4082_v12  ;;  %v3654_v13 = vld [vmem:[%s2699_s15 + $0x130] sm:$0xff] }
 0x477   : > { %1869 = vmatprep.subr.mxu0 %v3547_v42  ;;  %1940 = vmatprep.subr.mxu1 %v3550_v40 }
 0x516   : > { %v1391_v14 = vpop.f32.mrf.mxu0  ;;  %v1462_v15 = vpop.f32.mrf.mxu1 }
 0x518   : > { %v1393_v16 = vpop.f32.mrf.mxu0  ;;  %v1464_v17 = vpop.f32.mrf.mxu1 }
 0x519   : > { %v1471_v18 = vcombine.low %v1391_v14, %v1393_v16  ;;  %v1472_v19 = vcombine.low %v1462_v15, %v1464_v17  ;;  %v3659_v14 = vld [vmem:[%s2699_s15 + $0x108] sm:$0xff]  ;;  %v3662_v15 = vld [vmem:[%s2699_s15 + $0x118] sm:$0xff]  ;;  %v3667_v16 = vld [vmem:[%s2699_s15 + $0x100] sm:$0xff] }
 0x51a   : > { %v3670_v17 = vld [vmem:[%s2699_s15 + $0x110] sm:$0xff] }
 0x51b   : > { %v1479_v21 = vrot.slane %v1471_v18, %v3037_v1  ;;  %v1486_v22 = vrot.slane %v1472_v19, %v3037_v1  ;;  %v3675_v18 = vld [vmem:[%s2699_s15 + $0xe8] sm:$0xff]  ;;  %v3678_v19 = vld [vmem:[%s2699_s15 + $0xf8] sm:$0xff] }
 0x51d   : > { %v1487_v24 = vcombine.low %v1479_v21, %v1486_v22  ;;  %v3683_v21 = vld [vmem:[%s2699_s15 + $0xe0] sm:$0xff]  ;;  %v3686_v22 = vld [vmem:[%s2699_s15 + $0xf0] sm:$0xff] }
 0x51f   : > { %v1489_v25 = vadd.f32 %v1487_v24, %v1259_v23  ;;  %v3691_v23 = vld [vmem:[%s2699_s15 + $0xc8] sm:$0xff]  ;;  %v3694_v24 = vld [vmem:[%s2699_s15 + $0xd8] sm:$0xff] }
 0x521   : > { %v2479_v26 = vmul.f32 -1.442695, %v1489_v25  ;;  %v1497_v27 = vrot.slane %v1489_v25, 2  ;;  %v1508_v29 = vrot.slane %v1489_v25, 6  ;;  %v1505_v32 = vrot.slane %v1489_v25, 4  ;;  %v3699_v25 = vld [vmem:[%s2699_s15 + $0xc0] sm:$0xff] }
 0x523   : > { %2588 = vpow2.f32 %v2479_v26  ;;  %v2480_v28 = vmul.f32 -1.442695, %v1497_v27  ;;  %v2481_v30 = vmul.f32 -1.442695, %v1508_v29  ;;  %v3702_v26 = vld [vmem:[%s2699_s15 + $0xd0] sm:$0xff]  ;;  %v3707_v27 = vld [vmem:[%s2699_s15 + $0xa8] sm:$0xff] }
 0x524   : > { %v3715_v29 = vld [vmem:[%s2699_s15 + $0xa0] sm:$0xff] }
 0x525   : > { %2590 = vpow2.f32 %v2480_v28  ;;  %v3710_v28 = vld [vmem:[%s2699_s15 + $0xb8] sm:$0xff] }
 0x526   : > { %2592 = vpow2.f32 %v2481_v30  ;;  %v3718_v30 = vld [vmem:[%s2699_s15 + $0xb0] sm:$0xff] }
 0x530   : > { %v2589_v31 = vpop.eup %2588 }
 0x531   : > { %v1493_v33 = vadd.f32 1.0, %v2589_v31  ;;  %v3723_v31 = vld [vmem:[%s2699_s15 + $0x88] sm:$0xff] }
 0x532   : > { %v2591_v34 = vpop.eup %2590 }
 0x533   : > { %2594 = vrcp.f32 %v1493_v33  ;;  %v1502_v35 = vadd.f32 1.0, %v2591_v34  ;;  %v2593_v36 = vpop.eup %2592  ;;  %v3731_v33 = vld [vmem:[%s2699_s15 + $0x80] sm:$0xff]  ;;  %v3734_v34 = vld [vmem:[%s2699_s15 + $0x90] sm:$0xff] }
 0x534   : > { %2596 = vtanh.f32 %v1505_v32  ;;  %v1513_v54 = vadd.f32 1.0, %v2593_v36  ;;  %v3726_v32 = vld [vmem:[%s2699_s15 + $0x98] sm:$0xff]  ;;  %4084 = vst [vmem:[#allocation4_spill] sm:$0xff] %v3731_v33  ;;  %4085 = vst [vmem:[#allocation5_spill] sm:$0xff] %v3734_v34 }
 0x535   : > { %2598 = vrcp.f32 %v1502_v35  ;;  %v3739_v35 = vld [vmem:[%s2699_s15 + $0x68] sm:$0xff]  ;;  %v3742_v36 = vld [vmem:[%s2699_s15 + $0x78] sm:$0xff] }
 0x536   : > { %2600 = vrcp.f32 %v1513_v54  ;;  %4086 = vst [vmem:[#allocation6_spill] sm:$0xff] %v3739_v35  ;;  %4087 = vst [vmem:[#allocation7_spill] sm:$0xff] %v3742_v36  ;;  %v3756_v54 = vld [vmem:[%s2699_s15 + $0x58] sm:$0xff] }
 0x537   : > { %4091 = vst [vmem:[#allocation11_spill] sm:$0xff] %v3756_v54 }
 0x540   : > { %v2595_v37 = vpop.eup %2594 }
 0x541   : > { %v2597_v38 = vpop.eup %2596 }
 0x542   : > { %v2599_v39 = vpop.eup %2598  ;;  %v1518_v46 = vmul.f32 %v2597_v38, %v2595_v37  ;;  %v3745_v37 = vld [vmem:[%s2699_s15 + $0x60] sm:$0xff]  ;;  %v3750_v38 = vld [vmem:[%s2699_s15 + $0x70] sm:$0xff] }
 0x543   : > { %v1517_v52 = vmul.f32 %v2599_v39, %v1516_v41  ;;  %v2601_v45 = vpop.eup %2600  ;;  %4088 = vst [vmem:[#allocation8_spill] sm:$0xff] %v3745_v37  ;;  %4089 = vst [vmem:[#allocation9_spill] sm:$0xff] %v3750_v38  ;;  %v3753_v39 = vld [vmem:[%s2699_s15 + $0x48] sm:$0xff]  ;;  %v3761_v41 = vld [vmem:[%s2699_s15 + $0x40] sm:$0xff] }
 0x544   : > { %4090 = vst [vmem:[#allocation10_spill] sm:$0xff] %v3753_v39  ;;  %4092 = vst [vmem:[#allocation12_spill] sm:$0xff] %v3761_v41 }
 0x545   : > { %v1519_v0 = vadd.f32 %v1518_v46, %v1517_v52  ;;  %v3764_v52 = vld [vmem:[%s2699_s15 + $0x50] sm:$0xff]  ;;  %v3767_v46 = vld [vmem:[%s2699_s15 + $0x28] sm:$0xff] }
 0x546   : > { %4093 = vst [vmem:[#allocation13_spill] sm:$0xff] %v3764_v52  ;;  %4094 = vst [vmem:[#allocation14_spill] sm:$0xff] %v3767_v46 }
 0x547   : > { %2602 = vtanh.f32 %v1519_v0  ;;  %1522 = vst [vmem:[#allocation3] sm:$0x3] %v1519_v0  ;;  %v3772_v0 = vld [vmem:[%s2699_s15 + $0x38] sm:$0xff] }
 0x548   : > { %4095 = vst [vmem:[#allocation15_spill] sm:$0xff] %v3772_v0 }
 0x554   : > { %v2603_v62 = vpop.eup %2602 }
 0x555   : > { %v1521_v60 = vmul.f32 %v2603_v62, %v2601_v45  ;;  %v3775_v45 = vld [vmem:[%s2699_s15 + $0x20] sm:$0xff]  ;;  %v3778_v62 = vld [vmem:[%s2699_s15 + $0x30] sm:$0xff] }
 0x556   : > { %4096 = vst [vmem:[#allocation16_spill] sm:$0xff] %v3775_v45  ;;  %4097 = vst [vmem:[#allocation17_spill] sm:$0xff] %v3778_v62 }
 0x557   : > { %1526 = vst [vmem:[%s1525_s24] sm:$0x3] %v1521_v60  ;;  %1523 = vst [vmem:[#allocation2] sm:$0x3] %v1521_v60  ;;  %v3783_v60 = vld [vmem:[%s2699_s15 + $0x8] sm:$0xff] }
 0x558   : > { %4098 = vst [vmem:[#allocation18_spill] sm:$0xff] %v3783_v60 }
 0x55e   : > { %v1532_v44 = vld [vmem:[#allocation2] sm:$0x3] }
 0x55f   : > { %1662 = vmatmul.mubr.f32.vlgmr.msra.gmra.mxu0 %v1532_v44  ;;  %1733 = vmatmul.mubr.f32.vlgmr.msra.gmra.mxu1 %v1532_v44  ;;  %v3786_v44 = vld [vmem:[%s2699_s15 + $0x18] sm:$0xff] }
 0x560   : > { %1933 = vmatprep.mubr.f32.mxu0 %v4082_v12  ;;  %2004 = vmatprep.mubr.f32.mxu1 %v4082_v12  ;;  %4099 = vst [vmem:[#allocation19_spill] sm:$0xff] %v3786_v44  ;;  %v3791_v12 = vld [vmem:[%s2699_s15] sm:$0xff] }
 0x561   : > { %1870 = vmatpush1.msra.mxu0 %v3555_v20  ;;  %1941 = vmatpush1.msra.mxu1 %v3558_v63  ;;  %4100 = vst [vmem:[#allocation20_spill] sm:$0xff] %v3791_v12 }
 0x562   : > { %1871 = vmatprep.subr.mxu0 %v3563_v43  ;;  %1942 = vmatprep.subr.mxu1 %v3566_v61 }
 0x563   : > { %1872 = vmatpush1.msra.mxu0 %v3571_v55  ;;  %1943 = vmatpush1.msra.mxu1 %v3574_v58 }
 0x564   : > { %1873 = vmatprep.subr.mxu0 %v3579_v56  ;;  %1944 = vmatprep.subr.mxu1 %v3582_v57 }
 0x565   : > { %1874 = vmatpush1.msra.mxu0 %v3587_v51  ;;  %1945 = vmatpush1.msra.mxu1 %v3590_v50 }
 0x566   : > { %1875 = vmatprep.subr.mxu0 %v3595_v2  ;;  %1946 = vmatprep.subr.mxu1 %v3598_v49 }
 0x567   : > { %1876 = vmatpush1.msra.mxu0 %v3603_v47  ;;  %1947 = vmatpush1.msra.mxu1 %v3606_v48 }
 0x568   : > { %1877 = vmatprep.subr.mxu0 %v3611_v53  ;;  %1948 = vmatprep.subr.mxu1 %v3614_v59 }
 0x569   : > { %1878 = vmatpush1.msra.mxu0 %v3619_v3  ;;  %1949 = vmatpush1.msra.mxu1 %v3622_v4 }
 0x56a   : > { %1879 = vmatprep.subr.mxu0 %v3627_v5  ;;  %1950 = vmatprep.subr.mxu1 %v3630_v6 }
 0x56b   : > { %1880 = vmatpush1.msra.mxu0 %v3635_v7  ;;  %1951 = vmatpush1.msra.mxu1 %v3638_v8 }
 0x56c   : > { %1881 = vmatprep.subr.mxu0 %v3643_v9  ;;  %1952 = vmatprep.subr.mxu1 %v3646_v10 }
 0x56d   : > { %1882 = vmatpush1.msra.mxu0 %v3651_v11  ;;  %1953 = vmatpush1.msra.mxu1 %v3654_v13 }
 0x56e   : > { %1883 = vmatprep.subr.mxu0 %v3659_v14  ;;  %1954 = vmatprep.subr.mxu1 %v3662_v15 }
 0x56f   : > { %1884 = vmatpush1.msra.mxu0 %v3667_v16  ;;  %1955 = vmatpush1.msra.mxu1 %v3670_v17 }
 0x570   : > { %1885 = vmatprep.subr.mxu0 %v3675_v18  ;;  %1956 = vmatprep.subr.mxu1 %v3678_v19 }
 0x571   : > { %1886 = vmatpush1.msra.mxu0 %v3683_v21  ;;  %1957 = vmatpush1.msra.mxu1 %v3686_v22 }
 0x572   : > { %1887 = vmatprep.subr.mxu0 %v3691_v23  ;;  %1958 = vmatprep.subr.mxu1 %v3694_v24 }
 0x573   : > { %1888 = vmatpush1.msra.mxu0 %v3699_v25  ;;  %1959 = vmatpush1.msra.mxu1 %v3702_v26 }
 0x574   : > { %1889 = vmatprep.subr.mxu0 %v3707_v27  ;;  %1960 = vmatprep.subr.mxu1 %v3710_v28 }
 0x575   : > { %1890 = vmatpush1.msra.mxu0 %v3715_v29  ;;  %1961 = vmatpush1.msra.mxu1 %v3718_v30 }
 0x576   : > { %1891 = vmatprep.subr.mxu0 %v3723_v31  ;;  %1962 = vmatprep.subr.mxu1 %v3726_v32 }
 0x577   : > { %1892 = vmatpush1.msra.mxu0 %v3731_v33  ;;  %1963 = vmatpush1.msra.mxu1 %v3734_v34 }
 0x578   : > { %1893 = vmatprep.subr.mxu0 %v3739_v35  ;;  %1964 = vmatprep.subr.mxu1 %v3742_v36 }
 0x579   : > { %1894 = vmatpush1.msra.mxu0 %v3745_v37  ;;  %1965 = vmatpush1.msra.mxu1 %v3750_v38 }
 0x57a   : > { %1895 = vmatprep.subr.mxu0 %v3753_v39  ;;  %1966 = vmatprep.subr.mxu1 %v3756_v54  ;;  %v3794_v54 = vld [vmem:[%s2699_s15 + $0x10] sm:$0xff]  ;;  %s3806_s15 = scalar_select %p166_p4, 5, 2 }
 0x57b   : > { %1896 = vmatpush1.msra.mxu0 %v3761_v41  ;;  %1967 = vmatpush1.msra.mxu1 %v3764_v52  ;;  %4101 = vst [vmem:[#allocation21_spill] sm:$0xff] %v3794_v54 }
 0x57c   : > { %1897 = vmatprep.subr.mxu0 %v3767_v46  ;;  %1968 = vmatprep.subr.mxu1 %v3772_v0  ;;  %s2511_s25 = sshll.u32 %s3806_s15, 3  ;;  %s2488_s28 = sshll.u32 %s3806_s15, 1 }
 0x57d   : > { %1898 = vmatpush1.msra.mxu0 %v3775_v45  ;;  %1969 = vmatpush1.msra.mxu1 %v3778_v62  ;;  %s1530_s27 = scalar_lea.vmem %s3034_s20, %s2511_s25  ;;  %s1797_s29 = scalar_lea.vmem %s3046_s26, %s2488_s28 }
 0x57e   : > { %1899 = vmatprep.subr.mxu0 %v3783_v60  ;;  %1970 = vmatprep.subr.mxu1 %v3786_v44  ;;  %v1531_v52 = vld [vmem:[%s1530_s27] sm:$0xff]  ;;  %s2341_s20 = scalar_lea.vmem %s3046_s26, %s2500_s10 }
 0x57f   : > { %1900 = vmatpush1.msra.mxu0 %v3791_v12  ;;  %1971 = vmatpush1.msra.mxu1 %v3794_v54 }
 0x580   : > { %2141 = vmatprep.subr.mxu0 %v3547_v42  ;;  %2212 = vmatprep.subr.mxu1 %v3550_v40 }
 0x61f   : > { %v1663_v0 = vpop.f32.mrf.mxu0  ;;  %v1734_v45 = vpop.f32.mrf.mxu1 }
 0x621   : > { %v1665_v62 = vpop.f32.mrf.mxu0  ;;  %v1736_v46 = vpop.f32.mrf.mxu1 }
 0x622   : > { %v1743_v60 = vcombine.low %v1663_v0, %v1665_v62  ;;  %v1744_v44 = vcombine.low %v1734_v45, %v1736_v46 }
 0x624   : > { %v1751_v12 = vrot.slane %v1743_v60, %v3037_v1  ;;  %v1758_v54 = vrot.slane %v1744_v44, %v3037_v1 }
 0x626   : > { %v1759_v42 = vcombine.low %v1751_v12, %v1758_v54 }
 0x628   : > { %v1761_v41 = vadd.f32 %v1759_v42, %v1531_v52 }
 0x62a   : > { %v2485_v40 = vmul.f32 -1.442695, %v1761_v41  ;;  %v1769_v39 = vrot.slane %v1761_v41, 2  ;;  %v1780_v37 = vrot.slane %v1761_v41, 6  ;;  %v1777_v34 = vrot.slane %v1761_v41, 4 }
 0x62c   : > { %2604 = vpow2.f32 %v2485_v40  ;;  %v2486_v38 = vmul.f32 -1.442695, %v1769_v39  ;;  %v2487_v36 = vmul.f32 -1.442695, %v1780_v37  ;;  %v1788_v39 = vld [vmem:[#allocation3] sm:$0x3] }
 0x62e   : > { %2606 = vpow2.f32 %v2486_v38 }
 0x62f   : > { %2608 = vpow2.f32 %v2487_v36 }
 0x639   : > { %v2605_v35 = vpop.eup %2604 }
 0x63a   : > { %v1765_v33 = vadd.f32 1.0, %v2605_v35 }
 0x63b   : > { %v2607_v0 = vpop.eup %2606 }
 0x63c   : > { %2610 = vrcp.f32 %v1765_v33  ;;  %v1774_v46 = vadd.f32 1.0, %v2607_v0  ;;  %v2609_v12 = vpop.eup %2608 }
 0x63d   : > { %2612 = vtanh.f32 %v1777_v34  ;;  %v1785_v62 = vadd.f32 1.0, %v2609_v12 }
 0x63e   : > { %2614 = vrcp.f32 %v1774_v46 }
 0x63f   : > { %2616 = vrcp.f32 %v1785_v62 }
 0x649   : > { %v2611_v54 = vpop.eup %2610 }
 0x64a   : > { %v2613_v52 = vpop.eup %2612 }
 0x64b   : > { %v2615_v45 = vpop.eup %2614  ;;  %v1790_v60 = vmul.f32 %v2613_v52, %v2611_v54 }
 0x64c   : > { %v1789_v38 = vmul.f32 %v2615_v45, %v1788_v39  ;;  %v2617_v35 = vpop.eup %2616 }
 0x64e   : > { %v1791_v37 = vadd.f32 %v1790_v60, %v1789_v38 }
 0x650   : > { %2618 = vtanh.f32 %v1791_v37  ;;  %1794 = vst [vmem:[#allocation3] sm:$0x3] %v1791_v37 }
 0x657   : > { %v2060_v44 = vld [vmem:[#allocation3] sm:$0x3] }
 0x65d   : > { %v2619_v33 = vpop.eup %2618 }
 0x65e   : > { %v1793_v36 = vmul.f32 %v2619_v33, %v2617_v35 }
 0x660   : > { %1798 = vst [vmem:[%s1797_s29] sm:$0x3] %v1793_v36  ;;  %1795 = vst [vmem:[#allocation2] sm:$0x3] %v1793_v36  ;;  %v2075_v36 = vld [vmem:[%s2074_s11] sm:$0xff] }
 0x667   : > { %v1804_v34 = vld [vmem:[#allocation2] sm:$0x3] }
 0x668   : > { %1934 = vmatmul.mubr.f32.vlgmr.msra.gmra.mxu0 %v1804_v34  ;;  %2005 = vmatmul.mubr.f32.vlgmr.msra.gmra.mxu1 %v1804_v34 }
 0x669   : > { %2142 = vmatpush1.msra.mxu0 %v3555_v20  ;;  %2213 = vmatpush1.msra.mxu1 %v3558_v63  ;;  %v4102_v20 = vld [vmem:[#allocation4_spill] sm:$0xff]  ;;  %v4103_v63 = vld [vmem:[#allocation5_spill] sm:$0xff] }
 0x66a   : > { %2143 = vmatprep.subr.mxu0 %v3563_v43  ;;  %2214 = vmatprep.subr.mxu1 %v3566_v61  ;;  %v4104_v43 = vld [vmem:[#allocation6_spill] sm:$0xff]  ;;  %v4105_v61 = vld [vmem:[#allocation7_spill] sm:$0xff] }
 0x66b   : > { %2144 = vmatpush1.msra.mxu0 %v3571_v55  ;;  %2215 = vmatpush1.msra.mxu1 %v3574_v58  ;;  %v4106_v55 = vld [vmem:[#allocation8_spill] sm:$0xff]  ;;  %v4107_v58 = vld [vmem:[#allocation9_spill] sm:$0xff] }
 0x66c   : > { %2145 = vmatprep.subr.mxu0 %v3579_v56  ;;  %2216 = vmatprep.subr.mxu1 %v3582_v57  ;;  %v4108_v56 = vld [vmem:[#allocation10_spill] sm:$0xff]  ;;  %v4109_v57 = vld [vmem:[#allocation11_spill] sm:$0xff] }
 0x66d   : > { %2146 = vmatpush1.msra.mxu0 %v3587_v51  ;;  %2217 = vmatpush1.msra.mxu1 %v3590_v50  ;;  %v4110_v51 = vld [vmem:[#allocation12_spill] sm:$0xff]  ;;  %v4111_v50 = vld [vmem:[#allocation13_spill] sm:$0xff] }
 0x66e   : > { %2147 = vmatprep.subr.mxu0 %v3595_v2  ;;  %2218 = vmatprep.subr.mxu1 %v3598_v49  ;;  %v4112_v2 = vld [vmem:[#allocation14_spill] sm:$0xff]  ;;  %v4113_v49 = vld [vmem:[#allocation15_spill] sm:$0xff] }
 0x66f   : > { %2148 = vmatpush1.msra.mxu0 %v3603_v47  ;;  %2219 = vmatpush1.msra.mxu1 %v3606_v48  ;;  %v4114_v47 = vld [vmem:[#allocation16_spill] sm:$0xff]  ;;  %v4115_v48 = vld [vmem:[#allocation17_spill] sm:$0xff] }
 0x670   : > { %2149 = vmatprep.subr.mxu0 %v3611_v53  ;;  %2220 = vmatprep.subr.mxu1 %v3614_v59  ;;  %v4116_v53 = vld [vmem:[#allocation18_spill] sm:$0xff]  ;;  %v4117_v59 = vld [vmem:[#allocation19_spill] sm:$0xff] }
 0x671   : > { %2150 = vmatpush1.msra.mxu0 %v3619_v3  ;;  %2221 = vmatpush1.msra.mxu1 %v3622_v4  ;;  %v4118_v3 = vld [vmem:[#allocation20_spill] sm:$0xff]  ;;  %v4119_v4 = vmov 0.0  }
 0x672   : > { %2151 = vmatprep.subr.mxu0 %v3627_v5  ;;  %2222 = vmatprep.subr.mxu1 %v3630_v6  ;;  %v4120_v5 = vld [vmem:[#allocation21_spill] sm:$0xff] }
 0x673   : > { %2152 = vmatpush1.msra.mxu0 %v3635_v7  ;;  %2223 = vmatpush1.msra.mxu1 %v3638_v8 }
 0x674   : > { %2153 = vmatprep.subr.mxu0 %v3643_v9  ;;  %2224 = vmatprep.subr.mxu1 %v3646_v10 }
 0x675   : > { %2154 = vmatpush1.msra.mxu0 %v3651_v11  ;;  %2225 = vmatpush1.msra.mxu1 %v3654_v13 }
 0x676   : > { %2155 = vmatprep.subr.mxu0 %v3659_v14  ;;  %2226 = vmatprep.subr.mxu1 %v3662_v15  ;;  %v1803_v15 = vld [vmem:[%s1802_s4] sm:$0xff] }
 0x677   : > { %2156 = vmatpush1.msra.mxu0 %v3667_v16  ;;  %2227 = vmatpush1.msra.mxu1 %v3670_v17 }
 0x678   : > { %2157 = vmatprep.subr.mxu0 %v3675_v18  ;;  %2228 = vmatprep.subr.mxu1 %v3678_v19 }
 0x679   : > { %2158 = vmatpush1.msra.mxu0 %v3683_v21  ;;  %2229 = vmatpush1.msra.mxu1 %v3686_v22 }
 0x67a   : > { %2159 = vmatprep.subr.mxu0 %v3691_v23  ;;  %2230 = vmatprep.subr.mxu1 %v3694_v24 }
 0x67b   : > { %2160 = vmatpush1.msra.mxu0 %v3699_v25  ;;  %2231 = vmatpush1.msra.mxu1 %v3702_v26 }
 0x67c   : > { %2161 = vmatprep.subr.mxu0 %v3707_v27  ;;  %2232 = vmatprep.subr.mxu1 %v3710_v28 }
 0x67d   : > { %2162 = vmatpush1.msra.mxu0 %v3715_v29  ;;  %2233 = vmatpush1.msra.mxu1 %v3718_v30 }
 0x67e   : > { %2163 = vmatprep.subr.mxu0 %v3723_v31  ;;  %2234 = vmatprep.subr.mxu1 %v3726_v32 }
 0x67f   : > { %2164 = vmatpush1.msra.mxu0 %v4102_v20  ;;  %2235 = vmatpush1.msra.mxu1 %v4103_v63 }
 0x680   : > { %2165 = vmatprep.subr.mxu0 %v4104_v43  ;;  %2236 = vmatprep.subr.mxu1 %v4105_v61 }
 0x681   : > { %2166 = vmatpush1.msra.mxu0 %v4106_v55  ;;  %2237 = vmatpush1.msra.mxu1 %v4107_v58 }
 0x682   : > { %2167 = vmatprep.subr.mxu0 %v4108_v56  ;;  %2238 = vmatprep.subr.mxu1 %v4109_v57 }
 0x683   : > { %2168 = vmatpush1.msra.mxu0 %v4110_v51  ;;  %2239 = vmatpush1.msra.mxu1 %v4111_v50 }
 0x684   : > { %2169 = vmatprep.subr.mxu0 %v4112_v2  ;;  %2240 = vmatprep.subr.mxu1 %v4113_v49 }
 0x685   : > { %2170 = vmatpush1.msra.mxu0 %v4114_v47  ;;  %2241 = vmatpush1.msra.mxu1 %v4115_v48 }
 0x686   : > { %2171 = vmatprep.subr.mxu0 %v4116_v53  ;;  %2242 = vmatprep.subr.mxu1 %v4117_v59 }
 0x687   : > { %2172 = vmatpush1.msra.mxu0 %v4118_v3  ;;  %2205 = vmatprep.mubr.f32.mxu0 %v4119_v4 }
 0x688   : > { %2243 = vmatpush1.msra.mxu1 %v4120_v5  ;;  %2276 = vmatprep.mubr.f32.mxu1 %v4119_v4 }
 0x728   : > { %v1935_v6 = vpop.f32.mrf.mxu0  ;;  %v2006_v7 = vpop.f32.mrf.mxu1 }
 0x72a   : > { %v1937_v8 = vpop.f32.mrf.mxu0  ;;  %v2008_v9 = vpop.f32.mrf.mxu1 }
 0x72b   : > { %v2015_v10 = vcombine.low %v1935_v6, %v1937_v8  ;;  %v2016_v11 = vcombine.low %v2006_v7, %v2008_v9 }
 0x72d   : > { %v2023_v13 = vrot.slane %v2015_v10, %v3037_v1  ;;  %v2030_v14 = vrot.slane %v2016_v11, %v3037_v1 }
 0x72f   : > { %v2031_v16 = vcombine.low %v2023_v13, %v2030_v14 }
 0x731   : > { %v2033_v17 = vadd.f32 %v2031_v16, %v1803_v15 }
 0x733   : > { %v2491_v18 = vmul.f32 -1.442695, %v2033_v17  ;;  %v2041_v19 = vrot.slane %v2033_v17, 2  ;;  %v2052_v22 = vrot.slane %v2033_v17, 6  ;;  %v2049_v25 = vrot.slane %v2033_v17, 4 }
 0x735   : > { %2620 = vpow2.f32 %v2491_v18  ;;  %v2492_v21 = vmul.f32 -1.442695, %v2041_v19  ;;  %v2493_v23 = vmul.f32 -1.442695, %v2052_v22 }
 0x737   : > { %2622 = vpow2.f32 %v2492_v21 }
 0x738   : > { %2624 = vpow2.f32 %v2493_v23 }
 0x742   : > { %v2621_v24 = vpop.eup %2620 }
 0x743   : > { %v2037_v26 = vadd.f32 1.0, %v2621_v24 }
 0x744   : > { %v2623_v27 = vpop.eup %2622 }
 0x745   : > { %2626 = vrcp.f32 %v2037_v26  ;;  %v2046_v28 = vadd.f32 1.0, %v2623_v27  ;;  %v2625_v29 = vpop.eup %2624 }
 0x746   : > { %2628 = vtanh.f32 %v2049_v25  ;;  %v2057_v41 = vadd.f32 1.0, %v2625_v29 }
 0x747   : > { %2630 = vrcp.f32 %v2046_v28 }
 0x748   : > { %2632 = vrcp.f32 %v2057_v41 }
 0x752   : > { %v2627_v30 = vpop.eup %2626 }
 0x753   : > { %v2629_v31 = vpop.eup %2628 }
 0x754   : > { %v2631_v32 = vpop.eup %2630  ;;  %v2062_v40 = vmul.f32 %v2629_v31, %v2627_v30 }
 0x755   : > { %v2061_v42 = vmul.f32 %v2631_v32, %v2060_v44  ;;  %v2633_v46 = vpop.eup %2632 }
 0x757   : > { %v2063_v0 = vadd.f32 %v2062_v40, %v2061_v42 }
 0x759   : > { %2634 = vtanh.f32 %v2063_v0  ;;  %2066 = vst [vmem:[#allocation3] sm:$0x3] %v2063_v0 }
 0x760   : > { %v2332_v59 = vld [vmem:[#allocation3] sm:$0x3] }
 0x766   : > { %v2635_v12 = vpop.eup %2634 }
 0x767   : > { %v2065_v54 = vmul.f32 %v2635_v12, %v2633_v46 }
 0x769   : > { %2070 = vst [vmem:[%s2069_s6] sm:$0x3] %v2065_v54  ;;  %2067 = vst [vmem:[#allocation2] sm:$0x3] %v2065_v54 }
 0x770   : > { %v2076_v52 = vld [vmem:[#allocation2] sm:$0x3] }
 0x771   : > { %2206 = vmatmul.mubr.f32.vlgmr.msra.gmra.mxu0 %v2076_v52  ;;  %2277 = vmatmul.mubr.f32.vlgmr.msra.gmra.mxu1 %v2076_v52 }
 0x831   : > { %v2207_v45 = vpop.f32.mrf.mxu0  ;;  %v2278_v62 = vpop.f32.mrf.mxu1 }
 0x833   : > { %v2209_v39 = vpop.f32.mrf.mxu0  ;;  %v2280_v38 = vpop.f32.mrf.mxu1 }
 0x834   : > { %v2287_v60 = vcombine.low %v2207_v45, %v2209_v39  ;;  %v2288_v37 = vcombine.low %v2278_v62, %v2280_v38 }
 0x836   : > { %v2295_v35 = vrot.slane %v2287_v60, %v3037_v1  ;;  %v2302_v33 = vrot.slane %v2288_v37, %v3037_v1 }
 0x838   : > { %v2303_v34 = vcombine.low %v2295_v35, %v2302_v33 }
 0x83a   : > { %v2305_v20 = vadd.f32 %v2303_v34, %v2075_v36 }
 0x83c   : > { %v2497_v63 = vmul.f32 -1.442695, %v2305_v20  ;;  %v2313_v43 = vrot.slane %v2305_v20, 2  ;;  %v2324_v55 = vrot.slane %v2305_v20, 6  ;;  %v2321_v57 = vrot.slane %v2305_v20, 4 }
 0x83e   : > { %2636 = vpow2.f32 %v2497_v63  ;;  %v2498_v61 = vmul.f32 -1.442695, %v2313_v43  ;;  %v2499_v58 = vmul.f32 -1.442695, %v2324_v55 }
 0x840   : > { %2638 = vpow2.f32 %v2498_v61 }
 0x841   : > { %2640 = vpow2.f32 %v2499_v58 }
 0x84b   : > { %v2637_v56 = vpop.eup %2636 }
 0x84c   : > { %v2309_v51 = vadd.f32 1.0, %v2637_v56 }
 0x84d   : > { %v2639_v50 = vpop.eup %2638 }
 0x84e   : > { %2642 = vrcp.f32 %v2309_v51  ;;  %v2318_v2 = vadd.f32 1.0, %v2639_v50  ;;  %v2641_v1 = vpop.eup %2640 }
 0x84f   : > { %2644 = vtanh.f32 %v2321_v57  ;;  %v2329_v53 = vadd.f32 1.0, %v2641_v1 }
 0x850   : > { %2646 = vrcp.f32 %v2318_v2 }
 0x851   : > { %2648 = vrcp.f32 %v2329_v53 }
 0x85b   : > { %v2643_v49 = vpop.eup %2642 }
 0x85c   : > { %v2645_v47 = vpop.eup %2644 }
 0x85d   : > { %v2647_v48 = vpop.eup %2646  ;;  %v2334_v4 = vmul.f32 %v2645_v47, %v2643_v49 }
 0x85e   : > { %v2333_v3 = vmul.f32 %v2647_v48, %v2332_v59  ;;  %v2649_v6 = vpop.eup %2648 }
 0x860   : > { %v2335_v5 = vadd.f32 %v2334_v4, %v2333_v3 }
 0x862   : > { %2650 = vtanh.f32 %v2335_v5  ;;  %2338 = vst [vmem:[#allocation3] sm:$0x3] %v2335_v5 }
 0x86f   : > { %v2651_v7 = vpop.eup %2650 }
 0x870   : > { %v2337_v8 = vmul.f32 %v2651_v7, %v2649_v6 }
 0x872   : > { %2339 = vst [vmem:[#allocation2] sm:$0x3] %v2337_v8  ;;  %2342 = vst [vmem:[%s2341_s20] sm:$0x3] %v2337_v8 }
 0x873 PF: > { %s12_s9 = sadd.s32 1, %s2658_s9  }
 0x874   : > { %p9_p5 = scmp.ge.s32.totalorder %s12_s9, 4  }
 0x876   :  { %11 = sbr.rel (!%p9_p5) target bundleno = 1 (0x1), region = 77 }

</bundles_post_ra>
